<compile_context>
chip_gen: v7x
topology: tpu7x:2x2x1
jax: 0.10.0
libtpu: 0.0.40
codegen_flags: <defaults>
</compile_context>

<pallas_src>
import functools

import jax
import jax.numpy as jnp
from jax.experimental import pallas as pl
from jax.experimental.pallas import tpu as pltpu


# ----------------------------- chip-aware config -----------------------------

def _chip_config():
    """Per-generation tiling / VMEM parameters."""
    kind = ""
    try:
        kind = (getattr(jax.devices()[0], "device_kind", "") or "").lower()
    except Exception:
        pass
    is_v7 = ("v7" in kind) or ("7x" in kind)
    is_v6 = "v6" in kind
    old_gen = (not is_v7) and (not is_v6) and any(
        t in kind for t in ("v2", "v3", "v4", "v5"))

    vmem_phys = (64 << 20) if is_v7 else (128 << 20)
    try:  # prefer the runtime-reported per-core VMEM capacity when available
        cap = getattr(pltpu.get_tpu_info(), "vmem_capacity_bytes", None)
        if cap:
            vmem_phys = int(cap)
    except Exception:
        pass

    return dict(
        # leave headroom for compiler scratch / pipeline buffers: never hand
        # the compiler the full physical VMEM (critical on v7x's 64 MiB).
        vmem_limit=int(vmem_phys * 0.85),
        multi_core=is_v7,                     # v7x: 2 TensorCores per chip
        tile_mult=128 if old_gen else 256,    # MXU output tile width
        tk_target=512 if (is_v7 or old_gen) else 1024,
        nq_target=512 if is_v7 else 1024,
        fuse_lsum=not old_gen,                # MXU row-sum; v5e is MXU-bound
    )


def _pick_tile(n, target, mult):
    """Tile size: whole extent if small, else a fixed multiple of `mult`.
    A ragged last tile is handled in-kernel with a smaller static slice."""
    if n <= target:
        return n
    return max(mult, (target // mult) * mult)


def _block_vmem_bytes(bb, N, C, nq, tk, fuse_lsum):
    """Rough per-grid-step VMEM live set for a (bb, N, C) batch block."""
    f32, bf16 = 4, 2
    ca = C + 1 if fuse_lsum else C
    by = 2 * bb * N * C * f32           # input block (double-buffered)
    by += 2 * bb * N * C * f32          # output block (double-buffered)
    by += bb * N * C * bf16             # hn (bf16)
    by += bb * N * (2 * C + ca) * bf16  # q, k^T, v
    by += bb * nq * ca * f32            # online-softmax accumulator
    by += 2 * bb * nq * tk * f32        # s and p
    by += bb * nq * C * f32             # per-q-tile output / projection temp
    return by


def _const_vmem_bytes(C, G, fuse_lsum):
    ca = C + 1 if fuse_lsum else C
    per = (3 * C * C + C * ca) * 2 + 2 * C * G * 4 + (5 * C + ca + 2 * G) * 4
    return 2 * per                      # worst case: double-buffered


def _pick_bb(b, N, C, nq, tk, fuse_lsum, vmem_budget, multi_core):
    """Batch elements per grid step, from the real VMEM expansion factor."""
    cands = []
    for d in range(1, b + 1):
        if b % d:
            continue
        steps = b // d
        if multi_core and b >= 2 and steps < 2:
            continue                    # keep both v7x TensorCores busy
        if _block_vmem_bytes(d, N, C, nq, tk, fuse_lsum) > vmem_budget:
            continue
        cands.append(d)
    if not cands:
        return 1
    if multi_core:
        even = [d for d in cands if (b // d) % 2 == 0]
        if even:
            return max(even)
    return max(cands)


# --------------------------------- kernel ------------------------------------

def _attn_block_kernel(x_ref, gms_ref, gmt_ref, gamma_ref, beta_ref,
                       wq_ref, bq_ref, wk_ref, bk_ref, wv_ref, bv_ref,
                       wp_ref, bp_ref, o_ref, *, nq, tk, fuse_lsum):
    f32 = jnp.float32
    bf16 = jnp.bfloat16
    bb, N, C = x_ref.shape

    # ---- GroupNorm (eps=1e-6, affine) ---------------------------------------
    # Stats via one-hot matmuls; the two (bb, C) sums are stacked on sublanes
    # so there is one (2bb,C)@(C,G) and one (2bb,G)@(G,C) matmul (v5e review).
    # Single-pass E[x^2]-E[x]^2 in f32 (adequate for post-conv activations).
    xin = x_ref[...].astype(f32)
    s12 = jnp.concatenate([jnp.sum(xin, axis=1), jnp.sum(xin * xin, axis=1)],
                          axis=0)                                    # (2bb, C)
    g12 = jnp.dot(s12, gms_ref[...], preferred_element_type=f32)     # (2bb, G)
    mean_g = g12[:bb]
    var_g = g12[bb:] - mean_g * mean_g
    inv_g = jax.lax.rsqrt(var_g + f32(1e-6))
    c12 = jnp.dot(jnp.concatenate([mean_g, inv_g], axis=0), gmt_ref[...],
                  preferred_element_type=f32)                        # (2bb, C)
    hn = ((xin - c12[:bb][:, None, :]) * c12[bb:][:, None, :]
          * gamma_ref[...] + beta_ref[...]).astype(bf16)             # (bb,N,C)
    # `xin` is not referenced below; the residual re-reads x_ref per q tile so
    # no f32 copy of the input stays live across the attention loop.

    # ---- q/k/v: three separate matmuls, cast to bf16 immediately ------------
    # (softmax scale pre-folded into wq/bq; the ones column that makes the MXU
    #  emit the softmax row-sum is pre-folded into wv/bv on v6e/v7x).
    def proj(w_ref, b_ref):
        y = jax.lax.dot_general(hn, w_ref[...], (((2,), (0,)), ((), ())),
                                preferred_element_type=f32)
        return (y + b_ref[...]).astype(bf16)

    q = proj(wq_ref, bq_ref)                          # (bb, N, C)
    kT = jnp.swapaxes(proj(wk_ref, bk_ref), 1, 2)     # (bb, C, N): 1 transpose
    v = proj(wv_ref, bv_ref)                          # (bb, N, C[+1])
    ca = v.shape[-1]

    # ---- query-tiled x key-tiled online-softmax attention -------------------
    q0 = 0
    while q0 < N:                                     # static q-tile loop
        nq_t = min(nq, N - q0)
        q_t = q[:, q0:q0 + nq_t, :]
        m_i = jnp.full((bb, nq_t, 1), -jnp.inf, f32)
        l_i = jnp.zeros((bb, nq_t, 1), f32)
        acc = jnp.zeros((bb, nq_t, ca), f32)

        k0 = 0
        while k0 < N:                                 # static key-tile loop
            tk_t = min(tk, N - k0)
            k_t = kT[:, :, k0:k0 + tk_t]              # (bb, C, tk_t)
            v_t = v[:, k0:k0 + tk_t, :]               # (bb, tk_t, ca)
            s = jax.lax.dot_general(q_t, k_t, (((2,), (1,)), ((0,), (0,))),
                                    preferred_element_type=f32)
            m_new = jnp.maximum(m_i, jnp.max(s, axis=-1, keepdims=True))
            alpha = jnp.exp(m_i - m_new)
            p = jnp.exp(s - m_new)
            if not fuse_lsum:
                l_i = alpha * l_i + jnp.sum(p, axis=-1, keepdims=True)
            acc = alpha * acc + jax.lax.dot_general(
                p.astype(bf16), v_t, (((2,), (1,)), ((0,), (0,))),
                preferred_element_type=f32)
            m_i = m_new
            k0 += tk_t

        if fuse_lsum:
            out_t, l_i = acc[..., :C], acc[..., C:]   # row-sum came off the MXU
        else:
            out_t = acc
        out_t = out_t * pl.reciprocal(l_i, approx=False)

        # ---- output projection + residual for this q tile -------------------
        y_t = jax.lax.dot_general(out_t.astype(bf16), wp_ref[...],
                                  (((2,), (0,)), ((), ())),
                                  preferred_element_type=f32) + bp_ref[...]
        o_ref[:, q0:q0 + nq_t, :] = (
            x_ref[:, q0:q0 + nq_t, :].astype(f32) + y_t).astype(o_ref.dtype)
        q0 += nq_t


# -------------------------------- wrapper ------------------------------------

def attn_block_pallas(x, params, num_groups=32):
    """x: (B, T, C, H, W) float32 -> same shape; matches AttnBlock.forward."""
    B, T, C, H, W = x.shape
    b = B * T
    N = H * W
    G = num_groups
    assert C % G == 0
    cg = C // G

    cfg = _chip_config()
    nq = _pick_tile(N, cfg["nq_target"], cfg["tile_mult"])
    tk = _pick_tile(N, cfg["tk_target"], cfg["tile_mult"])
    fuse_lsum = cfg["fuse_lsum"]

    # NCHW -> (b, N, C) token-major layout.
    # TODO(synk): fold the NCHW<->token-major transposes into the kernel (read
    # (bb, C, N) blocks, transpose on the XLU) to save two HBM round trips (v5e).
    # TODO(synk): for small C (e.g. 32) pad channels to a 128-lane multiple or
    # pack batch along lanes for lane-dense MXU / store utilization.
    xr = x.reshape(b, C, N).transpose(0, 2, 1)

    f32, bf16 = jnp.float32, jnp.bfloat16
    scale = jnp.float32(C) ** -0.5
    wq = (params["wq"] * scale).astype(bf16)
    bq = (params["bq"] * scale).astype(f32)
    wk = params["wk"].astype(bf16)
    bk = params["bk"].astype(f32)
    wv, bv = params["wv"], params["bv"]
    if fuse_lsum:   # v -> [V | 1]: P @ [V|1] yields the softmax row-sum lane
        wv = jnp.concatenate([wv, jnp.zeros((C, 1), f32)], axis=1)
        bv = jnp.concatenate([bv, jnp.ones((1, 1), f32)], axis=1)
    wv = wv.astype(bf16)
    bv = bv.astype(f32)
    wp = params["wp"].astype(bf16)
    bp = params["bp"].astype(f32)
    ca = C + 1 if fuse_lsum else C

    # One-hot group membership, pre-scaled by 1/(N*cg); transpose precomputed.
    gmap = (jnp.arange(C)[:, None] // cg == jnp.arange(G)[None, :]).astype(f32)
    gms = gmap / jnp.float32(N * cg)                  # (C, G)
    gmt = gmap.T                                      # (G, C)

    bb = _pick_bb(b, N, C, nq, tk, fuse_lsum,
                  cfg["vmem_limit"] - _const_vmem_bytes(C, G, fuse_lsum),
                  cfg["multi_core"])

    kernel = functools.partial(_attn_block_kernel, nq=nq, tk=tk,
                               fuse_lsum=fuse_lsum)

    def build(single_buffer_consts):
        def cspec(shape):
            rank = len(shape)
            idx = lambda i: (0,) * rank
            if single_buffer_consts and hasattr(pl, "Buffered"):
                # Constant operands never change block index: single-buffer.
                return pl.BlockSpec(shape, idx, pipeline_mode=pl.Buffered(1))
            return pl.BlockSpec(shape, idx)

        return pl.pallas_call(
            kernel,
            out_shape=jax.ShapeDtypeStruct((b, N, C), x.dtype),
            grid_spec=pltpu.PrefetchScalarGridSpec(
                num_scalar_prefetch=0,
                grid=(b // bb,),
                in_specs=[
                    pl.BlockSpec((bb, N, C), lambda i: (i, 0, 0)),   # x
                    cspec((C, G)), cspec((G, C)),                    # group maps
                    cspec((1, C)), cspec((1, C)),                    # gamma, beta
                    cspec((C, C)), cspec((1, C)),                    # wq, bq
                    cspec((C, C)), cspec((1, C)),                    # wk, bk
                    cspec((C, ca)), cspec((1, ca)),                  # wv, bv
                    cspec((C, C)), cspec((1, C)),                    # wp, bp
                ],
                out_specs=pl.BlockSpec((bb, N, C), lambda i: (i, 0, 0)),
            ),
            compiler_params=pltpu.CompilerParams(
                dimension_semantics=("parallel",),
                vmem_limit_bytes=cfg["vmem_limit"],
            ),
        )

    args = (xr, gms, gmt, params["gamma"], params["beta"],
            wq, bq, wk, bk, wv, bv, wp, bp)
    try:
        out = build(True)(*args)
    except Exception:
        # pl.Buffered(1) single-buffering unsupported on this build: fall back
        # to default double-buffered constant operands.
        out = build(False)(*args)

    # (b, N, C) -> (B, T, C, H, W)
    return out.transpose(0, 2, 1).reshape(B, T, C, H, W)


# ----------------------------- reference & test -------------------------------

def attn_block_reference(x, params, num_groups=32):
    """Pure-JAX f32 reference mirroring the PyTorch forward pass."""
    B, T, C, H, W = x.shape
    b, N, G = B * T, H * W, num_groups
    cg = C // G
    h = x.reshape(b, C, N).transpose(0, 2, 1)                    # (b, N, C)
    hg = h.reshape(b, N, G, cg)
    mean = hg.mean(axis=(1, 3), keepdims=True)
    var = hg.var(axis=(1, 3), keepdims=True)
    hn = ((hg - mean) / jnp.sqrt(var + 1e-6)).reshape(b, N, C)
    hn = hn * params["gamma"] + params["beta"]
    q = hn @ params["wq"] + params["bq"]
    k = hn @ params["wk"] + params["bk"]
    v = hn @ params["wv"] + params["bv"]
    s = jnp.einsum("bnc,bmc->bnm", q, k) * (C ** -0.5)
    attn = jax.nn.softmax(s, axis=-1)
    out = jnp.einsum("bnm,bmc->bnc", attn, v)
    y = out @ params["wp"] + params["bp"]
    return x + y.transpose(0, 2, 1).reshape(B, T, C, H, W)


def init_params(key, C):
    ks = jax.random.split(key, 8)
    mk_w = lambda k: (jax.random.normal(k, (C, C), jnp.float32) * 0.1)
    mk_b = lambda k: (jax.random.normal(k, (1, C), jnp.float32) * 0.01)
    return {
        "gamma": jnp.ones((1, C), jnp.float32),   # torch GroupNorm affine init
        "beta": jnp.zeros((1, C), jnp.float32),
        "wq": mk_w(ks[0]), "bq": mk_b(ks[1]),
        "wk": mk_w(ks[2]), "bk": mk_b(ks[3]),
        "wv": mk_w(ks[4]), "bv": mk_b(ks[5]),
        "wp": mk_w(ks[6]), "bp": mk_b(ks[7]),
    }


if __name__ == "__main__":
    B, T, C, H, W = 2, 2, 32, 8, 8          # GroupNorm(32) needs C % 32 == 0
    key = jax.random.PRNGKey(0)
    kx, kp = jax.random.split(key)
    x = jax.random.normal(kx, (B, T, C, H, W), jnp.float32)
    params = init_params(kp, C)

    y = attn_block_pallas(x, params, num_groups=32)
    y = jax.block_until_ready(y)

    y_ref = attn_block_reference(x, params, num_groups=32)
    assert y.shape == (B, T, C, H, W)
    # bf16 MXU operands -> compare against f32 reference with loose tolerance.
    max_err = float(jnp.max(jnp.abs(y - y_ref)))
    assert jnp.allclose(y, y_ref, rtol=2e-2, atol=2e-2), max_err

    print("KERNEL_OK")
</pallas_src>

<mosaic_0001>
module attributes {stable_mosaic.version = 11 : i64} {
  func.func @_attn_block_kernel(%arg0: i32, %arg1: memref<4x64x32xf32, #tpu.memory_space<vmem>>, %arg2: memref<32x32xf32, #tpu.memory_space<vmem>>, %arg3: memref<32x32xf32, #tpu.memory_space<vmem>>, %arg4: memref<1x32xf32, #tpu.memory_space<vmem>>, %arg5: memref<1x32xf32, #tpu.memory_space<vmem>>, %arg6: memref<32x32xbf16, #tpu.memory_space<vmem>>, %arg7: memref<1x32xf32, #tpu.memory_space<vmem>>, %arg8: memref<32x32xbf16, #tpu.memory_space<vmem>>, %arg9: memref<1x32xf32, #tpu.memory_space<vmem>>, %arg10: memref<32x33xbf16, #tpu.memory_space<vmem>>, %arg11: memref<1x33xf32, #tpu.memory_space<vmem>>, %arg12: memref<32x32xbf16, #tpu.memory_space<vmem>>, %arg13: memref<1x32xf32, #tpu.memory_space<vmem>>, %arg14: memref<4x64x32xf32, #tpu.memory_space<vmem>>) attributes {dimension_semantics = [#tpu.dimension_semantics<parallel>], iteration_bounds = array<i64: 1>, scalar_prefetch = 0 : i64, scratch_operands = 0 : i64, tpu.core_type = #tpu.core_type<tc>, window_params = [{transform_indices = @transform_0, window_bounds = array<i64: 4, 64, 32>}, {pipeline_mode = #tpu.pipeline_mode<synchronous>, transform_indices = @transform_1, window_bounds = array<i64: 32, 32>}, {pipeline_mode = #tpu.pipeline_mode<synchronous>, transform_indices = @transform_2, window_bounds = array<i64: 32, 32>}, {pipeline_mode = #tpu.pipeline_mode<synchronous>, transform_indices = @transform_3, window_bounds = array<i64: 1, 32>}, {pipeline_mode = #tpu.pipeline_mode<synchronous>, transform_indices = @transform_4, window_bounds = array<i64: 1, 32>}, {pipeline_mode = #tpu.pipeline_mode<synchronous>, transform_indices = @transform_5, window_bounds = array<i64: 32, 32>}, {pipeline_mode = #tpu.pipeline_mode<synchronous>, transform_indices = @transform_6, window_bounds = array<i64: 1, 32>}, {pipeline_mode = #tpu.pipeline_mode<synchronous>, transform_indices = @transform_7, window_bounds = array<i64: 32, 32>}, {pipeline_mode = #tpu.pipeline_mode<synchronous>, transform_indices = @transform_8, window_bounds = array<i64: 1, 32>}, {pipeline_mode = #tpu.pipeline_mode<synchronous>, transform_indices = @transform_9, window_bounds = array<i64: 32, 33>}, {pipeline_mode = #tpu.pipeline_mode<synchronous>, transform_indices = @transform_10, window_bounds = array<i64: 1, 33>}, {pipeline_mode = #tpu.pipeline_mode<synchronous>, transform_indices = @transform_11, window_bounds = array<i64: 32, 32>}, {pipeline_mode = #tpu.pipeline_mode<synchronous>, transform_indices = @transform_12, window_bounds = array<i64: 1, 32>}, {transform_indices = @transform_13, window_bounds = array<i64: 4, 64, 32>}]} {
    %c0 = arith.constant 0 : index
    %c0_0 = arith.constant 0 : index
    %c0_1 = arith.constant 0 : index
    %0 = vector.load %arg1[%c0, %c0_0, %c0_1] : memref<4x64x32xf32, #tpu.memory_space<vmem>>, vector<4x64x32xf32>
    %cst = arith.constant dense<0.000000e+00> : vector<4x32xf32>
    %1 = vector.multi_reduction <add>, %0, %cst [1] : vector<4x64x32xf32> to vector<4x32xf32>
    %2 = arith.mulf %0, %0 : vector<4x64x32xf32>
    %cst_2 = arith.constant dense<0.000000e+00> : vector<4x32xf32>
    %3 = vector.multi_reduction <add>, %2, %cst_2 [1] : vector<4x64x32xf32> to vector<4x32xf32>
    %4 = tpu.concatenate %1, %3 in 0 : vector<4x32xf32>, vector<4x32xf32> -> vector<8x32xf32>
    %c0_3 = arith.constant 0 : index
    %c0_4 = arith.constant 0 : index
    %5 = vector.load %arg2[%c0_3, %c0_4] : memref<32x32xf32, #tpu.memory_space<vmem>>, vector<32x32xf32>
    %cst_5 = arith.constant dense<0.000000e+00> : vector<8x32xf32>
    %6 = tpu.matmul %4, %5, %cst_5 {dimension_numbers = #tpu.dot_dimension_numbers<[1], [0], [0], [1], [0, 0, 1, 1], [], []>} : vector<8x32xf32>, vector<32x32xf32>, vector<8x32xf32> -> vector<8x32xf32>
    %7 = vector.extract_strided_slice %6 {offsets = [0, 0], sizes = [4, 32], strides = [1, 1]} : vector<8x32xf32> to vector<4x32xf32>
    %8 = vector.extract_strided_slice %6 {offsets = [4, 0], sizes = [4, 32], strides = [1, 1]} : vector<8x32xf32> to vector<4x32xf32>
    %9 = arith.mulf %7, %7 : vector<4x32xf32>
    %10 = arith.subf %8, %9 : vector<4x32xf32>
    %cst_6 = arith.constant 9.99999997E-7 : f32
    %11 = vector.broadcast %cst_6 : f32 to vector<4x32xf32>
    %12 = arith.addf %10, %11 : vector<4x32xf32>
    %13 = math.rsqrt %12 : vector<4x32xf32>
    %14 = tpu.concatenate %7, %13 in 0 : vector<4x32xf32>, vector<4x32xf32> -> vector<8x32xf32>
    %c0_7 = arith.constant 0 : index
    %c0_8 = arith.constant 0 : index
    %15 = vector.load %arg3[%c0_7, %c0_8] : memref<32x32xf32, #tpu.memory_space<vmem>>, vector<32x32xf32>
    %cst_9 = arith.constant dense<0.000000e+00> : vector<8x32xf32>
    %16 = tpu.matmul %14, %15, %cst_9 {dimension_numbers = #tpu.dot_dimension_numbers<[1], [0], [0], [1], [0, 0, 1, 1], [], []>} : vector<8x32xf32>, vector<32x32xf32>, vector<8x32xf32> -> vector<8x32xf32>
    %17 = vector.extract_strided_slice %16 {offsets = [0, 0], sizes = [4, 32], strides = [1, 1]} : vector<8x32xf32> to vector<4x32xf32>
    %18 = vector.shape_cast %17 : vector<4x32xf32> to vector<4x1x32xf32>
    %19 = vector.broadcast %18 : vector<4x1x32xf32> to vector<4x64x32xf32>
    %20 = arith.subf %0, %19 : vector<4x64x32xf32>
    %21 = vector.extract_strided_slice %16 {offsets = [4, 0], sizes = [4, 32], strides = [1, 1]} : vector<8x32xf32> to vector<4x32xf32>
    %22 = vector.shape_cast %21 : vector<4x32xf32> to vector<4x1x32xf32>
    %23 = vector.broadcast %22 : vector<4x1x32xf32> to vector<4x64x32xf32>
    %24 = arith.mulf %20, %23 : vector<4x64x32xf32>
    %c0_10 = arith.constant 0 : index
    %c0_11 = arith.constant 0 : index
    %25 = vector.load %arg4[%c0_10, %c0_11] : memref<1x32xf32, #tpu.memory_space<vmem>>, vector<1x32xf32>
    %26 = vector.shape_cast %25 : vector<1x32xf32> to vector<1x1x32xf32>
    %27 = vector.broadcast %26 : vector<1x1x32xf32> to vector<4x64x32xf32>
    %28 = arith.mulf %24, %27 : vector<4x64x32xf32>
    %c0_12 = arith.constant 0 : index
    %c0_13 = arith.constant 0 : index
    %29 = vector.load %arg5[%c0_12, %c0_13] : memref<1x32xf32, #tpu.memory_space<vmem>>, vector<1x32xf32>
    %30 = vector.shape_cast %29 : vector<1x32xf32> to vector<1x1x32xf32>
    %31 = vector.broadcast %30 : vector<1x1x32xf32> to vector<4x64x32xf32>
    %32 = arith.addf %28, %31 : vector<4x64x32xf32>
    %33 = arith.truncf %32 : vector<4x64x32xf32> to vector<4x64x32xbf16>
    %c0_14 = arith.constant 0 : index
    %c0_15 = arith.constant 0 : index
    %34 = vector.load %arg6[%c0_14, %c0_15] : memref<32x32xbf16, #tpu.memory_space<vmem>>, vector<32x32xbf16>
    %cst_16 = arith.constant dense<0.000000e+00> : vector<4x64x32xf32>
    %35 = tpu.matmul %33, %34, %cst_16 {dimension_numbers = #tpu.dot_dimension_numbers<[2], [0], [0, 1], [1], [0, 0, 0, 1, 1, 1], [], []>} : vector<4x64x32xbf16>, vector<32x32xbf16>, vector<4x64x32xf32> -> vector<4x64x32xf32>
    %c0_17 = arith.constant 0 : index
    %c0_18 = arith.constant 0 : index
    %36 = vector.load %arg7[%c0_17, %c0_18] : memref<1x32xf32, #tpu.memory_space<vmem>>, vector<1x32xf32>
    %37 = vector.shape_cast %36 : vector<1x32xf32> to vector<1x1x32xf32>
    %38 = vector.broadcast %37 : vector<1x1x32xf32> to vector<4x64x32xf32>
    %39 = arith.addf %35, %38 : vector<4x64x32xf32>
    %40 = arith.truncf %39 : vector<4x64x32xf32> to vector<4x64x32xbf16>
    %c0_19 = arith.constant 0 : index
    %c0_20 = arith.constant 0 : index
    %41 = vector.load %arg8[%c0_19, %c0_20] : memref<32x32xbf16, #tpu.memory_space<vmem>>, vector<32x32xbf16>
    %cst_21 = arith.constant dense<0.000000e+00> : vector<4x64x32xf32>
    %42 = tpu.matmul %33, %41, %cst_21 {dimension_numbers = #tpu.dot_dimension_numbers<[2], [0], [0, 1], [1], [0, 0, 0, 1, 1, 1], [], []>} : vector<4x64x32xbf16>, vector<32x32xbf16>, vector<4x64x32xf32> -> vector<4x64x32xf32>
    %c0_22 = arith.constant 0 : index
    %c0_23 = arith.constant 0 : index
    %43 = vector.load %arg9[%c0_22, %c0_23] : memref<1x32xf32, #tpu.memory_space<vmem>>, vector<1x32xf32>
    %44 = vector.shape_cast %43 : vector<1x32xf32> to vector<1x1x32xf32>
    %45 = vector.broadcast %44 : vector<1x1x32xf32> to vector<4x64x32xf32>
    %46 = arith.addf %42, %45 : vector<4x64x32xf32>
    %47 = arith.truncf %46 : vector<4x64x32xf32> to vector<4x64x32xbf16>
    %48 = tpu.transpose %47, [0, 2, 1] : vector<4x64x32xbf16> -> vector<4x32x64xbf16>
    %c0_24 = arith.constant 0 : index
    %c0_25 = arith.constant 0 : index
    %49 = vector.load %arg10[%c0_24, %c0_25] : memref<32x33xbf16, #tpu.memory_space<vmem>>, vector<32x33xbf16>
    %cst_26 = arith.constant dense<0.000000e+00> : vector<4x64x33xf32>
    %50 = tpu.matmul %33, %49, %cst_26 {dimension_numbers = #tpu.dot_dimension_numbers<[2], [0], [0, 1], [1], [0, 0, 0, 1, 1, 1], [], []>} : vector<4x64x32xbf16>, vector<32x33xbf16>, vector<4x64x33xf32> -> vector<4x64x33xf32>
    %c0_27 = arith.constant 0 : index
    %c0_28 = arith.constant 0 : index
    %51 = vector.load %arg11[%c0_27, %c0_28] : memref<1x33xf32, #tpu.memory_space<vmem>>, vector<1x33xf32>
    %52 = vector.shape_cast %51 : vector<1x33xf32> to vector<1x1x33xf32>
    %53 = vector.broadcast %52 : vector<1x1x33xf32> to vector<4x64x33xf32>
    %54 = arith.addf %50, %53 : vector<4x64x33xf32>
    %55 = arith.truncf %54 : vector<4x64x33xf32> to vector<4x64x33xbf16>
    %cst_29 = arith.constant 0xFF800000 : f32
    %56 = vector.broadcast %cst_29 : f32 to vector<4x64x1xf32>
    %cst_30 = arith.constant 0.000000e+00 : f32
    %57 = vector.broadcast %cst_30 : f32 to vector<4x64x33xf32>
    %cst_31 = arith.constant dense<0.000000e+00> : vector<4x64x64xf32>
    %58 = tpu.matmul %40, %48, %cst_31 {dimension_numbers = #tpu.dot_dimension_numbers<[2], [1], [1], [2], [0, 0, 0, 1, 1, 2], [0], [0]>} : vector<4x64x32xbf16>, vector<4x32x64xbf16>, vector<4x64x64xf32> -> vector<4x64x64xf32>
    %cst_32 = arith.constant dense<0xFF800000> : vector<4x64xf32>
    %59 = vector.multi_reduction <maximumf>, %58, %cst_32 [2] : vector<4x64x64xf32> to vector<4x64xf32>
    %60 = vector.shape_cast %59 : vector<4x64xf32> to vector<4x64x1xf32>
    %61 = arith.maximumf %56, %60 : vector<4x64x1xf32>
    %62 = arith.subf %56, %61 : vector<4x64x1xf32>
    %63 = math.exp %62 : vector<4x64x1xf32>
    %64 = vector.broadcast %61 : vector<4x64x1xf32> to vector<4x64x64xf32>
    %65 = arith.subf %58, %64 : vector<4x64x64xf32>
    %66 = math.exp %65 : vector<4x64x64xf32>
    %67 = vector.broadcast %63 : vector<4x64x1xf32> to vector<4x64x33xf32>
    %68 = arith.mulf %67, %57 : vector<4x64x33xf32>
    %69 = arith.truncf %66 : vector<4x64x64xf32> to vector<4x64x64xbf16>
    %cst_33 = arith.constant dense<0.000000e+00> : vector<4x64x33xf32>
    %70 = tpu.matmul %69, %55, %cst_33 {dimension_numbers = #tpu.dot_dimension_numbers<[2], [1], [1], [2], [0, 0, 0, 1, 1, 2], [0], [0]>} : vector<4x64x64xbf16>, vector<4x64x33xbf16>, vector<4x64x33xf32> -> vector<4x64x33xf32>
    %71 = arith.addf %68, %70 : vector<4x64x33xf32>
    %72 = vector.extract_strided_slice %71 {offsets = [0, 0, 0], sizes = [4, 64, 32], strides = [1, 1, 1]} : vector<4x64x33xf32> to vector<4x64x32xf32>
    %73 = vector.extract_strided_slice %71 {offsets = [0, 0, 32], sizes = [4, 64, 1], strides = [1, 1, 1]} : vector<4x64x33xf32> to vector<4x64x1xf32>
    %74 = tpu.reciprocal %73 : vector<4x64x1xf32> -> vector<4x64x1xf32>
    %75 = vector.broadcast %74 : vector<4x64x1xf32> to vector<4x64x32xf32>
    %76 = arith.mulf %72, %75 : vector<4x64x32xf32>
    %77 = arith.truncf %76 : vector<4x64x32xf32> to vector<4x64x32xbf16>
    %c0_34 = arith.constant 0 : index
    %c0_35 = arith.constant 0 : index
    %78 = vector.load %arg12[%c0_34, %c0_35] : memref<32x32xbf16, #tpu.memory_space<vmem>>, vector<32x32xbf16>
    %cst_36 = arith.constant dense<0.000000e+00> : vector<4x64x32xf32>
    %79 = tpu.matmul %77, %78, %cst_36 {dimension_numbers = #tpu.dot_dimension_numbers<[2], [0], [0, 1], [1], [0, 0, 0, 1, 1, 1], [], []>} : vector<4x64x32xbf16>, vector<32x32xbf16>, vector<4x64x32xf32> -> vector<4x64x32xf32>
    %c0_37 = arith.constant 0 : index
    %c0_38 = arith.constant 0 : index
    %80 = vector.load %arg13[%c0_37, %c0_38] : memref<1x32xf32, #tpu.memory_space<vmem>>, vector<1x32xf32>
    %81 = vector.shape_cast %80 : vector<1x32xf32> to vector<1x1x32xf32>
    %82 = vector.broadcast %81 : vector<1x1x32xf32> to vector<4x64x32xf32>
    %83 = arith.addf %79, %82 : vector<4x64x32xf32>
    %c0_39 = arith.constant 0 : index
    %c0_40 = arith.constant 0 : index
    %c0_41 = arith.constant 0 : index
    %84 = vector.load %arg1[%c0_39, %c0_40, %c0_41] : memref<4x64x32xf32, #tpu.memory_space<vmem>>, vector<4x64x32xf32>
    %85 = arith.addf %84, %83 : vector<4x64x32xf32>
    %c0_42 = arith.constant 0 : index
    %c0_43 = arith.constant 0 : index
    %c0_44 = arith.constant 0 : index
    %86 = vector.load %arg14[%c0_42, %c0_43, %c0_44] : memref<4x64x32xf32, #tpu.memory_space<vmem>>, vector<4x64x32xf32>
    tpu.vector_store %arg14[%c0_42, %c0_43, %c0_44], %85 {strides = array<i32>} : memref<4x64x32xf32, #tpu.memory_space<vmem>>, vector<4x64x32xf32>,
    return
  }
  func.func @transform_0(%arg0: i32) -> (i32, i32, i32) {
    %c0_i32 = arith.constant 0 : i32
    %c0_i32_0 = arith.constant 0 : i32
    %c0_i32_1 = arith.constant 0 : i32
    return %arg0, %c0_i32, %c0_i32_0 : i32, i32, i32
  }
  func.func @transform_1(%arg0: i32) -> (i32, i32) {
    %c0_i32 = arith.constant 0 : i32
    %c0_i32_0 = arith.constant 0 : i32
    %c0_i32_1 = arith.constant 0 : i32
    return %c0_i32, %c0_i32_0 : i32, i32
  }
  func.func @transform_2(%arg0: i32) -> (i32, i32) {
    %c0_i32 = arith.constant 0 : i32
    %c0_i32_0 = arith.constant 0 : i32
    %c0_i32_1 = arith.constant 0 : i32
    return %c0_i32, %c0_i32_0 : i32, i32
  }
  func.func @transform_3(%arg0: i32) -> (i32, i32) {
    %c0_i32 = arith.constant 0 : i32
    %c0_i32_0 = arith.constant 0 : i32
    %c0_i32_1 = arith.constant 0 : i32
    return %c0_i32, %c0_i32_0 : i32, i32
  }
  func.func @transform_4(%arg0: i32) -> (i32, i32) {
    %c0_i32 = arith.constant 0 : i32
    %c0_i32_0 = arith.constant 0 : i32
    %c0_i32_1 = arith.constant 0 : i32
    return %c0_i32, %c0_i32_0 : i32, i32
  }
  func.func @transform_5(%arg0: i32) -> (i32, i32) {
    %c0_i32 = arith.constant 0 : i32
    %c0_i32_0 = arith.constant 0 : i32
    %c0_i32_1 = arith.constant 0 : i32
    return %c0_i32, %c0_i32_0 : i32, i32
  }
  func.func @transform_6(%arg0: i32) -> (i32, i32) {
    %c0_i32 = arith.constant 0 : i32
    %c0_i32_0 = arith.constant 0 : i32
    %c0_i32_1 = arith.constant 0 : i32
    return %c0_i32, %c0_i32_0 : i32, i32
  }
  func.func @transform_7(%arg0: i32) -> (i32, i32) {
    %c0_i32 = arith.constant 0 : i32
    %c0_i32_0 = arith.constant 0 : i32
    %c0_i32_1 = arith.constant 0 : i32
    return %c0_i32, %c0_i32_0 : i32, i32
  }
  func.func @transform_8(%arg0: i32) -> (i32, i32) {
    %c0_i32 = arith.constant 0 : i32
    %c0_i32_0 = arith.constant 0 : i32
    %c0_i32_1 = arith.constant 0 : i32
    return %c0_i32, %c0_i32_0 : i32, i32
  }
  func.func @transform_9(%arg0: i32) -> (i32, i32) {
    %c0_i32 = arith.constant 0 : i32
    %c0_i32_0 = arith.constant 0 : i32
    %c0_i32_1 = arith.constant 0 : i32
    return %c0_i32, %c0_i32_0 : i32, i32
  }
  func.func @transform_10(%arg0: i32) -> (i32, i32) {
    %c0_i32 = arith.constant 0 : i32
    %c0_i32_0 = arith.constant 0 : i32
    %c0_i32_1 = arith.constant 0 : i32
    return %c0_i32, %c0_i32_0 : i32, i32
  }
  func.func @transform_11(%arg0: i32) -> (i32, i32) {
    %c0_i32 = arith.constant 0 : i32
    %c0_i32_0 = arith.constant 0 : i32
    %c0_i32_1 = arith.constant 0 : i32
    return %c0_i32, %c0_i32_0 : i32, i32
  }
  func.func @transform_12(%arg0: i32) -> (i32, i32) {
    %c0_i32 = arith.constant 0 : i32
    %c0_i32_0 = arith.constant 0 : i32
    %c0_i32_1 = arith.constant 0 : i32
    return %c0_i32, %c0_i32_0 : i32, i32
  }
  func.func @transform_13(%arg0: i32) -> (i32, i32, i32) {
    %c0_i32 = arith.constant 0 : i32
    %c0_i32_0 = arith.constant 0 : i32
    %c0_i32_1 = arith.constant 0 : i32
    return %arg0, %c0_i32, %c0_i32_0 : i32, i32, i32
  }
}

module attributes {stable_mosaic.version = 11 : i64} {
  func.func @_attn_block_kernel(%arg0: i32, %arg1: memref<4x64x32xf32, #tpu.memory_space<vmem>>, %arg2: memref<32x32xf32, #tpu.memory_space<vmem>>, %arg3: memref<32x32xf32, #tpu.memory_space<vmem>>, %arg4: memref<1x32xf32, #tpu.memory_space<vmem>>, %arg5: memref<1x32xf32, #tpu.memory_space<vmem>>, %arg6: memref<32x32xbf16, #tpu.memory_space<vmem>>, %arg7: memref<1x32xf32, #tpu.memory_space<vmem>>, %arg8: memref<32x32xbf16, #tpu.memory_space<vmem>>, %arg9: memref<1x32xf32, #tpu.memory_space<vmem>>, %arg10: memref<32x33xbf16, #tpu.memory_space<vmem>>, %arg11: memref<1x33xf32, #tpu.memory_space<vmem>>, %arg12: memref<32x32xbf16, #tpu.memory_space<vmem>>, %arg13: memref<1x32xf32, #tpu.memory_space<vmem>>, %arg14: memref<4x64x32xf32, #tpu.memory_space<vmem>>) attributes {dimension_semantics = [#tpu.dimension_semantics<parallel>], iteration_bounds = array<i64: 1>, scalar_prefetch = 0 : i64, scratch_operands = 0 : i64, tpu.core_type = #tpu.core_type<tc>, window_params = [{transform_indices = @transform_0, window_bounds = array<i64: 4, 64, 32>}, {pipeline_mode = #tpu.pipeline_mode<synchronous>, transform_indices = @transform_1, window_bounds = array<i64: 32, 32>}, {pipeline_mode = #tpu.pipeline_mode<synchronous>, transform_indices = @transform_2, window_bounds = array<i64: 32, 32>}, {pipeline_mode = #tpu.pipeline_mode<synchronous>, transform_indices = @transform_3, window_bounds = array<i64: 1, 32>}, {pipeline_mode = #tpu.pipeline_mode<synchronous>, transform_indices = @transform_4, window_bounds = array<i64: 1, 32>}, {pipeline_mode = #tpu.pipeline_mode<synchronous>, transform_indices = @transform_5, window_bounds = array<i64: 32, 32>}, {pipeline_mode = #tpu.pipeline_mode<synchronous>, transform_indices = @transform_6, window_bounds = array<i64: 1, 32>}, {pipeline_mode = #tpu.pipeline_mode<synchronous>, transform_indices = @transform_7, window_bounds = array<i64: 32, 32>}, {pipeline_mode = #tpu.pipeline_mode<synchronous>, transform_indices = @transform_8, window_bounds = array<i64: 1, 32>}, {pipeline_mode = #tpu.pipeline_mode<synchronous>, transform_indices = @transform_9, window_bounds = array<i64: 32, 33>}, {pipeline_mode = #tpu.pipeline_mode<synchronous>, transform_indices = @transform_10, window_bounds = array<i64: 1, 33>}, {pipeline_mode = #tpu.pipeline_mode<synchronous>, transform_indices = @transform_11, window_bounds = array<i64: 32, 32>}, {pipeline_mode = #tpu.pipeline_mode<synchronous>, transform_indices = @transform_12, window_bounds = array<i64: 1, 32>}, {transform_indices = @transform_13, window_bounds = array<i64: 4, 64, 32>}]} {
    %c0 = arith.constant 0 : index
    %c0_0 = arith.constant 0 : index
    %c0_1 = arith.constant 0 : index
    %0 = vector.load %arg1[%c0, %c0_0, %c0_1] : memref<4x64x32xf32, #tpu.memory_space<vmem>>, vector<4x64x32xf32>
    %cst = arith.constant dense<0.000000e+00> : vector<4x32xf32>
    %1 = vector.multi_reduction <add>, %0, %cst [1] : vector<4x64x32xf32> to vector<4x32xf32>
    %2 = arith.mulf %0, %0 : vector<4x64x32xf32>
    %cst_2 = arith.constant dense<0.000000e+00> : vector<4x32xf32>
    %3 = vector.multi_reduction <add>, %2, %cst_2 [1] : vector<4x64x32xf32> to vector<4x32xf32>
    %4 = tpu.concatenate %1, %3 in 0 : vector<4x32xf32>, vector<4x32xf32> -> vector<8x32xf32>
    %c0_3 = arith.constant 0 : index
    %c0_4 = arith.constant 0 : index
    %5 = vector.load %arg2[%c0_3, %c0_4] : memref<32x32xf32, #tpu.memory_space<vmem>>, vector<32x32xf32>
    %cst_5 = arith.constant dense<0.000000e+00> : vector<8x32xf32>
    %6 = tpu.matmul %4, %5, %cst_5 {dimension_numbers = #tpu.dot_dimension_numbers<[1], [0], [0], [1], [0, 0, 1, 1], [], []>} : vector<8x32xf32>, vector<32x32xf32>, vector<8x32xf32> -> vector<8x32xf32>
    %7 = vector.extract_strided_slice %6 {offsets = [0, 0], sizes = [4, 32], strides = [1, 1]} : vector<8x32xf32> to vector<4x32xf32>
    %8 = vector.extract_strided_slice %6 {offsets = [4, 0], sizes = [4, 32], strides = [1, 1]} : vector<8x32xf32> to vector<4x32xf32>
    %9 = arith.mulf %7, %7 : vector<4x32xf32>
    %10 = arith.subf %8, %9 : vector<4x32xf32>
    %cst_6 = arith.constant 9.99999997E-7 : f32
    %11 = vector.broadcast %cst_6 : f32 to vector<4x32xf32>
    %12 = arith.addf %10, %11 : vector<4x32xf32>
    %13 = math.rsqrt %12 : vector<4x32xf32>
    %14 = tpu.concatenate %7, %13 in 0 : vector<4x32xf32>, vector<4x32xf32> -> vector<8x32xf32>
    %c0_7 = arith.constant 0 : index
    %c0_8 = arith.constant 0 : index
    %15 = vector.load %arg3[%c0_7, %c0_8] : memref<32x32xf32, #tpu.memory_space<vmem>>, vector<32x32xf32>
    %cst_9 = arith.constant dense<0.000000e+00> : vector<8x32xf32>
    %16 = tpu.matmul %14, %15, %cst_9 {dimension_numbers = #tpu.dot_dimension_numbers<[1], [0], [0], [1], [0, 0, 1, 1], [], []>} : vector<8x32xf32>, vector<32x32xf32>, vector<8x32xf32> -> vector<8x32xf32>
    %17 = vector.extract_strided_slice %16 {offsets = [0, 0], sizes = [4, 32], strides = [1, 1]} : vector<8x32xf32> to vector<4x32xf32>
    %18 = vector.shape_cast %17 : vector<4x32xf32> to vector<4x1x32xf32>
    %19 = vector.broadcast %18 : vector<4x1x32xf32> to vector<4x64x32xf32>
    %20 = arith.subf %0, %19 : vector<4x64x32xf32>
    %21 = vector.extract_strided_slice %16 {offsets = [4, 0], sizes = [4, 32], strides = [1, 1]} : vector<8x32xf32> to vector<4x32xf32>
    %22 = vector.shape_cast %21 : vector<4x32xf32> to vector<4x1x32xf32>
    %23 = vector.broadcast %22 : vector<4x1x32xf32> to vector<4x64x32xf32>
    %24 = arith.mulf %20, %23 : vector<4x64x32xf32>
    %c0_10 = arith.constant 0 : index
    %c0_11 = arith.constant 0 : index
    %25 = vector.load %arg4[%c0_10, %c0_11] : memref<1x32xf32, #tpu.memory_space<vmem>>, vector<1x32xf32>
    %26 = vector.shape_cast %25 : vector<1x32xf32> to vector<1x1x32xf32>
    %27 = vector.broadcast %26 : vector<1x1x32xf32> to vector<4x64x32xf32>
    %28 = arith.mulf %24, %27 : vector<4x64x32xf32>
    %c0_12 = arith.constant 0 : index
    %c0_13 = arith.constant 0 : index
    %29 = vector.load %arg5[%c0_12, %c0_13] : memref<1x32xf32, #tpu.memory_space<vmem>>, vector<1x32xf32>
    %30 = vector.shape_cast %29 : vector<1x32xf32> to vector<1x1x32xf32>
    %31 = vector.broadcast %30 : vector<1x1x32xf32> to vector<4x64x32xf32>
    %32 = arith.addf %28, %31 : vector<4x64x32xf32>
    %33 = arith.truncf %32 : vector<4x64x32xf32> to vector<4x64x32xbf16>
    %c0_14 = arith.constant 0 : index
    %c0_15 = arith.constant 0 : index
    %34 = vector.load %arg6[%c0_14, %c0_15] : memref<32x32xbf16, #tpu.memory_space<vmem>>, vector<32x32xbf16>
    %cst_16 = arith.constant dense<0.000000e+00> : vector<4x64x32xf32>
    %35 = tpu.matmul %33, %34, %cst_16 {dimension_numbers = #tpu.dot_dimension_numbers<[2], [0], [0, 1], [1], [0, 0, 0, 1, 1, 1], [], []>} : vector<4x64x32xbf16>, vector<32x32xbf16>, vector<4x64x32xf32> -> vector<4x64x32xf32>
    %c0_17 = arith.constant 0 : index
    %c0_18 = arith.constant 0 : index
    %36 = vector.load %arg7[%c0_17, %c0_18] : memref<1x32xf32, #tpu.memory_space<vmem>>, vector<1x32xf32>
    %37 = vector.shape_cast %36 : vector<1x32xf32> to vector<1x1x32xf32>
    %38 = vector.broadcast %37 : vector<1x1x32xf32> to vector<4x64x32xf32>
    %39 = arith.addf %35, %38 : vector<4x64x32xf32>
    %40 = arith.truncf %39 : vector<4x64x32xf32> to vector<4x64x32xbf16>
    %c0_19 = arith.constant 0 : index
    %c0_20 = arith.constant 0 : index
    %41 = vector.load %arg8[%c0_19, %c0_20] : memref<32x32xbf16, #tpu.memory_space<vmem>>, vector<32x32xbf16>
    %cst_21 = arith.constant dense<0.000000e+00> : vector<4x64x32xf32>
    %42 = tpu.matmul %33, %41, %cst_21 {dimension_numbers = #tpu.dot_dimension_numbers<[2], [0], [0, 1], [1], [0, 0, 0, 1, 1, 1], [], []>} : vector<4x64x32xbf16>, vector<32x32xbf16>, vector<4x64x32xf32> -> vector<4x64x32xf32>
    %c0_22 = arith.constant 0 : index
    %c0_23 = arith.constant 0 : index
    %43 = vector.load %arg9[%c0_22, %c0_23] : memref<1x32xf32, #tpu.memory_space<vmem>>, vector<1x32xf32>
    %44 = vector.shape_cast %43 : vector<1x32xf32> to vector<1x1x32xf32>
    %45 = vector.broadcast %44 : vector<1x1x32xf32> to vector<4x64x32xf32>
    %46 = arith.addf %42, %45 : vector<4x64x32xf32>
    %47 = arith.truncf %46 : vector<4x64x32xf32> to vector<4x64x32xbf16>
    %48 = tpu.transpose %47, [0, 2, 1] : vector<4x64x32xbf16> -> vector<4x32x64xbf16>
    %c0_24 = arith.constant 0 : index
    %c0_25 = arith.constant 0 : index
    %49 = vector.load %arg10[%c0_24, %c0_25] : memref<32x33xbf16, #tpu.memory_space<vmem>>, vector<32x33xbf16>
    %cst_26 = arith.constant dense<0.000000e+00> : vector<4x64x33xf32>
    %50 = tpu.matmul %33, %49, %cst_26 {dimension_numbers = #tpu.dot_dimension_numbers<[2], [0], [0, 1], [1], [0, 0, 0, 1, 1, 1], [], []>} : vector<4x64x32xbf16>, vector<32x33xbf16>, vector<4x64x33xf32> -> vector<4x64x33xf32>
    %c0_27 = arith.constant 0 : index
    %c0_28 = arith.constant 0 : index
    %51 = vector.load %arg11[%c0_27, %c0_28] : memref<1x33xf32, #tpu.memory_space<vmem>>, vector<1x33xf32>
    %52 = vector.shape_cast %51 : vector<1x33xf32> to vector<1x1x33xf32>
    %53 = vector.broadcast %52 : vector<1x1x33xf32> to vector<4x64x33xf32>
    %54 = arith.addf %50, %53 : vector<4x64x33xf32>
    %55 = arith.truncf %54 : vector<4x64x33xf32> to vector<4x64x33xbf16>
    %cst_29 = arith.constant 0xFF800000 : f32
    %56 = vector.broadcast %cst_29 : f32 to vector<4x64x1xf32>
    %cst_30 = arith.constant 0.000000e+00 : f32
    %57 = vector.broadcast %cst_30 : f32 to vector<4x64x33xf32>
    %cst_31 = arith.constant dense<0.000000e+00> : vector<4x64x64xf32>
    %58 = tpu.matmul %40, %48, %cst_31 {dimension_numbers = #tpu.dot_dimension_numbers<[2], [1], [1], [2], [0, 0, 0, 1, 1, 2], [0], [0]>} : vector<4x64x32xbf16>, vector<4x32x64xbf16>, vector<4x64x64xf32> -> vector<4x64x64xf32>
    %cst_32 = arith.constant dense<0xFF800000> : vector<4x64xf32>
    %59 = vector.multi_reduction <maximumf>, %58, %cst_32 [2] : vector<4x64x64xf32> to vector<4x64xf32>
    %60 = vector.shape_cast %59 : vector<4x64xf32> to vector<4x64x1xf32>
    %61 = arith.maximumf %56, %60 : vector<4x64x1xf32>
    %62 = arith.subf %56, %61 : vector<4x64x1xf32>
    %63 = math.exp %62 : vector<4x64x1xf32>
    %64 = vector.broadcast %61 : vector<4x64x1xf32> to vector<4x64x64xf32>
    %65 = arith.subf %58, %64 : vector<4x64x64xf32>
    %66 = math.exp %65 : vector<4x64x64xf32>
    %67 = vector.broadcast %63 : vector<4x64x1xf32> to vector<4x64x33xf32>
    %68 = arith.mulf %67, %57 : vector<4x64x33xf32>
    %69 = arith.truncf %66 : vector<4x64x64xf32> to vector<4x64x64xbf16>
    %cst_33 = arith.constant dense<0.000000e+00> : vector<4x64x33xf32>
    %70 = tpu.matmul %69, %55, %cst_33 {dimension_numbers = #tpu.dot_dimension_numbers<[2], [1], [1], [2], [0, 0, 0, 1, 1, 2], [0], [0]>} : vector<4x64x64xbf16>, vector<4x64x33xbf16>, vector<4x64x33xf32> -> vector<4x64x33xf32>
    %71 = arith.addf %68, %70 : vector<4x64x33xf32>
    %72 = vector.extract_strided_slice %71 {offsets = [0, 0, 0], sizes = [4, 64, 32], strides = [1, 1, 1]} : vector<4x64x33xf32> to vector<4x64x32xf32>
    %73 = vector.extract_strided_slice %71 {offsets = [0, 0, 32], sizes = [4, 64, 1], strides = [1, 1, 1]} : vector<4x64x33xf32> to vector<4x64x1xf32>
    %74 = tpu.reciprocal %73 : vector<4x64x1xf32> -> vector<4x64x1xf32>
    %75 = vector.broadcast %74 : vector<4x64x1xf32> to vector<4x64x32xf32>
    %76 = arith.mulf %72, %75 : vector<4x64x32xf32>
    %77 = arith.truncf %76 : vector<4x64x32xf32> to vector<4x64x32xbf16>
    %c0_34 = arith.constant 0 : index
    %c0_35 = arith.constant 0 : index
    %78 = vector.load %arg12[%c0_34, %c0_35] : memref<32x32xbf16, #tpu.memory_space<vmem>>, vector<32x32xbf16>
    %cst_36 = arith.constant dense<0.000000e+00> : vector<4x64x32xf32>
    %79 = tpu.matmul %77, %78, %cst_36 {dimension_numbers = #tpu.dot_dimension_numbers<[2], [0], [0, 1], [1], [0, 0, 0, 1, 1, 1], [], []>} : vector<4x64x32xbf16>, vector<32x32xbf16>, vector<4x64x32xf32> -> vector<4x64x32xf32>
    %c0_37 = arith.constant 0 : index
    %c0_38 = arith.constant 0 : index
    %80 = vector.load %arg13[%c0_37, %c0_38] : memref<1x32xf32, #tpu.memory_space<vmem>>, vector<1x32xf32>
    %81 = vector.shape_cast %80 : vector<1x32xf32> to vector<1x1x32xf32>
    %82 = vector.broadcast %81 : vector<1x1x32xf32> to vector<4x64x32xf32>
    %83 = arith.addf %79, %82 : vector<4x64x32xf32>
    %c0_39 = arith.constant 0 : index
    %c0_40 = arith.constant 0 : index
    %c0_41 = arith.constant 0 : index
    %84 = vector.load %arg1[%c0_39, %c0_40, %c0_41] : memref<4x64x32xf32, #tpu.memory_space<vmem>>, vector<4x64x32xf32>
    %85 = arith.addf %84, %83 : vector<4x64x32xf32>
    %c0_42 = arith.constant 0 : index
    %c0_43 = arith.constant 0 : index
    %c0_44 = arith.constant 0 : index
    %86 = vector.load %arg14[%c0_42, %c0_43, %c0_44] : memref<4x64x32xf32, #tpu.memory_space<vmem>>, vector<4x64x32xf32>
    tpu.vector_store %arg14[%c0_42, %c0_43, %c0_44], %85 {strides = array<i32>} : memref<4x64x32xf32, #tpu.memory_space<vmem>>, vector<4x64x32xf32>,
    return
  }
  func.func @transform_0(%arg0: i32) -> (i32, i32, i32) {
    %c0_i32 = arith.constant 0 : i32
    %c0_i32_0 = arith.constant 0 : i32
    %c0_i32_1 = arith.constant 0 : i32
    return %arg0, %c0_i32, %c0_i32_0 : i32, i32, i32
  }
  func.func @transform_1(%arg0: i32) -> (i32, i32) {
    %c0_i32 = arith.constant 0 : i32
    %c0_i32_0 = arith.constant 0 : i32
    %c0_i32_1 = arith.constant 0 : i32
    return %c0_i32, %c0_i32_0 : i32, i32
  }
  func.func @transform_2(%arg0: i32) -> (i32, i32) {
    %c0_i32 = arith.constant 0 : i32
    %c0_i32_0 = arith.constant 0 : i32
    %c0_i32_1 = arith.constant 0 : i32
    return %c0_i32, %c0_i32_0 : i32, i32
  }
  func.func @transform_3(%arg0: i32) -> (i32, i32) {
    %c0_i32 = arith.constant 0 : i32
    %c0_i32_0 = arith.constant 0 : i32
    %c0_i32_1 = arith.constant 0 : i32
    return %c0_i32, %c0_i32_0 : i32, i32
  }
  func.func @transform_4(%arg0: i32) -> (i32, i32) {
    %c0_i32 = arith.constant 0 : i32
    %c0_i32_0 = arith.constant 0 : i32
    %c0_i32_1 = arith.constant 0 : i32
    return %c0_i32, %c0_i32_0 : i32, i32
  }
  func.func @transform_5(%arg0: i32) -> (i32, i32) {
    %c0_i32 = arith.constant 0 : i32
    %c0_i32_0 = arith.constant 0 : i32
    %c0_i32_1 = arith.constant 0 : i32
    return %c0_i32, %c0_i32_0 : i32, i32
  }
  func.func @transform_6(%arg0: i32) -> (i32, i32) {
    %c0_i32 = arith.constant 0 : i32
    %c0_i32_0 = arith.constant 0 : i32
    %c0_i32_1 = arith.constant 0 : i32
    return %c0_i32, %c0_i32_0 : i32, i32
  }
  func.func @transform_7(%arg0: i32) -> (i32, i32) {
    %c0_i32 = arith.constant 0 : i32
    %c0_i32_0 = arith.constant 0 : i32
    %c0_i32_1 = arith.constant 0 : i32
    return %c0_i32, %c0_i32_0 : i32, i32
  }
  func.func @transform_8(%arg0: i32) -> (i32, i32) {
    %c0_i32 = arith.constant 0 : i32
    %c0_i32_0 = arith.constant 0 : i32
    %c0_i32_1 = arith.constant 0 : i32
    return %c0_i32, %c0_i32_0 : i32, i32
  }
  func.func @transform_9(%arg0: i32) -> (i32, i32) {
    %c0_i32 = arith.constant 0 : i32
    %c0_i32_0 = arith.constant 0 : i32
    %c0_i32_1 = arith.constant 0 : i32
    return %c0_i32, %c0_i32_0 : i32, i32
  }
  func.func @transform_10(%arg0: i32) -> (i32, i32) {
    %c0_i32 = arith.constant 0 : i32
    %c0_i32_0 = arith.constant 0 : i32
    %c0_i32_1 = arith.constant 0 : i32
    return %c0_i32, %c0_i32_0 : i32, i32
  }
  func.func @transform_11(%arg0: i32) -> (i32, i32) {
    %c0_i32 = arith.constant 0 : i32
    %c0_i32_0 = arith.constant 0 : i32
    %c0_i32_1 = arith.constant 0 : i32
    return %c0_i32, %c0_i32_0 : i32, i32
  }
  func.func @transform_12(%arg0: i32) -> (i32, i32) {
    %c0_i32 = arith.constant 0 : i32
    %c0_i32_0 = arith.constant 0 : i32
    %c0_i32_1 = arith.constant 0 : i32
    return %c0_i32, %c0_i32_0 : i32, i32
  }
  func.func @transform_13(%arg0: i32) -> (i32, i32, i32) {
    %c0_i32 = arith.constant 0 : i32
    %c0_i32_0 = arith.constant 0 : i32
    %c0_i32_1 = arith.constant 0 : i32
    return %arg0, %c0_i32, %c0_i32_0 : i32, i32, i32
  }
}

</mosaic_0001>

<bundles_post_ra>
// kernel: tpu_custom_call.1
= control target key start
LH: loop header
LB: loop body
LE: loop exit
PB: predicated region body
PF: predicated region fallthrough
CT: control target
= control target key end

     0   :  { %18 = vsyncpa [#allocation3], 0  ;;  %s5983_s0 = inlined_call_operand.hbm [shape: f32[4,64,32], index: 0, kind: input, shape index: {}]   ;;  %s5984_s1 = inlined_call_operand.hbm [shape: f32[32,32], index: 1, kind: input, shape index: {}]   ;;  %s5985_s2 = inlined_call_operand.hbm [shape: f32[32,32], index: 2, kind: input, shape index: {}]   ;;  %s5986_s3 = inlined_call_operand.hbm [shape: f32[1,32], index: 3, kind: input, shape index: {}]   ;;  %s5987_s4 = inlined_call_operand.hbm [shape: f32[1,32], index: 4, kind: input, shape index: {}]   ;;  %s5988_s5 = inlined_call_operand.hbm [shape: bf16[32,32], index: 5, kind: input, shape index: {}]   ;;  %s5989_s6 = inlined_call_operand.hbm [shape: f32[1,32], index: 6, kind: input, shape index: {}]   ;;  %s5990_s7 = inlined_call_operand.hbm [shape: bf16[32,32], index: 7, kind: input, shape index: {}]   ;;  %s5991_s8 = inlined_call_operand.hbm [shape: f32[1,32], index: 8, kind: input, shape index: {}]   ;;  %s5992_s9 = inlined_call_operand.hbm [shape: bf16[32,33], index: 9, kind: input, shape index: {}]   ;;  %s5993_s10 = inlined_call_operand.hbm [shape: f32[1,33], index: 10, kind: input, shape index: {}]   ;;  %s5994_s11 = inlined_call_operand.hbm [shape: bf16[32,32], index: 11, kind: input, shape index: {}]   ;;  %s5995_s12 = inlined_call_operand.hbm [shape: f32[1,32], index: 12, kind: input, shape index: {}]   ;;  %s5996_s13 = inlined_call_operand.hbm [shape: f32[4,64,32], index: 13, kind: output, shape index: {}]  }
   0x1   :  { %19 = vsyncpa [#allocation6], 0 }
   0x2   :  { %20 = vsyncpa [#allocation9], 0 }
   0x3   :  { %21 = vsyncpa [#allocation12], 0 }
   0x4   :  { %22 = vsyncpa [#allocation15], 0 }
   0x5   :  { %23 = vsyncpa [#allocation18], 0 }
   0x6   :  { %24 = vsyncpa [#allocation21], 0 }
   0x7   :  { %25 = vsyncpa [#allocation4], 0  ;;  %s4284_s25 = smov [#allocation5]   ;;  %s4285_s27 = smov [#allocation8]  }
   0x8   :  { %s43_s26 = sshll.u32 %s4284_s25, 4  ;;  %s68_s28 = sshll.u32 %s4285_s27, 4  ;;  %s44_s26 = int_to_ptr.vmem [resolvable:$true] %s43_s26  ;;  %s4377_s28 = int_to_ptr.vmem [resolvable:$true] %s68_s28 }
   0x9   :  { %s3960_s14 = scalar_lea.hbm %s5984_s1, 512 }
   0xa   :  { %p3961_p0 = scmp.ne.s32.totalorder %s5984_s1, %s3960_s14  ;;  %p3964_p1 = scmp.lt.u32.totalorder %s3960_s14, %s5984_s1 }
   0xc   :  { %p3966_p2 = pnand %p3964_p1, %p3961_p0 }
   0xe   :  { %3969 = shalt.err (!%p3966_p2)
}
   0xf   :  { %s3970_s19 = scalar_lea.vmem %s44_s26, 512  ;;  %p3975_p4 = scmp.lt.s32.totalorder %s44_s26, %s44_s26 }
  0x10   :  { %p3971_p3 = scmp.ne.s32.totalorder %s44_s26, %s3970_s19  ;;  %p3976_p5 = scmp.lt.s32.totalorder %s3970_s19, %s3970_s19 }
  0x12   :  { %p3977_p6 = por %p3976_p5, %p3975_p4 }
  0x14   :  { %p3978_p7 = pnand %p3977_p6, %p3971_p3 }
  0x16   :  { %3981 = shalt.err (!%p3978_p7)
}
  0x17   :  { %s4286_s20 = smov 128   ;;  %s4287_s21 = smov 8  }
  0x18   :  { %49 = dma.hbm_to_vmem [thread:$0]  %s5984_s1, 512, %s44_s26, [#allocation6], %s4286_s20, %s4286_s20, %s4287_s21  }
  0x19   :  { %s3982_s27 = scalar_lea.hbm %s5986_s3, 16 }
  0x1a   :  { %p3983_p8 = scmp.ne.s32.totalorder %s5986_s3, %s3982_s27  ;;  %p3986_p9 = scmp.lt.u32.totalorder %s3982_s27, %s5986_s3 }
  0x1c   :  { %p3988_p10 = pnand %p3986_p9, %p3983_p8 }
  0x1e   :  { %3991 = shalt.err (!%p3988_p10)
}
  0x1f   :  { %s3992_s16 = scalar_lea.vmem %s4377_s28, 16  ;;  %s3996_s1 = scalar_lea.vmem %s4377_s28, 32 }
  0x20   :  { %p3993_p11 = scmp.ne.s32.totalorder %s4377_s28, %s3992_s16  ;;  %p3997_p12 = scmp.lt.s32.totalorder %s4377_s28, %s4377_s28 }
  0x21   :  { %p3998_p13 = scmp.lt.s32.totalorder %s3996_s1, %s3992_s16 }
  0x23   :  { %p3999_p0 = por %p3998_p13, %p3997_p12 }
  0x25   :  { %p4000_p1 = pnand %p3999_p0, %p3993_p11 }
  0x27   :  { %4003 = shalt.err (!%p4000_p1)
}
  0x28   :  { %71 = dma.hbm_to_vmem [thread:$0]  %s5986_s3, 16, %s4377_s28, [#allocation9]  }
  0x29   :  { %s4288_s18 = smov [#allocation11]   ;;  %s4004_s24 = scalar_lea.hbm %s5988_s5, 256 }
  0x2a   :  { %s87_s19 = sshll.u32 %s4288_s18, 4  ;;  %p4005_p2 = scmp.ne.s32.totalorder %s5988_s5, %s4004_s24  ;;  %s88_s19 = int_to_ptr.vmem [resolvable:$true] %s87_s19 }
  0x2b   :  { %p4008_p3 = scmp.lt.u32.totalorder %s4004_s24, %s5988_s5 }
  0x2d   :  { %p4010_p4 = pnand %p4008_p3, %p4005_p2 }
  0x2f   :  { %4013 = shalt.err (!%p4010_p4)
}
  0x30   :  { %s4014_s14 = scalar_lea.vmem %s88_s19, 256  ;;  %p4019_p6 = scmp.lt.s32.totalorder %s88_s19, %s88_s19 }
  0x31   :  { %p4015_p5 = scmp.ne.s32.totalorder %s88_s19, %s4014_s14  ;;  %p4020_p7 = scmp.lt.s32.totalorder %s4014_s14, %s4014_s14 }
  0x33   :  { %p4021_p8 = por %p4020_p7, %p4019_p6 }
  0x35   :  { %p4022_p9 = pnand %p4021_p8, %p4015_p5 }
  0x37   :  { %4025 = shalt.err (!%p4022_p9)
}
  0x38   :  { %s4289_s3 = smov 64   ;;  %s4290_s28 = smov 4  }
  0x39   :  { %93 = dma.hbm_to_vmem [thread:$0]  %s5988_s5, 256, %s88_s19, [#allocation12], %s4289_s3, %s4289_s3, %s4290_s28  }
  0x3a   :  { %s4291_s1 = smov [#allocation14]   ;;  %s4292_s17 = smov [#allocation17]  }
  0x3b   :  { %s109_s26 = sshll.u32 %s4291_s1, 4  ;;  %s131_s18 = sshll.u32 %s4292_s17, 4  ;;  %s110_s26 = int_to_ptr.vmem [resolvable:$true] %s109_s26  ;;  %s132_s18 = int_to_ptr.vmem [resolvable:$true] %s131_s18 }
  0x3c   :  { %s4026_s24 = scalar_lea.hbm %s5990_s7, 256 }
  0x3d   :  { %p4027_p10 = scmp.ne.s32.totalorder %s5990_s7, %s4026_s24  ;;  %p4030_p11 = scmp.lt.u32.totalorder %s4026_s24, %s5990_s7 }
  0x3f   :  { %p4032_p12 = pnand %p4030_p11, %p4027_p10 }
  0x41   :  { %4035 = shalt.err (!%p4032_p12)
}
  0x42   :  { %s4036_s5 = scalar_lea.vmem %s110_s26, 256  ;;  %p4041_p0 = scmp.lt.s32.totalorder %s110_s26, %s110_s26 }
  0x43   :  { %p4037_p13 = scmp.ne.s32.totalorder %s110_s26, %s4036_s5  ;;  %p4042_p1 = scmp.lt.s32.totalorder %s4036_s5, %s4036_s5 }
  0x45   :  { %p4043_p2 = por %p4042_p1, %p4041_p0 }
  0x47   :  { %p4044_p3 = pnand %p4043_p2, %p4037_p13 }
  0x49   :  { %4047 = shalt.err (!%p4044_p3)
}
  0x4a   :  { %115 = dma.hbm_to_vmem [thread:$0]  %s5990_s7, 256, %s110_s26, [#allocation15], %s4289_s3, %s4289_s3, %s4290_s28  }
  0x4b   :  { %s4048_s1 = scalar_lea.hbm %s5992_s9, 256 }
  0x4c   :  { %p4049_p4 = scmp.ne.s32.totalorder %s5992_s9, %s4048_s1  ;;  %p4052_p5 = scmp.lt.u32.totalorder %s4048_s1, %s5992_s9 }
  0x4e   :  { %p4054_p6 = pnand %p4052_p5, %p4049_p4 }
  0x50   :  { %4057 = shalt.err (!%p4054_p6)
}
  0x51   :  { %s4058_s25 = scalar_lea.vmem %s132_s18, 256  ;;  %p4063_p8 = scmp.lt.s32.totalorder %s132_s18, %s132_s18 }
  0x52   :  { %p4059_p7 = scmp.ne.s32.totalorder %s132_s18, %s4058_s25  ;;  %p4064_p9 = scmp.lt.s32.totalorder %s4058_s25, %s4058_s25 }
  0x54   :  { %p4065_p10 = por %p4064_p9, %p4063_p8 }
  0x56   :  { %p4066_p11 = pnand %p4065_p10, %p4059_p7 }
  0x58   :  { %4069 = shalt.err (!%p4066_p11)
}
  0x59   :  { %137 = dma.hbm_to_vmem [thread:$0]  %s5992_s9, 256, %s132_s18, [#allocation18], %s4289_s3, %s4289_s3, %s4290_s28  }
  0x5a   :  { %s4293_s27 = smov [#allocation20]   ;;  %s4294_s30 = smov [#allocation2]  }
  0x5b   :  { %s153_s29 = sshll.u32 %s4293_s27, 4  ;;  %s31_s5 = sshll.u32 %s4294_s30, 4  ;;  %s154_s29 = int_to_ptr.vmem [resolvable:$true] %s153_s29  ;;  %s32_s5 = int_to_ptr.vmem [resolvable:$true] %s31_s5 }
  0x5c   :  { %s4070_s15 = scalar_lea.hbm %s5994_s11, 256 }
  0x5d   :  { %p4071_p12 = scmp.ne.s32.totalorder %s5994_s11, %s4070_s15  ;;  %p4074_p13 = scmp.lt.u32.totalorder %s4070_s15, %s5994_s11 }
  0x5f   :  { %p4076_p0 = pnand %p4074_p13, %p4071_p12 }
  0x61   :  { %4079 = shalt.err (!%p4076_p0)
}
  0x62   :  { %s4080_s9 = scalar_lea.vmem %s154_s29, 256  ;;  %p4085_p2 = scmp.lt.s32.totalorder %s154_s29, %s154_s29 }
  0x63   :  { %p4081_p1 = scmp.ne.s32.totalorder %s154_s29, %s4080_s9  ;;  %p4086_p3 = scmp.lt.s32.totalorder %s4080_s9, %s4080_s9 }
  0x65   :  { %p4087_p4 = por %p4086_p3, %p4085_p2 }
  0x67   :  { %p4088_p5 = pnand %p4087_p4, %p4081_p1 }
  0x69   :  { %4091 = shalt.err (!%p4088_p5)
}
  0x6a   :  { %159 = dma.hbm_to_vmem [thread:$0]  %s5994_s11, 256, %s154_s29, [#allocation21], %s4289_s3, %s4289_s3, %s4290_s28  }
  0x6b   :  { %s4092_s7 = scalar_lea.hbm %s5983_s0, 4096 }
  0x6c   :  { %p4093_p6 = scmp.ne.s32.totalorder %s5983_s0, %s4092_s7  ;;  %p4096_p7 = scmp.lt.u32.totalorder %s4092_s7, %s5983_s0 }
  0x6e   :  { %p4098_p8 = pnand %p4096_p7, %p4093_p6 }
  0x70   :  { %4101 = shalt.err (!%p4098_p8)
}
  0x71   :  { %s4102_s14 = scalar_lea.vmem %s32_s5, 4096  ;;  %p4107_p10 = scmp.lt.s32.totalorder %s32_s5, %s32_s5 }
  0x72   :  { %p4103_p9 = scmp.ne.s32.totalorder %s32_s5, %s4102_s14  ;;  %p4108_p11 = scmp.lt.s32.totalorder %s4102_s14, %s4102_s14 }
  0x74   :  { %p4109_p12 = por %p4108_p11, %p4107_p10 }
  0x76   :  { %p4110_p13 = pnand %p4109_p12, %p4103_p9 }
  0x78   :  { %4113 = shalt.err (!%p4110_p13)
}
  0x79   :  { %37 = dma.hbm_to_vmem [thread:$0]  %s5983_s0, 4096, %s32_s5, [#allocation3], %s4286_s20, %s4286_s20, %s4287_s21  }
  0x7a   :  { %s4295_s28 = smov [#allocation7]   ;;  %s4296_s15 = smov [#allocation10]  }
  0x7b   :  { %s55_s29 = sshll.u32 %s4295_s28, 4  ;;  %s78_s16 = sshll.u32 %s4296_s15, 4  ;;  %s56_s29 = int_to_ptr.vmem [resolvable:$true] %s55_s29  ;;  %s79_s16 = int_to_ptr.vmem [resolvable:$true] %s78_s16 }
  0x7c   :  { %s4114_s22 = scalar_lea.hbm %s5985_s2, 512 }
  0x7d   :  { %p4115_p0 = scmp.ne.s32.totalorder %s5985_s2, %s4114_s22  ;;  %p4118_p1 = scmp.lt.u32.totalorder %s4114_s22, %s5985_s2 }
  0x7f   :  { %p4120_p2 = pnand %p4118_p1, %p4115_p0 }
  0x81   :  { %4123 = shalt.err (!%p4120_p2)
}
  0x82   :  { %s4124_s0 = scalar_lea.vmem %s56_s29, 512  ;;  %p4129_p4 = scmp.lt.s32.totalorder %s56_s29, %s56_s29 }
  0x83   :  { %p4125_p3 = scmp.ne.s32.totalorder %s56_s29, %s4124_s0  ;;  %p4130_p5 = scmp.lt.s32.totalorder %s4124_s0, %s4124_s0 }
  0x85   :  { %p4131_p6 = por %p4130_p5, %p4129_p4 }
  0x87   :  { %p4132_p7 = pnand %p4131_p6, %p4125_p3 }
  0x89   :  { %4135 = shalt.err (!%p4132_p7)
}
  0x8a   :  { %61 = dma.hbm_to_vmem [thread:$0]  %s5985_s2, 512, %s56_s29, [#allocation6], %s4286_s20, %s4286_s20, %s4287_s21  }
  0x8b   :  { %s4136_s27 = scalar_lea.hbm %s5987_s4, 16 }
  0x8c   :  { %p4137_p8 = scmp.ne.s32.totalorder %s5987_s4, %s4136_s27  ;;  %p4140_p9 = scmp.lt.u32.totalorder %s4136_s27, %s5987_s4 }
  0x8e   :  { %p4142_p10 = pnand %p4140_p9, %p4137_p8 }
  0x90   :  { %4145 = shalt.err (!%p4142_p10)
}
  0x91   :  { %s4146_s3 = scalar_lea.vmem %s79_s16, 16  ;;  %s4150_s28 = scalar_lea.vmem %s79_s16, 32 }
  0x92   :  { %p4147_p11 = scmp.ne.s32.totalorder %s79_s16, %s4146_s3  ;;  %p4151_p12 = scmp.lt.s32.totalorder %s79_s16, %s79_s16 }
  0x93   :  { %p4152_p13 = scmp.lt.s32.totalorder %s4150_s28, %s4146_s3 }
  0x95   :  { %p4153_p0 = por %p4152_p13, %p4151_p12 }
  0x97   :  { %p4154_p1 = pnand %p4153_p0, %p4147_p11 }
  0x99   :  { %4157 = shalt.err (!%p4154_p1)
}
  0x9a   :  { %81 = dma.hbm_to_vmem [thread:$0]  %s5987_s4, 16, %s79_s16, [#allocation9]  }
  0x9b   :  { %s4297_s15 = smov [#allocation13]   ;;  %s4298_s17 = smov [#allocation16]  }
  0x9c   :  { %s100_s1 = sshll.u32 %s4297_s15, 4  ;;  %s122_s22 = sshll.u32 %s4298_s17, 4  ;;  %s101_s1 = int_to_ptr.vmem [resolvable:$true] %s100_s1  ;;  %s123_s22 = int_to_ptr.vmem [resolvable:$true] %s122_s22 }
  0x9d   :  { %s4158_s23 = scalar_lea.hbm %s5989_s6, 16 }
  0x9e   :  { %p4159_p2 = scmp.ne.s32.totalorder %s5989_s6, %s4158_s23  ;;  %p4162_p3 = scmp.lt.u32.totalorder %s4158_s23, %s5989_s6 }
  0xa0   :  { %p4164_p4 = pnand %p4162_p3, %p4159_p2 }
  0xa2   :  { %4167 = shalt.err (!%p4164_p4)
}
  0xa3   :  { %s4168_s4 = scalar_lea.vmem %s101_s1, 16  ;;  %s4172_s16 = scalar_lea.vmem %s101_s1, 32 }
  0xa4   :  { %p4169_p5 = scmp.ne.s32.totalorder %s101_s1, %s4168_s4  ;;  %p4173_p6 = scmp.lt.s32.totalorder %s101_s1, %s101_s1 }
  0xa5   :  { %p4174_p7 = scmp.lt.s32.totalorder %s4172_s16, %s4168_s4 }
  0xa7   :  { %p4175_p8 = por %p4174_p7, %p4173_p6 }
  0xa9   :  { %p4176_p9 = pnand %p4175_p8, %p4169_p5 }
  0xab   :  { %4179 = shalt.err (!%p4176_p9)
}
  0xac   :  { %103 = dma.hbm_to_vmem [thread:$0]  %s5989_s6, 16, %s101_s1, [#allocation12]  }
  0xad   :  { %s4180_s19 = scalar_lea.hbm %s5991_s8, 16 }
  0xae   :  { %p4181_p10 = scmp.ne.s32.totalorder %s5991_s8, %s4180_s19  ;;  %p4184_p11 = scmp.lt.u32.totalorder %s4180_s19, %s5991_s8 }
  0xb0   :  { %p4186_p12 = pnand %p4184_p11, %p4181_p10 }
  0xb2   :  { %4189 = shalt.err (!%p4186_p12)
}
  0xb3   :  { %s4190_s2 = scalar_lea.vmem %s123_s22, 16  ;;  %s4194_s29 = scalar_lea.vmem %s123_s22, 32 }
  0xb4   :  { %p4191_p13 = scmp.ne.s32.totalorder %s123_s22, %s4190_s2  ;;  %p4195_p0 = scmp.lt.s32.totalorder %s123_s22, %s123_s22 }
  0xb5   :  { %p4196_p1 = scmp.lt.s32.totalorder %s4194_s29, %s4190_s2 }
  0xb7   :  { %p4197_p2 = por %p4196_p1, %p4195_p0 }
  0xb9   :  { %p4198_p3 = pnand %p4197_p2, %p4191_p13 }
  0xbb   :  { %4201 = shalt.err (!%p4198_p3)
}
  0xbc   :  { %125 = dma.hbm_to_vmem [thread:$0]  %s5991_s8, 16, %s123_s22, [#allocation15]  }
  0xbd   :  { %s4299_s1 = smov [#allocation19]   ;;  %s4300_s9 = smov [#allocation22]  }
  0xbe   :  { %s144_s17 = sshll.u32 %s4299_s1, 4  ;;  %s166_s18 = sshll.u32 %s4300_s9, 4  ;;  %s145_s17 = int_to_ptr.vmem [resolvable:$true] %s144_s17  ;;  %s167_s18 = int_to_ptr.vmem [resolvable:$true] %s166_s18 }
  0xbf   :  { %s4202_s0 = scalar_lea.hbm %s5993_s10, 16 }
  0xc0   :  { %p4203_p4 = scmp.ne.s32.totalorder %s5993_s10, %s4202_s0  ;;  %p4206_p5 = scmp.lt.u32.totalorder %s4202_s0, %s5993_s10 }
  0xc2   :  { %p4208_p6 = pnand %p4206_p5, %p4203_p4 }
  0xc4   :  { %4211 = shalt.err (!%p4208_p6)
}
  0xc5   :  { %s4212_s8 = scalar_lea.vmem %s145_s17, 16  ;;  %s4216_s22 = scalar_lea.vmem %s145_s17, 32 }
  0xc6   :  { %p4213_p7 = scmp.ne.s32.totalorder %s145_s17, %s4212_s8  ;;  %p4217_p8 = scmp.lt.s32.totalorder %s145_s17, %s145_s17 }
  0xc7   :  { %p4218_p9 = scmp.lt.s32.totalorder %s4216_s22, %s4212_s8 }
  0xc9   :  { %p4219_p10 = por %p4218_p9, %p4217_p8 }
  0xcb   :  { %p4220_p11 = pnand %p4219_p10, %p4213_p7 }
  0xcd   :  { %4223 = shalt.err (!%p4220_p11)
}
  0xce   :  { %147 = dma.hbm_to_vmem [thread:$0]  %s5993_s10, 16, %s145_s17, [#allocation18]  }
  0xcf   :  { %s4224_s19 = scalar_lea.hbm %s5995_s12, 16 }
  0xd0   :  { %p4225_p12 = scmp.ne.s32.totalorder %s5995_s12, %s4224_s19  ;;  %p4228_p13 = scmp.lt.u32.totalorder %s4224_s19, %s5995_s12 }
  0xd2   :  { %p4230_p0 = pnand %p4228_p13, %p4225_p12 }
  0xd4   :  { %4233 = shalt.err (!%p4230_p0)
}
  0xd5   :  { %s4234_s2 = scalar_lea.vmem %s167_s18, 16  ;;  %s4238_s29 = scalar_lea.vmem %s167_s18, 32 }
  0xd6   :  { %p4235_p1 = scmp.ne.s32.totalorder %s167_s18, %s4234_s2  ;;  %p4239_p2 = scmp.lt.s32.totalorder %s167_s18, %s167_s18 }
  0xd7   :  { %p4240_p3 = scmp.lt.s32.totalorder %s4238_s29, %s4234_s2 }
  0xd9   :  { %p4241_p4 = por %p4240_p3, %p4239_p2 }
  0xdb   :  { %p4242_p5 = pnand %p4241_p4, %p4235_p1 }
  0xdd   :  { %4245 = shalt.err (!%p4242_p5)
}
  0xde   :  { %169 = dma.hbm_to_vmem [thread:$0]  %s5995_s12, 16, %s167_s18, [#allocation21]  }
  0xdf   :  { %4268 = dma.done.wait [#allocation3], 4096  }
  0xe0   :  { %4269 = vsyncadd [#allocation3], 4294963200 }
  0xe1   :  { %4270 = dma.done.wait [#allocation6], 1024  }
  0xe2   :  { %4271 = vsyncadd [#allocation6], 4294966272 }
  0xe3   :  { %4272 = dma.done.wait [#allocation9], 32  }
  0xe4   :  { %4273 = vsyncadd [#allocation9], 4294967264 }
  0xe5   :  { %4274 = dma.done.wait [#allocation12], 272  }
  0xe6   :  { %4275 = vsyncadd [#allocation12], 4294967024 }
  0xe7   :  { %4276 = dma.done.wait [#allocation15], 272  }
  0xe8   :  { %4277 = vsyncadd [#allocation15], 4294967024 }
  0xe9   :  { %4278 = dma.done.wait [#allocation18], 272  }
  0xea   :  { %4279 = vsyncadd [#allocation18], 4294967024 }
  0xeb   :  { %4280 = dma.done.wait [#allocation21], 272  }
  0xec   :  { %4281 = vsyncadd [#allocation21], 4294967024  ;;  %v5997_v0 = vmov 0.0|0.0   ;;  %vm4302_vm0 = vmmov 0   ;;  %v4303_v1 = vmov 0.0   ;;  %vm242_vm1 = vcmask 261120  }
  0xed   :  { %3669 = vmatprep.subr.bf16.mxu0 %v5997_v0  ;;  %3383 = vmatprep.mubr.msk.f32.mxu0 %vm4302_vm0, %v4303_v1  ;;  %v467_v2 = vld [vmem:[#allocation5] sm:$0xff]  ;;  %v468_v3 = vld [vmem:[#allocation5 + $0x8] sm:$0xff]  ;;  %v469_v4 = vld [vmem:[#allocation5 + $0x10] sm:$0xff]  ;;  %vm447_vm2 = vcmask 1041409   ;;  %vm449_vm3 = vcmask 1042434   ;;  %vm458_vm4 = vcmask 1045509  }
  0xee   :  { %3675 = vmatprep.subr.bf16.mxu1 %v5997_v0  ;;  %3394 = vmatprep.mubr.msk.f32.mxu1 %vm4302_vm0, %v4303_v1  ;;  %v3670_v5 = vpack.c.bf16 %v468_v3, %v467_v2  ;;  %v470_v6 = vld [vmem:[#allocation5 + $0x18] sm:$0xff]  ;;  %v4564_v7 = vld [vmem:[#allocation2] sm:$0xff]  ;;  %v4566_v8 = vld [vmem:[#allocation2 + $0x8] sm:$0xff]  ;;  %vm451_vm5 = vcmask 1043459   ;;  %vm460_vm6 = vcmask 1046534   ;;  %vm462_vm7 = vcmask 1047559  }
  0xef   :  { %v4568_v9 = vld [vmem:[#allocation2 + $0x10] sm:$0xff]  ;;  %v243_v10 = vsel %vm242_vm1, %v4564_v7, 0.0  ;;  %v244_v11 = vsel %vm242_vm1, %v4566_v8, 0.0  ;;  %v3673_v12 = vpack.c.bf16 %v470_v6, %v469_v4  ;;  %v4574_v13 = vld [vmem:[#allocation2 + $0x18] sm:$0xff]  ;;  %v4576_v14 = vld [vmem:[#allocation2 + $0x20] sm:$0xff]  ;;  %vm465_vm8 = vcmask 1043456  }
  0xf0   :  { %3671 = vmatpush3.bf16.msra.mxu0 %v3670_v5  ;;  %v245_v15 = vadd.f32 %v244_v11, %v243_v10  ;;  %v246_v16 = vsel %vm242_vm1, %v4568_v9, 0.0  ;;  %v4581_v17 = vld [vmem:[#allocation2 + $0x40] sm:$0xff]  ;;  %v4583_v18 = vld [vmem:[#allocation2 + $0x48] sm:$0xff]  ;;  %v4585_v19 = vld [vmem:[#allocation2 + $0x50] sm:$0xff]  ;;  %v248_v20 = vsel %vm242_vm1, %v4574_v13, 0.0  ;;  %v250_v21 = vsel %vm242_vm1, %v4576_v14, 0.0 }
  0xf1   :  { %3672 = vmatprep.subr.bf16.mxu0 %v5997_v0  ;;  %6008 = vst [vmem:[#allocation32_spill] sm:$0xff] %v4585_v19  ;;  %v4591_v22 = vld [vmem:[#allocation2 + $0x28] sm:$0xff]  ;;  %v4593_v23 = vld [vmem:[#allocation2 + $0x30] sm:$0xff]  ;;  %v4595_v24 = vld [vmem:[#allocation2 + $0x38] sm:$0xff]  ;;  %v264_v26 = vsel %vm242_vm1, %v4581_v17, 0.0  ;;  %v265_v27 = vsel %vm242_vm1, %v4583_v18, 0.0 }
  0xf2   :  { %v247_v25 = vadd.f32 %v246_v16, %v245_v15  ;;  %v267_v28 = vsel %vm242_vm1, %v4585_v19, 0.0  ;;  %v4603_v29 = vld [vmem:[#allocation2 + $0x58] sm:$0xff]  ;;  %v4605_v30 = vld [vmem:[#allocation2 + $0x60] sm:$0xff]  ;;  %v252_v32 = vsel %vm242_vm1, %v4591_v22, 0.0  ;;  %v254_v33 = vsel %vm242_vm1, %v4593_v23, 0.0  ;;  %v4615_v36 = vld [vmem:[#allocation2 + $0x68] sm:$0xff] }
  0xf3   :  { %6009 = vst [vmem:[#allocation33_spill] sm:$0xff] %v4603_v29  ;;  %6010 = vst [vmem:[#allocation34_spill] sm:$0xff] %v4605_v30  ;;  %v4607_v31 = vld [vmem:[#allocation2 + $0x80] sm:$0xff]  ;;  %v256_v34 = vsel %vm242_vm1, %v4595_v24, 0.0  ;;  %v266_v35 = vadd.f32 %v265_v27, %v264_v26  ;;  %v4617_v37 = vld [vmem:[#allocation2 + $0x88] sm:$0xff]  ;;  %v269_v40 = vsel %vm242_vm1, %v4603_v29, 0.0 }
  0xf4   :  { %3674 = vmatpush3.bf16.msra.mxu0 %v3673_v12  ;;  %6011 = vst [vmem:[#allocation35_spill] sm:$0xff] %v4615_v36  ;;  %v4619_v38 = vld [vmem:[#allocation2 + $0x90] sm:$0xff]  ;;  %v249_v39 = vadd.f32 %v248_v20, %v247_v25  ;;  %v271_v41 = vsel %vm242_vm1, %v4605_v30, 0.0  ;;  %v285_v42 = vsel %vm242_vm1, %v4607_v31, 0.0  ;;  %v4629_v44 = vld [vmem:[#allocation2 + $0x78] sm:$0xff]  ;;  %v273_v46 = vsel %vm242_vm1, %v4615_v36, 0.0 }
  0xf5   :  { %v4627_v43 = vld [vmem:[#allocation2 + $0x70] sm:$0xff]  ;;  %6013 = vst [vmem:[#allocation37_spill] sm:$0xff] %v4629_v44  ;;  %v268_v45 = vadd.f32 %v267_v28, %v266_v35  ;;  %v286_v47 = vsel %vm242_vm1, %v4617_v37, 0.0  ;;  %v288_v48 = vsel %vm242_vm1, %v4619_v38, 0.0  ;;  %v4637_v49 = vld [vmem:[#allocation2 + $0x98] sm:$0xff]  ;;  %v4639_v50 = vld [vmem:[#allocation2 + $0xa0] sm:$0xff] }
  0xf6   :  { %6012 = vst [vmem:[#allocation36_spill] sm:$0xff] %v4627_v43  ;;  %v4641_v51 = vld [vmem:[#allocation2 + $0xc0] sm:$0xff]  ;;  %v251_v52 = vadd.f32 %v250_v21, %v249_v39  ;;  %v275_v53 = vsel %vm242_vm1, %v4627_v43, 0.0  ;;  %v277_v54 = vsel %vm242_vm1, %v4629_v44, 0.0  ;;  %v287_v55 = vadd.f32 %v286_v47, %v285_v42  ;;  %v4647_v56 = vld [vmem:[#allocation2 + $0xc8] sm:$0xff]  ;;  %v4649_v57 = vld [vmem:[#allocation2 + $0xd0] sm:$0xff] }
  0xf7   :  { %6014 = vst [vmem:[#allocation38_spill] sm:$0xff] %v4641_v51  ;;  %6015 = vst [vmem:[#allocation39_spill] sm:$0xff] %v4649_v57  ;;  %v270_v58 = vadd.f32 %v269_v40, %v268_v45  ;;  %v290_v59 = vsel %vm242_vm1, %v4637_v49, 0.0  ;;  %v292_v60 = vsel %vm242_vm1, %v4639_v50, 0.0  ;;  %v306_v61 = vsel %vm242_vm1, %v4641_v51, 0.0  ;;  %v4657_v62 = vld [vmem:[#allocation2 + $0xa8] sm:$0xff] }
  0xf8   :  { %v4659_v63 = vld [vmem:[#allocation2 + $0xb0] sm:$0xff]  ;;  %v4661_v1 = vld [vmem:[#allocation2 + $0xd8] sm:$0xff]  ;;  %v253_v2 = vadd.f32 %v252_v32, %v251_v52  ;;  %v289_v3 = vadd.f32 %v288_v48, %v287_v55  ;;  %v307_v4 = vsel %vm242_vm1, %v4647_v56, 0.0  ;;  %v309_v5 = vsel %vm242_vm1, %v4649_v57, 0.0  ;;  %v4667_v6 = vld [vmem:[#allocation2 + $0xe0] sm:$0xff]  ;;  %s4306_s12 = smov [#allocation23]  }
  0xf9   :  { %6016 = vst [vmem:[#allocation40_spill] sm:$0xff] %v4661_v1  ;;  %v272_v10 = vadd.f32 %v271_v41, %v270_v58  ;;  %v294_v11 = vsel %vm242_vm1, %v4657_v62, 0.0  ;;  %v308_v12 = vadd.f32 %v307_v4, %v306_v61  ;;  %v296_v20 = vsel %vm242_vm1, %v4659_v63, 0.0  ;;  %v4675_v25 = vld [vmem:[#allocation2 + $0xe8] sm:$0xff]  ;;  %v4681_v45 = vld [vmem:[#allocation2 + $0xb8] sm:$0xff]  ;;  %v4683_v52 = vld [vmem:[#allocation2 + $0xf0] sm:$0xff] }
  0xfa   :  { %v255_v15 = vadd.f32 %v254_v33, %v253_v2  ;;  %v291_v16 = vadd.f32 %v290_v59, %v289_v3  ;;  %v311_v21 = vsel %vm242_vm1, %v4661_v1, 0.0  ;;  %v313_v28 = vsel %vm242_vm1, %v4667_v6, 0.0  ;;  %6017 = vst [vmem:[#allocation41_spill] sm:$0xff] %v4681_v45  ;;  %s3099_s15 = sshll.u32 %s4306_s12, 4  ;;  %s3100_s15 = int_to_ptr.vmem [resolvable:$true] %s3099_s15 }
  0xfb   :  { %v274_v26 = vadd.f32 %v273_v46, %v272_v10  ;;  %v310_v27 = vadd.f32 %v309_v5, %v308_v12  ;;  %v315_v42 = vsel %vm242_vm1, %v4675_v25, 0.0  ;;  %v298_v55 = vsel %vm242_vm1, %v4681_v45, 0.0  ;;  %s4246_s1 = scalar_lea.vmem %s3100_s15, 4096  ;;  %p4251_p7 = scmp.lt.s32.totalorder %s3100_s15, %s3100_s15 }
  0xfc   :  { %v257_v32 = vadd.f32 %v256_v34, %v255_v15  ;;  %v293_v35 = vadd.f32 %v292_v60, %v291_v16  ;;  %v4689_v60 = vld [vmem:[#allocation2 + $0xf8] sm:$0xff]  ;;  %v328_v2 = vmul.f32 %v4566_v8, %v4566_v8  ;;  %v329_v3 = vmul.f32 %v4568_v9, %v4568_v9  ;;  %p4247_p6 = scmp.ne.s32.totalorder %s3100_s15, %s4246_s1  ;;  %p4252_p8 = scmp.lt.s32.totalorder %s4246_s1, %s4246_s1 }
  0xfd   :  { %v276_v39 = vadd.f32 %v275_v53, %v274_v26  ;;  %v312_v40 = vadd.f32 %v311_v21, %v310_v27  ;;  %v317_v53 = vsel %vm242_vm1, %v4683_v52, 0.0  ;;  %v319_v61 = vsel %vm242_vm1, %v4689_v60, 0.0 }
  0xfe   :  { %v258_v41 = vrot.slane %v257_v32, 4  ;;  %v295_v33 = vadd.f32 %v294_v11, %v293_v35  ;;  %v330_v10 = vmul.f32 %v4574_v13, %v4574_v13  ;;  %v331_v11 = vmul.f32 %v4576_v14, %v4576_v14  ;;  %p4253_p9 = por %p4252_p8, %p4251_p7 }
  0xff   :  { %v278_v47 = vadd.f32 %v277_v54, %v276_v39  ;;  %v314_v48 = vadd.f32 %v313_v28, %v312_v40  ;;  %v327_v54 = vmul.f32 %v4564_v7, %v4564_v7  ;;  %v332_v16 = vmul.f32 %v4591_v22, %v4591_v22 }
 0x100   :  { %v297_v46 = vadd.f32 %v296_v20, %v295_v33  ;;  %v259_v58 = vadd.f32 %v258_v41, %v257_v32  ;;  %v333_v20 = vmul.f32 %v4593_v23, %v4593_v23  ;;  %v334_v21 = vmul.f32 %v4595_v24, %v4595_v24  ;;  %p4254_p10 = pnand %p4253_p9, %p4247_p6 }
 0x101   :  { %v279_v34 = vrot.slane %v278_v47, 4  ;;  %v316_v59 = vadd.f32 %v315_v42, %v314_v48  ;;  %v335_v26 = vmul.f32 %v4581_v17, %v4581_v17  ;;  %v336_v27 = vmul.f32 %v4583_v18, %v4583_v18 }
 0x102   :  { %v299_v4 = vadd.f32 %v298_v55, %v297_v46  ;;  %v260_v12 = vrot.slane %v259_v58, 2  ;;  %v337_v28 = vmul.f32 %v4585_v19, %v4585_v19  ;;  %v338_v32 = vmul.f32 %v4603_v29, %v4603_v29 }
 0x103   :  { %v318_v5 = vadd.f32 %v317_v53, %v316_v59  ;;  %v280_v15 = vadd.f32 %v279_v34, %v278_v47  ;;  %v339_v35 = vmul.f32 %v4605_v30, %v4605_v30  ;;  %v340_v39 = vmul.f32 %v4615_v36, %v4615_v36 }
 0x104   :  { %v341_v40 = vmul.f32 %v4627_v43, %v4627_v43  ;;  %v300_v41 = vrot.slane %v299_v4, 4  ;;  %v4725_v42 = vmul.f32 %v4629_v44, %v4629_v44  ;;  %v343_v47 = vmul.f32 %v4607_v31, %v4607_v31 }
 0x105   :  { %v320_v33 = vadd.f32 %v319_v61, %v318_v5  ;;  %v4729_v48 = vadd.f32 %v260_v12, %v259_v58  ;;  %v281_v46 = vrot.slane %v280_v15, 2  ;;  %v344_v55 = vmul.f32 %v4617_v37, %v4617_v37 }
 0x106   :  { %v345_v34 = vmul.f32 %v4619_v38, %v4619_v38  ;;  %v346_v59 = vmul.f32 %v4637_v49, %v4637_v49  ;;  %v347_v53 = vmul.f32 %v4639_v50, %v4639_v50  ;;  %v359_v61 = vsel %vm242_vm1, %v327_v54, 0.0 }
 0x107   :  { %v360_v5 = vsel %vm242_vm1, %v328_v2, 0.0  ;;  %v348_v58 = vmul.f32 %v4657_v62, %v4657_v62  ;;  %v349_v12 = vmul.f32 %v4659_v63, %v4659_v63  ;;  %v362_v44 = vsel %vm242_vm1, %v329_v3, 0.0 }
 0x108   :  { %v361_v0 = vadd.f32 %v360_v5, %v359_v61  ;;  %v4746_v43 = vadd.f32 %v300_v41, %v299_v4  ;;  %v321_v36 = vrot.slane %v320_v33, 4  ;;  %v4750_v30 = vmul.f32 %v4681_v45, %v4681_v45 }
 0x109   :  { %v364_v54 = vsel %vm242_vm1, %v330_v10, 0.0  ;;  %v4753_v29 = vadd.f32 %v281_v46, %v280_v15  ;;  %v351_v2 = vmul.f32 %v4641_v51, %v4641_v51  ;;  %v352_v19 = vmul.f32 %v4647_v56, %v4647_v56 }
 0x10a   :  { %v363_v61 = vadd.f32 %v362_v44, %v361_v0  ;;  %v366_v3 = vsel %vm242_vm1, %v331_v11, 0.0  ;;  %v380_v4 = vsel %vm242_vm1, %v335_v26, 0.0  ;;  %v381_v41 = vsel %vm242_vm1, %v336_v27, 0.0 }
 0x10b   :  { %v383_v5 = vsel %vm242_vm1, %v337_v28, 0.0  ;;  %v353_v10 = vmul.f32 %v4649_v57, %v4649_v57  ;;  %v354_v15 = vmul.f32 %v4661_v1, %v4661_v1  ;;  %v382_v51 = vadd.f32 %v381_v41, %v380_v4 }
 0x10c   :  { %v365_v46 = vadd.f32 %v364_v54, %v363_v61  ;;  %v4767_v45 = vadd.f32 %v321_v36, %v320_v33  ;;  %v355_v0 = vmul.f32 %v4667_v6, %v4667_v6  ;;  %v368_v44 = vsel %vm242_vm1, %v332_v16, 0.0 }
 0x10d   :  { %v385_v11 = vsel %vm242_vm1, %v338_v32, 0.0  ;;  %v356_v26 = vmul.f32 %v4675_v25, %v4675_v25  ;;  %v384_v28 = vadd.f32 %v383_v5, %v382_v51  ;;  %v401_v57 = vsel %vm242_vm1, %v343_v47, 0.0 }
 0x10e   :  { %v367_v27 = vadd.f32 %v366_v3, %v365_v46  ;;  %v370_v1 = vsel %vm242_vm1, %v333_v20, 0.0  ;;  %v387_v54 = vsel %vm242_vm1, %v339_v35, 0.0  ;;  %v402_v36 = vsel %vm242_vm1, %v344_v55, 0.0 }
 0x10f   :  { %v404_v33 = vsel %vm242_vm1, %v345_v34, 0.0  ;;  %v372_v16 = vsel %vm242_vm1, %v334_v21, 0.0  ;;  %v386_v4 = vadd.f32 %v385_v11, %v384_v28  ;;  %v403_v32 = vadd.f32 %v402_v36, %v401_v57 }
 0x110   :  { %v369_v61 = vadd.f32 %v368_v44, %v367_v27  ;;  %v389_v41 = vsel %vm242_vm1, %v340_v39, 0.0  ;;  %v406_v3 = vsel %vm242_vm1, %v346_v59, 0.0  ;;  %v422_v51 = vsel %vm242_vm1, %v351_v2, 0.0 }
 0x111   :  { %v423_v47 = vsel %vm242_vm1, %v352_v19, 0.0  ;;  %v388_v5 = vadd.f32 %v387_v54, %v386_v4  ;;  %v405_v35 = vadd.f32 %v404_v33, %v403_v32  ;;  %v391_v55 = vsel %vm242_vm1, %v341_v40, 0.0 }
 0x112   :  { %v371_v20 = vadd.f32 %v370_v1, %v369_v61  ;;  %v424_v46 = vadd.f32 %v423_v47, %v422_v51  ;;  %v408_v34 = vsel %vm242_vm1, %v347_v53, 0.0  ;;  %v425_v21 = vsel %vm242_vm1, %v353_v10, 0.0 }
 0x113   :  { %v427_v57 = vsel %vm242_vm1, %v354_v15, 0.0  ;;  %v390_v39 = vadd.f32 %v389_v41, %v388_v5  ;;  %v407_v11 = vadd.f32 %v406_v3, %v405_v35  ;;  %v357_v2 = vmul.f32 %v4683_v52, %v4683_v52 }
 0x114   :  { %v373_v44 = vadd.f32 %v372_v16, %v371_v20  ;;  %v426_v59 = vadd.f32 %v425_v21, %v424_v46  ;;  %v393_v19 = vsel %vm242_vm1, %v4725_v42, 0.0  ;;  %v410_v1 = vsel %vm242_vm1, %v348_v58, 0.0 }
 0x115   :  { %v429_v40 = vsel %vm242_vm1, %v355_v0, 0.0  ;;  %v392_v53 = vadd.f32 %v391_v55, %v390_v39  ;;  %v409_v28 = vadd.f32 %v408_v34, %v407_v11  ;;  %v302_v15 = vrot.slane %v4746_v43, 2 }
 0x116   :  { %v374_v27 = vrot.slane %v373_v44, 4  ;;  %v428_v10 = vadd.f32 %v427_v57, %v426_v59  ;;  %v358_v54 = vmul.f32 %v4689_v60, %v4689_v60  ;;  %v412_v36 = vsel %vm242_vm1, %v349_v12, 0.0 }
 0x117   :  { %v431_v33 = vsel %vm242_vm1, %v356_v26, 0.0  ;;  %v394_v16 = vadd.f32 %v393_v19, %v392_v53  ;;  %v411_v42 = vadd.f32 %v410_v1, %v409_v28  ;;  %v323_v58 = vrot.slane %v4767_v45, 2 }
 0x118   :  { %v375_v61 = vadd.f32 %v374_v27, %v373_v44  ;;  %v430_v4 = vadd.f32 %v429_v40, %v428_v10  ;;  %v414_v0 = vsel %vm242_vm1, %v4750_v30, 0.0  ;;  %v433_v32 = vsel %vm242_vm1, %v357_v2, 0.0 }
 0x119   :  { %v395_v3 = vrot.slane %v394_v16, 4  ;;  %v413_v51 = vadd.f32 %v412_v36, %v411_v42  ;;  %v262_v20 = vrot.slane %v4729_v48, 1  ;;  %v283_v12 = vrot.slane %v4753_v29, 1 }
 0x11a   :  { %v376_v41 = vrot.slane %v375_v61, 2  ;;  %v432_v47 = vadd.f32 %v431_v33, %v430_v4  ;;  %v303_v26 = vadd.f32 %v302_v15, %v4746_v43  ;;  %v435_v5 = vsel %vm242_vm1, %v358_v54, 0.0 }
 0x11b   :  { %v396_v46 = vadd.f32 %v395_v3, %v394_v16  ;;  %v415_v55 = vadd.f32 %v414_v0, %v413_v51  ;;  %v324_v30 = vadd.f32 %v323_v58, %v4767_v45  ;;  %v263_v39 = vadd.f32 %v262_v20, %v4729_v48  ;;  %v553_v20 = vld [vmem:[#allocation7 + $0x8] sm:$0xff] }
 0x11c   :  { %v377_v35 = vadd.f32 %v376_v41, %v375_v61  ;;  %v434_v34 = vadd.f32 %v433_v32, %v432_v47  ;;  %v304_v11 = vrot.slane %v303_v26, 1  ;;  %v284_v2 = vadd.f32 %v283_v12, %v4753_v29  ;;  %v552_v47 = vld [vmem:[#allocation7] sm:$0xff]  ;;  %v554_v12 = vld [vmem:[#allocation7 + $0x10] sm:$0xff] }
 0x11d   :  { %v397_v21 = vrot.slane %v396_v46, 2  ;;  %v416_v57 = vrot.slane %v415_v55, 4  ;;  %v325_v40 = vrot.slane %v324_v30, 1  ;;  %vm1881_vm9 = vcmask 523264  }
 0x11e   :  { %v436_v44 = vadd.f32 %v435_v5, %v434_v34  ;;  %v378_v59 = vrot.slane %v377_v35, 1  ;;  %v305_v10 = vadd.f32 %v304_v11, %v303_v26  ;;  %v448_v48 = vsel %vm447_vm2, %v284_v2, %v263_v39  ;;  %v555_v5 = vld [vmem:[#allocation7 + $0x18] sm:$0xff]  ;;  %v3727_v2 = vld [vmem:[#allocation11 + $0x8] sm:$0xff]  }
 0x11f   :  { %v398_v19 = vadd.f32 %v397_v21, %v396_v46  ;;  %v417_v1 = vadd.f32 %v416_v57, %v415_v55  ;;  %v326_v33 = vadd.f32 %v325_v40, %v324_v30  ;;  %v3676_v26 = vpack.c.bf16 %v553_v20, %v552_v47 }
 0x120   :  { %v437_v43 = vrot.slane %v436_v44, 4  ;;  %v379_v15 = vadd.f32 %v378_v59, %v377_v35  ;;  %v450_v29 = vsel %vm449_vm3, %v305_v10, %v448_v48  ;;  %v3679_v35 = vpack.c.bf16 %v555_v5, %v554_v12  ;;  %v3726_v59 = vld [vmem:[#allocation11] sm:$0xff]  }
 0x121   :  { %v399_v27 = vrot.slane %v398_v19, 1  ;;  %v418_v53 = vrot.slane %v417_v1, 2  ;;  %v452_v32 = vsel %vm451_vm5, %v326_v33, %v450_v29  ;;  %3677 = vmatpush3.bf16.msra.mxu1 %v3676_v26  ;;  %v6018_v46 = vmov 0.0|0.0   ;;  %3397 = vmatprep.subr.bf16.mxu0 %v3726_v59 }
 0x122   :  { %v438_v28 = vadd.f32 %v437_v43, %v436_v44  ;;  %3678 = vmatprep.subr.bf16.mxu1 %v6018_v46  ;;  %v4304_v43 = vmov 1966171168  }
 0x123   :  { %v400_v45 = vadd.f32 %v399_v27, %v398_v19  ;;  %v419_v54 = vadd.f32 %v418_v53, %v417_v1  ;;  %v4816_v19 = vld [vmem:[#allocation17] sm:$0xff]   ;;  %v4819_v1 = vld [vmem:[#allocation14] sm:$0xff]   ;;  %v631_v40 = vunpack.c.l.s4 %v4304_v43  ;;  %v633_v27 = vlaneseq }
 0x124   :  { %v439_v36 = vrot.slane %v438_v28, 2 }
 0x125   :  { %v420_v61 = vrot.slane %v419_v54, 1  ;;  %v459_v42 = vsel %vm458_vm4, %v400_v45, %v379_v15  ;;  %3680 = vmatpush3.bf16.msra.mxu1 %v3679_v35  ;;  %v632_v53 = vunpack.c.0.s8 %v631_v40 }
 0x126   :  { %v440_v16 = vadd.f32 %v439_v36, %v438_v28  ;;  %3681 = vmatprep.subr.bf16.mxu1 %v3726_v59  ;;  %v634_v28 = vshrl.u32 %v633_v27, 7 }
 0x127   :  { %v421_v4 = vadd.f32 %v420_v61, %v419_v54 }
 0x128   :  { %v441_v58 = vrot.slane %v440_v16, 1  ;;  %v635_v10 = vsub.s32 %v632_v53, %v634_v28  ;;  %v656_v54 = vsub.s32 0, %v634_v28 }
 0x129   :  { %v461_v41 = vsel %vm460_vm6, %v421_v4, %v459_v42 }
 0x12a   :  { %v442_v0 = vadd.f32 %v441_v58, %v440_v16 }
 0x12c   :  { %v463_v3 = vsel %vm462_vm7, %v442_v0, %v461_v41 }
 0x12d   :  { %v466_v51 = vsel %vm465_vm8, %v452_v32, %v463_v3 }
 0x12e   :  { %3384 = vmatmul.mubr.msk.f32.vlgmr.msra.gmra.mrb[0].mxu0 %vm242_vm1, %v466_v51 }
 0x12f   :  { %3398 = vmatpush3.bf16.msra.mxu0 %v3726_v59 }
 0x130   :  { %3399 = vmatprep.subr.bf16.mxu0 %v3727_v2 }
 0x133   :  { %3400 = vmatpush3.bf16.msra.mxu0 %v3727_v2 }
 0x134   :  { %3469 = vmatprep.subr.bf16.mxu0 %v4816_v19 }
 0x201   :  { %v540_v55 = vpop.f32.mrb[0].mxu0 }
 0x202   :  { %v544_v34 = vmul.f32 %v540_v55, %v540_v55  ;;  %v3385_v30 = vpop.f32.mrb[1].mxu0 }
 0x204   :  { %v546_v21 = vrot.slane %v544_v34, 4 }
 0x206   :  { %v548_v57 = vsub.f32 %v540_v55, %v546_v21 }
 0x208   :  { %v549_v44 = vadd.f32 1e-06, %v548_v57 }
 0x20a   :  { %3734 = vrsqrt.f32 %v549_v44  ;;  %v4850_v44 = vld [vmem:[#allocation10] ss:$0 sm:$0xff] }
 0x214   :  { %v3735_v39 = vpop.eup %3734 }
 0x215   :  { %v551_v11 = vsel %vm465_vm8, %v540_v55, %v3735_v39  ;;  %v4838_v55 = vld [vmem:[#allocation8] ss:$0 sm:$0xff] }
 0x216   :  { %3395 = vmatmul.mubr.msk.f32.vlgmr.msra.gmra.mrb[0].mxu1 %vm242_vm1, %v551_v11 }
 0x217   :  { %3683 = vmatpush3.bf16.msra.mxu1 %v3726_v59 }
 0x218   :  { %3682 = vmatprep.subr.bf16.mxu1 %v3727_v2 }
 0x21b   :  { %3684 = vmatpush3.bf16.msra.mxu1 %v3727_v2 }
 0x21c   :  { %3433 = vmatprep.subr.bf16.mxu1 %v4819_v1 }
 0x2e9   :  { %v625_v15 = vpop.f32.mrb[0].mxu1 }
 0x2ea   :  { %v636_v45 = vrot.slane %v625_v15, %v635_v10  ;;  %v706_v36 = vcombine.high %v625_v15, %v625_v15  ;;  %v3396_v48 = vpop.f32.mrb[1].mxu1 }
 0x2ec   :  { %v637_v33 = vcombine.high %v636_v45, %v636_v45  ;;  %v644_v61 = vrot.slane %v636_v45, %v635_v10  ;;  %v713_v16 = vrot.slane %v706_v36, %v635_v10 }
 0x2ee   :  { %v651_v29 = vrot.slane %v637_v33, %v635_v10  ;;  %v652_v42 = vcombine.high %v644_v61, %v644_v61  ;;  %v4822_v4 = vrot.slane %v644_v61, %v656_v54  ;;  %v714_v58 = vcombine.high %v713_v16, %v713_v16 }
 0x2ef   :  { %v721_v0 = vrot.slane %v713_v16, %v635_v10 }
 0x2f0   :  { %v653_v32 = vcombine.high %v651_v29, %v651_v29  ;;  %v4824_v41 = vrot.slane %v651_v29, %v656_v54  ;;  %v4826_v3 = vrot.slane %v652_v42, %v656_v54  ;;  %v728_v51 = vrot.slane %v714_v58, %v635_v10 }
 0x2f1   :  { %v729_v47 = vcombine.high %v721_v0, %v721_v0  ;;  %v4828_v20 = vrot.slane %v721_v0, %v656_v54  ;;  %v674_v12 = vsub.f32 %v4564_v7, %v4822_v4  ;;  %v675_v26 = vsub.f32 %v4566_v8, %v4822_v4 }
 0x2f2   :  { %v4834_v5 = vrot.slane %v653_v32, %v656_v54  ;;  %v730_v35 = vcombine.high %v728_v51, %v728_v51  ;;  %v4836_v46 = vrot.slane %v728_v51, %v656_v54  ;;  %v676_v34 = vsub.f32 %v4568_v9, %v4822_v4 }
 0x2f3   :  { %v4842_v30 = vrot.slane %v729_v47, %v656_v54  ;;  %v751_v21 = vmul.f32 %v4828_v20, %v674_v12  ;;  %v752_v57 = vmul.f32 %v4828_v20, %v675_v26  ;;  %v677_v7 = vsub.f32 %v4574_v13, %v4822_v4 }
 0x2f4   :  { %v4848_v8 = vrot.slane %v730_v35, %v656_v54  ;;  %v753_v39 = vmul.f32 %v4828_v20, %v676_v34  ;;  %v678_v11 = vsub.f32 %v4576_v14, %v4822_v4  ;;  %v679_v9 = vsub.f32 %v4591_v22, %v4822_v4 }
 0x2f5   :  { %v790_v59 = vmul.f32 %v4838_v55, %v751_v21  ;;  %v791_v2 = vmul.f32 %v4838_v55, %v752_v57  ;;  %v754_v43 = vmul.f32 %v4828_v20, %v677_v7  ;;  %v690_v13 = vsub.f32 %v4607_v31, %v4826_v3  ;;  %v3730_v57 = vld [vmem:[#allocation17 + $0x8] sm:$0xff]  }
 0x2f6   :  { %v792_v40 = vmul.f32 %v4838_v55, %v753_v39  ;;  %v755_v27 = vmul.f32 %v4828_v20, %v678_v11  ;;  %v756_v53 = vmul.f32 %v4828_v20, %v679_v9  ;;  %v691_v14 = vsub.f32 %v4617_v37, %v4826_v3 }
 0x2f7   :  { %v829_v22 = vadd.f32 %v4850_v44, %v790_v59  ;;  %v830_v28 = vadd.f32 %v4850_v44, %v791_v2  ;;  %v793_v10 = vmul.f32 %v4838_v55, %v754_v43  ;;  %v767_v15 = vmul.f32 %v4842_v30, %v690_v13 }
 0x2f8   :  { %v831_v45 = vadd.f32 %v4850_v44, %v792_v40  ;;  %v794_v31 = vmul.f32 %v4838_v55, %v755_v27  ;;  %v795_v54 = vmul.f32 %v4838_v55, %v756_v53  ;;  %v768_v36 = vmul.f32 %v4842_v30, %v691_v14 }
 0x2f9   :  { %v4875_v48 = vpack.c.bf16 %v830_v28, %v829_v22  ;;  %v832_v37 = vadd.f32 %v4850_v44, %v793_v10  ;;  %v806_v33 = vmul.f32 %v4838_v55, %v767_v15  ;;  %v692_v61 = vsub.f32 %v4619_v38, %v4826_v3  ;;  %v6019_v10 = vld [vmem:[#allocation41_spill] sm:$0xff] }
 0x2fa   :  { %v833_v16 = vadd.f32 %v4850_v44, %v794_v31  ;;  %v834_v29 = vadd.f32 %v4850_v44, %v795_v54  ;;  %v807_v42 = vmul.f32 %v4838_v55, %v768_v36  ;;  %v693_v58 = vsub.f32 %v4637_v49, %v4826_v3  ;;  %v6020_v36 = vld [vmem:[#allocation38_spill] sm:$0xff] }
 0x2fb   :  { %3401 = vmatprep.mubr.msk.bf16.mxu0 %vm242_vm1, %v4875_v48  ;;  %v4888_v0 = vpack.c.bf16 %v832_v37, %v831_v45  ;;  %v845_v32 = vadd.f32 %v4850_v44, %v806_v33  ;;  %v769_v51 = vmul.f32 %v4842_v30, %v692_v61  ;;  %v694_v38 = vsub.f32 %v4639_v50, %v4826_v3  ;;  %v3731_v33 = vld [vmem:[#allocation14 + $0x8] sm:$0xff]  }
 0x2fc   :  { %v4894_v47 = vpack.c.bf16 %v834_v29, %v833_v16  ;;  %v846_v12 = vadd.f32 %v4850_v44, %v807_v42  ;;  %v770_v26 = vmul.f32 %v4842_v30, %v693_v58  ;;  %v695_v49 = vsub.f32 %v4657_v62, %v4826_v3 }
 0x2fd   :  { %3402 = vmatmul.mubr.msk.bf16.vlgmr.msra.gmra.mrb[4].mxu0 %vm242_vm1, %v4888_v0  ;;  %v808_v35 = vmul.f32 %v4838_v55, %v769_v51  ;;  %v771_v34 = vmul.f32 %v4842_v30, %v694_v38  ;;  %v680_v21 = vsub.f32 %v4593_v23, %v4822_v4  ;;  %v681_v50 = vsub.f32 %v4595_v24, %v4822_v4  ;;  %v6022_v38 = vld [vmem:[#allocation33_spill] sm:$0xff] }
 0x2fe   :  { %3405 = vmatprep.mubr.msk.bf16.mxu0 %vm242_vm1, %v4894_v47  ;;  %v4910_v7 = vpack.c.bf16 %v846_v12, %v845_v32  ;;  %v809_v62 = vmul.f32 %v4838_v55, %v770_v26  ;;  %v772_v39 = vmul.f32 %v4842_v30, %v695_v49  ;;  %v682_v11 = vsub.f32 %v4581_v17, %v4824_v41  ;;  %v6021_v32 = vld [vmem:[#allocation32_spill] sm:$0xff]  ;;  %v6023_v26 = vld [vmem:[#allocation34_spill] sm:$0xff] }
 0x2ff   :  { %v847_v9 = vadd.f32 %v4850_v44, %v808_v35  ;;  %v810_v23 = vmul.f32 %v4838_v55, %v771_v34  ;;  %v757_v59 = vmul.f32 %v4828_v20, %v680_v21  ;;  %v758_v24 = vmul.f32 %v4828_v20, %v681_v50  ;;  %3470 = vmatpush3.bf16.msra.mxu0 %v4816_v19 }
 0x300   :  { %3417 = vmatprep.mubr.msk.bf16.mxu1 %vm242_vm1, %v4910_v7  ;;  %v848_v4 = vadd.f32 %v4850_v44, %v809_v62  ;;  %v811_v2 = vmul.f32 %v4838_v55, %v772_v39  ;;  %v683_v17 = vsub.f32 %v4583_v18, %v4824_v41  ;;  %v759_v43 = vmul.f32 %v4836_v46, %v682_v11  ;;  %v6024_v39 = vld [vmem:[#allocation35_spill] sm:$0xff] }
 0x301   :  { %v849_v13 = vadd.f32 %v4850_v44, %v810_v23  ;;  %v796_v40 = vmul.f32 %v4838_v55, %v757_v59  ;;  %v797_v20 = vmul.f32 %v4838_v55, %v758_v24  ;;  %v696_v19 = vsub.f32 %v4659_v63, %v4826_v3  ;;  %3471 = vmatprep.subr.bf16.mxu0 %v3730_v57 }
 0x302   :  { %v4933_v27 = vpack.c.bf16 %v848_v4, %v847_v9  ;;  %v850_v53 = vadd.f32 %v4850_v44, %v811_v2  ;;  %v760_v14 = vmul.f32 %v4836_v46, %v683_v17  ;;  %v798_v18 = vmul.f32 %v4838_v55, %v759_v43  ;;  %v6025_v4 = vld [vmem:[#allocation39_spill] sm:$0xff] }
 0x303   :  { %v835_v22 = vadd.f32 %v4850_v44, %v796_v40  ;;  %v836_v28 = vadd.f32 %v4850_v44, %v797_v20  ;;  %v697_v15 = vsub.f32 %v6019_v10, %v4826_v3  ;;  %v773_v45 = vmul.f32 %v4842_v30, %v696_v19  ;;  %3472 = vmatpush3.bf16.msra.mxu0 %v3730_v57 }
 0x304   :  { %3418 = vmatmul.mubr.msk.bf16.vlgmr.msra.gmra.mrb[4].mxu1 %vm242_vm1, %v4933_v27  ;;  %v4945_v63 = vpack.c.bf16 %v850_v53, %v849_v13  ;;  %v799_v31 = vmul.f32 %v4838_v55, %v760_v14  ;;  %v837_v54 = vadd.f32 %v4850_v44, %v798_v18  ;;  %v698_v37 = vsub.f32 %v6020_v36, %v4834_v5  ;;  %v6026_v53 = vld [vmem:[#allocation40_spill] sm:$0xff] }
 0x305   :  { %v4951_v61 = vpack.c.bf16 %v836_v28, %v835_v22  ;;  %v774_v3 = vmul.f32 %v4842_v30, %v697_v15  ;;  %v812_v16 = vmul.f32 %v4838_v55, %v773_v45  ;;  %v699_v29 = vsub.f32 %v4647_v56, %v4834_v5  ;;  %3434 = vmatpush3.bf16.msra.mxu1 %v4819_v1 }
 0x306   :  { %3421 = vmatprep.mubr.msk.bf16.mxu1 %vm242_vm1, %v4945_v63  ;;  %v838_v42 = vadd.f32 %v4850_v44, %v799_v31  ;;  %v775_v58 = vmul.f32 %v4848_v8, %v698_v37  ;;  %v684_v51 = vsub.f32 %v6021_v32, %v4824_v41  ;;  %v685_v30 = vsub.f32 %v6022_v38, %v4824_v41 }
 0x307   :  { %3406 = vmatmul.mubr.msk.bf16.gmra.mrb[8].mxu0 %vm242_vm1, %v4951_v61  ;;  %v813_v56 = vmul.f32 %v4838_v55, %v774_v3  ;;  %v851_v1 = vadd.f32 %v4850_v44, %v812_v16  ;;  %v776_v12 = vmul.f32 %v4848_v8, %v699_v29  ;;  %v686_v49 = vsub.f32 %v6023_v26, %v4824_v41  ;;  %v6027_v3 = vld [vmem:[#allocation36_spill] sm:$0xff] }
 0x308   :  { %v4973_v35 = vpack.c.bf16 %v838_v42, %v837_v54  ;;  %v814_v34 = vmul.f32 %v4838_v55, %v775_v58  ;;  %v761_v21 = vmul.f32 %v4836_v46, %v684_v51  ;;  %v762_v50 = vmul.f32 %v4836_v46, %v685_v30  ;;  %3435 = vmatprep.subr.bf16.mxu1 %v3731_v33 }
 0x309   :  { %v852_v57 = vadd.f32 %v4850_v44, %v813_v56  ;;  %v815_v62 = vmul.f32 %v4838_v55, %v776_v12  ;;  %v687_v11 = vsub.f32 %v6024_v39, %v4824_v41  ;;  %v763_v9 = vmul.f32 %v4836_v46, %v686_v49  ;;  %3436 = vmatpush3.bf16.msra.mxu1 %v3731_v33 }
 0x30a   :  { %3409 = vmatprep.mubr.msk.bf16.mxu0 %vm242_vm1, %v4973_v35  ;;  %v853_v23 = vadd.f32 %v4850_v44, %v814_v34  ;;  %v800_v59 = vmul.f32 %v4838_v55, %v761_v21  ;;  %v801_v24 = vmul.f32 %v4838_v55, %v762_v50  ;;  %v700_v2 = vsub.f32 %v6025_v4, %v4834_v5 }
 0x30b   :  { %v4990_v17 = vpack.c.bf16 %v852_v57, %v851_v1  ;;  %v854_v43 = vadd.f32 %v4850_v44, %v815_v62  ;;  %v764_v13 = vmul.f32 %v4836_v46, %v687_v11  ;;  %v802_v40 = vmul.f32 %v4838_v55, %v763_v9 }
 0x30c   :  { %v839_v20 = vadd.f32 %v4850_v44, %v800_v59  ;;  %v840_v19 = vadd.f32 %v4850_v44, %v801_v24  ;;  %v701_v14 = vsub.f32 %v6026_v53, %v4834_v5  ;;  %v777_v18 = vmul.f32 %v4848_v8, %v700_v2 }
 0x30d   :  { %3422 = vmatmul.mubr.msk.bf16.gmra.mrb[8].mxu1 %vm242_vm1, %v4990_v17  ;;  %v5002_v22 = vpack.c.bf16 %v854_v43, %v853_v23  ;;  %v803_v28 = vmul.f32 %v4838_v55, %v764_v13  ;;  %v841_v10 = vadd.f32 %v4850_v44, %v802_v40  ;;  %v702_v15 = vsub.f32 %v4667_v6, %v4834_v5  ;;  %v6028_v6 = vld [vmem:[#allocation37_spill] sm:$0xff] }
 0x30e   :  { %v866_v45 = vpack.c.bf16 %v840_v19, %v839_v20  ;;  %v778_v31 = vmul.f32 %v4848_v8, %v701_v14  ;;  %v816_v54 = vmul.f32 %v4838_v55, %v777_v18  ;;  %v703_v36 = vsub.f32 %v4675_v25, %v4834_v5 }
 0x30f   :  { %3425 = vmatprep.mubr.msk.bf16.mxu1 %vm242_vm1, %v5002_v22  ;;  %v842_v37 = vadd.f32 %v4850_v44, %v803_v28  ;;  %v779_v33 = vmul.f32 %v4848_v8, %v702_v15  ;;  %v688_v16 = vsub.f32 %v6027_v3, %v4824_v41  ;;  %v689_v29 = vsub.f32 %v6028_v6, %v4824_v41 }
 0x310   :  { %3410 = vmatmul.mubr.msk.bf16.gmra.mrb[12].mxu0 %vm242_vm1, %v866_v45  ;;  %v817_v42 = vmul.f32 %v4838_v55, %v778_v31  ;;  %v855_v58 = vadd.f32 %v4850_v44, %v816_v54  ;;  %v780_v25 = vmul.f32 %v4848_v8, %v703_v36  ;;  %v704_v32 = vsub.f32 %v4683_v52, %v4834_v5 }
 0x311   :  { %v867_v51 = vpack.c.bf16 %v842_v37, %v841_v10  ;;  %v818_v38 = vmul.f32 %v4838_v55, %v779_v33  ;;  %v765_v30 = vmul.f32 %v4836_v46, %v688_v16  ;;  %v766_v56 = vmul.f32 %v4836_v46, %v689_v29 }
 0x312   :  { %v856_v41 = vadd.f32 %v4850_v44, %v817_v42  ;;  %v819_v1 = vmul.f32 %v4838_v55, %v780_v25  ;;  %v705_v12 = vsub.f32 %v4689_v60, %v4834_v5  ;;  %v781_v26 = vmul.f32 %v4848_v8, %v704_v32 }
 0x313   :  { %3413 = vmatprep.mubr.msk.bf16.mxu0 %vm242_vm1, %v867_v51  ;;  %v857_v52 = vadd.f32 %v4850_v44, %v818_v38  ;;  %v804_v49 = vmul.f32 %v4838_v55, %v765_v30  ;;  %v805_v34 = vmul.f32 %v4838_v55, %v766_v56 }
 0x314   :  { %v874_v21 = vpack.c.bf16 %v856_v41, %v855_v58  ;;  %v858_v46 = vadd.f32 %v4850_v44, %v819_v1  ;;  %v782_v50 = vmul.f32 %v4848_v8, %v705_v12  ;;  %v820_v57 = vmul.f32 %v4838_v55, %v781_v26 }
 0x315   :  { %v843_v62 = vadd.f32 %v4850_v44, %v804_v49  ;;  %v844_v60 = vadd.f32 %v4850_v44, %v805_v34 }
 0x316   :  { %3426 = vmatmul.mubr.msk.bf16.gmra.mrb[12].mxu1 %vm242_vm1, %v874_v21  ;;  %v875_v5 = vpack.c.bf16 %v858_v46, %v857_v52  ;;  %v821_v39 = vmul.f32 %v4838_v55, %v782_v50  ;;  %v859_v9 = vadd.f32 %v4850_v44, %v820_v57  ;;  %v5102_v55 = vld [vmem:[#allocation13] ss:$0 sm:$0xff] }
 0x317   :  { %v868_v11 = vpack.c.bf16 %v844_v60, %v843_v62 }
 0x318   :  { %3429 = vmatprep.mubr.msk.bf16.mxu1 %vm242_vm1, %v875_v5  ;;  %v860_v23 = vadd.f32 %v4850_v44, %v821_v39 }
 0x319   :  { %3414 = vmatmul.mubr.msk.bf16.gmra.mrb[16].mxu0 %vm242_vm1, %v868_v11 }
 0x31a   :  { %3473 = vmatprep.mubr.msk.bf16.mxu0 %vm242_vm1, %v4875_v48  ;;  %v876_v8 = vpack.c.bf16 %v860_v23, %v859_v9 }
 0x31e   :  { %3430 = vmatmul.mubr.msk.bf16.gmra.mrb[16].mxu1 %vm242_vm1, %v876_v8 }
 0x31f   :  { %3437 = vmatprep.mubr.msk.bf16.mxu1 %vm242_vm1, %v4875_v48 }
 0x321   :  { %3474 = vmatmul.mubr.msk.bf16.vlgmr.msra.gmra.mrb[20].mxu0 %vm242_vm1, %v4888_v0 }
 0x322   :  { %3477 = vmatprep.mubr.msk.bf16.mxu0 %vm242_vm1, %v4894_v47 }
 0x326   :  { %3438 = vmatmul.mubr.msk.bf16.vlgmr.msra.gmra.mrb[20].mxu1 %vm242_vm1, %v4888_v0 }
 0x327   :  { %3441 = vmatprep.mubr.msk.bf16.mxu1 %vm242_vm1, %v4894_v47 }
 0x329   :  { %3478 = vmatmul.mubr.msk.bf16.gmra.mrb[24].mxu0 %vm242_vm1, %v4951_v61 }
 0x32a   :  { %3481 = vmatprep.mubr.msk.bf16.mxu0 %vm242_vm1, %v4973_v35 }
 0x32e   :  { %3442 = vmatmul.mubr.msk.bf16.gmra.mrb[24].mxu1 %vm242_vm1, %v4951_v61 }
 0x32f   :  { %3445 = vmatprep.mubr.msk.bf16.mxu1 %vm242_vm1, %v4973_v35 }
 0x331   :  { %3482 = vmatmul.mubr.msk.bf16.gmra.mrb[28].mxu0 %vm242_vm1, %v866_v45 }
 0x332   :  { %3485 = vmatprep.mubr.msk.bf16.mxu0 %vm242_vm1, %v867_v51 }
 0x336   :  { %3446 = vmatmul.mubr.msk.bf16.gmra.mrb[28].mxu1 %vm242_vm1, %v866_v45 }
 0x337   :  { %3449 = vmatprep.mubr.msk.bf16.mxu1 %vm242_vm1, %v867_v51 }
 0x339   :  { %3486 = vmatmul.mubr.msk.bf16.gmra.mrb[32].mxu0 %vm242_vm1, %v868_v11 }
 0x33a   :  { %3489 = vmatprep.mubr.msk.bf16.mxu0 %vm242_vm1, %v4910_v7 }
 0x33e   :  { %3450 = vmatmul.mubr.msk.bf16.gmra.mrb[32].mxu1 %vm242_vm1, %v868_v11 }
 0x33f   :  { %3453 = vmatprep.mubr.msk.bf16.mxu1 %vm242_vm1, %v4910_v7 }
 0x341   :  { %3490 = vmatmul.mubr.msk.bf16.gmra.mrb[36].mxu0 %vm242_vm1, %v4933_v27 }
 0x342   :  { %3493 = vmatprep.mubr.msk.bf16.mxu0 %vm242_vm1, %v4945_v63 }
 0x346   :  { %3454 = vmatmul.mubr.msk.bf16.gmra.mrb[36].mxu1 %vm242_vm1, %v4933_v27 }
 0x347   :  { %3457 = vmatprep.mubr.msk.bf16.mxu1 %vm242_vm1, %v4945_v63 }
 0x349   :  { %3494 = vmatmul.mubr.msk.bf16.gmra.mrb[40].mxu0 %vm242_vm1, %v4990_v17 }
 0x34a   :  { %3497 = vmatprep.mubr.msk.bf16.mxu0 %vm242_vm1, %v5002_v22 }
 0x34e   :  { %3458 = vmatmul.mubr.msk.bf16.gmra.mrb[40].mxu1 %vm242_vm1, %v4990_v17 }
 0x34f   :  { %3461 = vmatprep.mubr.msk.bf16.mxu1 %vm242_vm1, %v5002_v22 }
 0x351   :  { %3498 = vmatmul.mubr.msk.bf16.gmra.mrb[44].mxu0 %vm242_vm1, %v874_v21 }
 0x352   :  { %3501 = vmatprep.mubr.msk.bf16.mxu0 %vm242_vm1, %v875_v5 }
 0x356   :  { %3462 = vmatmul.mubr.msk.bf16.gmra.mrb[44].mxu1 %vm242_vm1, %v874_v21 }
 0x357   :  { %3465 = vmatprep.mubr.msk.bf16.mxu1 %vm242_vm1, %v875_v5 }
 0x359   :  { %3502 = vmatmul.mubr.msk.bf16.gmra.mrb[48].mxu0 %vm242_vm1, %v876_v8 }
 0x35e   :  { %3466 = vmatmul.mubr.msk.bf16.gmra.mrb[48].mxu1 %vm242_vm1, %v876_v8 }
 0x3d0   :  { %v3403_v44 = vpop.f32.mrb[4].mxu0 }
 0x3d1   :  { %v5105_v48 = vadd.f32 %v3403_v44, %v5102_v55  ;;  %v982_v0 = vpop.f32.mrb[5].mxu0 }
 0x3d2   :  { %v3404_v47 = vpop.f32.mrb[6].mxu0  ;;  %v983_v63 = vadd.f32 %v5102_v55, %v982_v0 }
 0x3d3   :  { %v5108_v7 = vadd.f32 %v3404_v47, %v5102_v55  ;;  %v985_v27 = vpop.f32.mrb[7].mxu0 }
 0x3d4   :  { %v986_v61 = vadd.f32 %v5102_v55, %v985_v27 }
 0x3d5   :  { %v1110_v35 = vpack.c.bf16 %v5108_v7, %v5105_v48 }
 0x3d6   :  { %v1109_v59 = vpack.c.bf16 %v986_v61, %v983_v63 }
 0x3d7   :  { %v3419_v24 = vpop.f32.mrb[4].mxu1 }
 0x3d8   :  { %v5115_v4 = vadd.f32 %v3419_v24, %v5102_v55  ;;  %v1046_v2 = vpop.f32.mrb[5].mxu1  ;;  %3513 = vmatprep.mubr.msk.bf16.mxu1 %vm242_vm1, %v1109_v59 }
 0x3d9   :  { %v3420_v17 = vpop.f32.mrb[6].mxu1  ;;  %v1047_v20 = vadd.f32 %v5102_v55, %v1046_v2 }
 0x3da   :  { %v5119_v43 = vadd.f32 %v3420_v17, %v5102_v55  ;;  %v1049_v13 = vpop.f32.mrb[7].mxu1  ;;  %v3407_v40 = vpop.f32.mrb[8].mxu0 }
 0x3db   :  { %v1050_v19 = vadd.f32 %v5102_v55, %v1049_v13  ;;  %v5124_v53 = vadd.f32 %v3407_v40, %v5102_v55  ;;  %v998_v14 = vpop.f32.mrb[9].mxu0 }
 0x3dc   :  { %v5129_v22 = vadd.f32 %v5102_v55, %v998_v14  ;;  %v3408_v28 = vpop.f32.mrb[10].mxu0 }
 0x3dd   :  { %v1117_v10 = vpack.c.bf16 %v1050_v19, %v1047_v20  ;;  %v5132_v15 = vadd.f32 %v3408_v28, %v5102_v55  ;;  %v1001_v45 = vpop.f32.mrb[11].mxu0  ;;  %v5215_v28 = vld [vmem:[#allocation19] ss:$0 sm:$0xff] }
 0x3de   :  { %v5135_v31 = vadd.f32 %v5102_v55, %v1001_v45 }
 0x3df   :  { %3545 = vmatprep.mubr.msk.bf16.mxu0 %vm242_vm1, %v1117_v10 }
 0x3e0   :  { %v3423_v36 = vpop.f32.mrb[8].mxu1  ;;  %v1111_v37 = vpack.c.bf16 %v5135_v31, %v5129_v22 }
 0x3e1   :  { %v5143_v33 = vadd.f32 %v3423_v36, %v5102_v55  ;;  %v1062_v3 = vpop.f32.mrb[9].mxu1 }
 0x3e2   :  { %v5146_v16 = vadd.f32 %v5102_v55, %v1062_v3  ;;  %v3424_v6 = vpop.f32.mrb[10].mxu1 }
 0x3e3   :  { %v5149_v29 = vadd.f32 %v3424_v6, %v5102_v55  ;;  %v1065_v42 = vpop.f32.mrb[11].mxu1  ;;  %v3411_v58 = vpop.f32.mrb[12].mxu0 }
 0x3e4   :  { %v5152_v25 = vadd.f32 %v5102_v55, %v1065_v42  ;;  %v5155_v32 = vadd.f32 %v3411_v58, %v5102_v55  ;;  %v1014_v51 = vpop.f32.mrb[13].mxu0 }
 0x3e5   :  { %v5160_v30 = vadd.f32 %v5102_v55, %v1014_v51  ;;  %v3412_v56 = vpop.f32.mrb[14].mxu0 }
 0x3e6   :  { %v5165_v1 = vadd.f32 %v3412_v56, %v5102_v55  ;;  %v1017_v12 = vpop.f32.mrb[15].mxu0 }
 0x3e7   :  { %v5168_v26 = vadd.f32 %v5102_v55, %v1017_v12 }
 0x3e9   :  { %v3427_v49 = vpop.f32.mrb[12].mxu1 }
 0x3ea   :  { %v5175_v21 = vadd.f32 %v3427_v49, %v5102_v55  ;;  %v1078_v46 = vpop.f32.mrb[13].mxu1 }
 0x3eb   :  { %v5178_v50 = vadd.f32 %v5102_v55, %v1078_v46  ;;  %v3428_v57 = vpop.f32.mrb[14].mxu1 }
 0x3ec   :  { %v5181_v62 = vadd.f32 %v3428_v57, %v5102_v55  ;;  %v1081_v60 = vpop.f32.mrb[15].mxu1  ;;  %v3415_v5 = vpop.f32.mrb[16].mxu0 }
 0x3ed   :  { %v5184_v39 = vadd.f32 %v5102_v55, %v1081_v60  ;;  %v5187_v11 = vadd.f32 %v3415_v5, %v5102_v55  ;;  %v1030_v9 = vpop.f32.mrb[17].mxu0 }
 0x3ee   :  { %v5192_v8 = vadd.f32 %v5102_v55, %v1030_v9  ;;  %v3416_v44 = vpop.f32.mrb[18].mxu0 }
 0x3ef   :  { %v5197_v47 = vadd.f32 %v3416_v44, %v5102_v55  ;;  %v1033_v27 = vpop.f32.mrb[19].mxu0 }
 0x3f0   :  { %v5200_v63 = vadd.f32 %v5102_v55, %v1033_v27 }
 0x3f1   :  { %v3431_v59 = vpop.f32.mrb[16].mxu1 }
 0x3f2   :  { %v5205_v24 = vadd.f32 %v3431_v59, %v5102_v55  ;;  %v1094_v17 = vpop.f32.mrb[17].mxu1 }
 0x3f3   :  { %v5210_v13 = vadd.f32 %v5102_v55, %v1094_v17  ;;  %v3432_v40 = vpop.f32.mrb[18].mxu1 }
 0x3f4   :  { %v5213_v20 = vadd.f32 %v3432_v40, %v5102_v55  ;;  %v1097_v19 = vpop.f32.mrb[19].mxu1  ;;  %v3475_v14 = vpop.f32.mrb[20].mxu0 }
 0x3f5   :  { %v5218_v10 = vadd.f32 %v5102_v55, %v1097_v19  ;;  %v1382_v45 = vpop.f32.mrb[21].mxu0  ;;  %v1391_v42 = vadd.f32 %v3475_v14, %v5215_v28  ;;  %v5228_v55 = vld [vmem:[#allocation16] ss:$0 sm:$0xff] }
 0x3f6   :  { %v3476_v3 = vpop.f32.mrb[22].mxu0  ;;  %v1383_v56 = vadd.f32 %v5215_v28, %v1382_v45 }
 0x3f7   :  { %v1394_v58 = vadd.f32 %v3476_v3, %v5215_v28  ;;  %v1385_v51 = vpop.f32.mrb[23].mxu0 }
 0x3f8   :  { %v1386_v12 = vadd.f32 %v5215_v28, %v1385_v51 }
 0x3f9   :  { %v3439_v49 = vpop.f32.mrb[20].mxu1  ;;  %v5230_v46 = vpack.c.bf16 %v1394_v58, %v1391_v42 }
 0x3fa   :  { %v1182_v57 = vpop.f32.mrb[21].mxu1  ;;  %v5232_v60 = vpack.c.bf16 %v1386_v12, %v1383_v56  ;;  %v1191_v9 = vadd.f32 %v3439_v49, %v5228_v55 }
 0x3fb   :  { %v3440_v5 = vpop.f32.mrb[22].mxu1  ;;  %v1183_v17 = vadd.f32 %v5228_v55, %v1182_v57 }
 0x3fc   :  { %v1194_v44 = vadd.f32 %v3440_v5, %v5228_v55  ;;  %v1185_v27 = vpop.f32.mrb[23].mxu1  ;;  %v3479_v59 = vpop.f32.mrb[24].mxu0 }
 0x3fd   :  { %v1186_v40 = vadd.f32 %v5228_v55, %v1185_v27  ;;  %v1398_v19 = vpop.f32.mrb[25].mxu0  ;;  %v1407_v42 = vadd.f32 %v3479_v59, %v5215_v28 }
 0x3fe   :  { %v1310_v14 = vpack.c.bf16 %v1194_v44, %v1191_v9  ;;  %v3480_v45 = vpop.f32.mrb[26].mxu0  ;;  %v1399_v56 = vadd.f32 %v5215_v28, %v1398_v19 }
 0x3ff   :  { %v1309_v3 = vpack.c.bf16 %v1186_v40, %v1183_v17  ;;  %v1410_v58 = vadd.f32 %v3480_v45, %v5215_v28  ;;  %v1401_v51 = vpop.f32.mrb[27].mxu0 }
 0x400   :  { %v1402_v12 = vadd.f32 %v5215_v28, %v1401_v51 }
 0x401   :  { %v3443_v49 = vpop.f32.mrb[24].mxu1  ;;  %v5242_v5 = vpack.c.bf16 %v1410_v58, %v1407_v42  ;;  %3685 = vmatprep.subr.msk.bf16.mxu1 %vm242_vm1, %v1309_v3  ;;  %v1538_v57 = vsel %vm242_vm1, %v1309_v3, 0 }
 0x402   :  { %v1198_v27 = vpop.f32.mrb[25].mxu1  ;;  %v5246_v9 = vpack.c.bf16 %v1402_v12, %v1399_v56  ;;  %3506 = vmatpush3.bf16.xpose.msra.mxu1 %v1538_v57  ;;  %v1207_v59 = vadd.f32 %v3443_v49, %v5228_v55 }
 0x403   :  { %v3444_v44 = vpop.f32.mrb[26].mxu1  ;;  %3686 = vmatprep.subr.msk.bf16.mxu1 %vm242_vm1, %v1310_v14  ;;  %v1199_v45 = vadd.f32 %v5228_v55, %v1198_v27  ;;  %v1541_v27 = vsel %vm242_vm1, %v1310_v14, 0 }
 0x404   :  { %v1210_v17 = vadd.f32 %v3444_v44, %v5228_v55  ;;  %v1201_v40 = vpop.f32.mrb[27].mxu1  ;;  %v3483_v19 = vpop.f32.mrb[28].mxu0 }
 0x405   :  { %v1202_v42 = vadd.f32 %v5228_v55, %v1201_v40  ;;  %v1414_v58 = vpop.f32.mrb[29].mxu0  ;;  %v1423_v56 = vadd.f32 %v3483_v19, %v5215_v28 }
 0x406   :  { %v1312_v51 = vpack.c.bf16 %v1210_v17, %v1207_v59  ;;  %v3484_v3 = vpop.f32.mrb[30].mxu0  ;;  %v1415_v6 = vadd.f32 %v5215_v28, %v1414_v58 }
 0x407   :  { %v1311_v36 = vpack.c.bf16 %v1202_v42, %v1199_v45  ;;  %v1426_v12 = vadd.f32 %v3484_v3, %v5215_v28  ;;  %v1417_v57 = vpop.f32.mrb[31].mxu0 }
 0x408   :  { %v1418_v49 = vadd.f32 %v5215_v28, %v1417_v57 }
 0x409   :  { %v3447_v44 = vpop.f32.mrb[28].mxu1  ;;  %v5257_v23 = vpack.c.bf16 %v1426_v12, %v1423_v56 }
 0x40a   :  { %v1214_v0 = vpop.f32.mrb[29].mxu1  ;;  %v5260_v40 = vpack.c.bf16 %v1418_v49, %v1415_v6  ;;  %3508 = vmatpush3.bf16.xpose.msra.mxu1 %v1541_v27  ;;  %v1223_v17 = vadd.f32 %v3447_v44, %v5228_v55 }
 0x40b   :  { %v3448_v59 = vpop.f32.mrb[30].mxu1  ;;  %3687 = vmatprep.subr.msk.bf16.mxu1 %vm242_vm1, %v1311_v36  ;;  %v1215_v58 = vadd.f32 %v5228_v55, %v1214_v0  ;;  %v1544_v0 = vsel %vm242_vm1, %v1311_v36, 0 }
 0x40c   :  { %v1226_v19 = vadd.f32 %v3448_v59, %v5228_v55  ;;  %v1217_v45 = vpop.f32.mrb[31].mxu1  ;;  %v3487_v42 = vpop.f32.mrb[32].mxu0 }
 0x40d   :  { %v1218_v3 = vadd.f32 %v5228_v55, %v1217_v45  ;;  %v1430_v56 = vpop.f32.mrb[33].mxu0  ;;  %v1439_v57 = vadd.f32 %v3487_v42, %v5215_v28 }
 0x40e   :  { %v5267_v12 = vpack.c.bf16 %v1226_v19, %v1223_v17  ;;  %v3488_v14 = vpop.f32.mrb[34].mxu0  ;;  %v1431_v44 = vadd.f32 %v5215_v28, %v1430_v56 }
 0x40f   :  { %v1313_v6 = vpack.c.bf16 %v1218_v3, %v1215_v58  ;;  %v1442_v49 = vadd.f32 %v3488_v14, %v5215_v28  ;;  %v1433_v27 = vpop.f32.mrb[35].mxu0 }
 0x410   :  { %v1434_v59 = vadd.f32 %v5215_v28, %v1433_v27 }
 0x411   :  { %v3451_v38 = vpop.f32.mrb[32].mxu1  ;;  %v5273_v61 = vpack.c.bf16 %v1442_v49, %v1439_v57 }
 0x412   :  { %v1230_v45 = vpop.f32.mrb[33].mxu1  ;;  %v5276_v41 = vpack.c.bf16 %v1434_v59, %v1431_v44  ;;  %3510 = vmatpush3.bf16.xpose.msra.mxu1 %v1544_v0  ;;  %v1239_v19 = vadd.f32 %v3451_v38, %v5228_v55 }
 0x413   :  { %v3452_v17 = vpop.f32.mrb[34].mxu1  ;;  %3688 = vmatprep.subr.msk.bf16.mxu1 %vm242_vm1, %v1312_v51  ;;  %v1231_v56 = vadd.f32 %v5228_v55, %v1230_v45  ;;  %v1547_v45 = vsel %vm242_vm1, %v1312_v51, 0 }
 0x414   :  { %v1242_v42 = vadd.f32 %v3452_v17, %v5228_v55  ;;  %v1233_v58 = vpop.f32.mrb[35].mxu1  ;;  %v3491_v3 = vpop.f32.mrb[36].mxu0 }
 0x415   :  { %v1234_v14 = vadd.f32 %v5228_v55, %v1233_v58  ;;  %v1455_v57 = vadd.f32 %v3491_v3, %v5215_v28  ;;  %v1446_v36 = vpop.f32.mrb[37].mxu0 }
 0x416   :  { %v5284_v49 = vpack.c.bf16 %v1242_v42, %v1239_v19  ;;  %v3492_v27 = vpop.f32.mrb[38].mxu0  ;;  %v1447_v38 = vadd.f32 %v5215_v28, %v1446_v36 }
 0x417   :  { %v5286_v44 = vpack.c.bf16 %v1234_v14, %v1231_v56  ;;  %v1458_v59 = vadd.f32 %v3492_v27, %v5215_v28  ;;  %v1449_v0 = vpop.f32.mrb[39].mxu0 }
 0x418   :  { %v1450_v17 = vadd.f32 %v5215_v28, %v1449_v0 }
 0x419   :  { %v3455_v2 = vpop.f32.mrb[36].mxu1  ;;  %v5291_v18 = vpack.c.bf16 %v1458_v59, %v1455_v57 }
 0x41a   :  { %v1246_v58 = vpop.f32.mrb[37].mxu1  ;;  %v5294_v3 = vpack.c.bf16 %v1450_v17, %v1447_v38  ;;  %3512 = vmatpush3.bf16.xpose.msra.mxu1 %v1547_v45  ;;  %v1255_v42 = vadd.f32 %v3455_v2, %v5228_v55 }
 0x41b   :  { %v3456_v19 = vpop.f32.mrb[38].mxu1  ;;  %3689 = vmatprep.subr.msk.bf16.mxu1 %vm242_vm1, %v1313_v6  ;;  %v1247_v27 = vadd.f32 %v5228_v55, %v1246_v58  ;;  %v1627_v58 = vsel %vm242_vm1, %v1313_v6, 0 }
 0x41c   :  { %v1258_v56 = vadd.f32 %v3456_v19, %v5228_v55  ;;  %v1249_v14 = vpop.f32.mrb[39].mxu1  ;;  %v3495_v36 = vpop.f32.mrb[40].mxu0 }
 0x41d   :  { %v1250_v57 = vadd.f32 %v5228_v55, %v1249_v14  ;;  %v1471_v59 = vadd.f32 %v3495_v36, %v5215_v28  ;;  %v1462_v51 = vpop.f32.mrb[41].mxu0 }
 0x41e   :  { %v1318_v0 = vpack.c.bf16 %v1258_v56, %v1255_v42  ;;  %v1463_v38 = vadd.f32 %v5215_v28, %v1462_v51  ;;  %v3496_v17 = vpop.f32.mrb[42].mxu0 }
 0x41f   :  { %v1317_v45 = vpack.c.bf16 %v1250_v57, %v1247_v27  ;;  %v1474_v52 = vadd.f32 %v3496_v17, %v5215_v28  ;;  %v1465_v34 = vpop.f32.mrb[43].mxu0 }
 0x420   :  { %v1466_v2 = vadd.f32 %v5215_v28, %v1465_v34 }
 0x421   :  { %v3459_v19 = vpop.f32.mrb[40].mxu1  ;;  %v5305_v54 = vpack.c.bf16 %v1474_v52, %v1471_v59  ;;  %3514 = vmatmul.mubr.msk.bf16.vlgmr.msra.gmra.mrb[52].mxu1 %vm242_vm1, %v1110_v35  ;;  %3693 = vmatprep.subr.msk.bf16.mxu0 %vm242_vm1, %v1317_v45  ;;  %v1716_v42 = vsel %vm242_vm1, %v1317_v45, 0 }
 0x422   :  { %v1262_v56 = vpop.f32.mrb[41].mxu1  ;;  %v5314_v14 = vpack.c.bf16 %v1466_v2, %v1463_v38  ;;  %3517 = vmatprep.mubr.msk.bf16.mxu1 %vm242_vm1, %v1111_v37  ;;  %3522 = vmatpush3.bf16.xpose.msra.mxu1 %v1627_v58  ;;  %v1271_v48 = vadd.f32 %v3459_v19, %v5228_v55  ;;  %v6029_v19 = vpack.c.bf16 %v5132_v15, %v5124_v53  ;;  %v1630_v58 = vsel %vm242_vm1, %v5267_v12, 0 }
 0x423   :  { %3538 = vmatpush3.bf16.xpose.msra.mxu0 %v1716_v42  ;;  %v3460_v52 = vpop.f32.mrb[42].mxu1  ;;  %3690 = vmatprep.subr.msk.bf16.mxu1 %vm242_vm1, %v5267_v12  ;;  %v1263_v6 = vadd.f32 %v5228_v55, %v1262_v56 }
 0x424   :  { %v1274_v7 = vadd.f32 %v3460_v52, %v5228_v55  ;;  %3694 = vmatprep.subr.msk.bf16.mxu0 %vm242_vm1, %v1318_v0  ;;  %v1265_v35 = vpop.f32.mrb[43].mxu1  ;;  %v3499_v34 = vpop.f32.mrb[44].mxu0 }
 0x425   :  { %v1266_v22 = vadd.f32 %v5228_v55, %v1265_v35  ;;  %v1487_v31 = vadd.f32 %v3499_v34, %v5215_v28  ;;  %v1478_v37 = vpop.f32.mrb[45].mxu0 }
 0x426   :  { %v1320_v36 = vpack.c.bf16 %v1274_v7, %v1271_v48  ;;  %v3500_v27 = vpop.f32.mrb[46].mxu0  ;;  %v1479_v38 = vadd.f32 %v5215_v28, %v1478_v37  ;;  %v6030_v48 = vpack.c.bf16 %v5168_v26, %v5160_v30  ;;  %v1719_v7 = vsel %vm242_vm1, %v1318_v0, 0 }
 0x427   :  { %v1319_v57 = vpack.c.bf16 %v1266_v22, %v1263_v6  ;;  %v1490_v59 = vadd.f32 %v3500_v27, %v5215_v28  ;;  %v1481_v51 = vpop.f32.mrb[47].mxu0 }
 0x428   :  { %v1482_v17 = vadd.f32 %v5215_v28, %v1481_v51 }
 0x429   :  { %v3463_v45 = vpop.f32.mrb[44].mxu1  ;;  %v5331_v2 = vpack.c.bf16 %v1490_v59, %v1487_v31  ;;  %3518 = vmatmul.mubr.msk.bf16.gmra.mrb[56].mxu1 %vm242_vm1, %v6029_v19 }
 0x42a   :  { %v1287_v42 = vadd.f32 %v3463_v45, %v5228_v55  ;;  %v1278_v56 = vpop.f32.mrb[45].mxu1  ;;  %v5340_v52 = vpack.c.bf16 %v1482_v17, %v1479_v38  ;;  %3524 = vmatpush3.bf16.xpose.msra.mxu1 %v1630_v58  ;;  %3529 = vmatprep.mubr.msk.bf16.mxu1 %vm242_vm1, %v6030_v48  ;;  %v1633_v45 = vsel %vm242_vm1, %v5286_v44, 0 }
 0x42b   :  { %3540 = vmatpush3.bf16.xpose.msra.mxu0 %v1719_v7  ;;  %v3464_v53 = vpop.f32.mrb[46].mxu1  ;;  %3691 = vmatprep.subr.msk.bf16.mxu1 %vm242_vm1, %v5286_v44  ;;  %v1279_v34 = vadd.f32 %v5228_v55, %v1278_v56 }
 0x42c   :  { %v1290_v15 = vadd.f32 %v3464_v53, %v5228_v55  ;;  %3695 = vmatprep.subr.msk.bf16.mxu0 %vm242_vm1, %v1319_v57  ;;  %v1281_v12 = vpop.f32.mrb[47].mxu1  ;;  %v3503_v35 = vpop.f32.mrb[48].mxu0 }
 0x42d   :  { %v1282_v6 = vadd.f32 %v5228_v55, %v1281_v12  ;;  %v1503_v30 = vadd.f32 %v3503_v35, %v5215_v28  ;;  %v1494_v26 = vpop.f32.mrb[49].mxu0  ;;  %v1636_v35 = vsel %vm242_vm1, %v5284_v49, 0 }
 0x42e   :  { %v1322_v22 = vpack.c.bf16 %v1290_v15, %v1287_v42  ;;  %v1495_v0 = vadd.f32 %v5215_v28, %v1494_v26  ;;  %v3504_v31 = vpop.f32.mrb[50].mxu0  ;;  %v1722_v42 = vsel %vm242_vm1, %v1319_v57, 0  ;;  %v1725_v57 = vsel %vm242_vm1, %v1320_v36, 0 }
 0x42f   :  { %v1321_v37 = vpack.c.bf16 %v1282_v6, %v1279_v34  ;;  %v1506_v27 = vadd.f32 %v3504_v31, %v5215_v28  ;;  %v1497_v59 = vpop.f32.mrb[51].mxu0  ;;  %v6031_v34 = vpack.c.bf16 %v5165_v1, %v5155_v32  ;;  %v6034_v6 = vpack.c.bf16 %v5152_v25, %v5146_v16 }
 0x430   :  { %v1498_v51 = vadd.f32 %v5215_v28, %v1497_v59  ;;  %v1808_v16 = vsel %vm242_vm1, %v1322_v22, 0  ;;  %v6037_v25 = vpack.c.bf16 %v5184_v39, %v5178_v50  ;;  %v6038_v32 = vpack.c.bf16 %v5181_v62, %v5175_v21 }
 0x431   :  { %v3467_v38 = vpop.f32.mrb[48].mxu1  ;;  %v5357_v17 = vpack.c.bf16 %v1506_v27, %v1503_v30  ;;  %v6039_v1 = vpack.c.bf16 %v5218_v10, %v5210_v13  ;;  %v6040_v50 = vpack.c.bf16 %v5213_v20, %v5205_v24 }
 0x432   :  { %v1303_v19 = vadd.f32 %v3467_v38, %v5228_v55  ;;  %v1294_v58 = vpop.f32.mrb[49].mxu1  ;;  %v5362_v56 = vpack.c.bf16 %v1498_v51, %v1495_v0  ;;  %3526 = vmatpush3.bf16.xpose.msra.mxu1 %v1633_v45 }
 0x433   :  { %v1295_v48 = vadd.f32 %v5228_v55, %v1294_v58  ;;  %3542 = vmatpush3.bf16.xpose.msra.mxu0 %v1722_v42  ;;  %v3468_v7 = vpop.f32.mrb[50].mxu1  ;;  %3692 = vmatprep.subr.msk.bf16.mxu1 %vm242_vm1, %v5284_v49  ;;  %v6033_v49 = vpack.c.bf16 %v5200_v63, %v5192_v8 }
 0x434   :  { %v1306_v28 = vadd.f32 %v3468_v7, %v5228_v55  ;;  %3696 = vmatprep.subr.msk.bf16.mxu0 %vm242_vm1, %v1320_v36  ;;  %v1297_v44 = vpop.f32.mrb[51].mxu1  ;;  %v1805_v36 = vsel %vm242_vm1, %v1321_v37, 0 }
 0x435   :  { %v1298_v53 = vadd.f32 %v5228_v55, %v1297_v44  ;;  %v6032_v55 = vpack.c.bf16 %v5119_v43, %v5115_v4  ;;  %v6035_v4 = vpack.c.bf16 %v5197_v47, %v5187_v11  ;;  %v6036_v43 = vpack.c.bf16 %v5149_v29, %v5143_v33 }
 0x436   :  { %v1324_v15 = vpack.c.bf16 %v1306_v28, %v1303_v19 }
 0x437   :  { %v1323_v12 = vpack.c.bf16 %v1298_v53, %v1295_v48 }
 0x438   :  { %v1814_v29 = vsel %vm242_vm1, %v1324_v15, 0 }
 0x439   :  { %v1811_v33 = vsel %vm242_vm1, %v1323_v12, 0 }
 0x43a   :  { %3528 = vmatpush3.bf16.xpose.msra.mxu1 %v1636_v35 }
 0x43b   :  { %3544 = vmatpush3.bf16.xpose.msra.mxu0 %v1725_v57  ;;  %3697 = vmatprep.subr.msk.bf16.mxu1 %vm242_vm1, %v1321_v37 }
 0x43c   :  { %3569 = vmatprep.subr.bf16.mxu0 %v5232_v60 }
 0x441   :  { %3530 = vmatmul.mubr.msk.bf16.vlgmr.msra.gmra.mrb[60].mxu1 %vm242_vm1, %v6031_v34 }
 0x442   :  { %3546 = vmatmul.mubr.msk.bf16.vlgmr.msra.gmra.mrb[52].mxu0 %vm242_vm1, %v6032_v55  ;;  %3533 = vmatprep.mubr.msk.bf16.mxu1 %vm242_vm1, %v6033_v49 }
 0x443   :  { %3549 = vmatprep.mubr.msk.bf16.mxu0 %vm242_vm1, %v6034_v6  ;;  %3554 = vmatpush3.bf16.xpose.msra.mxu1 %v1805_v36 }
 0x444   :  { %3570 = vmatpush3.bf16.msra.mxu0 %v5232_v60  ;;  %3698 = vmatprep.subr.msk.bf16.mxu1 %vm242_vm1, %v1322_v22 }
 0x445   :  { %3571 = vmatprep.subr.bf16.mxu0 %v5230_v46 }
 0x448   :  { %3572 = vmatpush3.bf16.msra.mxu0 %v5230_v46 }
 0x449   :  { %3573 = vmatprep.subr.bf16.mxu0 %v5246_v9  ;;  %3534 = vmatmul.mubr.msk.bf16.gmra.mrb[64].mxu1 %vm242_vm1, %v6035_v4 }
 0x44a   :  { %3550 = vmatmul.mubr.msk.bf16.gmra.mrb[56].mxu0 %vm242_vm1, %v6036_v43  ;;  %3561 = vmatprep.mubr.msk.bf16.mxu1 %vm242_vm1, %v6037_v25 }
 0x44b   :  { %3556 = vmatpush3.bf16.xpose.msra.mxu1 %v1808_v16 }
 0x44c   :  { %3574 = vmatpush3.bf16.msra.mxu0 %v5246_v9  ;;  %3699 = vmatprep.subr.msk.bf16.mxu1 %vm242_vm1, %v1323_v12 }
 0x44d   :  { %3575 = vmatprep.subr.bf16.mxu0 %v5242_v5 }
 0x450   :  { %3576 = vmatpush3.bf16.msra.mxu0 %v5242_v5 }
 0x451   :  { %3601 = vmatprep.subr.bf16.mxu0 %v5294_v3 }
 0x453   :  { %3558 = vmatpush3.bf16.xpose.msra.mxu1 %v1811_v33 }
 0x454   :  { %3700 = vmatprep.subr.msk.bf16.mxu1 %vm242_vm1, %v1324_v15 }
 0x45b   :  { %3560 = vmatpush3.bf16.xpose.msra.mxu1 %v1814_v29 }
 0x45c   :  { %3585 = vmatprep.subr.bf16.mxu1 %v5260_v40 }
 0x462   :  { %3562 = vmatmul.mubr.msk.bf16.vlgmr.msra.gmra.mrb[68].mxu1 %vm242_vm1, %v6038_v32 }
 0x463   :  { %3565 = vmatprep.mubr.msk.bf16.mxu1 %vm242_vm1, %v6039_v1  ;;  %3586 = vmatpush3.bf16.msra.mxu1 %v5260_v40 }
 0x464   :  { %3587 = vmatprep.subr.bf16.mxu1 %v5257_v23 }
 0x467   :  { %3588 = vmatpush3.bf16.msra.mxu1 %v5257_v23 }
 0x468   :  { %3589 = vmatprep.subr.bf16.mxu1 %v5276_v41 }
 0x46a   :  { %3566 = vmatmul.mubr.msk.bf16.gmra.mrb[72].mxu1 %vm242_vm1, %v6040_v50 }
 0x46b   :  { %3590 = vmatpush3.bf16.msra.mxu1 %v5276_v41 }
 0x46c   :  { %3591 = vmatprep.subr.bf16.mxu1 %v5273_v61 }
 0x46f   :  { %3592 = vmatpush3.bf16.msra.mxu1 %v5273_v61 }
 0x470   :  { %3617 = vmatprep.subr.bf16.mxu1 %v5340_v52 }
 0x4f4   :  { %v5440_v21 = vpop.f32.mrb[52].mxu1 }
 0x4f5   :  { %v5442_v62 = vpop.f32.mrb[53].mxu1  ;;  %v1888_v39 = vsel %vm1881_vm9, %v5440_v21, -inf }
 0x4f6   :  { %1889 = vmax.xlane.f32.xlu1 %v1888_v39  ;;  %v5446_v11 = vpop.f32.mrb[54].mxu1  ;;  %v1882_v41 = vsel %vm1881_vm9, %v5442_v62, -inf }
 0x4f7   :  { %1883 = vmax.xlane.f32.xlu0 %v1882_v41  ;;  %v5450_v23 = vpop.f32.mrb[55].mxu1  ;;  %v1891_v8 = vsel %vm1881_vm9, %v5446_v11, -inf }
 0x4f8   :  { %v1885_v47 = vsel %vm1881_vm9, %v5450_v23, -inf }
 0x4fa   :  { %1892 = vmax.xlane.f32.xlu1 %v1891_v8 }
 0x4fb   :  { %1886 = vmax.xlane.f32.xlu0 %v1885_v47 }
 0x4fc   :  { %v5456_v63 = vpop.f32.mrb[56].mxu1 }
 0x4fd   :  { %v5458_v61 = vpop.f32.mrb[57].mxu1  ;;  %v1900_v46 = vsel %vm1881_vm9, %v5456_v63, -inf }
 0x4fe   :  { %v5460_v24 = vpop.f32.mrb[58].mxu1  ;;  %v1894_v13 = vsel %vm1881_vm9, %v5458_v61, -inf }
 0x4ff   :  { %1895 = vmax.xlane.f32.xlu0 %v1894_v13  ;;  %v5464_v20 = vpop.f32.mrb[59].mxu1  ;;  %v1903_v60 = vsel %vm1881_vm9, %v5460_v24, -inf }
 0x500   :  { %v1897_v10 = vsel %vm1881_vm9, %v5464_v20, -inf }
 0x501   :  { %1898 = vmax.xlane.f32.xlu1 %v1897_v10 }
 0x503   :  { %1901 = vmax.xlane.f32.xlu0 %v1900_v46 }
 0x505   :  { %1904 = vmax.xlane.f32.xlu1 %v1903_v60 }
 0x514   :  { %v5472_v5 = vpop.f32.mrb[60].mxu1 }
 0x515   :  { %v5474_v9 = vpop.f32.mrb[52].mxu0  ;;  %v5476_v40 = vpop.f32.mrb[61].mxu1  ;;  %v1912_v59 = vsel %vm1881_vm9, %v5472_v5, -inf }
 0x516   :  { %v5478_v30 = vpop.f32.mrb[53].mxu0  ;;  %v5480_v26 = vpop.f32.mrb[62].mxu1  ;;  %v1906_v22 = vsel %vm1881_vm9, %v5476_v40, -inf  ;;  %v1936_v34 = vsel %vm1881_vm9, %v5474_v9, -inf }
 0x517   :  { %v5484_v0 = vpop.f32.mrb[54].mxu0  ;;  %1907 = vmax.xlane.f32.xlu0 %v1906_v22  ;;  %v5486_v31 = vpop.f32.mrb[63].mxu1  ;;  %v1915_v38 = vsel %vm1881_vm9, %v5480_v26, -inf  ;;  %v1930_v35 = vsel %vm1881_vm9, %v5478_v30, -inf }
 0x518   :  { %v5488_v37 = vpop.f32.mrb[55].mxu0  ;;  %v1909_v27 = vsel %vm1881_vm9, %v5486_v31, -inf  ;;  %v1939_v55 = vsel %vm1881_vm9, %v5484_v0, -inf }
 0x519   :  { %1910 = vmax.xlane.f32.xlu1 %v1909_v27  ;;  %v1933_v57 = vsel %vm1881_vm9, %v5488_v37, -inf }
 0x51b   :  { %1913 = vmax.xlane.f32.xlu0 %v1912_v59 }
 0x51c   :  { %v5494_v51 = vpop.f32.mrb[64].mxu1 }
 0x51d   :  { %v5498_v45 = vpop.f32.mrb[56].mxu0  ;;  %1916 = vmax.xlane.f32.xlu1 %v1915_v38  ;;  %v5500_v19 = vpop.f32.mrb[65].mxu1  ;;  %v1924_v15 = vsel %vm1881_vm9, %v5494_v51, -inf }
 0x51e   :  { %v5502_v58 = vpop.f32.mrb[57].mxu0  ;;  %v5504_v42 = vpop.f32.mrb[66].mxu1  ;;  %v1918_v48 = vsel %vm1881_vm9, %v5500_v19, -inf  ;;  %v1948_v6 = vsel %vm1881_vm9, %v5498_v45, -inf }
 0x51f   :  { %v5508_v7 = vpop.f32.mrb[58].mxu0  ;;  %1919 = vmax.xlane.f32.xlu0 %v1918_v48  ;;  %v5510_v28 = vpop.f32.mrb[67].mxu1  ;;  %v1927_v12 = vsel %vm1881_vm9, %v5504_v42, -inf  ;;  %v1942_v49 = vsel %vm1881_vm9, %v5502_v58, -inf }
 0x520   :  { %v5512_v44 = vpop.f32.mrb[59].mxu0  ;;  %v1921_v53 = vsel %vm1881_vm9, %v5510_v28, -inf  ;;  %v1951_v4 = vsel %vm1881_vm9, %v5508_v7, -inf }
 0x521   :  { %1922 = vmax.xlane.f32.xlu1 %v1921_v53  ;;  %v1945_v36 = vsel %vm1881_vm9, %v5512_v44, -inf }
 0x523   :  { %1925 = vmax.xlane.f32.xlu0 %v1924_v15 }
 0x525   :  { %1928 = vmax.xlane.f32.xlu1 %v1927_v12 }
 0x527   :  { %1931 = vmax.xlane.f32.xlu0 %v1930_v35 }
 0x529   :  { %1934 = vmax.xlane.f32.xlu1 %v1933_v57 }
 0x52b   :  { %1937 = vmax.xlane.f32.xlu0 %v1936_v34 }
 0x52d   :  { %1940 = vmax.xlane.f32.xlu1 %v1939_v55 }
 0x52f   :  { %1943 = vmax.xlane.f32.xlu0 %v1942_v49 }
 0x531   :  { %1946 = vmax.xlane.f32.xlu1 %v1945_v36 }
 0x533   :  { %1949 = vmax.xlane.f32.xlu0 %v1948_v6 }
 0x535   :  { %v5536_v43 = vpop.f32.mrb[68].mxu1  ;;  %1952 = vmax.xlane.f32.xlu1 %v1951_v4 }
 0x536   :  { %v5538_v16 = vpop.f32.mrb[69].mxu1  ;;  %v1960_v1 = vsel %vm1881_vm9, %v5536_v43, -inf }
 0x537   :  { %v5540_v25 = vpop.f32.mrb[70].mxu1  ;;  %v1954_v33 = vsel %vm1881_vm9, %v5538_v16, -inf }
 0x538   :  { %1955 = vmax.xlane.f32.xlu0 %v1954_v33  ;;  %v5544_v29 = vpop.f32.mrb[71].mxu1  ;;  %v1963_v39 = vsel %vm1881_vm9, %v5540_v25, -inf }
 0x539   :  { %v1957_v32 = vsel %vm1881_vm9, %v5544_v29, -inf }
 0x53a   :  { %1958 = vmax.xlane.f32.xlu1 %v1957_v32 }
 0x53c   :  { %1961 = vmax.xlane.f32.xlu0 %v1960_v1 }
 0x53d   :  { %v5550_v50 = vpop.f32.mrb[72].mxu1 }
 0x53e   :  { %1964 = vmax.xlane.f32.xlu1 %v1963_v39  ;;  %v5554_v41 = vpop.f32.mrb[73].mxu1  ;;  %v1972_v46 = vsel %vm1881_vm9, %v5550_v50, -inf }
 0x53f   :  { %v5556_v8 = vpop.f32.mrb[74].mxu1  ;;  %v1966_v47 = vsel %vm1881_vm9, %v5554_v41, -inf }
 0x540   :  { %1967 = vmax.xlane.f32.xlu0 %v1966_v47  ;;  %v5560_v13 = vpop.f32.mrb[75].mxu1  ;;  %v1975_v60 = vsel %vm1881_vm9, %v5556_v8, -inf }
 0x541   :  { %v1969_v10 = vsel %vm1881_vm9, %v5560_v13, -inf }
 0x542   :  { %1970 = vmax.xlane.f32.xlu1 %v1969_v10 }
 0x544   :  { %1973 = vmax.xlane.f32.xlu0 %v1972_v46 }
 0x546   :  { %1976 = vmax.xlane.f32.xlu1 %v1975_v60 }
 0x583   :  { %v5568_v22 = vpop.xlane.xlu1 %1889 }
 0x584   :  { %v2076_v27 = vsub.f32 %v5440_v21, %v5568_v22  ;;  %v5572_v59 = vpop.xlane.xlu0 %1883 }
 0x585   :  { %v2074_v38 = vsub.f32 %v5442_v62, %v5572_v59 }
 0x586   :  { %v2110_v53 = vmul.f32 1.442695, %v2076_v27 }
 0x587   :  { %v5576_v48 = vpop.xlane.xlu1 %1892  ;;  %v2106_v57 = vmul.f32 1.442695, %v2074_v38 }
 0x588   :  { %v2077_v15 = vsub.f32 %v5446_v11, %v5576_v48  ;;  %v5580_v12 = vpop.xlane.xlu0 %1886  ;;  %3736 = vpow2.f32 %v2110_v53 }
 0x589   :  { %v2075_v35 = vsub.f32 %v5450_v23, %v5580_v12 }
 0x58a   :  { %v2112_v34 = vmul.f32 1.442695, %v2077_v15 }
 0x58b   :  { %v2108_v55 = vmul.f32 1.442695, %v2075_v35 }
 0x58c   :  { %v5584_v21 = vpop.xlane.xlu0 %1895  ;;  %3738 = vpow2.f32 %v2112_v34 }
 0x58d   :  { %v2078_v62 = vsub.f32 %v5458_v61, %v5584_v21  ;;  %3740 = vpow2.f32 %v2106_v57 }
 0x58e   :  { %v5588_v49 = vpop.xlane.xlu1 %1898  ;;  %3742 = vpow2.f32 %v2108_v55 }
 0x58f   :  { %v2114_v11 = vmul.f32 1.442695, %v2078_v62  ;;  %v2079_v36 = vsub.f32 %v5464_v20, %v5588_v49 }
 0x590   :  { %v5592_v6 = vpop.xlane.xlu0 %1901 }
 0x591   :  { %v2080_v23 = vsub.f32 %v5456_v63, %v5592_v6  ;;  %v2116_v4 = vmul.f32 1.442695, %v2079_v36  ;;  %3744 = vpow2.f32 %v2114_v11 }
 0x592   :  { %v5596_v33 = vpop.xlane.xlu1 %1904  ;;  %v3737_v1 = vpop.eup %3736 }
 0x593   :  { %v2118_v32 = vmul.f32 1.442695, %v2080_v23  ;;  %3746 = vpow2.f32 %v2116_v4  ;;  %v2081_v61 = vsub.f32 %v5460_v24, %v5596_v33 }
 0x595   :  { %v2120_v39 = vmul.f32 1.442695, %v2081_v61  ;;  %3748 = vpow2.f32 %v2118_v32 }
 0x596   :  { %v3739_v47 = vpop.eup %3738 }
 0x597   :  { %v3741_v10 = vpop.eup %3740  ;;  %v2203_v20 = vpack.c.bf16 %v3739_v47, %v3737_v1  ;;  %3750 = vpow2.f32 %v2120_v39 }
 0x598   :  { %v3743_v46 = vpop.eup %3742 }
 0x599   :  { %v2202_v60 = vpack.c.bf16 %v3743_v46, %v3741_v10 }
 0x59b   :  { %3577 = vmatprep.mubr.msk.bf16.mxu0 %vm1881_vm9, %v2202_v60  ;;  %v3745_v63 = vpop.eup %3744 }
 0x59c   :  { %3578 = vmatmul.mubr.msk.bf16.vlgmr.msra.gmra.mrb[60].mxu0 %vm1881_vm9, %v2203_v20 }
 0x59d   :  { %v3747_v27 = vpop.eup %3746  ;;  %3602 = vmatpush3.bf16.msra.mxu0 %v5294_v3 }
 0x59e   :  { %3603 = vmatprep.subr.bf16.mxu0 %v5291_v18  ;;  %v2204_v24 = vpack.c.bf16 %v3747_v27, %v3745_v63 }
 0x59f   :  { %v3749_v38 = vpop.eup %3748 }
 0x5a0   :  { %3581 = vmatprep.mubr.msk.bf16.mxu0 %vm1881_vm9, %v2204_v24 }
 0x5a1   :  { %v3751_v53 = vpop.eup %3750  ;;  %3604 = vmatpush3.bf16.msra.mxu0 %v5291_v18 }
 0x5a2   :  { %3605 = vmatprep.subr.bf16.mxu0 %v5314_v14  ;;  %v2205_v15 = vpack.c.bf16 %v3751_v53, %v3749_v38 }
 0x5a4   :  { %v5607_v35 = vpop.xlane.xlu0 %1907  ;;  %3582 = vmatmul.mubr.msk.bf16.gmra.mrb[64].mxu0 %vm1881_vm9, %v2205_v15 }
 0x5a5   :  { %v2082_v57 = vsub.f32 %v5476_v40, %v5607_v35  ;;  %3606 = vmatpush3.bf16.msra.mxu0 %v5314_v14 }
 0x5a6   :  { %v5613_v3 = vpop.xlane.xlu1 %1910  ;;  %3607 = vmatprep.subr.bf16.mxu0 %v5305_v54 }
 0x5a7   :  { %v2083_v34 = vsub.f32 %v5486_v31, %v5613_v3  ;;  %v2122_v55 = vmul.f32 1.442695, %v2082_v57 }
 0x5a8   :  { %v5618_v18 = vpop.xlane.xlu0 %1913 }
 0x5a9   :  { %v2124_v62 = vmul.f32 1.442695, %v2083_v34  ;;  %3608 = vmatpush3.bf16.msra.mxu0 %v5305_v54  ;;  %v2084_v11 = vsub.f32 %v5472_v5, %v5618_v18 }
 0x5aa   :  { %v5623_v36 = vpop.xlane.xlu1 %1916 }
 0x5ab   :  { %v2085_v14 = vsub.f32 %v5480_v26, %v5623_v36  ;;  %3752 = vpow2.f32 %v2124_v62  ;;  %v2126_v40 = vmul.f32 1.442695, %v2084_v11 }
 0x5ac   :  { %v5627_v23 = vpop.xlane.xlu0 %1919  ;;  %3754 = vpow2.f32 %v2122_v55 }
 0x5ad   :  { %v2128_v31 = vmul.f32 1.442695, %v2085_v14  ;;  %v2086_v4 = vsub.f32 %v5500_v19, %v5627_v23  ;;  %3756 = vpow2.f32 %v2126_v40 }
 0x5ae   :  { %v5631_v32 = vpop.xlane.xlu1 %1922 }
 0x5af   :  { %v2087_v54 = vsub.f32 %v5510_v28, %v5631_v32  ;;  %3758 = vpow2.f32 %v2128_v31  ;;  %v2130_v61 = vmul.f32 1.442695, %v2086_v4 }
 0x5b0   :  { %v5635_v5 = vpop.xlane.xlu0 %1925 }
 0x5b1   :  { %v2132_v26 = vmul.f32 1.442695, %v2087_v54  ;;  %v2088_v1 = vsub.f32 %v5494_v51, %v5635_v5 }
 0x5b2   :  { %v5639_v39 = vpop.xlane.xlu1 %1928 }
 0x5b3   :  { %v2089_v47 = vsub.f32 %v5504_v42, %v5639_v39  ;;  %3760 = vpow2.f32 %v2132_v26  ;;  %v2134_v10 = vmul.f32 1.442695, %v2088_v1 }
 0x5b4   :  { %v5643_v19 = vpop.xlane.xlu0 %1931  ;;  %3762 = vpow2.f32 %v2130_v61 }
 0x5b5   :  { %v2136_v20 = vmul.f32 1.442695, %v2089_v47  ;;  %v3753_v28 = vpop.eup %3752  ;;  %v2090_v46 = vsub.f32 %v5478_v30, %v5643_v19 }
 0x5b6   :  { %v5647_v60 = vpop.xlane.xlu1 %1934  ;;  %v3755_v63 = vpop.eup %3754 }
 0x5b7   :  { %v2091_v51 = vsub.f32 %v5488_v37, %v5647_v60  ;;  %3764 = vpow2.f32 %v2136_v20  ;;  %v2138_v27 = vmul.f32 1.442695, %v2090_v46  ;;  %v2206_v24 = vpack.c.bf16 %v3753_v28, %v3755_v63  ;;  %v3757_v38 = vpop.eup %3756 }
 0x5b8   :  { %v5651_v42 = vpop.xlane.xlu0 %1937  ;;  %3766 = vpow2.f32 %v2134_v10 }
 0x5b9   :  { %v2140_v53 = vmul.f32 1.442695, %v2091_v51  ;;  %v3759_v15 = vpop.eup %3758  ;;  %3593 = vmatprep.mubr.msk.bf16.mxu1 %vm1881_vm9, %v2206_v24  ;;  %v2092_v30 = vsub.f32 %v5474_v9, %v5651_v42  ;;  %3768 = vpow2.f32 %v2138_v27 }
 0x5ba   :  { %v5656_v57 = vpop.xlane.xlu1 %1940  ;;  %v2207_v34 = vpack.c.bf16 %v3759_v15, %v3757_v38 }
 0x5bb   :  { %3770 = vpow2.f32 %v2140_v53  ;;  %v2142_v37 = vmul.f32 1.442695, %v2092_v30  ;;  %v2093_v55 = vsub.f32 %v5484_v0, %v5656_v57 }
 0x5bc   :  { %v5660_v62 = vpop.xlane.xlu0 %1943  ;;  %3594 = vmatmul.mubr.msk.bf16.vlgmr.msra.gmra.mrb[76].mxu1 %vm1881_vm9, %v2207_v34 }
 0x5bd   :  { %v2094_v11 = vsub.f32 %v5502_v58, %v5660_v62  ;;  %v3761_v14 = vpop.eup %3760  ;;  %v2144_v40 = vmul.f32 1.442695, %v2093_v55  ;;  %3618 = vmatpush3.bf16.msra.mxu1 %v5340_v52  ;;  %3772 = vpow2.f32 %v2142_v37 }
 0x5be   :  { %v5666_v9 = vpop.xlane.xlu1 %1946  ;;  %v3763_v31 = vpop.eup %3762  ;;  %3619 = vmatprep.subr.bf16.mxu1 %v5331_v2 }
 0x5bf   :  { %v2146_v4 = vmul.f32 1.442695, %v2094_v11  ;;  %3774 = vpow2.f32 %v2144_v40  ;;  %v2095_v0 = vsub.f32 %v5512_v44, %v5666_v9  ;;  %v2208_v61 = vpack.c.bf16 %v3761_v14, %v3763_v31 }
 0x5c0   :  { %v5671_v54 = vpop.xlane.xlu0 %1949 }
 0x5c1   :  { %v2096_v58 = vsub.f32 %v5498_v45, %v5671_v54  ;;  %v3765_v26 = vpop.eup %3764  ;;  %v2148_v1 = vmul.f32 1.442695, %v2095_v0  ;;  %3620 = vmatpush3.bf16.msra.mxu1 %v5331_v2  ;;  %3597 = vmatprep.mubr.msk.bf16.mxu1 %vm1881_vm9, %v2208_v61  ;;  %3776 = vpow2.f32 %v2146_v4 }
 0x5c2   :  { %v5677_v52 = vpop.xlane.xlu1 %1952  ;;  %v3767_v47 = vpop.eup %3766  ;;  %3621 = vmatprep.subr.bf16.mxu1 %v5362_v56 }
 0x5c3   :  { %v2150_v10 = vmul.f32 1.442695, %v2096_v58  ;;  %3778 = vpow2.f32 %v2148_v1  ;;  %v2097_v44 = vsub.f32 %v5508_v7, %v5677_v52  ;;  %v2209_v20 = vpack.c.bf16 %v3765_v26, %v3767_v47  ;;  %v3769_v28 = vpop.eup %3768 }
 0x5c5   :  { %v5682_v45 = vpop.xlane.xlu0 %1955  ;;  %v3771_v46 = vpop.eup %3770  ;;  %v2152_v63 = vmul.f32 1.442695, %v2097_v44  ;;  %3598 = vmatmul.mubr.msk.bf16.gmra.mrb[80].mxu1 %vm1881_vm9, %v2209_v20  ;;  %3780 = vpow2.f32 %v2150_v10 }
 0x5c6   :  { %v2098_v2 = vsub.f32 %v5538_v16, %v5682_v45  ;;  %3622 = vmatpush3.bf16.msra.mxu1 %v5362_v56  ;;  %v2210_v27 = vpack.c.bf16 %v3771_v46, %v3769_v28 }
 0x5c7   :  { %v5688_v51 = vpop.xlane.xlu1 %1958  ;;  %3782 = vpow2.f32 %v2152_v63  ;;  %3623 = vmatprep.subr.bf16.mxu1 %v5357_v17  ;;  %v3773_v7 = vpop.eup %3772 }
 0x5c8   :  { %v2154_v24 = vmul.f32 1.442695, %v2098_v2  ;;  %v2099_v38 = vsub.f32 %v5544_v29, %v5688_v51  ;;  %3609 = vmatprep.mubr.msk.bf16.mxu0 %vm1881_vm9, %v2210_v27 }
 0x5c9   :  { %v5694_v53 = vpop.xlane.xlu0 %1961  ;;  %v3775_v15 = vpop.eup %3774 }
 0x5ca   :  { %v2100_v16 = vsub.f32 %v5536_v43, %v5694_v53  ;;  %v2211_v56 = vpack.c.bf16 %v3775_v15, %v3773_v7  ;;  %v2156_v30 = vmul.f32 1.442695, %v2099_v38  ;;  %3624 = vmatpush3.bf16.msra.mxu1 %v5357_v17  ;;  %3784 = vpow2.f32 %v2154_v24 }
 0x5cb   :  { %v5699_v34 = vpop.xlane.xlu1 %1964  ;;  %v3777_v55 = vpop.eup %3776 }
 0x5cc   :  { %v2158_v37 = vmul.f32 1.442695, %v2100_v16  ;;  %3786 = vpow2.f32 %v2156_v30  ;;  %v2101_v29 = vsub.f32 %v5540_v25, %v5699_v34  ;;  %3610 = vmatmul.mubr.msk.bf16.vlgmr.msra.gmra.mrb[68].mxu0 %vm1881_vm9, %v2211_v56  ;;  %v4305_v16 = vmov 32  }
 0x5cd   :  { %v5704_v11 = vpop.xlane.xlu0 %1967  ;;  %v3779_v14 = vpop.eup %3778  ;;  %3725 = vset.pattern.permute.xlu1 %v4305_v16  ;;  %3724 = vset.pattern.permute.xlu0 %v4305_v16  ;;  %v1980_v56 = vsub.f32 -inf, %v5568_v22  ;;  %v1978_v30 = vsub.f32 -inf, %v5572_v59  ;;  %v1983_v22 = vsub.f32 -inf, %v5588_v49  ;;  %v1986_v16 = vsub.f32 -inf, %v5607_v35 }
 0x5ce   :  { %v2102_v43 = vsub.f32 %v5554_v41, %v5704_v11  ;;  %v2160_v40 = vmul.f32 1.442695, %v2101_v29  ;;  %v2212_v17 = vpack.c.bf16 %v3779_v14, %v3777_v55  ;;  %3788 = vpow2.f32 %v2158_v37 }
 0x5cf   :  { %v5708_v31 = vpop.xlane.xlu1 %1970  ;;  %v3781_v0 = vpop.eup %3780  ;;  %v1981_v37 = vsub.f32 -inf, %v5576_v48  ;;  %v1979_v55 = vsub.f32 -inf, %v5580_v12  ;;  %v2014_v29 = vmul.f32 1.442695, %v1980_v56  ;;  %v2010_v14 = vmul.f32 1.442695, %v1978_v30 }
 0x5d0   :  { %v2162_v4 = vmul.f32 1.442695, %v2102_v43  ;;  %3790 = vpow2.f32 %v2160_v40  ;;  %v2103_v61 = vsub.f32 %v5560_v13, %v5708_v31  ;;  %3613 = vmatprep.mubr.msk.bf16.mxu0 %vm1881_vm9, %v2212_v17  ;;  %v1984_v17 = vsub.f32 -inf, %v5592_v6 }
 0x5d1   :  { %v5713_v25 = vpop.xlane.xlu0 %1973  ;;  %v3783_v58 = vpop.eup %3782  ;;  %v2016_v43 = vmul.f32 1.442695, %v1981_v37  ;;  %v2012_v40 = vmul.f32 1.442695, %v1979_v55  ;;  %v2020_v12 = vmul.f32 1.442695, %v1983_v22 }
 0x5d2   :  { %v2104_v26 = vsub.f32 %v5550_v50, %v5713_v25  ;;  %v2164_v41 = vmul.f32 1.442695, %v2103_v61  ;;  %v2213_v47 = vpack.c.bf16 %v3783_v58, %v3781_v0  ;;  %3792 = vpow2.f32 %v2162_v4 }
 0x5d3   :  { %v5717_v1 = vpop.xlane.xlu1 %1976  ;;  %v1982_v4 = vsub.f32 -inf, %v5584_v21  ;;  %v1985_v0 = vsub.f32 -inf, %v5596_v33  ;;  %v2022_v59 = vmul.f32 1.442695, %v1984_v17  ;;  %v1988_v55 = vsub.f32 -inf, %v5618_v18 }
 0x5d4   :  { %v2166_v10 = vmul.f32 1.442695, %v2104_v26  ;;  %3794 = vpow2.f32 %v2164_v41  ;;  %v2105_v44 = vsub.f32 %v5556_v8, %v5717_v1  ;;  %3614 = vmatmul.mubr.msk.bf16.gmra.mrb[72].mxu0 %vm1881_vm9, %v2213_v47  ;;  %v3785_v13 = vpop.eup %3784  ;;  %v2026_v22 = vmul.f32 1.442695, %v1986_v16 }
 0x5d5   :  { %v2018_v48 = vmul.f32 1.442695, %v1982_v4  ;;  %v2024_v61 = vmul.f32 1.442695, %v1985_v0  ;;  %v1989_v4 = vsub.f32 -inf, %v5623_v36  ;;  %v1992_v36 = vsub.f32 -inf, %v5635_v5 }
 0x5d6   :  { %v3787_v20 = vpop.eup %3786  ;;  %v2168_v28 = vmul.f32 1.442695, %v2105_v44  ;;  %3796 = vpow2.f32 %v2166_v10  ;;  %v1994_v5 = vsub.f32 -inf, %v5643_v19  ;;  %v1995_v19 = vsub.f32 -inf, %v5647_v60 }
 0x5d7   :  { %v2214_v46 = vpack.c.bf16 %v3787_v20, %v3785_v13  ;;  %v2032_v18 = vmul.f32 1.442695, %v1989_v4 }
 0x5d8   :  { %3798 = vpow2.f32 %v2168_v28  ;;  %v3789_v63 = vpop.eup %3788 }
 0x5d9   :  { %3625 = vmatprep.mubr.msk.bf16.mxu1 %vm1881_vm9, %v2214_v46  ;;  %3800 = vpow2.f32 %v2014_v29 }
 0x5da   :  { %v3791_v50 = vpop.eup %3790  ;;  %3802 = vpow2.f32 %v2010_v14 }
 0x5db   :  { %v2215_v2 = vpack.c.bf16 %v3791_v50, %v3789_v63  ;;  %3804 = vpow2.f32 %v2016_v43 }
 0x5dc   :  { %v3793_v27 = vpop.eup %3792  ;;  %3806 = vpow2.f32 %v2012_v40 }
 0x5dd   :  { %3626 = vmatmul.mubr.msk.bf16.vlgmr.msra.gmra.mrb[84].mxu1 %vm1881_vm9, %v2215_v2  ;;  %3808 = vpow2.f32 %v2022_v59  ;;  %v1987_v59 = vsub.f32 -inf, %v5613_v3  ;;  %v1993_v3 = vsub.f32 -inf, %v5639_v39  ;;  %v1996_v39 = vsub.f32 -inf, %v5651_v42 }
 0x5de   :  { %v3795_v24 = vpop.eup %3794  ;;  %3810 = vpow2.f32 %v2018_v48 }
 0x5df   :  { %v2216_v7 = vpack.c.bf16 %v3795_v24, %v3793_v27  ;;  %3812 = vpow2.f32 %v2024_v61  ;;  %v2030_v61 = vmul.f32 1.442695, %v1988_v55  ;;  %v2000_v55 = vsub.f32 -inf, %v5671_v54 }
 0x5e0   :  { %v3797_v38 = vpop.eup %3796  ;;  %3814 = vpow2.f32 %v2020_v12  ;;  %v2001_v54 = vsub.f32 -inf, %v5677_v52 }
 0x5e1   :  { %3629 = vmatprep.mubr.msk.bf16.mxu1 %vm1881_vm9, %v2216_v7 }
 0x5e2   :  { %v3799_v8 = vpop.eup %3798 }
 0x5e3   :  { %v2217_v15 = vpack.c.bf16 %v3799_v8, %v3797_v38  ;;  %v3801_v58 = vpop.eup %3800 }
 0x5e4   :  { %v3803_v26 = vpop.eup %3802  ;;  %v2172_v47 = vmul.f32 0.0, %v3801_v58  ;;  %v2028_v58 = vmul.f32 1.442695, %v1987_v59  ;;  %v1999_v59 = vsub.f32 -inf, %v5666_v9 }
 0x5e5   :  { %3630 = vmatmul.mubr.msk.bf16.gmra.mrb[88].mxu1 %vm1881_vm9, %v2217_v15  ;;  %v3805_v6 = vpop.eup %3804  ;;  %v2170_v10 = vmul.f32 0.0, %v3803_v26  ;;  %v1990_v26 = vsub.f32 -inf, %v5627_v23  ;;  %v2040_v23 = vmul.f32 1.442695, %v1993_v3  ;;  %v2002_v3 = vsub.f32 -inf, %v5682_v45 }
 0x5e6   :  { %v3807_v41 = vpop.eup %3806  ;;  %v2173_v13 = vmul.f32 0.0, %v3805_v6  ;;  %v3732_v6 = vld [vmem:[#allocation20] sm:$0xff]   ;;  %v2052_v9 = vmul.f32 1.442695, %v1999_v59  ;;  %v2004_v45 = vsub.f32 -inf, %v5694_v53 }
 0x5e7   :  { %v2171_v28 = vmul.f32 0.0, %v3807_v41  ;;  %v3809_v50 = vpop.eup %3808  ;;  %3633 = vmatprep.subr.bf16.mxu0 %v3732_v6 }
 0x5e8   :  { %v3811_v27 = vpop.eup %3810  ;;  %v2176_v38 = vmul.f32 0.0, %v3809_v50  ;;  %3634 = vmatpush3.bf16.msra.mxu0 %v3732_v6  ;;  %v2042_v50 = vmul.f32 1.442695, %v1994_v5 }
 0x5e9   :  { %v3813_v24 = vpop.eup %3812  ;;  %v2174_v15 = vmul.f32 0.0, %v3811_v27 }
 0x5ea   :  { %v3815_v7 = vpop.eup %3814  ;;  %v2177_v37 = vmul.f32 0.0, %v3813_v24 }
 0x5eb   :  { %v2175_v43 = vmul.f32 0.0, %v3815_v7  ;;  %v2046_v7 = vmul.f32 1.442695, %v1996_v39 }
 0x66f   :  { %v3579_v21 = vpop.f32.mrb[60].mxu0 }
 0x670   :  { %v5734_v44 = vadd.f32 %v3579_v21, %v2172_v47  ;;  %v2264_v33 = vpop.f32.mrb[61].mxu0  ;;  %v2034_v47 = vmul.f32 1.442695, %v1990_v26  ;;  %v1991_v21 = vsub.f32 -inf, %v5631_v32  ;;  %v1997_v32 = vsub.f32 -inf, %v5656_v57 }
 0x671   :  { %v5736_v49 = vadd.f32 %v2264_v33, %v2170_v10  ;;  %v3580_v20 = vpop.f32.mrb[62].mxu0  ;;  %v2038_v10 = vmul.f32 1.442695, %v1992_v36  ;;  %v3733_v33 = vld [vmem:[#allocation20 + $0x8] sm:$0xff]   ;;  %v2054_v26 = vmul.f32 1.442695, %v2000_v55 }
 0x672   :  { %3816 = vrcp.f32 %v5734_v44  ;;  %v5739_v46 = vadd.f32 %v3580_v20, %v2173_v13  ;;  %v2267_v63 = vpop.f32.mrb[63].mxu0  ;;  %v2036_v20 = vmul.f32 1.442695, %v1991_v21  ;;  %3635 = vmatprep.subr.bf16.mxu0 %v3733_v33  ;;  %v2048_v42 = vmul.f32 1.442695, %v1997_v32 }
 0x673   :  { %3818 = vrcp.f32 %v5736_v49  ;;  %v5742_v2 = vadd.f32 %v2267_v63, %v2171_v28  ;;  %3636 = vmatpush3.bf16.msra.mxu0 %v3733_v33  ;;  %v2058_v33 = vmul.f32 1.442695, %v2002_v3 }
 0x674   :  { %3820 = vrcp.f32 %v5739_v46 }
 0x675   :  { %3822 = vrcp.f32 %v5742_v2 }
 0x677   :  { %v3583_v8 = vpop.f32.mrb[64].mxu0 }
 0x678   :  { %v5746_v56 = vadd.f32 %v3583_v8, %v2176_v38  ;;  %v2280_v30 = vpop.f32.mrb[65].mxu0  ;;  %v1998_v8 = vsub.f32 -inf, %v5660_v62 }
 0x679   :  { %v5749_v29 = vadd.f32 %v2280_v30, %v2174_v15  ;;  %v3584_v14 = vpop.f32.mrb[66].mxu0 }
 0x67a   :  { %v5752_v40 = vadd.f32 %v3584_v14, %v2177_v37  ;;  %v2283_v17 = vpop.f32.mrb[67].mxu0  ;;  %3824 = vrcp.f32 %v5746_v56  ;;  %v2044_v37 = vmul.f32 1.442695, %v1995_v19  ;;  %v2050_v62 = vmul.f32 1.442695, %v1998_v8 }
 0x67b   :  { %v5755_v0 = vadd.f32 %v2283_v17, %v2175_v43  ;;  %3826 = vpow2.f32 %v2026_v22 }
 0x67c   :  { %v3817_v35 = vpop.eup %3816  ;;  %3828 = vpow2.f32 %v2030_v61 }
 0x67d   :  { %v3819_v48 = vpop.eup %3818  ;;  %2602 = vperm.xlu1 %3725, %v3817_v35   ;;  %3830 = vrcp.f32 %v5749_v29 }
 0x67e   :  { %2592 = vperm.xlu0 %3724, %v3819_v48   ;;  %v3821_v12 = vpop.eup %3820  ;;  %3832 = vpow2.f32 %v2032_v18 }
 0x67f   :  { %v3823_v41 = vpop.eup %3822  ;;  %3834 = vpow2.f32 %v2028_v58 }
 0x680   :  { %3836 = vrcp.f32 %v5755_v0 }
 0x681   :  { %2607 = vperm.xlu1 %3725, %v3821_v12   ;;  %3838 = vpow2.f32 %v2034_v47  ;;  %v2003_v47 = vsub.f32 -inf, %v5688_v51 }
 0x682   :  { %3840 = vpow2.f32 %v2038_v10 }
 0x683   :  { %3842 = vrcp.f32 %v5752_v40 }
 0x684   :  { %v3825_v13 = vpop.eup %3824  ;;  %3844 = vpow2.f32 %v2040_v23 }
 0x685   :  { %2597 = vperm.xlu1 %3725, %v3823_v41   ;;  %v3827_v28 = vpop.eup %3826  ;;  %3846 = vpow2.f32 %v2036_v20  ;;  %v2056_v41 = vmul.f32 1.442695, %v2001_v54 }
 0x686   :  { %v3829_v63 = vpop.eup %3828  ;;  %3848 = vpow2.f32 %v2042_v50  ;;  %v2178_v16 = vmul.f32 0.0, %v3827_v28 }
 0x687   :  { %v3831_v27 = vpop.eup %3830  ;;  %v2180_v15 = vmul.f32 0.0, %v3829_v63  ;;  %3850 = vpow2.f32 %v2046_v7  ;;  %v2060_v63 = vmul.f32 1.442695, %v2003_v47 }
 0x688   :  { %v3833_v24 = vpop.eup %3832  ;;  %3852 = vpow2.f32 %v2048_v42 }
 0x689   :  { %2622 = vperm.xlu1 %3725, %v3825_v13   ;;  %v3835_v38 = vpop.eup %3834  ;;  %v2181_v60 = vmul.f32 0.0, %v3833_v24  ;;  %v2005_v24 = vsub.f32 -inf, %v5699_v34 }
 0x68a   :  { %v3837_v30 = vpop.eup %3836  ;;  %v2179_v35 = vmul.f32 0.0, %v3835_v38  ;;  %v2062_v38 = vmul.f32 1.442695, %v2004_v45 }
 0x68b   :  { %v3839_v22 = vpop.eup %3838  ;;  %v2064_v34 = vmul.f32 1.442695, %v2005_v24 }
 0x68c   :  { %v3841_v18 = vpop.eup %3840  ;;  %v2182_v10 = vmul.f32 0.0, %v3839_v22 }
 0x68d   :  { %2612 = vperm.xlu1 %3725, %v3831_v27   ;;  %v3843_v58 = vpop.eup %3842  ;;  %v2184_v52 = vmul.f32 0.0, %v3841_v18 }
 0x68e   :  { %v3845_v36 = vpop.eup %3844 }
 0x68f   :  { %v3595_v57 = vpop.f32.mrb[76].mxu1  ;;  %v3847_v6 = vpop.eup %3846  ;;  %v2185_v23 = vmul.f32 0.0, %v3845_v36 }
 0x690   :  { %v5772_v14 = vadd.f32 %v3595_v57, %v2180_v15  ;;  %v2341_v43 = vpop.f32.mrb[77].mxu1  ;;  %v3849_v5 = vpop.eup %3848  ;;  %v2183_v28 = vmul.f32 0.0, %v3847_v6  ;;  %v2006_v57 = vsub.f32 -inf, %v5704_v11 }
 0x691   :  { %v5774_v17 = vadd.f32 %v2341_v43, %v2178_v16  ;;  %2617 = vperm.xlu1 %3725, %v3837_v30   ;;  %v3596_v4 = vpop.f32.mrb[78].mxu1  ;;  %v3851_v32 = vpop.eup %3850  ;;  %v2186_v30 = vmul.f32 0.0, %v3849_v5 }
 0x692   :  { %v5777_v48 = vadd.f32 %v3596_v4, %v2181_v60  ;;  %v2344_v61 = vpop.f32.mrb[79].mxu1  ;;  %v3853_v19 = vpop.eup %3852  ;;  %v2188_v8 = vmul.f32 0.0, %v3851_v32 }
 0x693   :  { %3854 = vrcp.f32 %v5774_v17  ;;  %v5781_v12 = vadd.f32 %v2344_v61, %v2179_v35  ;;  %v2189_v60 = vmul.f32 0.0, %v3853_v19  ;;  %v2007_v35 = vsub.f32 -inf, %v5708_v31 }
 0x694   :  { %3856 = vpow2.f32 %v2044_v37  ;;  %v2008_v31 = vsub.f32 -inf, %v5713_v25 }
 0x695   :  { %3858 = vrcp.f32 %v5781_v12  ;;  %2627 = vperm.xlu1 %3725, %v3843_v58   ;;  %v2066_v58 = vmul.f32 1.442695, %v2006_v57 }
 0x696   :  { %3860 = vpow2.f32 %v2050_v62  ;;  %v2070_v5 = vmul.f32 1.442695, %v2008_v31 }
 0x697   :  { %3862 = vrcp.f32 %v5772_v14 }
 0x698   :  { %3864 = vpow2.f32 %v2054_v26  ;;  %v3599_v21 = vpop.f32.mrb[80].mxu1 }
 0x699   :  { %3866 = vrcp.f32 %v5777_v48  ;;  %v5789_v13 = vadd.f32 %v3599_v21, %v2184_v52  ;;  %v2357_v20 = vpop.f32.mrb[81].mxu1  ;;  %v2009_v52 = vsub.f32 -inf, %v5717_v1 }
 0x69a   :  { %3868 = vpow2.f32 %v2052_v9  ;;  %v5791_v39 = vadd.f32 %v2357_v20, %v2182_v10  ;;  %v3600_v51 = vpop.f32.mrb[82].mxu1  ;;  %v2068_v9 = vmul.f32 1.442695, %v2007_v35 }
 0x69b   :  { %3870 = vpow2.f32 %v2056_v41  ;;  %v5793_v50 = vadd.f32 %v3600_v51, %v2185_v23  ;;  %v2360_v27 = vpop.f32.mrb[83].mxu1  ;;  %v2072_v24 = vmul.f32 1.442695, %v2009_v52 }
 0x69c   :  { %3872 = vrcp.f32 %v5791_v39  ;;  %v5797_v53 = vadd.f32 %v2360_v27, %v2183_v28 }
 0x69d   :  { %v3855_v7 = vpop.eup %3854  ;;  %3874 = vpow2.f32 %v2058_v33 }
 0x69e   :  { %v3857_v42 = vpop.eup %3856  ;;  %3876 = vrcp.f32 %v5797_v53  ;;  %2632 = vperm.xlu1 %3725, %v3855_v7  }
 0x69f   :  { %v3859_v15 = vpop.eup %3858  ;;  %3878 = vpow2.f32 %v2060_v63  ;;  %v3611_v16 = vpop.f32.mrb[68].mxu0  ;;  %v2187_v59 = vmul.f32 0.0, %v3857_v42 }
 0x6a0   :  { %v3861_v37 = vpop.eup %3860  ;;  %3880 = vrcp.f32 %v5789_v13  ;;  %v5802_v55 = vadd.f32 %v3611_v16, %v2188_v8  ;;  %v2418_v43 = vpop.f32.mrb[69].mxu0  ;;  %2637 = vperm.xlu0 %3724, %v3859_v15  }
 0x6a1   :  { %v3863_v4 = vpop.eup %3862  ;;  %3882 = vpow2.f32 %v2062_v38  ;;  %v5805_v22 = vadd.f32 %v2418_v43, %v2186_v30  ;;  %v3612_v62 = vpop.f32.mrb[70].mxu0  ;;  %v2190_v10 = vmul.f32 0.0, %v3861_v37 }
 0x6a2   :  { %v3865_v11 = vpop.eup %3864  ;;  %3884 = vrcp.f32 %v5793_v50  ;;  %v5808_v61 = vadd.f32 %v3612_v62, %v2189_v60  ;;  %v2421_v18 = vpop.f32.mrb[71].mxu0  ;;  %2642 = vperm.xlu1 %3725, %v3863_v4  }
 0x6a3   :  { %v3867_v54 = vpop.eup %3866  ;;  %3886 = vrcp.f32 %v5805_v22  ;;  %v5811_v26 = vadd.f32 %v2421_v18, %v2187_v59  ;;  %v2192_v41 = vmul.f32 0.0, %v3865_v11 }
 0x6a4   :  { %v3869_v36 = vpop.eup %3868  ;;  %3888 = vpow2.f32 %v2064_v34  ;;  %2647 = vperm.xlu0 %3724, %v3867_v54  }
 0x6a5   :  { %v3871_v3 = vpop.eup %3870  ;;  %3890 = vrcp.f32 %v5811_v26  ;;  %v2191_v32 = vmul.f32 0.0, %v3869_v36 }
 0x6a6   :  { %v3873_v6 = vpop.eup %3872  ;;  %3892 = vpow2.f32 %v2066_v58  ;;  %v2193_v45 = vmul.f32 0.0, %v3871_v3 }
 0x6a7   :  { %v3875_v47 = vpop.eup %3874  ;;  %2652 = vperm.xlu1 %3725, %v3873_v6   ;;  %v3615_v21 = vpop.f32.mrb[72].mxu0  ;;  %3894 = vrcp.f32 %v5802_v55 }
 0x6a8   :  { %v3877_v23 = vpop.eup %3876  ;;  %v5817_v33 = vadd.f32 %v3615_v21, %v2192_v41  ;;  %v2434_v25 = vpop.f32.mrb[73].mxu0  ;;  %3896 = vpow2.f32 %v2068_v9  ;;  %v2194_v30 = vmul.f32 0.0, %v3875_v47 }
 0x6a9   :  { %v3879_v20 = vpop.eup %3878  ;;  %v5819_v51 = vadd.f32 %v2434_v25, %v2190_v10  ;;  %2657 = vperm.xlu0 %3724, %v3877_v23   ;;  %v3616_v28 = vpop.f32.mrb[74].mxu0  ;;  %3898 = vrcp.f32 %v5808_v61 }
 0x6aa   :  { %v3881_v63 = vpop.eup %3880  ;;  %v5822_v1 = vadd.f32 %v3616_v28, %v2193_v45  ;;  %v2437_v27 = vpop.f32.mrb[75].mxu0  ;;  %v2195_v59 = vmul.f32 0.0, %v3879_v20 }
 0x6ab   :  { %v3883_v19 = vpop.eup %3882  ;;  %3900 = vrcp.f32 %v5819_v51  ;;  %v5825_v7 = vadd.f32 %v2437_v27, %v2191_v32  ;;  %2662 = vperm.xlu1 %3725, %v3881_v63  }
 0x6ac   :  { %v3885_v38 = vpop.eup %3884  ;;  %3902 = vpow2.f32 %v2070_v5  ;;  %v2196_v57 = vmul.f32 0.0, %v3883_v19 }
 0x6ad   :  { %v3887_v42 = vpop.eup %3886  ;;  %3904 = vrcp.f32 %v5825_v7  ;;  %2667 = vperm.xlu0 %3724, %v3885_v38  }
 0x6ae   :  { %v3889_v8 = vpop.eup %3888  ;;  %3906 = vpow2.f32 %v2072_v24 }
 0x6af   :  { %v3891_v15 = vpop.eup %3890  ;;  %2672 = vperm.xlu1 %3725, %v3887_v42   ;;  %3908 = vrcp.f32 %v5817_v33  ;;  %v2197_v60 = vmul.f32 0.0, %v3889_v8 }
 0x6b0   :  { %v3627_v16 = vpop.f32.mrb[84].mxu1  ;;  %v3893_v37 = vpop.eup %3892  ;;  %3910 = vrcp.f32 %v5822_v1 }
 0x6b1   :  { %v5829_v34 = vadd.f32 %v3627_v16, %v2196_v57  ;;  %2677 = vperm.xlu0 %3724, %v3891_v15   ;;  %v2495_v43 = vpop.f32.mrb[85].mxu1  ;;  %v3895_v4 = vpop.eup %3894  ;;  %v2198_v41 = vmul.f32 0.0, %v3893_v37 }
 0x6b2   :  { %v5832_v35 = vadd.f32 %v2495_v43, %v2194_v30  ;;  %v3628_v62 = vpop.f32.mrb[86].mxu1  ;;  %v3897_v11 = vpop.eup %3896 }
 0x6b3   :  { %v5834_v18 = vadd.f32 %v3628_v62, %v2197_v60  ;;  %v2498_v54 = vpop.f32.mrb[87].mxu1  ;;  %2682 = vperm.xlu1 %3725, %v3895_v4   ;;  %v3899_v58 = vpop.eup %3898  ;;  %v2199_v25 = vmul.f32 0.0, %v3897_v11 }
 0x6b4   :  { %3912 = vrcp.f32 %v5832_v35  ;;  %v5837_v36 = vadd.f32 %v2498_v54, %v2195_v59 }
 0x6b5   :  { %v3901_v31 = vpop.eup %3900  ;;  %2687 = vperm.xlu0 %3724, %v3899_v58  }
 0x6b6   :  { %v3903_v3 = vpop.eup %3902  ;;  %3914 = vrcp.f32 %v5837_v36 }
 0x6b7   :  { %v3905_v9 = vpop.eup %3904  ;;  %2692 = vperm.xlu1 %3725, %v3901_v31   ;;  %3916 = vrcp.f32 %v5829_v34  ;;  %v2200_v10 = vmul.f32 0.0, %v3903_v3 }
 0x6b8   :  { %v3631_v6 = vpop.f32.mrb[88].mxu1  ;;  %v3907_v47 = vpop.eup %3906  ;;  %3918 = vrcp.f32 %v5834_v18 }
 0x6b9   :  { %2697 = vperm.xlu0 %3724, %v3905_v9   ;;  %v2511_v52 = vpop.f32.mrb[89].mxu1  ;;  %v3909_v21 = vpop.eup %3908  ;;  %v5844_v28 = vadd.f32 %v3631_v6, %v2200_v10  ;;  %v2201_v32 = vmul.f32 0.0, %v3907_v47 }
 0x6ba   :  { %v5842_v23 = vadd.f32 %v2511_v52, %v2198_v41  ;;  %v3632_v5 = vpop.f32.mrb[90].mxu1  ;;  %v3911_v20 = vpop.eup %3910 }
 0x6bb   :  { %2702 = vperm.xlu1 %3725, %v3909_v21   ;;  %v2514_v45 = vpop.f32.mrb[91].mxu1  ;;  %v5849_v19 = vadd.f32 %v3632_v5, %v2201_v32 }
 0x6bc   :  { %3920 = vrcp.f32 %v5842_v23  ;;  %v5847_v63 = vadd.f32 %v2514_v45, %v2199_v25 }
 0x6bd   :  { %2707 = vperm.xlu0 %3724, %v3911_v20  }
 0x6be   :  { %v3913_v27 = vpop.eup %3912  ;;  %3922 = vrcp.f32 %v5847_v63 }
 0x6bf   :  { %2712 = vperm.xlu1 %3725, %v3913_v27   ;;  %3924 = vrcp.f32 %v5844_v28 }
 0x6c0   :  { %v3915_v24 = vpop.eup %3914  ;;  %3926 = vrcp.f32 %v5849_v19 }
 0x6c1   :  { %2717 = vperm.xlu0 %3724, %v3915_v24   ;;  %v3917_v38 = vpop.eup %3916 }
 0x6c2   :  { %v3919_v42 = vpop.eup %3918 }
 0x6c3   :  { %2722 = vperm.xlu1 %3725, %v3917_v38  }
 0x6c5   :  { %2727 = vperm.xlu0 %3724, %v3919_v42  }
 0x6c6   :  { %v3921_v8 = vpop.eup %3920 }
 0x6c7   :  { %2732 = vperm.xlu1 %3725, %v3921_v8  }
 0x6c8   :  { %v3923_v15 = vpop.eup %3922 }
 0x6c9   :  { %2737 = vperm.xlu0 %3724, %v3923_v15   ;;  %v3925_v57 = vpop.eup %3924 }
 0x6ca   :  { %v3927_v16 = vpop.eup %3926 }
 0x6cb   :  { %2742 = vperm.xlu1 %3725, %v3925_v57  }
 0x6cd   :  { %2747 = vperm.xlu0 %3724, %v3927_v16  }
 0x6fc   :  { %v2603_v30 = vpop.permute.xlu1 %2602 }
 0x6fd   :  { %v2593_v43 = vpop.permute.xlu0 %2592  ;;  %v2752_v11 = vmul.f32 %v2603_v30, %v5734_v44 }
 0x6fe   :  { %v2750_v62 = vmul.f32 %v2593_v43, %v5736_v49 }
 0x700   :  { %v2608_v37 = vpop.permute.xlu1 %2607 }
 0x701   :  { %v2753_v60 = vmul.f32 %v2608_v37, %v5739_v46 }
 0x703   :  { %v2783_v58 = vpack.c.bf16 %v2753_v60, %v2752_v11 }
 0x704   :  { %v2598_v4 = vpop.permute.xlu1 %2597 }
 0x705   :  { %v2751_v59 = vmul.f32 %v2598_v4, %v5742_v2 }
 0x707   :  { %v2782_v54 = vpack.c.bf16 %v2751_v59, %v2750_v62 }
 0x708   :  { %v2623_v31 = vpop.permute.xlu1 %2622 }
 0x709   :  { %3637 = vmatprep.mubr.msk.bf16.mxu0 %vm242_vm1, %v2782_v54  ;;  %v2756_v49 = vmul.f32 %v2623_v31, %v5746_v56 }
 0x70a   :  { %3638 = vmatmul.mubr.msk.bf16.vlgmr.msra.gmra.mrb[76].mxu0 %vm242_vm1, %v2783_v58 }
 0x70c   :  { %v2613_v3 = vpop.permute.xlu1 %2612 }
 0x70d   :  { %v2754_v6 = vmul.f32 %v2613_v3, %v5749_v29 }
 0x710   :  { %v2618_v9 = vpop.permute.xlu1 %2617 }
 0x711   :  { %v2755_v46 = vmul.f32 %v2618_v9, %v5755_v0 }
 0x713   :  { %v2784_v41 = vpack.c.bf16 %v2755_v46, %v2754_v6 }
 0x714   :  { %v2628_v47 = vpop.permute.xlu1 %2627 }
 0x715   :  { %v2757_v2 = vmul.f32 %v2628_v47, %v5752_v40  ;;  %3641 = vmatprep.mubr.msk.bf16.mxu0 %vm242_vm1, %v2784_v41 }
 0x717   :  { %v2785_v44 = vpack.c.bf16 %v2757_v2, %v2756_v49 }
 0x719   :  { %3642 = vmatmul.mubr.msk.bf16.gmra.mrb[80].mxu0 %vm242_vm1, %v2785_v44 }
 0x71d   :  { %v2633_v52 = vpop.permute.xlu1 %2632 }
 0x71e   :  { %v2758_v10 = vmul.f32 %v2633_v52, %v5774_v17  ;;  %v5902_v52 = vld [vmem:[#allocation22] ss:$0 sm:$0xff] }
 0x71f   :  { %v2638_v21 = vpop.permute.xlu0 %2637 }
 0x720   :  { %v2759_v5 = vmul.f32 %v2638_v21, %v5781_v12 }
 0x721   :  { %v2643_v29 = vpop.permute.xlu1 %2642 }
 0x722   :  { %v2786_v25 = vpack.c.bf16 %v2759_v5, %v2758_v10  ;;  %v2760_v45 = vmul.f32 %v2643_v29, %v5772_v14  ;;  %v3928_v29 = vld [vmem:[#allocation2 + $0x10] sm:$0xff] }
 0x723   :  { %v2648_v0 = vpop.permute.xlu0 %2647 }
 0x724   :  { %v2761_v56 = vmul.f32 %v2648_v0, %v5777_v48  ;;  %3645 = vmatprep.mubr.msk.bf16.mxu0 %vm242_vm1, %v2786_v25 }
 0x726   :  { %v2787_v40 = vpack.c.bf16 %v2761_v56, %v2760_v45  ;;  %v2653_v20 = vpop.permute.xlu1 %2652 }
 0x727   :  { %v2762_v27 = vmul.f32 %v2653_v20, %v5791_v39 }
 0x728   :  { %v2658_v32 = vpop.permute.xlu0 %2657  ;;  %3646 = vmatmul.mubr.msk.bf16.gmra.mrb[84].mxu0 %vm242_vm1, %v2787_v40  ;;  %v3930_v40 = vld [vmem:[#allocation2 + $0x18] sm:$0xff] }
 0x729   :  { %v2763_v17 = vmul.f32 %v2658_v32, %v5797_v53  ;;  %v3931_v32 = vld [vmem:[#allocation2 + $0x8] sm:$0xff] }
 0x72a   :  { %v2663_v24 = vpop.permute.xlu1 %2662 }
 0x72b   :  { %v2788_v12 = vpack.c.bf16 %v2763_v17, %v2762_v27  ;;  %v2764_v42 = vmul.f32 %v2663_v24, %v5789_v13 }
 0x72c   :  { %v2668_v38 = vpop.permute.xlu0 %2667 }
 0x72d   :  { %v2765_v14 = vmul.f32 %v2668_v38, %v5793_v50  ;;  %3649 = vmatprep.mubr.msk.bf16.mxu0 %vm242_vm1, %v2788_v12 }
 0x72e   :  { %v2673_v48 = vpop.permute.xlu1 %2672 }
 0x72f   :  { %v2789_v8 = vpack.c.bf16 %v2765_v14, %v2764_v42  ;;  %v2766_v57 = vmul.f32 %v2673_v48, %v5805_v22  ;;  %v3932_v14 = vld [vmem:[#allocation2 + $0x30] sm:$0xff] }
 0x730   :  { %v2678_v15 = vpop.permute.xlu0 %2677 }
 0x731   :  { %v2767_v16 = vmul.f32 %v2678_v15, %v5811_v26  ;;  %3650 = vmatmul.mubr.msk.bf16.gmra.mrb[88].mxu0 %vm242_vm1, %v2789_v8 }
 0x732   :  { %v2683_v39 = vpop.permute.xlu1 %2682 }
 0x733   :  { %v2790_v53 = vpack.c.bf16 %v2767_v16, %v2766_v57  ;;  %v2768_v37 = vmul.f32 %v2683_v39, %v5802_v55  ;;  %v3933_v57 = vld [vmem:[#allocation2 + $0x20] sm:$0xff] }
 0x734   :  { %v2688_v30 = vpop.permute.xlu0 %2687 }
 0x735   :  { %v2769_v13 = vmul.f32 %v2688_v30, %v5808_v61  ;;  %3653 = vmatprep.mubr.msk.bf16.mxu0 %vm242_vm1, %v2790_v53  ;;  %v3934_v53 = vld [vmem:[#allocation2 + $0x38] sm:$0xff] }
 0x736   :  { %v2693_v50 = vpop.permute.xlu1 %2692 }
 0x737   :  { %v2791_v43 = vpack.c.bf16 %v2769_v13, %v2768_v37  ;;  %v2770_v4 = vmul.f32 %v2693_v50, %v5819_v51  ;;  %v3935_v37 = vld [vmem:[#allocation2 + $0x28] sm:$0xff] }
 0x738   :  { %v2698_v60 = vpop.permute.xlu0 %2697 }
 0x739   :  { %v2771_v22 = vmul.f32 %v2698_v60, %v5825_v7  ;;  %3654 = vmatmul.mubr.msk.bf16.gmra.mrb[92].mxu0 %vm242_vm1, %v2791_v43 }
 0x73a   :  { %v2703_v26 = vpop.permute.xlu1 %2702 }
 0x73b   :  { %v2792_v62 = vpack.c.bf16 %v2771_v22, %v2770_v4  ;;  %v2772_v11 = vmul.f32 %v2703_v26, %v5817_v33  ;;  %v3936_v26 = vld [vmem:[#allocation2 + $0x50] sm:$0xff] }
 0x73c   :  { %v2708_v59 = vpop.permute.xlu0 %2707 }
 0x73d   :  { %v2773_v55 = vmul.f32 %v2708_v59, %v5822_v1  ;;  %3657 = vmatprep.mubr.msk.bf16.mxu0 %vm242_vm1, %v2792_v62 }
 0x73e   :  { %v2713_v61 = vpop.permute.xlu1 %2712 }
 0x73f   :  { %v2793_v54 = vpack.c.bf16 %v2773_v55, %v2772_v11  ;;  %v2774_v31 = vmul.f32 %v2713_v61, %v5832_v35  ;;  %v3937_v55 = vld [vmem:[#allocation2 + $0x40] sm:$0xff] }
 0x740   :  { %v2718_v58 = vpop.permute.xlu0 %2717 }
 0x741   :  { %v2775_v51 = vmul.f32 %v2718_v58, %v5837_v36  ;;  %3658 = vmatmul.mubr.msk.bf16.gmra.mrb[96].mxu0 %vm242_vm1, %v2793_v54  ;;  %v3938_v58 = vld [vmem:[#allocation2 + $0x58] sm:$0xff] }
 0x742   :  { %v2723_v7 = vpop.permute.xlu1 %2722 }
 0x743   :  { %v2794_v3 = vpack.c.bf16 %v2775_v51, %v2774_v31  ;;  %v2776_v6 = vmul.f32 %v2723_v7, %v5829_v34  ;;  %v3939_v51 = vld [vmem:[#allocation2 + $0x48] sm:$0xff] }
 0x744   :  { %v2728_v9 = vpop.permute.xlu0 %2727 }
 0x745   :  { %v2777_v33 = vmul.f32 %v2728_v9, %v5834_v18  ;;  %3661 = vmatprep.mubr.msk.bf16.mxu0 %vm242_vm1, %v2794_v3 }
 0x746   :  { %v2733_v1 = vpop.permute.xlu1 %2732 }
 0x747   :  { %v2795_v46 = vpack.c.bf16 %v2777_v33, %v2776_v6  ;;  %v2778_v47 = vmul.f32 %v2733_v1, %v5842_v23 }
 0x748   :  { %v2738_v41 = vpop.permute.xlu0 %2737 }
 0x749   :  { %v2779_v35 = vmul.f32 %v2738_v41, %v5847_v63  ;;  %3662 = vmatmul.mubr.msk.bf16.gmra.mrb[100].mxu0 %vm242_vm1, %v2795_v46  ;;  %v3940_v46 = vld [vmem:[#allocation2 + $0x70] sm:$0xff] }
 0x74a   :  { %v2743_v36 = vpop.permute.xlu1 %2742 }
 0x74b   :  { %v2796_v49 = vpack.c.bf16 %v2779_v35, %v2778_v47  ;;  %v2780_v44 = vmul.f32 %v2743_v36, %v5844_v28  ;;  %v3941_v36 = vld [vmem:[#allocation2 + $0x60] sm:$0xff] }
 0x74c   :  { %v2748_v2 = vpop.permute.xlu0 %2747 }
 0x74d   :  { %v2781_v34 = vmul.f32 %v2748_v2, %v5849_v19  ;;  %3665 = vmatprep.mubr.msk.bf16.mxu0 %vm242_vm1, %v2796_v49  ;;  %v3929_v19 = vld [vmem:[#allocation2] sm:$0xff] }
 0x74f   :  { %v2797_v18 = vpack.c.bf16 %v2781_v34, %v2780_v44  ;;  %v3942_v44 = vld [vmem:[#allocation2 + $0x78] sm:$0xff] }
 0x751   :  { %3666 = vmatmul.mubr.msk.bf16.gmra.mrb[104].mxu0 %vm242_vm1, %v2797_v18  ;;  %v3943_v18 = vld [vmem:[#allocation2 + $0x68] sm:$0xff] }
 0x7dd   :  { %v3639_v21 = vpop.f32.mrb[76].mxu0 }
 0x7de   :  { %v2912_v23 = vadd.f32 %v3639_v21, %v5902_v52  ;;  %v2903_v63 = vpop.f32.mrb[77].mxu0 }
 0x7df   :  { %v2904_v10 = vadd.f32 %v5902_v52, %v2903_v63  ;;  %v3640_v5 = vpop.f32.mrb[78].mxu0 }
 0x7e0   :  { %v3032_v25 = vadd.f32 %v3928_v29, %v2912_v23  ;;  %v2915_v28 = vadd.f32 %v3640_v5, %v5902_v52  ;;  %v2906_v0 = vpop.f32.mrb[79].mxu0 }
 0x7e1   :  { %v3030_v45 = vadd.f32 %v3929_v19, %v2904_v10  ;;  %v2907_v56 = vadd.f32 %v5902_v52, %v2906_v0 }
 0x7e2   :  { %3064 = vst.msk [vmem:[#allocation23 + $0x10] sm:$0xff] %vm242_vm1, %v3032_v25  ;;  %v3033_v20 = vadd.f32 %v3930_v40, %v2915_v28  ;;  %v3944_v25 = vld [vmem:[#allocation2 + $0x90] sm:$0xff] }
 0x7e3   :  { %3062 = vst.msk [vmem:[#allocation23] sm:$0xff] %vm242_vm1, %v3030_v45  ;;  %v3031_v27 = vadd.f32 %v3931_v32, %v2907_v56  ;;  %v3945_v45 = vld [vmem:[#allocation2 + $0x80] sm:$0xff] }
 0x7e4   :  { %3065 = vst.msk [vmem:[#allocation23 + $0x18] sm:$0xff] %vm242_vm1, %v3033_v20  ;;  %v3946_v20 = vld [vmem:[#allocation2 + $0x98] sm:$0xff] }
 0x7e5   :  { %3063 = vst.msk [vmem:[#allocation23 + $0x8] sm:$0xff] %vm242_vm1, %v3031_v27  ;;  %v3947_v27 = vld [vmem:[#allocation2 + $0x88] sm:$0xff] }
 0x7ec   :  { %v3643_v17 = vpop.f32.mrb[80].mxu0 }
 0x7ed   :  { %v2928_v24 = vadd.f32 %v3643_v17, %v5902_v52  ;;  %v2919_v12 = vpop.f32.mrb[81].mxu0 }
 0x7ee   :  { %v2920_v38 = vadd.f32 %v5902_v52, %v2919_v12  ;;  %v3644_v42 = vpop.f32.mrb[82].mxu0 }
 0x7ef   :  { %v3036_v48 = vadd.f32 %v3932_v14, %v2928_v24  ;;  %v2931_v8 = vadd.f32 %v3644_v42, %v5902_v52  ;;  %v2922_v15 = vpop.f32.mrb[83].mxu0 }
 0x7f0   :  { %v3034_v16 = vadd.f32 %v3933_v57, %v2920_v38  ;;  %v2923_v39 = vadd.f32 %v5902_v52, %v2922_v15 }
 0x7f1   :  { %3068 = vst.msk [vmem:[#allocation23 + $0x30] sm:$0xff] %vm242_vm1, %v3036_v48  ;;  %v3037_v30 = vadd.f32 %v3934_v53, %v2931_v8  ;;  %v3948_v48 = vld [vmem:[#allocation2 + $0xb0] sm:$0xff] }
 0x7f2   :  { %3066 = vst.msk [vmem:[#allocation23 + $0x20] sm:$0xff] %vm242_vm1, %v3034_v16  ;;  %v3035_v13 = vadd.f32 %v3935_v37, %v2923_v39  ;;  %v3949_v16 = vld [vmem:[#allocation2 + $0xa0] sm:$0xff] }
 0x7f3   :  { %3069 = vst.msk [vmem:[#allocation23 + $0x38] sm:$0xff] %vm242_vm1, %v3037_v30  ;;  %v3950_v30 = vld [vmem:[#allocation2 + $0xb8] sm:$0xff] }
 0x7f4   :  { %3067 = vst.msk [vmem:[#allocation23 + $0x28] sm:$0xff] %vm242_vm1, %v3035_v13  ;;  %v3951_v13 = vld [vmem:[#allocation2 + $0xa8] sm:$0xff] }
 0x7fb   :  { %v3647_v50 = vpop.f32.mrb[84].mxu0 }
 0x7fc   :  { %v2944_v43 = vadd.f32 %v3647_v50, %v5902_v52  ;;  %v2935_v60 = vpop.f32.mrb[85].mxu0 }
 0x7fd   :  { %v2936_v4 = vadd.f32 %v5902_v52, %v2935_v60  ;;  %v3648_v22 = vpop.f32.mrb[86].mxu0 }
 0x7fe   :  { %v3040_v62 = vadd.f32 %v3936_v26, %v2944_v43  ;;  %v2947_v59 = vadd.f32 %v3648_v22, %v5902_v52  ;;  %v2938_v11 = vpop.f32.mrb[87].mxu0 }
 0x7ff   :  { %v3038_v61 = vadd.f32 %v3937_v55, %v2936_v4  ;;  %v2939_v54 = vadd.f32 %v5902_v52, %v2938_v11 }
 0x800   :  { %3072 = vst.msk [vmem:[#allocation23 + $0x50] sm:$0xff] %vm242_vm1, %v3040_v62  ;;  %v3041_v31 = vadd.f32 %v3938_v58, %v2947_v59  ;;  %v3952_v62 = vld [vmem:[#allocation2 + $0xd0] sm:$0xff] }
 0x801   :  { %3070 = vst.msk [vmem:[#allocation23 + $0x40] sm:$0xff] %vm242_vm1, %v3038_v61  ;;  %v3039_v7 = vadd.f32 %v3939_v51, %v2939_v54  ;;  %v3953_v61 = vld [vmem:[#allocation2 + $0xc0] sm:$0xff] }
 0x802   :  { %3073 = vst.msk [vmem:[#allocation23 + $0x58] sm:$0xff] %vm242_vm1, %v3041_v31  ;;  %v3954_v31 = vld [vmem:[#allocation2 + $0xd8] sm:$0xff] }
 0x803   :  { %3071 = vst.msk [vmem:[#allocation23 + $0x48] sm:$0xff] %vm242_vm1, %v3039_v7  ;;  %v3955_v7 = vld [vmem:[#allocation2 + $0xc8] sm:$0xff] }
 0x804   :  { %v3651_v3 = vpop.f32.mrb[88].mxu0 }
 0x805   :  { %v2960_v9 = vadd.f32 %v3651_v3, %v5902_v52  ;;  %v2951_v6 = vpop.f32.mrb[89].mxu0 }
 0x806   :  { %v2952_v33 = vadd.f32 %v5902_v52, %v2951_v6  ;;  %v3652_v1 = vpop.f32.mrb[90].mxu0 }
 0x807   :  { %v3044_v41 = vadd.f32 %v3940_v46, %v2960_v9  ;;  %v2963_v47 = vadd.f32 %v3652_v1, %v5902_v52  ;;  %v2954_v35 = vpop.f32.mrb[91].mxu0 }
 0x808   :  { %v3042_v49 = vadd.f32 %v3941_v36, %v2952_v33  ;;  %v2955_v2 = vadd.f32 %v5902_v52, %v2954_v35 }
 0x809   :  { %3076 = vst.msk [vmem:[#allocation23 + $0x70] sm:$0xff] %vm242_vm1, %v3044_v41  ;;  %v3045_v34 = vadd.f32 %v3942_v44, %v2963_v47  ;;  %v3956_v41 = vld [vmem:[#allocation2 + $0xf0] sm:$0xff] }
 0x80a   :  { %3074 = vst.msk [vmem:[#allocation23 + $0x60] sm:$0xff] %vm242_vm1, %v3042_v49  ;;  %v3043_v21 = vadd.f32 %v3943_v18, %v2955_v2  ;;  %v3957_v49 = vld [vmem:[#allocation2 + $0xe0] sm:$0xff] }
 0x80b   :  { %3077 = vst.msk [vmem:[#allocation23 + $0x78] sm:$0xff] %vm242_vm1, %v3045_v34  ;;  %v3958_v34 = vld [vmem:[#allocation2 + $0xf8] sm:$0xff] }
 0x80c   :  { %3075 = vst.msk [vmem:[#allocation23 + $0x68] sm:$0xff] %vm242_vm1, %v3043_v21  ;;  %v3655_v23 = vpop.f32.mrb[92].mxu0  ;;  %v3959_v21 = vld [vmem:[#allocation2 + $0xe8] sm:$0xff] }
 0x80d   :  { %v2976_v63 = vadd.f32 %v3655_v23, %v5902_v52  ;;  %v2967_v10 = vpop.f32.mrb[93].mxu0 }
 0x80e   :  { %v2968_v5 = vadd.f32 %v5902_v52, %v2967_v10  ;;  %v3656_v29 = vpop.f32.mrb[94].mxu0 }
 0x80f   :  { %v3048_v28 = vadd.f32 %v3944_v25, %v2976_v63  ;;  %v2979_v0 = vadd.f32 %v3656_v29, %v5902_v52  ;;  %v2970_v19 = vpop.f32.mrb[95].mxu0 }
 0x810   :  { %v3046_v56 = vadd.f32 %v3945_v45, %v2968_v5  ;;  %v2971_v40 = vadd.f32 %v5902_v52, %v2970_v19 }
 0x811   :  { %3080 = vst.msk [vmem:[#allocation23 + $0x90] sm:$0xff] %vm242_vm1, %v3048_v28  ;;  %v3049_v32 = vadd.f32 %v3946_v20, %v2979_v0 }
 0x812   :  { %3078 = vst.msk [vmem:[#allocation23 + $0x80] sm:$0xff] %vm242_vm1, %v3046_v56  ;;  %v3047_v17 = vadd.f32 %v3947_v27, %v2971_v40 }
 0x813   :  { %3081 = vst.msk [vmem:[#allocation23 + $0x98] sm:$0xff] %vm242_vm1, %v3049_v32 }
 0x814   :  { %3079 = vst.msk [vmem:[#allocation23 + $0x88] sm:$0xff] %vm242_vm1, %v3047_v17  ;;  %v3659_v24 = vpop.f32.mrb[96].mxu0 }
 0x815   :  { %v2992_v12 = vadd.f32 %v3659_v24, %v5902_v52  ;;  %v2983_v38 = vpop.f32.mrb[97].mxu0 }
 0x816   :  { %v2984_v42 = vadd.f32 %v5902_v52, %v2983_v38  ;;  %v3660_v14 = vpop.f32.mrb[98].mxu0 }
 0x817   :  { %v3052_v8 = vadd.f32 %v3948_v48, %v2992_v12  ;;  %v2995_v15 = vadd.f32 %v3660_v14, %v5902_v52  ;;  %v2986_v57 = vpop.f32.mrb[99].mxu0 }
 0x818   :  { %v3050_v39 = vadd.f32 %v3949_v16, %v2984_v42  ;;  %v2987_v53 = vadd.f32 %v5902_v52, %v2986_v57 }
 0x819   :  { %3084 = vst.msk [vmem:[#allocation23 + $0xb0] sm:$0xff] %vm242_vm1, %v3052_v8  ;;  %v3053_v37 = vadd.f32 %v3950_v30, %v2995_v15 }
 0x81a   :  { %3082 = vst.msk [vmem:[#allocation23 + $0xa0] sm:$0xff] %vm242_vm1, %v3050_v39  ;;  %v3051_v50 = vadd.f32 %v3951_v13, %v2987_v53 }
 0x81b   :  { %3085 = vst.msk [vmem:[#allocation23 + $0xb8] sm:$0xff] %vm242_vm1, %v3053_v37 }
 0x81c   :  { %3083 = vst.msk [vmem:[#allocation23 + $0xa8] sm:$0xff] %vm242_vm1, %v3051_v50  ;;  %v3663_v43 = vpop.f32.mrb[100].mxu0 }
 0x81d   :  { %v3008_v60 = vadd.f32 %v3663_v43, %v5902_v52  ;;  %v2999_v4 = vpop.f32.mrb[101].mxu0 }
 0x81e   :  { %v3000_v22 = vadd.f32 %v5902_v52, %v2999_v4  ;;  %v3664_v26 = vpop.f32.mrb[102].mxu0 }
 0x81f   :  { %v3056_v59 = vadd.f32 %v3952_v62, %v3008_v60  ;;  %v3011_v11 = vadd.f32 %v3664_v26, %v5902_v52  ;;  %v3002_v55 = vpop.f32.mrb[103].mxu0 }
 0x820   :  { %v3054_v54 = vadd.f32 %v3953_v61, %v3000_v22  ;;  %v3003_v58 = vadd.f32 %v5902_v52, %v3002_v55 }
 0x821   :  { %3088 = vst.msk [vmem:[#allocation23 + $0xd0] sm:$0xff] %vm242_vm1, %v3056_v59  ;;  %v3057_v51 = vadd.f32 %v3954_v31, %v3011_v11 }
 0x822   :  { %3086 = vst.msk [vmem:[#allocation23 + $0xc0] sm:$0xff] %vm242_vm1, %v3054_v54  ;;  %v3055_v3 = vadd.f32 %v3955_v7, %v3003_v58 }
 0x823   :  { %3089 = vst.msk [vmem:[#allocation23 + $0xd8] sm:$0xff] %vm242_vm1, %v3057_v51 }
 0x824   :  { %3087 = vst.msk [vmem:[#allocation23 + $0xc8] sm:$0xff] %vm242_vm1, %v3055_v3  ;;  %v3667_v9 = vpop.f32.mrb[104].mxu0 }
 0x825   :  { %v3024_v6 = vadd.f32 %v3667_v9, %v5902_v52  ;;  %v3015_v33 = vpop.f32.mrb[105].mxu0 }
 0x826   :  { %v3016_v1 = vadd.f32 %v5902_v52, %v3015_v33  ;;  %v3668_v46 = vpop.f32.mrb[106].mxu0 }
 0x827   :  { %v3060_v47 = vadd.f32 %v3956_v41, %v3024_v6  ;;  %v3027_v35 = vadd.f32 %v3668_v46, %v5902_v52  ;;  %v3018_v36 = vpop.f32.mrb[107].mxu0 }
 0x828   :  { %v3058_v2 = vadd.f32 %v3957_v49, %v3016_v1  ;;  %v3019_v44 = vadd.f32 %v5902_v52, %v3018_v36 }
 0x829   :  { %3092 = vst.msk [vmem:[#allocation23 + $0xf0] sm:$0xff] %vm242_vm1, %v3060_v47  ;;  %v3061_v18 = vadd.f32 %v3958_v34, %v3027_v35 }
 0x82a   :  { %3090 = vst.msk [vmem:[#allocation23 + $0xe0] sm:$0xff] %vm242_vm1, %v3058_v2  ;;  %v3059_v23 = vadd.f32 %v3959_v21, %v3019_v44 }
 0x82b   :  { %3093 = vst.msk [vmem:[#allocation23 + $0xf8] sm:$0xff] %vm242_vm1, %v3061_v18 }
 0x82c   :  { %3091 = vst.msk [vmem:[#allocation23 + $0xe8] sm:$0xff] %vm242_vm1, %v3059_v23 }
 0x82d   :  { %4257 = shalt.err (!%p4254_p10)
}
 0x82e   :  { %s4258_s18 = scalar_lea.hbm %s5996_s13, 4096 }
 0x82f   :  { %p4259_p11 = scmp.ne.s32.totalorder %s5996_s13, %s4258_s18  ;;  %p4262_p12 = scmp.lt.u32.totalorder %s4258_s18, %s5996_s13 }
 0x831   :  { %p4264_p13 = pnand %p4262_p12, %p4259_p11 }
 0x833   :  { %4267 = shalt.err (!%p4264_p13)
}
 0x834   :  { %3105 = dma.vmem_to_hbm [thread:$0]  %s3100_s15, 4096, %s5996_s13, [#allocation4], %s4286_s20, %s4286_s20, %s4287_s21  }
 0x835   :  { %4282 = dma.done.wait [#allocation4], 4096  }
 0x836   :  { %4283 = vsyncadd [#allocation4], 4294963200 }
 0x837   :  { %3109 = vsyncpa [#allocation3], 1 }
 0x838   :  { %3110 = vsyncpa [#allocation6], 1 }
 0x839   :  { %3111 = vsyncpa [#allocation9], 1 }
 0x83a   :  { %3112 = vsyncpa [#allocation12], 1 }
 0x83b   :  { %3113 = vsyncpa [#allocation15], 1 }
 0x83c   :  { %3114 = vsyncpa [#allocation18], 1 }
 0x83d   :  { %3115 = vsyncpa [#allocation21], 1 }
 0x83e   :  { %3116 = vsyncpa [#allocation4], 1 }

// kernel: tpu_custom_call.1
= control target key start
LH: loop header
LB: loop body
LE: loop exit
PB: predicated region body
PF: predicated region fallthrough
CT: control target
= control target key end

     0   :  { %18 = vsyncpa [#allocation3], 0  ;;  %s5983_s0 = inlined_call_operand.hbm [shape: f32[4,64,32], index: 0, kind: input, shape index: {}]   ;;  %s5984_s1 = inlined_call_operand.hbm [shape: f32[32,32], index: 1, kind: input, shape index: {}]   ;;  %s5985_s2 = inlined_call_operand.hbm [shape: f32[32,32], index: 2, kind: input, shape index: {}]   ;;  %s5986_s3 = inlined_call_operand.hbm [shape: f32[1,32], index: 3, kind: input, shape index: {}]   ;;  %s5987_s4 = inlined_call_operand.hbm [shape: f32[1,32], index: 4, kind: input, shape index: {}]   ;;  %s5988_s5 = inlined_call_operand.hbm [shape: bf16[32,32], index: 5, kind: input, shape index: {}]   ;;  %s5989_s6 = inlined_call_operand.hbm [shape: f32[1,32], index: 6, kind: input, shape index: {}]   ;;  %s5990_s7 = inlined_call_operand.hbm [shape: bf16[32,32], index: 7, kind: input, shape index: {}]   ;;  %s5991_s8 = inlined_call_operand.hbm [shape: f32[1,32], index: 8, kind: input, shape index: {}]   ;;  %s5992_s9 = inlined_call_operand.hbm [shape: bf16[32,33], index: 9, kind: input, shape index: {}]   ;;  %s5993_s10 = inlined_call_operand.hbm [shape: f32[1,33], index: 10, kind: input, shape index: {}]   ;;  %s5994_s11 = inlined_call_operand.hbm [shape: bf16[32,32], index: 11, kind: input, shape index: {}]   ;;  %s5995_s12 = inlined_call_operand.hbm [shape: f32[1,32], index: 12, kind: input, shape index: {}]   ;;  %s5996_s13 = inlined_call_operand.hbm [shape: f32[4,64,32], index: 13, kind: output, shape index: {}]  }
   0x1   :  { %19 = vsyncpa [#allocation6], 0 }
   0x2   :  { %20 = vsyncpa [#allocation9], 0 }
   0x3   :  { %21 = vsyncpa [#allocation12], 0 }
   0x4   :  { %22 = vsyncpa [#allocation15], 0 }
   0x5   :  { %23 = vsyncpa [#allocation18], 0 }
   0x6   :  { %24 = vsyncpa [#allocation21], 0 }
   0x7   :  { %25 = vsyncpa [#allocation4], 0  ;;  %s4284_s25 = smov [#allocation5]   ;;  %s4285_s27 = smov [#allocation8]  }
   0x8   :  { %s43_s26 = sshll.u32 %s4284_s25, 4  ;;  %s68_s28 = sshll.u32 %s4285_s27, 4  ;;  %s44_s26 = int_to_ptr.vmem [resolvable:$true] %s43_s26  ;;  %s4377_s28 = int_to_ptr.vmem [resolvable:$true] %s68_s28 }
   0x9   :  { %s3960_s14 = scalar_lea.hbm %s5984_s1, 512 }
   0xa   :  { %p3961_p0 = scmp.ne.s32.totalorder %s5984_s1, %s3960_s14  ;;  %p3964_p1 = scmp.lt.u32.totalorder %s3960_s14, %s5984_s1 }
   0xc   :  { %p3966_p2 = pnand %p3964_p1, %p3961_p0 }
   0xe   :  { %3969 = shalt.err (!%p3966_p2)
}
   0xf   :  { %s3970_s19 = scalar_lea.vmem %s44_s26, 512  ;;  %p3975_p4 = scmp.lt.s32.totalorder %s44_s26, %s44_s26 }
  0x10   :  { %p3971_p3 = scmp.ne.s32.totalorder %s44_s26, %s3970_s19  ;;  %p3976_p5 = scmp.lt.s32.totalorder %s3970_s19, %s3970_s19 }
  0x12   :  { %p3977_p6 = por %p3976_p5, %p3975_p4 }
  0x14   :  { %p3978_p7 = pnand %p3977_p6, %p3971_p3 }
  0x16   :  { %3981 = shalt.err (!%p3978_p7)
}
  0x17   :  { %s4286_s20 = smov 128   ;;  %s4287_s21 = smov 8  }
  0x18   :  { %49 = dma.hbm_to_vmem [thread:$0]  %s5984_s1, 512, %s44_s26, [#allocation6], %s4286_s20, %s4286_s20, %s4287_s21  }
  0x19   :  { %s3982_s27 = scalar_lea.hbm %s5986_s3, 16 }
  0x1a   :  { %p3983_p8 = scmp.ne.s32.totalorder %s5986_s3, %s3982_s27  ;;  %p3986_p9 = scmp.lt.u32.totalorder %s3982_s27, %s5986_s3 }
  0x1c   :  { %p3988_p10 = pnand %p3986_p9, %p3983_p8 }
  0x1e   :  { %3991 = shalt.err (!%p3988_p10)
}
  0x1f   :  { %s3992_s16 = scalar_lea.vmem %s4377_s28, 16  ;;  %s3996_s1 = scalar_lea.vmem %s4377_s28, 32 }
  0x20   :  { %p3993_p11 = scmp.ne.s32.totalorder %s4377_s28, %s3992_s16  ;;  %p3997_p12 = scmp.lt.s32.totalorder %s4377_s28, %s4377_s28 }
  0x21   :  { %p3998_p13 = scmp.lt.s32.totalorder %s3996_s1, %s3992_s16 }
  0x23   :  { %p3999_p0 = por %p3998_p13, %p3997_p12 }
  0x25   :  { %p4000_p1 = pnand %p3999_p0, %p3993_p11 }
  0x27   :  { %4003 = shalt.err (!%p4000_p1)
}
  0x28   :  { %71 = dma.hbm_to_vmem [thread:$0]  %s5986_s3, 16, %s4377_s28, [#allocation9]  }
  0x29   :  { %s4288_s18 = smov [#allocation11]   ;;  %s4004_s24 = scalar_lea.hbm %s5988_s5, 256 }
  0x2a   :  { %s87_s19 = sshll.u32 %s4288_s18, 4  ;;  %p4005_p2 = scmp.ne.s32.totalorder %s5988_s5, %s4004_s24  ;;  %s88_s19 = int_to_ptr.vmem [resolvable:$true] %s87_s19 }
  0x2b   :  { %p4008_p3 = scmp.lt.u32.totalorder %s4004_s24, %s5988_s5 }
  0x2d   :  { %p4010_p4 = pnand %p4008_p3, %p4005_p2 }
  0x2f   :  { %4013 = shalt.err (!%p4010_p4)
}
  0x30   :  { %s4014_s14 = scalar_lea.vmem %s88_s19, 256  ;;  %p4019_p6 = scmp.lt.s32.totalorder %s88_s19, %s88_s19 }
  0x31   :  { %p4015_p5 = scmp.ne.s32.totalorder %s88_s19, %s4014_s14  ;;  %p4020_p7 = scmp.lt.s32.totalorder %s4014_s14, %s4014_s14 }
  0x33   :  { %p4021_p8 = por %p4020_p7, %p4019_p6 }
  0x35   :  { %p4022_p9 = pnand %p4021_p8, %p4015_p5 }
  0x37   :  { %4025 = shalt.err (!%p4022_p9)
}
  0x38   :  { %s4289_s3 = smov 64   ;;  %s4290_s28 = smov 4  }
  0x39   :  { %93 = dma.hbm_to_vmem [thread:$0]  %s5988_s5, 256, %s88_s19, [#allocation12], %s4289_s3, %s4289_s3, %s4290_s28  }
  0x3a   :  { %s4291_s1 = smov [#allocation14]   ;;  %s4292_s17 = smov [#allocation17]  }
  0x3b   :  { %s109_s26 = sshll.u32 %s4291_s1, 4  ;;  %s131_s18 = sshll.u32 %s4292_s17, 4  ;;  %s110_s26 = int_to_ptr.vmem [resolvable:$true] %s109_s26  ;;  %s132_s18 = int_to_ptr.vmem [resolvable:$true] %s131_s18 }
  0x3c   :  { %s4026_s24 = scalar_lea.hbm %s5990_s7, 256 }
  0x3d   :  { %p4027_p10 = scmp.ne.s32.totalorder %s5990_s7, %s4026_s24  ;;  %p4030_p11 = scmp.lt.u32.totalorder %s4026_s24, %s5990_s7 }
  0x3f   :  { %p4032_p12 = pnand %p4030_p11, %p4027_p10 }
  0x41   :  { %4035 = shalt.err (!%p4032_p12)
}
  0x42   :  { %s4036_s5 = scalar_lea.vmem %s110_s26, 256  ;;  %p4041_p0 = scmp.lt.s32.totalorder %s110_s26, %s110_s26 }
  0x43   :  { %p4037_p13 = scmp.ne.s32.totalorder %s110_s26, %s4036_s5  ;;  %p4042_p1 = scmp.lt.s32.totalorder %s4036_s5, %s4036_s5 }
  0x45   :  { %p4043_p2 = por %p4042_p1, %p4041_p0 }
  0x47   :  { %p4044_p3 = pnand %p4043_p2, %p4037_p13 }
  0x49   :  { %4047 = shalt.err (!%p4044_p3)
}
  0x4a   :  { %115 = dma.hbm_to_vmem [thread:$0]  %s5990_s7, 256, %s110_s26, [#allocation15], %s4289_s3, %s4289_s3, %s4290_s28  }
  0x4b   :  { %s4048_s1 = scalar_lea.hbm %s5992_s9, 256 }
  0x4c   :  { %p4049_p4 = scmp.ne.s32.totalorder %s5992_s9, %s4048_s1  ;;  %p4052_p5 = scmp.lt.u32.totalorder %s4048_s1, %s5992_s9 }
  0x4e   :  { %p4054_p6 = pnand %p4052_p5, %p4049_p4 }
  0x50   :  { %4057 = shalt.err (!%p4054_p6)
}
  0x51   :  { %s4058_s25 = scalar_lea.vmem %s132_s18, 256  ;;  %p4063_p8 = scmp.lt.s32.totalorder %s132_s18, %s132_s18 }
  0x52   :  { %p4059_p7 = scmp.ne.s32.totalorder %s132_s18, %s4058_s25  ;;  %p4064_p9 = scmp.lt.s32.totalorder %s4058_s25, %s4058_s25 }
  0x54   :  { %p4065_p10 = por %p4064_p9, %p4063_p8 }
  0x56   :  { %p4066_p11 = pnand %p4065_p10, %p4059_p7 }
  0x58   :  { %4069 = shalt.err (!%p4066_p11)
}
  0x59   :  { %137 = dma.hbm_to_vmem [thread:$0]  %s5992_s9, 256, %s132_s18, [#allocation18], %s4289_s3, %s4289_s3, %s4290_s28  }
  0x5a   :  { %s4293_s27 = smov [#allocation20]   ;;  %s4294_s30 = smov [#allocation2]  }
  0x5b   :  { %s153_s29 = sshll.u32 %s4293_s27, 4  ;;  %s31_s5 = sshll.u32 %s4294_s30, 4  ;;  %s154_s29 = int_to_ptr.vmem [resolvable:$true] %s153_s29  ;;  %s32_s5 = int_to_ptr.vmem [resolvable:$true] %s31_s5 }
  0x5c   :  { %s4070_s15 = scalar_lea.hbm %s5994_s11, 256 }
  0x5d   :  { %p4071_p12 = scmp.ne.s32.totalorder %s5994_s11, %s4070_s15  ;;  %p4074_p13 = scmp.lt.u32.totalorder %s4070_s15, %s5994_s11 }
  0x5f   :  { %p4076_p0 = pnand %p4074_p13, %p4071_p12 }
  0x61   :  { %4079 = shalt.err (!%p4076_p0)
}
  0x62   :  { %s4080_s9 = scalar_lea.vmem %s154_s29, 256  ;;  %p4085_p2 = scmp.lt.s32.totalorder %s154_s29, %s154_s29 }
  0x63   :  { %p4081_p1 = scmp.ne.s32.totalorder %s154_s29, %s4080_s9  ;;  %p4086_p3 = scmp.lt.s32.totalorder %s4080_s9, %s4080_s9 }
  0x65   :  { %p4087_p4 = por %p4086_p3, %p4085_p2 }
  0x67   :  { %p4088_p5 = pnand %p4087_p4, %p4081_p1 }
  0x69   :  { %4091 = shalt.err (!%p4088_p5)
}
  0x6a   :  { %159 = dma.hbm_to_vmem [thread:$0]  %s5994_s11, 256, %s154_s29, [#allocation21], %s4289_s3, %s4289_s3, %s4290_s28  }
  0x6b   :  { %s4092_s7 = scalar_lea.hbm %s5983_s0, 4096 }
  0x6c   :  { %p4093_p6 = scmp.ne.s32.totalorder %s5983_s0, %s4092_s7  ;;  %p4096_p7 = scmp.lt.u32.totalorder %s4092_s7, %s5983_s0 }
  0x6e   :  { %p4098_p8 = pnand %p4096_p7, %p4093_p6 }
  0x70   :  { %4101 = shalt.err (!%p4098_p8)
}
  0x71   :  { %s4102_s14 = scalar_lea.vmem %s32_s5, 4096  ;;  %p4107_p10 = scmp.lt.s32.totalorder %s32_s5, %s32_s5 }
  0x72   :  { %p4103_p9 = scmp.ne.s32.totalorder %s32_s5, %s4102_s14  ;;  %p4108_p11 = scmp.lt.s32.totalorder %s4102_s14, %s4102_s14 }
  0x74   :  { %p4109_p12 = por %p4108_p11, %p4107_p10 }
  0x76   :  { %p4110_p13 = pnand %p4109_p12, %p4103_p9 }
  0x78   :  { %4113 = shalt.err (!%p4110_p13)
}
  0x79   :  { %37 = dma.hbm_to_vmem [thread:$0]  %s5983_s0, 4096, %s32_s5, [#allocation3], %s4286_s20, %s4286_s20, %s4287_s21  }
  0x7a   :  { %s4295_s28 = smov [#allocation7]   ;;  %s4296_s15 = smov [#allocation10]  }
  0x7b   :  { %s55_s29 = sshll.u32 %s4295_s28, 4  ;;  %s78_s16 = sshll.u32 %s4296_s15, 4  ;;  %s56_s29 = int_to_ptr.vmem [resolvable:$true] %s55_s29  ;;  %s79_s16 = int_to_ptr.vmem [resolvable:$true] %s78_s16 }
  0x7c   :  { %s4114_s22 = scalar_lea.hbm %s5985_s2, 512 }
  0x7d   :  { %p4115_p0 = scmp.ne.s32.totalorder %s5985_s2, %s4114_s22  ;;  %p4118_p1 = scmp.lt.u32.totalorder %s4114_s22, %s5985_s2 }
  0x7f   :  { %p4120_p2 = pnand %p4118_p1, %p4115_p0 }
  0x81   :  { %4123 = shalt.err (!%p4120_p2)
}
  0x82   :  { %s4124_s0 = scalar_lea.vmem %s56_s29, 512  ;;  %p4129_p4 = scmp.lt.s32.totalorder %s56_s29, %s56_s29 }
  0x83   :  { %p4125_p3 = scmp.ne.s32.totalorder %s56_s29, %s4124_s0  ;;  %p4130_p5 = scmp.lt.s32.totalorder %s4124_s0, %s4124_s0 }
  0x85   :  { %p4131_p6 = por %p4130_p5, %p4129_p4 }
  0x87   :  { %p4132_p7 = pnand %p4131_p6, %p4125_p3 }
  0x89   :  { %4135 = shalt.err (!%p4132_p7)
}
  0x8a   :  { %61 = dma.hbm_to_vmem [thread:$0]  %s5985_s2, 512, %s56_s29, [#allocation6], %s4286_s20, %s4286_s20, %s4287_s21  }
  0x8b   :  { %s4136_s27 = scalar_lea.hbm %s5987_s4, 16 }
  0x8c   :  { %p4137_p8 = scmp.ne.s32.totalorder %s5987_s4, %s4136_s27  ;;  %p4140_p9 = scmp.lt.u32.totalorder %s4136_s27, %s5987_s4 }
  0x8e   :  { %p4142_p10 = pnand %p4140_p9, %p4137_p8 }
  0x90   :  { %4145 = shalt.err (!%p4142_p10)
}
  0x91   :  { %s4146_s3 = scalar_lea.vmem %s79_s16, 16  ;;  %s4150_s28 = scalar_lea.vmem %s79_s16, 32 }
  0x92   :  { %p4147_p11 = scmp.ne.s32.totalorder %s79_s16, %s4146_s3  ;;  %p4151_p12 = scmp.lt.s32.totalorder %s79_s16, %s79_s16 }
  0x93   :  { %p4152_p13 = scmp.lt.s32.totalorder %s4150_s28, %s4146_s3 }
  0x95   :  { %p4153_p0 = por %p4152_p13, %p4151_p12 }
  0x97   :  { %p4154_p1 = pnand %p4153_p0, %p4147_p11 }
  0x99   :  { %4157 = shalt.err (!%p4154_p1)
}
  0x9a   :  { %81 = dma.hbm_to_vmem [thread:$0]  %s5987_s4, 16, %s79_s16, [#allocation9]  }
  0x9b   :  { %s4297_s15 = smov [#allocation13]   ;;  %s4298_s17 = smov [#allocation16]  }
  0x9c   :  { %s100_s1 = sshll.u32 %s4297_s15, 4  ;;  %s122_s22 = sshll.u32 %s4298_s17, 4  ;;  %s101_s1 = int_to_ptr.vmem [resolvable:$true] %s100_s1  ;;  %s123_s22 = int_to_ptr.vmem [resolvable:$true] %s122_s22 }
  0x9d   :  { %s4158_s23 = scalar_lea.hbm %s5989_s6, 16 }
  0x9e   :  { %p4159_p2 = scmp.ne.s32.totalorder %s5989_s6, %s4158_s23  ;;  %p4162_p3 = scmp.lt.u32.totalorder %s4158_s23, %s5989_s6 }
  0xa0   :  { %p4164_p4 = pnand %p4162_p3, %p4159_p2 }
  0xa2   :  { %4167 = shalt.err (!%p4164_p4)
}
  0xa3   :  { %s4168_s4 = scalar_lea.vmem %s101_s1, 16  ;;  %s4172_s16 = scalar_lea.vmem %s101_s1, 32 }
  0xa4   :  { %p4169_p5 = scmp.ne.s32.totalorder %s101_s1, %s4168_s4  ;;  %p4173_p6 = scmp.lt.s32.totalorder %s101_s1, %s101_s1 }
  0xa5   :  { %p4174_p7 = scmp.lt.s32.totalorder %s4172_s16, %s4168_s4 }
  0xa7   :  { %p4175_p8 = por %p4174_p7, %p4173_p6 }
  0xa9   :  { %p4176_p9 = pnand %p4175_p8, %p4169_p5 }
  0xab   :  { %4179 = shalt.err (!%p4176_p9)
}
  0xac   :  { %103 = dma.hbm_to_vmem [thread:$0]  %s5989_s6, 16, %s101_s1, [#allocation12]  }
  0xad   :  { %s4180_s19 = scalar_lea.hbm %s5991_s8, 16 }
  0xae   :  { %p4181_p10 = scmp.ne.s32.totalorder %s5991_s8, %s4180_s19  ;;  %p4184_p11 = scmp.lt.u32.totalorder %s4180_s19, %s5991_s8 }
  0xb0   :  { %p4186_p12 = pnand %p4184_p11, %p4181_p10 }
  0xb2   :  { %4189 = shalt.err (!%p4186_p12)
}
  0xb3   :  { %s4190_s2 = scalar_lea.vmem %s123_s22, 16  ;;  %s4194_s29 = scalar_lea.vmem %s123_s22, 32 }
  0xb4   :  { %p4191_p13 = scmp.ne.s32.totalorder %s123_s22, %s4190_s2  ;;  %p4195_p0 = scmp.lt.s32.totalorder %s123_s22, %s123_s22 }
  0xb5   :  { %p4196_p1 = scmp.lt.s32.totalorder %s4194_s29, %s4190_s2 }
  0xb7   :  { %p4197_p2 = por %p4196_p1, %p4195_p0 }
  0xb9   :  { %p4198_p3 = pnand %p4197_p2, %p4191_p13 }
  0xbb   :  { %4201 = shalt.err (!%p4198_p3)
}
  0xbc   :  { %125 = dma.hbm_to_vmem [thread:$0]  %s5991_s8, 16, %s123_s22, [#allocation15]  }
  0xbd   :  { %s4299_s1 = smov [#allocation19]   ;;  %s4300_s9 = smov [#allocation22]  }
  0xbe   :  { %s144_s17 = sshll.u32 %s4299_s1, 4  ;;  %s166_s18 = sshll.u32 %s4300_s9, 4  ;;  %s145_s17 = int_to_ptr.vmem [resolvable:$true] %s144_s17  ;;  %s167_s18 = int_to_ptr.vmem [resolvable:$true] %s166_s18 }
  0xbf   :  { %s4202_s0 = scalar_lea.hbm %s5993_s10, 16 }
  0xc0   :  { %p4203_p4 = scmp.ne.s32.totalorder %s5993_s10, %s4202_s0  ;;  %p4206_p5 = scmp.lt.u32.totalorder %s4202_s0, %s5993_s10 }
  0xc2   :  { %p4208_p6 = pnand %p4206_p5, %p4203_p4 }
  0xc4   :  { %4211 = shalt.err (!%p4208_p6)
}
  0xc5   :  { %s4212_s8 = scalar_lea.vmem %s145_s17, 16  ;;  %s4216_s22 = scalar_lea.vmem %s145_s17, 32 }
  0xc6   :  { %p4213_p7 = scmp.ne.s32.totalorder %s145_s17, %s4212_s8  ;;  %p4217_p8 = scmp.lt.s32.totalorder %s145_s17, %s145_s17 }
  0xc7   :  { %p4218_p9 = scmp.lt.s32.totalorder %s4216_s22, %s4212_s8 }
  0xc9   :  { %p4219_p10 = por %p4218_p9, %p4217_p8 }
  0xcb   :  { %p4220_p11 = pnand %p4219_p10, %p4213_p7 }
  0xcd   :  { %4223 = shalt.err (!%p4220_p11)
}
  0xce   :  { %147 = dma.hbm_to_vmem [thread:$0]  %s5993_s10, 16, %s145_s17, [#allocation18]  }
  0xcf   :  { %s4224_s19 = scalar_lea.hbm %s5995_s12, 16 }
  0xd0   :  { %p4225_p12 = scmp.ne.s32.totalorder %s5995_s12, %s4224_s19  ;;  %p4228_p13 = scmp.lt.u32.totalorder %s4224_s19, %s5995_s12 }
  0xd2   :  { %p4230_p0 = pnand %p4228_p13, %p4225_p12 }
  0xd4   :  { %4233 = shalt.err (!%p4230_p0)
}
  0xd5   :  { %s4234_s2 = scalar_lea.vmem %s167_s18, 16  ;;  %s4238_s29 = scalar_lea.vmem %s167_s18, 32 }
  0xd6   :  { %p4235_p1 = scmp.ne.s32.totalorder %s167_s18, %s4234_s2  ;;  %p4239_p2 = scmp.lt.s32.totalorder %s167_s18, %s167_s18 }
  0xd7   :  { %p4240_p3 = scmp.lt.s32.totalorder %s4238_s29, %s4234_s2 }
  0xd9   :  { %p4241_p4 = por %p4240_p3, %p4239_p2 }
  0xdb   :  { %p4242_p5 = pnand %p4241_p4, %p4235_p1 }
  0xdd   :  { %4245 = shalt.err (!%p4242_p5)
}
  0xde   :  { %169 = dma.hbm_to_vmem [thread:$0]  %s5995_s12, 16, %s167_s18, [#allocation21]  }
  0xdf   :  { %4268 = dma.done.wait [#allocation3], 4096  }
  0xe0   :  { %4269 = vsyncadd [#allocation3], 4294963200 }
  0xe1   :  { %4270 = dma.done.wait [#allocation6], 1024  }
  0xe2   :  { %4271 = vsyncadd [#allocation6], 4294966272 }
  0xe3   :  { %4272 = dma.done.wait [#allocation9], 32  }
  0xe4   :  { %4273 = vsyncadd [#allocation9], 4294967264 }
  0xe5   :  { %4274 = dma.done.wait [#allocation12], 272  }
  0xe6   :  { %4275 = vsyncadd [#allocation12], 4294967024 }
  0xe7   :  { %4276 = dma.done.wait [#allocation15], 272  }
  0xe8   :  { %4277 = vsyncadd [#allocation15], 4294967024 }
  0xe9   :  { %4278 = dma.done.wait [#allocation18], 272  }
  0xea   :  { %4279 = vsyncadd [#allocation18], 4294967024 }
  0xeb   :  { %4280 = dma.done.wait [#allocation21], 272  }
  0xec   :  { %4281 = vsyncadd [#allocation21], 4294967024  ;;  %v5997_v0 = vmov 0.0|0.0   ;;  %vm4302_vm0 = vmmov 0   ;;  %v4303_v1 = vmov 0.0   ;;  %vm242_vm1 = vcmask 261120  }
  0xed   :  { %3669 = vmatprep.subr.bf16.mxu0 %v5997_v0  ;;  %3383 = vmatprep.mubr.msk.f32.mxu0 %vm4302_vm0, %v4303_v1  ;;  %v467_v2 = vld [vmem:[#allocation5] sm:$0xff]  ;;  %v468_v3 = vld [vmem:[#allocation5 + $0x8] sm:$0xff]  ;;  %v469_v4 = vld [vmem:[#allocation5 + $0x10] sm:$0xff]  ;;  %vm447_vm2 = vcmask 1041409   ;;  %vm449_vm3 = vcmask 1042434   ;;  %vm458_vm4 = vcmask 1045509  }
  0xee   :  { %3675 = vmatprep.subr.bf16.mxu1 %v5997_v0  ;;  %3394 = vmatprep.mubr.msk.f32.mxu1 %vm4302_vm0, %v4303_v1  ;;  %v3670_v5 = vpack.c.bf16 %v468_v3, %v467_v2  ;;  %v470_v6 = vld [vmem:[#allocation5 + $0x18] sm:$0xff]  ;;  %v4564_v7 = vld [vmem:[#allocation2] sm:$0xff]  ;;  %v4566_v8 = vld [vmem:[#allocation2 + $0x8] sm:$0xff]  ;;  %vm451_vm5 = vcmask 1043459   ;;  %vm460_vm6 = vcmask 1046534   ;;  %vm462_vm7 = vcmask 1047559  }
  0xef   :  { %v4568_v9 = vld [vmem:[#allocation2 + $0x10] sm:$0xff]  ;;  %v243_v10 = vsel %vm242_vm1, %v4564_v7, 0.0  ;;  %v244_v11 = vsel %vm242_vm1, %v4566_v8, 0.0  ;;  %v3673_v12 = vpack.c.bf16 %v470_v6, %v469_v4  ;;  %v4574_v13 = vld [vmem:[#allocation2 + $0x18] sm:$0xff]  ;;  %v4576_v14 = vld [vmem:[#allocation2 + $0x20] sm:$0xff]  ;;  %vm465_vm8 = vcmask 1043456  }
  0xf0   :  { %3671 = vmatpush3.bf16.msra.mxu0 %v3670_v5  ;;  %v245_v15 = vadd.f32 %v244_v11, %v243_v10  ;;  %v246_v16 = vsel %vm242_vm1, %v4568_v9, 0.0  ;;  %v4581_v17 = vld [vmem:[#allocation2 + $0x40] sm:$0xff]  ;;  %v4583_v18 = vld [vmem:[#allocation2 + $0x48] sm:$0xff]  ;;  %v4585_v19 = vld [vmem:[#allocation2 + $0x50] sm:$0xff]  ;;  %v248_v20 = vsel %vm242_vm1, %v4574_v13, 0.0  ;;  %v250_v21 = vsel %vm242_vm1, %v4576_v14, 0.0 }
  0xf1   :  { %3672 = vmatprep.subr.bf16.mxu0 %v5997_v0  ;;  %6008 = vst [vmem:[#allocation32_spill] sm:$0xff] %v4585_v19  ;;  %v4591_v22 = vld [vmem:[#allocation2 + $0x28] sm:$0xff]  ;;  %v4593_v23 = vld [vmem:[#allocation2 + $0x30] sm:$0xff]  ;;  %v4595_v24 = vld [vmem:[#allocation2 + $0x38] sm:$0xff]  ;;  %v264_v26 = vsel %vm242_vm1, %v4581_v17, 0.0  ;;  %v265_v27 = vsel %vm242_vm1, %v4583_v18, 0.0 }
  0xf2   :  { %v247_v25 = vadd.f32 %v246_v16, %v245_v15  ;;  %v267_v28 = vsel %vm242_vm1, %v4585_v19, 0.0  ;;  %v4603_v29 = vld [vmem:[#allocation2 + $0x58] sm:$0xff]  ;;  %v4605_v30 = vld [vmem:[#allocation2 + $0x60] sm:$0xff]  ;;  %v252_v32 = vsel %vm242_vm1, %v4591_v22, 0.0  ;;  %v254_v33 = vsel %vm242_vm1, %v4593_v23, 0.0  ;;  %v4615_v36 = vld [vmem:[#allocation2 + $0x68] sm:$0xff] }
  0xf3   :  { %6009 = vst [vmem:[#allocation33_spill] sm:$0xff] %v4603_v29  ;;  %6010 = vst [vmem:[#allocation34_spill] sm:$0xff] %v4605_v30  ;;  %v4607_v31 = vld [vmem:[#allocation2 + $0x80] sm:$0xff]  ;;  %v256_v34 = vsel %vm242_vm1, %v4595_v24, 0.0  ;;  %v266_v35 = vadd.f32 %v265_v27, %v264_v26  ;;  %v4617_v37 = vld [vmem:[#allocation2 + $0x88] sm:$0xff]  ;;  %v269_v40 = vsel %vm242_vm1, %v4603_v29, 0.0 }
  0xf4   :  { %3674 = vmatpush3.bf16.msra.mxu0 %v3673_v12  ;;  %6011 = vst [vmem:[#allocation35_spill] sm:$0xff] %v4615_v36  ;;  %v4619_v38 = vld [vmem:[#allocation2 + $0x90] sm:$0xff]  ;;  %v249_v39 = vadd.f32 %v248_v20, %v247_v25  ;;  %v271_v41 = vsel %vm242_vm1, %v4605_v30, 0.0  ;;  %v285_v42 = vsel %vm242_vm1, %v4607_v31, 0.0  ;;  %v4629_v44 = vld [vmem:[#allocation2 + $0x78] sm:$0xff]  ;;  %v273_v46 = vsel %vm242_vm1, %v4615_v36, 0.0 }
  0xf5   :  { %v4627_v43 = vld [vmem:[#allocation2 + $0x70] sm:$0xff]  ;;  %6013 = vst [vmem:[#allocation37_spill] sm:$0xff] %v4629_v44  ;;  %v268_v45 = vadd.f32 %v267_v28, %v266_v35  ;;  %v286_v47 = vsel %vm242_vm1, %v4617_v37, 0.0  ;;  %v288_v48 = vsel %vm242_vm1, %v4619_v38, 0.0  ;;  %v4637_v49 = vld [vmem:[#allocation2 + $0x98] sm:$0xff]  ;;  %v4639_v50 = vld [vmem:[#allocation2 + $0xa0] sm:$0xff] }
  0xf6   :  { %6012 = vst [vmem:[#allocation36_spill] sm:$0xff] %v4627_v43  ;;  %v4641_v51 = vld [vmem:[#allocation2 + $0xc0] sm:$0xff]  ;;  %v251_v52 = vadd.f32 %v250_v21, %v249_v39  ;;  %v275_v53 = vsel %vm242_vm1, %v4627_v43, 0.0  ;;  %v277_v54 = vsel %vm242_vm1, %v4629_v44, 0.0  ;;  %v287_v55 = vadd.f32 %v286_v47, %v285_v42  ;;  %v4647_v56 = vld [vmem:[#allocation2 + $0xc8] sm:$0xff]  ;;  %v4649_v57 = vld [vmem:[#allocation2 + $0xd0] sm:$0xff] }
  0xf7   :  { %6014 = vst [vmem:[#allocation38_spill] sm:$0xff] %v4641_v51  ;;  %6015 = vst [vmem:[#allocation39_spill] sm:$0xff] %v4649_v57  ;;  %v270_v58 = vadd.f32 %v269_v40, %v268_v45  ;;  %v290_v59 = vsel %vm242_vm1, %v4637_v49, 0.0  ;;  %v292_v60 = vsel %vm242_vm1, %v4639_v50, 0.0  ;;  %v306_v61 = vsel %vm242_vm1, %v4641_v51, 0.0  ;;  %v4657_v62 = vld [vmem:[#allocation2 + $0xa8] sm:$0xff] }
  0xf8   :  { %v4659_v63 = vld [vmem:[#allocation2 + $0xb0] sm:$0xff]  ;;  %v4661_v1 = vld [vmem:[#allocation2 + $0xd8] sm:$0xff]  ;;  %v253_v2 = vadd.f32 %v252_v32, %v251_v52  ;;  %v289_v3 = vadd.f32 %v288_v48, %v287_v55  ;;  %v307_v4 = vsel %vm242_vm1, %v4647_v56, 0.0  ;;  %v309_v5 = vsel %vm242_vm1, %v4649_v57, 0.0  ;;  %v4667_v6 = vld [vmem:[#allocation2 + $0xe0] sm:$0xff]  ;;  %s4306_s12 = smov [#allocation23]  }
  0xf9   :  { %6016 = vst [vmem:[#allocation40_spill] sm:$0xff] %v4661_v1  ;;  %v272_v10 = vadd.f32 %v271_v41, %v270_v58  ;;  %v294_v11 = vsel %vm242_vm1, %v4657_v62, 0.0  ;;  %v308_v12 = vadd.f32 %v307_v4, %v306_v61  ;;  %v296_v20 = vsel %vm242_vm1, %v4659_v63, 0.0  ;;  %v4675_v25 = vld [vmem:[#allocation2 + $0xe8] sm:$0xff]  ;;  %v4681_v45 = vld [vmem:[#allocation2 + $0xb8] sm:$0xff]  ;;  %v4683_v52 = vld [vmem:[#allocation2 + $0xf0] sm:$0xff] }
  0xfa   :  { %v255_v15 = vadd.f32 %v254_v33, %v253_v2  ;;  %v291_v16 = vadd.f32 %v290_v59, %v289_v3  ;;  %v311_v21 = vsel %vm242_vm1, %v4661_v1, 0.0  ;;  %v313_v28 = vsel %vm242_vm1, %v4667_v6, 0.0  ;;  %6017 = vst [vmem:[#allocation41_spill] sm:$0xff] %v4681_v45  ;;  %s3099_s15 = sshll.u32 %s4306_s12, 4  ;;  %s3100_s15 = int_to_ptr.vmem [resolvable:$true] %s3099_s15 }
  0xfb   :  { %v274_v26 = vadd.f32 %v273_v46, %v272_v10  ;;  %v310_v27 = vadd.f32 %v309_v5, %v308_v12  ;;  %v315_v42 = vsel %vm242_vm1, %v4675_v25, 0.0  ;;  %v298_v55 = vsel %vm242_vm1, %v4681_v45, 0.0  ;;  %s4246_s1 = scalar_lea.vmem %s3100_s15, 4096  ;;  %p4251_p7 = scmp.lt.s32.totalorder %s3100_s15, %s3100_s15 }
  0xfc   :  { %v257_v32 = vadd.f32 %v256_v34, %v255_v15  ;;  %v293_v35 = vadd.f32 %v292_v60, %v291_v16  ;;  %v4689_v60 = vld [vmem:[#allocation2 + $0xf8] sm:$0xff]  ;;  %v328_v2 = vmul.f32 %v4566_v8, %v4566_v8  ;;  %v329_v3 = vmul.f32 %v4568_v9, %v4568_v9  ;;  %p4247_p6 = scmp.ne.s32.totalorder %s3100_s15, %s4246_s1  ;;  %p4252_p8 = scmp.lt.s32.totalorder %s4246_s1, %s4246_s1 }
  0xfd   :  { %v276_v39 = vadd.f32 %v275_v53, %v274_v26  ;;  %v312_v40 = vadd.f32 %v311_v21, %v310_v27  ;;  %v317_v53 = vsel %vm242_vm1, %v4683_v52, 0.0  ;;  %v319_v61 = vsel %vm242_vm1, %v4689_v60, 0.0 }
  0xfe   :  { %v258_v41 = vrot.slane %v257_v32, 4  ;;  %v295_v33 = vadd.f32 %v294_v11, %v293_v35  ;;  %v330_v10 = vmul.f32 %v4574_v13, %v4574_v13  ;;  %v331_v11 = vmul.f32 %v4576_v14, %v4576_v14  ;;  %p4253_p9 = por %p4252_p8, %p4251_p7 }
  0xff   :  { %v278_v47 = vadd.f32 %v277_v54, %v276_v39  ;;  %v314_v48 = vadd.f32 %v313_v28, %v312_v40  ;;  %v327_v54 = vmul.f32 %v4564_v7, %v4564_v7  ;;  %v332_v16 = vmul.f32 %v4591_v22, %v4591_v22 }
 0x100   :  { %v297_v46 = vadd.f32 %v296_v20, %v295_v33  ;;  %v259_v58 = vadd.f32 %v258_v41, %v257_v32  ;;  %v333_v20 = vmul.f32 %v4593_v23, %v4593_v23  ;;  %v334_v21 = vmul.f32 %v4595_v24, %v4595_v24  ;;  %p4254_p10 = pnand %p4253_p9, %p4247_p6 }
 0x101   :  { %v279_v34 = vrot.slane %v278_v47, 4  ;;  %v316_v59 = vadd.f32 %v315_v42, %v314_v48  ;;  %v335_v26 = vmul.f32 %v4581_v17, %v4581_v17  ;;  %v336_v27 = vmul.f32 %v4583_v18, %v4583_v18 }
 0x102   :  { %v299_v4 = vadd.f32 %v298_v55, %v297_v46  ;;  %v260_v12 = vrot.slane %v259_v58, 2  ;;  %v337_v28 = vmul.f32 %v4585_v19, %v4585_v19  ;;  %v338_v32 = vmul.f32 %v4603_v29, %v4603_v29 }
 0x103   :  { %v318_v5 = vadd.f32 %v317_v53, %v316_v59  ;;  %v280_v15 = vadd.f32 %v279_v34, %v278_v47  ;;  %v339_v35 = vmul.f32 %v4605_v30, %v4605_v30  ;;  %v340_v39 = vmul.f32 %v4615_v36, %v4615_v36 }
 0x104   :  { %v341_v40 = vmul.f32 %v4627_v43, %v4627_v43  ;;  %v300_v41 = vrot.slane %v299_v4, 4  ;;  %v4725_v42 = vmul.f32 %v4629_v44, %v4629_v44  ;;  %v343_v47 = vmul.f32 %v4607_v31, %v4607_v31 }
 0x105   :  { %v320_v33 = vadd.f32 %v319_v61, %v318_v5  ;;  %v4729_v48 = vadd.f32 %v260_v12, %v259_v58  ;;  %v281_v46 = vrot.slane %v280_v15, 2  ;;  %v344_v55 = vmul.f32 %v4617_v37, %v4617_v37 }
 0x106   :  { %v345_v34 = vmul.f32 %v4619_v38, %v4619_v38  ;;  %v346_v59 = vmul.f32 %v4637_v49, %v4637_v49  ;;  %v347_v53 = vmul.f32 %v4639_v50, %v4639_v50  ;;  %v359_v61 = vsel %vm242_vm1, %v327_v54, 0.0 }
 0x107   :  { %v360_v5 = vsel %vm242_vm1, %v328_v2, 0.0  ;;  %v348_v58 = vmul.f32 %v4657_v62, %v4657_v62  ;;  %v349_v12 = vmul.f32 %v4659_v63, %v4659_v63  ;;  %v362_v44 = vsel %vm242_vm1, %v329_v3, 0.0 }
 0x108   :  { %v361_v0 = vadd.f32 %v360_v5, %v359_v61  ;;  %v4746_v43 = vadd.f32 %v300_v41, %v299_v4  ;;  %v321_v36 = vrot.slane %v320_v33, 4  ;;  %v4750_v30 = vmul.f32 %v4681_v45, %v4681_v45 }
 0x109   :  { %v364_v54 = vsel %vm242_vm1, %v330_v10, 0.0  ;;  %v4753_v29 = vadd.f32 %v281_v46, %v280_v15  ;;  %v351_v2 = vmul.f32 %v4641_v51, %v4641_v51  ;;  %v352_v19 = vmul.f32 %v4647_v56, %v4647_v56 }
 0x10a   :  { %v363_v61 = vadd.f32 %v362_v44, %v361_v0  ;;  %v366_v3 = vsel %vm242_vm1, %v331_v11, 0.0  ;;  %v380_v4 = vsel %vm242_vm1, %v335_v26, 0.0  ;;  %v381_v41 = vsel %vm242_vm1, %v336_v27, 0.0 }
 0x10b   :  { %v383_v5 = vsel %vm242_vm1, %v337_v28, 0.0  ;;  %v353_v10 = vmul.f32 %v4649_v57, %v4649_v57  ;;  %v354_v15 = vmul.f32 %v4661_v1, %v4661_v1  ;;  %v382_v51 = vadd.f32 %v381_v41, %v380_v4 }
 0x10c   :  { %v365_v46 = vadd.f32 %v364_v54, %v363_v61  ;;  %v4767_v45 = vadd.f32 %v321_v36, %v320_v33  ;;  %v355_v0 = vmul.f32 %v4667_v6, %v4667_v6  ;;  %v368_v44 = vsel %vm242_vm1, %v332_v16, 0.0 }
 0x10d   :  { %v385_v11 = vsel %vm242_vm1, %v338_v32, 0.0  ;;  %v356_v26 = vmul.f32 %v4675_v25, %v4675_v25  ;;  %v384_v28 = vadd.f32 %v383_v5, %v382_v51  ;;  %v401_v57 = vsel %vm242_vm1, %v343_v47, 0.0 }
 0x10e   :  { %v367_v27 = vadd.f32 %v366_v3, %v365_v46  ;;  %v370_v1 = vsel %vm242_vm1, %v333_v20, 0.0  ;;  %v387_v54 = vsel %vm242_vm1, %v339_v35, 0.0  ;;  %v402_v36 = vsel %vm242_vm1, %v344_v55, 0.0 }
 0x10f   :  { %v404_v33 = vsel %vm242_vm1, %v345_v34, 0.0  ;;  %v372_v16 = vsel %vm242_vm1, %v334_v21, 0.0  ;;  %v386_v4 = vadd.f32 %v385_v11, %v384_v28  ;;  %v403_v32 = vadd.f32 %v402_v36, %v401_v57 }
 0x110   :  { %v369_v61 = vadd.f32 %v368_v44, %v367_v27  ;;  %v389_v41 = vsel %vm242_vm1, %v340_v39, 0.0  ;;  %v406_v3 = vsel %vm242_vm1, %v346_v59, 0.0  ;;  %v422_v51 = vsel %vm242_vm1, %v351_v2, 0.0 }
 0x111   :  { %v423_v47 = vsel %vm242_vm1, %v352_v19, 0.0  ;;  %v388_v5 = vadd.f32 %v387_v54, %v386_v4  ;;  %v405_v35 = vadd.f32 %v404_v33, %v403_v32  ;;  %v391_v55 = vsel %vm242_vm1, %v341_v40, 0.0 }
 0x112   :  { %v371_v20 = vadd.f32 %v370_v1, %v369_v61  ;;  %v424_v46 = vadd.f32 %v423_v47, %v422_v51  ;;  %v408_v34 = vsel %vm242_vm1, %v347_v53, 0.0  ;;  %v425_v21 = vsel %vm242_vm1, %v353_v10, 0.0 }
 0x113   :  { %v427_v57 = vsel %vm242_vm1, %v354_v15, 0.0  ;;  %v390_v39 = vadd.f32 %v389_v41, %v388_v5  ;;  %v407_v11 = vadd.f32 %v406_v3, %v405_v35  ;;  %v357_v2 = vmul.f32 %v4683_v52, %v4683_v52 }
 0x114   :  { %v373_v44 = vadd.f32 %v372_v16, %v371_v20  ;;  %v426_v59 = vadd.f32 %v425_v21, %v424_v46  ;;  %v393_v19 = vsel %vm242_vm1, %v4725_v42, 0.0  ;;  %v410_v1 = vsel %vm242_vm1, %v348_v58, 0.0 }
 0x115   :  { %v429_v40 = vsel %vm242_vm1, %v355_v0, 0.0  ;;  %v392_v53 = vadd.f32 %v391_v55, %v390_v39  ;;  %v409_v28 = vadd.f32 %v408_v34, %v407_v11  ;;  %v302_v15 = vrot.slane %v4746_v43, 2 }
 0x116   :  { %v374_v27 = vrot.slane %v373_v44, 4  ;;  %v428_v10 = vadd.f32 %v427_v57, %v426_v59  ;;  %v358_v54 = vmul.f32 %v4689_v60, %v4689_v60  ;;  %v412_v36 = vsel %vm242_vm1, %v349_v12, 0.0 }
 0x117   :  { %v431_v33 = vsel %vm242_vm1, %v356_v26, 0.0  ;;  %v394_v16 = vadd.f32 %v393_v19, %v392_v53  ;;  %v411_v42 = vadd.f32 %v410_v1, %v409_v28  ;;  %v323_v58 = vrot.slane %v4767_v45, 2 }
 0x118   :  { %v375_v61 = vadd.f32 %v374_v27, %v373_v44  ;;  %v430_v4 = vadd.f32 %v429_v40, %v428_v10  ;;  %v414_v0 = vsel %vm242_vm1, %v4750_v30, 0.0  ;;  %v433_v32 = vsel %vm242_vm1, %v357_v2, 0.0 }
 0x119   :  { %v395_v3 = vrot.slane %v394_v16, 4  ;;  %v413_v51 = vadd.f32 %v412_v36, %v411_v42  ;;  %v262_v20 = vrot.slane %v4729_v48, 1  ;;  %v283_v12 = vrot.slane %v4753_v29, 1 }
 0x11a   :  { %v376_v41 = vrot.slane %v375_v61, 2  ;;  %v432_v47 = vadd.f32 %v431_v33, %v430_v4  ;;  %v303_v26 = vadd.f32 %v302_v15, %v4746_v43  ;;  %v435_v5 = vsel %vm242_vm1, %v358_v54, 0.0 }
 0x11b   :  { %v396_v46 = vadd.f32 %v395_v3, %v394_v16  ;;  %v415_v55 = vadd.f32 %v414_v0, %v413_v51  ;;  %v324_v30 = vadd.f32 %v323_v58, %v4767_v45  ;;  %v263_v39 = vadd.f32 %v262_v20, %v4729_v48  ;;  %v553_v20 = vld [vmem:[#allocation7 + $0x8] sm:$0xff] }
 0x11c   :  { %v377_v35 = vadd.f32 %v376_v41, %v375_v61  ;;  %v434_v34 = vadd.f32 %v433_v32, %v432_v47  ;;  %v304_v11 = vrot.slane %v303_v26, 1  ;;  %v284_v2 = vadd.f32 %v283_v12, %v4753_v29  ;;  %v552_v47 = vld [vmem:[#allocation7] sm:$0xff]  ;;  %v554_v12 = vld [vmem:[#allocation7 + $0x10] sm:$0xff] }
 0x11d   :  { %v397_v21 = vrot.slane %v396_v46, 2  ;;  %v416_v57 = vrot.slane %v415_v55, 4  ;;  %v325_v40 = vrot.slane %v324_v30, 1  ;;  %vm1881_vm9 = vcmask 523264  }
 0x11e   :  { %v436_v44 = vadd.f32 %v435_v5, %v434_v34  ;;  %v378_v59 = vrot.slane %v377_v35, 1  ;;  %v305_v10 = vadd.f32 %v304_v11, %v303_v26  ;;  %v448_v48 = vsel %vm447_vm2, %v284_v2, %v263_v39  ;;  %v555_v5 = vld [vmem:[#allocation7 + $0x18] sm:$0xff]  ;;  %v3727_v2 = vld [vmem:[#allocation11 + $0x8] sm:$0xff]  }
 0x11f   :  { %v398_v19 = vadd.f32 %v397_v21, %v396_v46  ;;  %v417_v1 = vadd.f32 %v416_v57, %v415_v55  ;;  %v326_v33 = vadd.f32 %v325_v40, %v324_v30  ;;  %v3676_v26 = vpack.c.bf16 %v553_v20, %v552_v47 }
 0x120   :  { %v437_v43 = vrot.slane %v436_v44, 4  ;;  %v379_v15 = vadd.f32 %v378_v59, %v377_v35  ;;  %v450_v29 = vsel %vm449_vm3, %v305_v10, %v448_v48  ;;  %v3679_v35 = vpack.c.bf16 %v555_v5, %v554_v12  ;;  %v3726_v59 = vld [vmem:[#allocation11] sm:$0xff]  }
 0x121   :  { %v399_v27 = vrot.slane %v398_v19, 1  ;;  %v418_v53 = vrot.slane %v417_v1, 2  ;;  %v452_v32 = vsel %vm451_vm5, %v326_v33, %v450_v29  ;;  %3677 = vmatpush3.bf16.msra.mxu1 %v3676_v26  ;;  %v6018_v46 = vmov 0.0|0.0   ;;  %3397 = vmatprep.subr.bf16.mxu0 %v3726_v59 }
 0x122   :  { %v438_v28 = vadd.f32 %v437_v43, %v436_v44  ;;  %3678 = vmatprep.subr.bf16.mxu1 %v6018_v46  ;;  %v4304_v43 = vmov 1966171168  }
 0x123   :  { %v400_v45 = vadd.f32 %v399_v27, %v398_v19  ;;  %v419_v54 = vadd.f32 %v418_v53, %v417_v1  ;;  %v4816_v19 = vld [vmem:[#allocation17] sm:$0xff]   ;;  %v4819_v1 = vld [vmem:[#allocation14] sm:$0xff]   ;;  %v631_v40 = vunpack.c.l.s4 %v4304_v43  ;;  %v633_v27 = vlaneseq }
 0x124   :  { %v439_v36 = vrot.slane %v438_v28, 2 }
 0x125   :  { %v420_v61 = vrot.slane %v419_v54, 1  ;;  %v459_v42 = vsel %vm458_vm4, %v400_v45, %v379_v15  ;;  %3680 = vmatpush3.bf16.msra.mxu1 %v3679_v35  ;;  %v632_v53 = vunpack.c.0.s8 %v631_v40 }
 0x126   :  { %v440_v16 = vadd.f32 %v439_v36, %v438_v28  ;;  %3681 = vmatprep.subr.bf16.mxu1 %v3726_v59  ;;  %v634_v28 = vshrl.u32 %v633_v27, 7 }
 0x127   :  { %v421_v4 = vadd.f32 %v420_v61, %v419_v54 }
 0x128   :  { %v441_v58 = vrot.slane %v440_v16, 1  ;;  %v635_v10 = vsub.s32 %v632_v53, %v634_v28  ;;  %v656_v54 = vsub.s32 0, %v634_v28 }
 0x129   :  { %v461_v41 = vsel %vm460_vm6, %v421_v4, %v459_v42 }
 0x12a   :  { %v442_v0 = vadd.f32 %v441_v58, %v440_v16 }
 0x12c   :  { %v463_v3 = vsel %vm462_vm7, %v442_v0, %v461_v41 }
 0x12d   :  { %v466_v51 = vsel %vm465_vm8, %v452_v32, %v463_v3 }
 0x12e   :  { %3384 = vmatmul.mubr.msk.f32.vlgmr.msra.gmra.mrb[0].mxu0 %vm242_vm1, %v466_v51 }
 0x12f   :  { %3398 = vmatpush3.bf16.msra.mxu0 %v3726_v59 }
 0x130   :  { %3399 = vmatprep.subr.bf16.mxu0 %v3727_v2 }
 0x133   :  { %3400 = vmatpush3.bf16.msra.mxu0 %v3727_v2 }
 0x134   :  { %3469 = vmatprep.subr.bf16.mxu0 %v4816_v19 }
 0x201   :  { %v540_v55 = vpop.f32.mrb[0].mxu0 }
 0x202   :  { %v544_v34 = vmul.f32 %v540_v55, %v540_v55  ;;  %v3385_v30 = vpop.f32.mrb[1].mxu0 }
 0x204   :  { %v546_v21 = vrot.slane %v544_v34, 4 }
 0x206   :  { %v548_v57 = vsub.f32 %v540_v55, %v546_v21 }
 0x208   :  { %v549_v44 = vadd.f32 1e-06, %v548_v57 }
 0x20a   :  { %3734 = vrsqrt.f32 %v549_v44  ;;  %v4850_v44 = vld [vmem:[#allocation10] ss:$0 sm:$0xff] }
 0x214   :  { %v3735_v39 = vpop.eup %3734 }
 0x215   :  { %v551_v11 = vsel %vm465_vm8, %v540_v55, %v3735_v39  ;;  %v4838_v55 = vld [vmem:[#allocation8] ss:$0 sm:$0xff] }
 0x216   :  { %3395 = vmatmul.mubr.msk.f32.vlgmr.msra.gmra.mrb[0].mxu1 %vm242_vm1, %v551_v11 }
 0x217   :  { %3683 = vmatpush3.bf16.msra.mxu1 %v3726_v59 }
 0x218   :  { %3682 = vmatprep.subr.bf16.mxu1 %v3727_v2 }
 0x21b   :  { %3684 = vmatpush3.bf16.msra.mxu1 %v3727_v2 }
 0x21c   :  { %3433 = vmatprep.subr.bf16.mxu1 %v4819_v1 }
 0x2e9   :  { %v625_v15 = vpop.f32.mrb[0].mxu1 }
 0x2ea   :  { %v636_v45 = vrot.slane %v625_v15, %v635_v10  ;;  %v706_v36 = vcombine.high %v625_v15, %v625_v15  ;;  %v3396_v48 = vpop.f32.mrb[1].mxu1 }
 0x2ec   :  { %v637_v33 = vcombine.high %v636_v45, %v636_v45  ;;  %v644_v61 = vrot.slane %v636_v45, %v635_v10  ;;  %v713_v16 = vrot.slane %v706_v36, %v635_v10 }
 0x2ee   :  { %v651_v29 = vrot.slane %v637_v33, %v635_v10  ;;  %v652_v42 = vcombine.high %v644_v61, %v644_v61  ;;  %v4822_v4 = vrot.slane %v644_v61, %v656_v54  ;;  %v714_v58 = vcombine.high %v713_v16, %v713_v16 }
 0x2ef   :  { %v721_v0 = vrot.slane %v713_v16, %v635_v10 }
 0x2f0   :  { %v653_v32 = vcombine.high %v651_v29, %v651_v29  ;;  %v4824_v41 = vrot.slane %v651_v29, %v656_v54  ;;  %v4826_v3 = vrot.slane %v652_v42, %v656_v54  ;;  %v728_v51 = vrot.slane %v714_v58, %v635_v10 }
 0x2f1   :  { %v729_v47 = vcombine.high %v721_v0, %v721_v0  ;;  %v4828_v20 = vrot.slane %v721_v0, %v656_v54  ;;  %v674_v12 = vsub.f32 %v4564_v7, %v4822_v4  ;;  %v675_v26 = vsub.f32 %v4566_v8, %v4822_v4 }
 0x2f2   :  { %v4834_v5 = vrot.slane %v653_v32, %v656_v54  ;;  %v730_v35 = vcombine.high %v728_v51, %v728_v51  ;;  %v4836_v46 = vrot.slane %v728_v51, %v656_v54  ;;  %v676_v34 = vsub.f32 %v4568_v9, %v4822_v4 }
 0x2f3   :  { %v4842_v30 = vrot.slane %v729_v47, %v656_v54  ;;  %v751_v21 = vmul.f32 %v4828_v20, %v674_v12  ;;  %v752_v57 = vmul.f32 %v4828_v20, %v675_v26  ;;  %v677_v7 = vsub.f32 %v4574_v13, %v4822_v4 }
 0x2f4   :  { %v4848_v8 = vrot.slane %v730_v35, %v656_v54  ;;  %v753_v39 = vmul.f32 %v4828_v20, %v676_v34  ;;  %v678_v11 = vsub.f32 %v4576_v14, %v4822_v4  ;;  %v679_v9 = vsub.f32 %v4591_v22, %v4822_v4 }
 0x2f5   :  { %v790_v59 = vmul.f32 %v4838_v55, %v751_v21  ;;  %v791_v2 = vmul.f32 %v4838_v55, %v752_v57  ;;  %v754_v43 = vmul.f32 %v4828_v20, %v677_v7  ;;  %v690_v13 = vsub.f32 %v4607_v31, %v4826_v3  ;;  %v3730_v57 = vld [vmem:[#allocation17 + $0x8] sm:$0xff]  }
 0x2f6   :  { %v792_v40 = vmul.f32 %v4838_v55, %v753_v39  ;;  %v755_v27 = vmul.f32 %v4828_v20, %v678_v11  ;;  %v756_v53 = vmul.f32 %v4828_v20, %v679_v9  ;;  %v691_v14 = vsub.f32 %v4617_v37, %v4826_v3 }
 0x2f7   :  { %v829_v22 = vadd.f32 %v4850_v44, %v790_v59  ;;  %v830_v28 = vadd.f32 %v4850_v44, %v791_v2  ;;  %v793_v10 = vmul.f32 %v4838_v55, %v754_v43  ;;  %v767_v15 = vmul.f32 %v4842_v30, %v690_v13 }
 0x2f8   :  { %v831_v45 = vadd.f32 %v4850_v44, %v792_v40  ;;  %v794_v31 = vmul.f32 %v4838_v55, %v755_v27  ;;  %v795_v54 = vmul.f32 %v4838_v55, %v756_v53  ;;  %v768_v36 = vmul.f32 %v4842_v30, %v691_v14 }
 0x2f9   :  { %v4875_v48 = vpack.c.bf16 %v830_v28, %v829_v22  ;;  %v832_v37 = vadd.f32 %v4850_v44, %v793_v10  ;;  %v806_v33 = vmul.f32 %v4838_v55, %v767_v15  ;;  %v692_v61 = vsub.f32 %v4619_v38, %v4826_v3  ;;  %v6019_v10 = vld [vmem:[#allocation41_spill] sm:$0xff] }
 0x2fa   :  { %v833_v16 = vadd.f32 %v4850_v44, %v794_v31  ;;  %v834_v29 = vadd.f32 %v4850_v44, %v795_v54  ;;  %v807_v42 = vmul.f32 %v4838_v55, %v768_v36  ;;  %v693_v58 = vsub.f32 %v4637_v49, %v4826_v3  ;;  %v6020_v36 = vld [vmem:[#allocation38_spill] sm:$0xff] }
 0x2fb   :  { %3401 = vmatprep.mubr.msk.bf16.mxu0 %vm242_vm1, %v4875_v48  ;;  %v4888_v0 = vpack.c.bf16 %v832_v37, %v831_v45  ;;  %v845_v32 = vadd.f32 %v4850_v44, %v806_v33  ;;  %v769_v51 = vmul.f32 %v4842_v30, %v692_v61  ;;  %v694_v38 = vsub.f32 %v4639_v50, %v4826_v3  ;;  %v3731_v33 = vld [vmem:[#allocation14 + $0x8] sm:$0xff]  }
 0x2fc   :  { %v4894_v47 = vpack.c.bf16 %v834_v29, %v833_v16  ;;  %v846_v12 = vadd.f32 %v4850_v44, %v807_v42  ;;  %v770_v26 = vmul.f32 %v4842_v30, %v693_v58  ;;  %v695_v49 = vsub.f32 %v4657_v62, %v4826_v3 }
 0x2fd   :  { %3402 = vmatmul.mubr.msk.bf16.vlgmr.msra.gmra.mrb[4].mxu0 %vm242_vm1, %v4888_v0  ;;  %v808_v35 = vmul.f32 %v4838_v55, %v769_v51  ;;  %v771_v34 = vmul.f32 %v4842_v30, %v694_v38  ;;  %v680_v21 = vsub.f32 %v4593_v23, %v4822_v4  ;;  %v681_v50 = vsub.f32 %v4595_v24, %v4822_v4  ;;  %v6022_v38 = vld [vmem:[#allocation33_spill] sm:$0xff] }
 0x2fe   :  { %3405 = vmatprep.mubr.msk.bf16.mxu0 %vm242_vm1, %v4894_v47  ;;  %v4910_v7 = vpack.c.bf16 %v846_v12, %v845_v32  ;;  %v809_v62 = vmul.f32 %v4838_v55, %v770_v26  ;;  %v772_v39 = vmul.f32 %v4842_v30, %v695_v49  ;;  %v682_v11 = vsub.f32 %v4581_v17, %v4824_v41  ;;  %v6021_v32 = vld [vmem:[#allocation32_spill] sm:$0xff]  ;;  %v6023_v26 = vld [vmem:[#allocation34_spill] sm:$0xff] }
 0x2ff   :  { %v847_v9 = vadd.f32 %v4850_v44, %v808_v35  ;;  %v810_v23 = vmul.f32 %v4838_v55, %v771_v34  ;;  %v757_v59 = vmul.f32 %v4828_v20, %v680_v21  ;;  %v758_v24 = vmul.f32 %v4828_v20, %v681_v50  ;;  %3470 = vmatpush3.bf16.msra.mxu0 %v4816_v19 }
 0x300   :  { %3417 = vmatprep.mubr.msk.bf16.mxu1 %vm242_vm1, %v4910_v7  ;;  %v848_v4 = vadd.f32 %v4850_v44, %v809_v62  ;;  %v811_v2 = vmul.f32 %v4838_v55, %v772_v39  ;;  %v683_v17 = vsub.f32 %v4583_v18, %v4824_v41  ;;  %v759_v43 = vmul.f32 %v4836_v46, %v682_v11  ;;  %v6024_v39 = vld [vmem:[#allocation35_spill] sm:$0xff] }
 0x301   :  { %v849_v13 = vadd.f32 %v4850_v44, %v810_v23  ;;  %v796_v40 = vmul.f32 %v4838_v55, %v757_v59  ;;  %v797_v20 = vmul.f32 %v4838_v55, %v758_v24  ;;  %v696_v19 = vsub.f32 %v4659_v63, %v4826_v3  ;;  %3471 = vmatprep.subr.bf16.mxu0 %v3730_v57 }
 0x302   :  { %v4933_v27 = vpack.c.bf16 %v848_v4, %v847_v9  ;;  %v850_v53 = vadd.f32 %v4850_v44, %v811_v2  ;;  %v760_v14 = vmul.f32 %v4836_v46, %v683_v17  ;;  %v798_v18 = vmul.f32 %v4838_v55, %v759_v43  ;;  %v6025_v4 = vld [vmem:[#allocation39_spill] sm:$0xff] }
 0x303   :  { %v835_v22 = vadd.f32 %v4850_v44, %v796_v40  ;;  %v836_v28 = vadd.f32 %v4850_v44, %v797_v20  ;;  %v697_v15 = vsub.f32 %v6019_v10, %v4826_v3  ;;  %v773_v45 = vmul.f32 %v4842_v30, %v696_v19  ;;  %3472 = vmatpush3.bf16.msra.mxu0 %v3730_v57 }
 0x304   :  { %3418 = vmatmul.mubr.msk.bf16.vlgmr.msra.gmra.mrb[4].mxu1 %vm242_vm1, %v4933_v27  ;;  %v4945_v63 = vpack.c.bf16 %v850_v53, %v849_v13  ;;  %v799_v31 = vmul.f32 %v4838_v55, %v760_v14  ;;  %v837_v54 = vadd.f32 %v4850_v44, %v798_v18  ;;  %v698_v37 = vsub.f32 %v6020_v36, %v4834_v5  ;;  %v6026_v53 = vld [vmem:[#allocation40_spill] sm:$0xff] }
 0x305   :  { %v4951_v61 = vpack.c.bf16 %v836_v28, %v835_v22  ;;  %v774_v3 = vmul.f32 %v4842_v30, %v697_v15  ;;  %v812_v16 = vmul.f32 %v4838_v55, %v773_v45  ;;  %v699_v29 = vsub.f32 %v4647_v56, %v4834_v5  ;;  %3434 = vmatpush3.bf16.msra.mxu1 %v4819_v1 }
 0x306   :  { %3421 = vmatprep.mubr.msk.bf16.mxu1 %vm242_vm1, %v4945_v63  ;;  %v838_v42 = vadd.f32 %v4850_v44, %v799_v31  ;;  %v775_v58 = vmul.f32 %v4848_v8, %v698_v37  ;;  %v684_v51 = vsub.f32 %v6021_v32, %v4824_v41  ;;  %v685_v30 = vsub.f32 %v6022_v38, %v4824_v41 }
 0x307   :  { %3406 = vmatmul.mubr.msk.bf16.gmra.mrb[8].mxu0 %vm242_vm1, %v4951_v61  ;;  %v813_v56 = vmul.f32 %v4838_v55, %v774_v3  ;;  %v851_v1 = vadd.f32 %v4850_v44, %v812_v16  ;;  %v776_v12 = vmul.f32 %v4848_v8, %v699_v29  ;;  %v686_v49 = vsub.f32 %v6023_v26, %v4824_v41  ;;  %v6027_v3 = vld [vmem:[#allocation36_spill] sm:$0xff] }
 0x308   :  { %v4973_v35 = vpack.c.bf16 %v838_v42, %v837_v54  ;;  %v814_v34 = vmul.f32 %v4838_v55, %v775_v58  ;;  %v761_v21 = vmul.f32 %v4836_v46, %v684_v51  ;;  %v762_v50 = vmul.f32 %v4836_v46, %v685_v30  ;;  %3435 = vmatprep.subr.bf16.mxu1 %v3731_v33 }
 0x309   :  { %v852_v57 = vadd.f32 %v4850_v44, %v813_v56  ;;  %v815_v62 = vmul.f32 %v4838_v55, %v776_v12  ;;  %v687_v11 = vsub.f32 %v6024_v39, %v4824_v41  ;;  %v763_v9 = vmul.f32 %v4836_v46, %v686_v49  ;;  %3436 = vmatpush3.bf16.msra.mxu1 %v3731_v33 }
 0x30a   :  { %3409 = vmatprep.mubr.msk.bf16.mxu0 %vm242_vm1, %v4973_v35  ;;  %v853_v23 = vadd.f32 %v4850_v44, %v814_v34  ;;  %v800_v59 = vmul.f32 %v4838_v55, %v761_v21  ;;  %v801_v24 = vmul.f32 %v4838_v55, %v762_v50  ;;  %v700_v2 = vsub.f32 %v6025_v4, %v4834_v5 }
 0x30b   :  { %v4990_v17 = vpack.c.bf16 %v852_v57, %v851_v1  ;;  %v854_v43 = vadd.f32 %v4850_v44, %v815_v62  ;;  %v764_v13 = vmul.f32 %v4836_v46, %v687_v11  ;;  %v802_v40 = vmul.f32 %v4838_v55, %v763_v9 }
 0x30c   :  { %v839_v20 = vadd.f32 %v4850_v44, %v800_v59  ;;  %v840_v19 = vadd.f32 %v4850_v44, %v801_v24  ;;  %v701_v14 = vsub.f32 %v6026_v53, %v4834_v5  ;;  %v777_v18 = vmul.f32 %v4848_v8, %v700_v2 }
 0x30d   :  { %3422 = vmatmul.mubr.msk.bf16.gmra.mrb[8].mxu1 %vm242_vm1, %v4990_v17  ;;  %v5002_v22 = vpack.c.bf16 %v854_v43, %v853_v23  ;;  %v803_v28 = vmul.f32 %v4838_v55, %v764_v13  ;;  %v841_v10 = vadd.f32 %v4850_v44, %v802_v40  ;;  %v702_v15 = vsub.f32 %v4667_v6, %v4834_v5  ;;  %v6028_v6 = vld [vmem:[#allocation37_spill] sm:$0xff] }
 0x30e   :  { %v866_v45 = vpack.c.bf16 %v840_v19, %v839_v20  ;;  %v778_v31 = vmul.f32 %v4848_v8, %v701_v14  ;;  %v816_v54 = vmul.f32 %v4838_v55, %v777_v18  ;;  %v703_v36 = vsub.f32 %v4675_v25, %v4834_v5 }
 0x30f   :  { %3425 = vmatprep.mubr.msk.bf16.mxu1 %vm242_vm1, %v5002_v22  ;;  %v842_v37 = vadd.f32 %v4850_v44, %v803_v28  ;;  %v779_v33 = vmul.f32 %v4848_v8, %v702_v15  ;;  %v688_v16 = vsub.f32 %v6027_v3, %v4824_v41  ;;  %v689_v29 = vsub.f32 %v6028_v6, %v4824_v41 }
 0x310   :  { %3410 = vmatmul.mubr.msk.bf16.gmra.mrb[12].mxu0 %vm242_vm1, %v866_v45  ;;  %v817_v42 = vmul.f32 %v4838_v55, %v778_v31  ;;  %v855_v58 = vadd.f32 %v4850_v44, %v816_v54  ;;  %v780_v25 = vmul.f32 %v4848_v8, %v703_v36  ;;  %v704_v32 = vsub.f32 %v4683_v52, %v4834_v5 }
 0x311   :  { %v867_v51 = vpack.c.bf16 %v842_v37, %v841_v10  ;;  %v818_v38 = vmul.f32 %v4838_v55, %v779_v33  ;;  %v765_v30 = vmul.f32 %v4836_v46, %v688_v16  ;;  %v766_v56 = vmul.f32 %v4836_v46, %v689_v29 }
 0x312   :  { %v856_v41 = vadd.f32 %v4850_v44, %v817_v42  ;;  %v819_v1 = vmul.f32 %v4838_v55, %v780_v25  ;;  %v705_v12 = vsub.f32 %v4689_v60, %v4834_v5  ;;  %v781_v26 = vmul.f32 %v4848_v8, %v704_v32 }
 0x313   :  { %3413 = vmatprep.mubr.msk.bf16.mxu0 %vm242_vm1, %v867_v51  ;;  %v857_v52 = vadd.f32 %v4850_v44, %v818_v38  ;;  %v804_v49 = vmul.f32 %v4838_v55, %v765_v30  ;;  %v805_v34 = vmul.f32 %v4838_v55, %v766_v56 }
 0x314   :  { %v874_v21 = vpack.c.bf16 %v856_v41, %v855_v58  ;;  %v858_v46 = vadd.f32 %v4850_v44, %v819_v1  ;;  %v782_v50 = vmul.f32 %v4848_v8, %v705_v12  ;;  %v820_v57 = vmul.f32 %v4838_v55, %v781_v26 }
 0x315   :  { %v843_v62 = vadd.f32 %v4850_v44, %v804_v49  ;;  %v844_v60 = vadd.f32 %v4850_v44, %v805_v34 }
 0x316   :  { %3426 = vmatmul.mubr.msk.bf16.gmra.mrb[12].mxu1 %vm242_vm1, %v874_v21  ;;  %v875_v5 = vpack.c.bf16 %v858_v46, %v857_v52  ;;  %v821_v39 = vmul.f32 %v4838_v55, %v782_v50  ;;  %v859_v9 = vadd.f32 %v4850_v44, %v820_v57  ;;  %v5102_v55 = vld [vmem:[#allocation13] ss:$0 sm:$0xff] }
 0x317   :  { %v868_v11 = vpack.c.bf16 %v844_v60, %v843_v62 }
 0x318   :  { %3429 = vmatprep.mubr.msk.bf16.mxu1 %vm242_vm1, %v875_v5  ;;  %v860_v23 = vadd.f32 %v4850_v44, %v821_v39 }
 0x319   :  { %3414 = vmatmul.mubr.msk.bf16.gmra.mrb[16].mxu0 %vm242_vm1, %v868_v11 }
 0x31a   :  { %3473 = vmatprep.mubr.msk.bf16.mxu0 %vm242_vm1, %v4875_v48  ;;  %v876_v8 = vpack.c.bf16 %v860_v23, %v859_v9 }
 0x31e   :  { %3430 = vmatmul.mubr.msk.bf16.gmra.mrb[16].mxu1 %vm242_vm1, %v876_v8 }
 0x31f   :  { %3437 = vmatprep.mubr.msk.bf16.mxu1 %vm242_vm1, %v4875_v48 }
 0x321   :  { %3474 = vmatmul.mubr.msk.bf16.vlgmr.msra.gmra.mrb[20].mxu0 %vm242_vm1, %v4888_v0 }
 0x322   :  { %3477 = vmatprep.mubr.msk.bf16.mxu0 %vm242_vm1, %v4894_v47 }
 0x326   :  { %3438 = vmatmul.mubr.msk.bf16.vlgmr.msra.gmra.mrb[20].mxu1 %vm242_vm1, %v4888_v0 }
 0x327   :  { %3441 = vmatprep.mubr.msk.bf16.mxu1 %vm242_vm1, %v4894_v47 }
 0x329   :  { %3478 = vmatmul.mubr.msk.bf16.gmra.mrb[24].mxu0 %vm242_vm1, %v4951_v61 }
 0x32a   :  { %3481 = vmatprep.mubr.msk.bf16.mxu0 %vm242_vm1, %v4973_v35 }
 0x32e   :  { %3442 = vmatmul.mubr.msk.bf16.gmra.mrb[24].mxu1 %vm242_vm1, %v4951_v61 }
 0x32f   :  { %3445 = vmatprep.mubr.msk.bf16.mxu1 %vm242_vm1, %v4973_v35 }
 0x331   :  { %3482 = vmatmul.mubr.msk.bf16.gmra.mrb[28].mxu0 %vm242_vm1, %v866_v45 }
 0x332   :  { %3485 = vmatprep.mubr.msk.bf16.mxu0 %vm242_vm1, %v867_v51 }
 0x336   :  { %3446 = vmatmul.mubr.msk.bf16.gmra.mrb[28].mxu1 %vm242_vm1, %v866_v45 }
 0x337   :  { %3449 = vmatprep.mubr.msk.bf16.mxu1 %vm242_vm1, %v867_v51 }
 0x339   :  { %3486 = vmatmul.mubr.msk.bf16.gmra.mrb[32].mxu0 %vm242_vm1, %v868_v11 }
 0x33a   :  { %3489 = vmatprep.mubr.msk.bf16.mxu0 %vm242_vm1, %v4910_v7 }
 0x33e   :  { %3450 = vmatmul.mubr.msk.bf16.gmra.mrb[32].mxu1 %vm242_vm1, %v868_v11 }
 0x33f   :  { %3453 = vmatprep.mubr.msk.bf16.mxu1 %vm242_vm1, %v4910_v7 }
 0x341   :  { %3490 = vmatmul.mubr.msk.bf16.gmra.mrb[36].mxu0 %vm242_vm1, %v4933_v27 }
 0x342   :  { %3493 = vmatprep.mubr.msk.bf16.mxu0 %vm242_vm1, %v4945_v63 }
 0x346   :  { %3454 = vmatmul.mubr.msk.bf16.gmra.mrb[36].mxu1 %vm242_vm1, %v4933_v27 }
 0x347   :  { %3457 = vmatprep.mubr.msk.bf16.mxu1 %vm242_vm1, %v4945_v63 }
 0x349   :  { %3494 = vmatmul.mubr.msk.bf16.gmra.mrb[40].mxu0 %vm242_vm1, %v4990_v17 }
 0x34a   :  { %3497 = vmatprep.mubr.msk.bf16.mxu0 %vm242_vm1, %v5002_v22 }
 0x34e   :  { %3458 = vmatmul.mubr.msk.bf16.gmra.mrb[40].mxu1 %vm242_vm1, %v4990_v17 }
 0x34f   :  { %3461 = vmatprep.mubr.msk.bf16.mxu1 %vm242_vm1, %v5002_v22 }
 0x351   :  { %3498 = vmatmul.mubr.msk.bf16.gmra.mrb[44].mxu0 %vm242_vm1, %v874_v21 }
 0x352   :  { %3501 = vmatprep.mubr.msk.bf16.mxu0 %vm242_vm1, %v875_v5 }
 0x356   :  { %3462 = vmatmul.mubr.msk.bf16.gmra.mrb[44].mxu1 %vm242_vm1, %v874_v21 }
 0x357   :  { %3465 = vmatprep.mubr.msk.bf16.mxu1 %vm242_vm1, %v875_v5 }
 0x359   :  { %3502 = vmatmul.mubr.msk.bf16.gmra.mrb[48].mxu0 %vm242_vm1, %v876_v8 }
 0x35e   :  { %3466 = vmatmul.mubr.msk.bf16.gmra.mrb[48].mxu1 %vm242_vm1, %v876_v8 }
 0x3d0   :  { %v3403_v44 = vpop.f32.mrb[4].mxu0 }
 0x3d1   :  { %v5105_v48 = vadd.f32 %v3403_v44, %v5102_v55  ;;  %v982_v0 = vpop.f32.mrb[5].mxu0 }
 0x3d2   :  { %v3404_v47 = vpop.f32.mrb[6].mxu0  ;;  %v983_v63 = vadd.f32 %v5102_v55, %v982_v0 }
 0x3d3   :  { %v5108_v7 = vadd.f32 %v3404_v47, %v5102_v55  ;;  %v985_v27 = vpop.f32.mrb[7].mxu0 }
 0x3d4   :  { %v986_v61 = vadd.f32 %v5102_v55, %v985_v27 }
 0x3d5   :  { %v1110_v35 = vpack.c.bf16 %v5108_v7, %v5105_v48 }
 0x3d6   :  { %v1109_v59 = vpack.c.bf16 %v986_v61, %v983_v63 }
 0x3d7   :  { %v3419_v24 = vpop.f32.mrb[4].mxu1 }
 0x3d8   :  { %v5115_v4 = vadd.f32 %v3419_v24, %v5102_v55  ;;  %v1046_v2 = vpop.f32.mrb[5].mxu1  ;;  %3513 = vmatprep.mubr.msk.bf16.mxu1 %vm242_vm1, %v1109_v59 }
 0x3d9   :  { %v3420_v17 = vpop.f32.mrb[6].mxu1  ;;  %v1047_v20 = vadd.f32 %v5102_v55, %v1046_v2 }
 0x3da   :  { %v5119_v43 = vadd.f32 %v3420_v17, %v5102_v55  ;;  %v1049_v13 = vpop.f32.mrb[7].mxu1  ;;  %v3407_v40 = vpop.f32.mrb[8].mxu0 }
 0x3db   :  { %v1050_v19 = vadd.f32 %v5102_v55, %v1049_v13  ;;  %v5124_v53 = vadd.f32 %v3407_v40, %v5102_v55  ;;  %v998_v14 = vpop.f32.mrb[9].mxu0 }
 0x3dc   :  { %v5129_v22 = vadd.f32 %v5102_v55, %v998_v14  ;;  %v3408_v28 = vpop.f32.mrb[10].mxu0 }
 0x3dd   :  { %v1117_v10 = vpack.c.bf16 %v1050_v19, %v1047_v20  ;;  %v5132_v15 = vadd.f32 %v3408_v28, %v5102_v55  ;;  %v1001_v45 = vpop.f32.mrb[11].mxu0  ;;  %v5215_v28 = vld [vmem:[#allocation19] ss:$0 sm:$0xff] }
 0x3de   :  { %v5135_v31 = vadd.f32 %v5102_v55, %v1001_v45 }
 0x3df   :  { %3545 = vmatprep.mubr.msk.bf16.mxu0 %vm242_vm1, %v1117_v10 }
 0x3e0   :  { %v3423_v36 = vpop.f32.mrb[8].mxu1  ;;  %v1111_v37 = vpack.c.bf16 %v5135_v31, %v5129_v22 }
 0x3e1   :  { %v5143_v33 = vadd.f32 %v3423_v36, %v5102_v55  ;;  %v1062_v3 = vpop.f32.mrb[9].mxu1 }
 0x3e2   :  { %v5146_v16 = vadd.f32 %v5102_v55, %v1062_v3  ;;  %v3424_v6 = vpop.f32.mrb[10].mxu1 }
 0x3e3   :  { %v5149_v29 = vadd.f32 %v3424_v6, %v5102_v55  ;;  %v1065_v42 = vpop.f32.mrb[11].mxu1  ;;  %v3411_v58 = vpop.f32.mrb[12].mxu0 }
 0x3e4   :  { %v5152_v25 = vadd.f32 %v5102_v55, %v1065_v42  ;;  %v5155_v32 = vadd.f32 %v3411_v58, %v5102_v55  ;;  %v1014_v51 = vpop.f32.mrb[13].mxu0 }
 0x3e5   :  { %v5160_v30 = vadd.f32 %v5102_v55, %v1014_v51  ;;  %v3412_v56 = vpop.f32.mrb[14].mxu0 }
 0x3e6   :  { %v5165_v1 = vadd.f32 %v3412_v56, %v5102_v55  ;;  %v1017_v12 = vpop.f32.mrb[15].mxu0 }
 0x3e7   :  { %v5168_v26 = vadd.f32 %v5102_v55, %v1017_v12 }
 0x3e9   :  { %v3427_v49 = vpop.f32.mrb[12].mxu1 }
 0x3ea   :  { %v5175_v21 = vadd.f32 %v3427_v49, %v5102_v55  ;;  %v1078_v46 = vpop.f32.mrb[13].mxu1 }
 0x3eb   :  { %v5178_v50 = vadd.f32 %v5102_v55, %v1078_v46  ;;  %v3428_v57 = vpop.f32.mrb[14].mxu1 }
 0x3ec   :  { %v5181_v62 = vadd.f32 %v3428_v57, %v5102_v55  ;;  %v1081_v60 = vpop.f32.mrb[15].mxu1  ;;  %v3415_v5 = vpop.f32.mrb[16].mxu0 }
 0x3ed   :  { %v5184_v39 = vadd.f32 %v5102_v55, %v1081_v60  ;;  %v5187_v11 = vadd.f32 %v3415_v5, %v5102_v55  ;;  %v1030_v9 = vpop.f32.mrb[17].mxu0 }
 0x3ee   :  { %v5192_v8 = vadd.f32 %v5102_v55, %v1030_v9  ;;  %v3416_v44 = vpop.f32.mrb[18].mxu0 }
 0x3ef   :  { %v5197_v47 = vadd.f32 %v3416_v44, %v5102_v55  ;;  %v1033_v27 = vpop.f32.mrb[19].mxu0 }
 0x3f0   :  { %v5200_v63 = vadd.f32 %v5102_v55, %v1033_v27 }
 0x3f1   :  { %v3431_v59 = vpop.f32.mrb[16].mxu1 }
 0x3f2   :  { %v5205_v24 = vadd.f32 %v3431_v59, %v5102_v55  ;;  %v1094_v17 = vpop.f32.mrb[17].mxu1 }
 0x3f3   :  { %v5210_v13 = vadd.f32 %v5102_v55, %v1094_v17  ;;  %v3432_v40 = vpop.f32.mrb[18].mxu1 }
 0x3f4   :  { %v5213_v20 = vadd.f32 %v3432_v40, %v5102_v55  ;;  %v1097_v19 = vpop.f32.mrb[19].mxu1  ;;  %v3475_v14 = vpop.f32.mrb[20].mxu0 }
 0x3f5   :  { %v5218_v10 = vadd.f32 %v5102_v55, %v1097_v19  ;;  %v1382_v45 = vpop.f32.mrb[21].mxu0  ;;  %v1391_v42 = vadd.f32 %v3475_v14, %v5215_v28  ;;  %v5228_v55 = vld [vmem:[#allocation16] ss:$0 sm:$0xff] }
 0x3f6   :  { %v3476_v3 = vpop.f32.mrb[22].mxu0  ;;  %v1383_v56 = vadd.f32 %v5215_v28, %v1382_v45 }
 0x3f7   :  { %v1394_v58 = vadd.f32 %v3476_v3, %v5215_v28  ;;  %v1385_v51 = vpop.f32.mrb[23].mxu0 }
 0x3f8   :  { %v1386_v12 = vadd.f32 %v5215_v28, %v1385_v51 }
 0x3f9   :  { %v3439_v49 = vpop.f32.mrb[20].mxu1  ;;  %v5230_v46 = vpack.c.bf16 %v1394_v58, %v1391_v42 }
 0x3fa   :  { %v1182_v57 = vpop.f32.mrb[21].mxu1  ;;  %v5232_v60 = vpack.c.bf16 %v1386_v12, %v1383_v56  ;;  %v1191_v9 = vadd.f32 %v3439_v49, %v5228_v55 }
 0x3fb   :  { %v3440_v5 = vpop.f32.mrb[22].mxu1  ;;  %v1183_v17 = vadd.f32 %v5228_v55, %v1182_v57 }
 0x3fc   :  { %v1194_v44 = vadd.f32 %v3440_v5, %v5228_v55  ;;  %v1185_v27 = vpop.f32.mrb[23].mxu1  ;;  %v3479_v59 = vpop.f32.mrb[24].mxu0 }
 0x3fd   :  { %v1186_v40 = vadd.f32 %v5228_v55, %v1185_v27  ;;  %v1398_v19 = vpop.f32.mrb[25].mxu0  ;;  %v1407_v42 = vadd.f32 %v3479_v59, %v5215_v28 }
 0x3fe   :  { %v1310_v14 = vpack.c.bf16 %v1194_v44, %v1191_v9  ;;  %v3480_v45 = vpop.f32.mrb[26].mxu0  ;;  %v1399_v56 = vadd.f32 %v5215_v28, %v1398_v19 }
 0x3ff   :  { %v1309_v3 = vpack.c.bf16 %v1186_v40, %v1183_v17  ;;  %v1410_v58 = vadd.f32 %v3480_v45, %v5215_v28  ;;  %v1401_v51 = vpop.f32.mrb[27].mxu0 }
 0x400   :  { %v1402_v12 = vadd.f32 %v5215_v28, %v1401_v51 }
 0x401   :  { %v3443_v49 = vpop.f32.mrb[24].mxu1  ;;  %v5242_v5 = vpack.c.bf16 %v1410_v58, %v1407_v42  ;;  %3685 = vmatprep.subr.msk.bf16.mxu1 %vm242_vm1, %v1309_v3  ;;  %v1538_v57 = vsel %vm242_vm1, %v1309_v3, 0 }
 0x402   :  { %v1198_v27 = vpop.f32.mrb[25].mxu1  ;;  %v5246_v9 = vpack.c.bf16 %v1402_v12, %v1399_v56  ;;  %3506 = vmatpush3.bf16.xpose.msra.mxu1 %v1538_v57  ;;  %v1207_v59 = vadd.f32 %v3443_v49, %v5228_v55 }
 0x403   :  { %v3444_v44 = vpop.f32.mrb[26].mxu1  ;;  %3686 = vmatprep.subr.msk.bf16.mxu1 %vm242_vm1, %v1310_v14  ;;  %v1199_v45 = vadd.f32 %v5228_v55, %v1198_v27  ;;  %v1541_v27 = vsel %vm242_vm1, %v1310_v14, 0 }
 0x404   :  { %v1210_v17 = vadd.f32 %v3444_v44, %v5228_v55  ;;  %v1201_v40 = vpop.f32.mrb[27].mxu1  ;;  %v3483_v19 = vpop.f32.mrb[28].mxu0 }
 0x405   :  { %v1202_v42 = vadd.f32 %v5228_v55, %v1201_v40  ;;  %v1414_v58 = vpop.f32.mrb[29].mxu0  ;;  %v1423_v56 = vadd.f32 %v3483_v19, %v5215_v28 }
 0x406   :  { %v1312_v51 = vpack.c.bf16 %v1210_v17, %v1207_v59  ;;  %v3484_v3 = vpop.f32.mrb[30].mxu0  ;;  %v1415_v6 = vadd.f32 %v5215_v28, %v1414_v58 }
 0x407   :  { %v1311_v36 = vpack.c.bf16 %v1202_v42, %v1199_v45  ;;  %v1426_v12 = vadd.f32 %v3484_v3, %v5215_v28  ;;  %v1417_v57 = vpop.f32.mrb[31].mxu0 }
 0x408   :  { %v1418_v49 = vadd.f32 %v5215_v28, %v1417_v57 }
 0x409   :  { %v3447_v44 = vpop.f32.mrb[28].mxu1  ;;  %v5257_v23 = vpack.c.bf16 %v1426_v12, %v1423_v56 }
 0x40a   :  { %v1214_v0 = vpop.f32.mrb[29].mxu1  ;;  %v5260_v40 = vpack.c.bf16 %v1418_v49, %v1415_v6  ;;  %3508 = vmatpush3.bf16.xpose.msra.mxu1 %v1541_v27  ;;  %v1223_v17 = vadd.f32 %v3447_v44, %v5228_v55 }
 0x40b   :  { %v3448_v59 = vpop.f32.mrb[30].mxu1  ;;  %3687 = vmatprep.subr.msk.bf16.mxu1 %vm242_vm1, %v1311_v36  ;;  %v1215_v58 = vadd.f32 %v5228_v55, %v1214_v0  ;;  %v1544_v0 = vsel %vm242_vm1, %v1311_v36, 0 }
 0x40c   :  { %v1226_v19 = vadd.f32 %v3448_v59, %v5228_v55  ;;  %v1217_v45 = vpop.f32.mrb[31].mxu1  ;;  %v3487_v42 = vpop.f32.mrb[32].mxu0 }
 0x40d   :  { %v1218_v3 = vadd.f32 %v5228_v55, %v1217_v45  ;;  %v1430_v56 = vpop.f32.mrb[33].mxu0  ;;  %v1439_v57 = vadd.f32 %v3487_v42, %v5215_v28 }
 0x40e   :  { %v5267_v12 = vpack.c.bf16 %v1226_v19, %v1223_v17  ;;  %v3488_v14 = vpop.f32.mrb[34].mxu0  ;;  %v1431_v44 = vadd.f32 %v5215_v28, %v1430_v56 }
 0x40f   :  { %v1313_v6 = vpack.c.bf16 %v1218_v3, %v1215_v58  ;;  %v1442_v49 = vadd.f32 %v3488_v14, %v5215_v28  ;;  %v1433_v27 = vpop.f32.mrb[35].mxu0 }
 0x410   :  { %v1434_v59 = vadd.f32 %v5215_v28, %v1433_v27 }
 0x411   :  { %v3451_v38 = vpop.f32.mrb[32].mxu1  ;;  %v5273_v61 = vpack.c.bf16 %v1442_v49, %v1439_v57 }
 0x412   :  { %v1230_v45 = vpop.f32.mrb[33].mxu1  ;;  %v5276_v41 = vpack.c.bf16 %v1434_v59, %v1431_v44  ;;  %3510 = vmatpush3.bf16.xpose.msra.mxu1 %v1544_v0  ;;  %v1239_v19 = vadd.f32 %v3451_v38, %v5228_v55 }
 0x413   :  { %v3452_v17 = vpop.f32.mrb[34].mxu1  ;;  %3688 = vmatprep.subr.msk.bf16.mxu1 %vm242_vm1, %v1312_v51  ;;  %v1231_v56 = vadd.f32 %v5228_v55, %v1230_v45  ;;  %v1547_v45 = vsel %vm242_vm1, %v1312_v51, 0 }
 0x414   :  { %v1242_v42 = vadd.f32 %v3452_v17, %v5228_v55  ;;  %v1233_v58 = vpop.f32.mrb[35].mxu1  ;;  %v3491_v3 = vpop.f32.mrb[36].mxu0 }
 0x415   :  { %v1234_v14 = vadd.f32 %v5228_v55, %v1233_v58  ;;  %v1455_v57 = vadd.f32 %v3491_v3, %v5215_v28  ;;  %v1446_v36 = vpop.f32.mrb[37].mxu0 }
 0x416   :  { %v5284_v49 = vpack.c.bf16 %v1242_v42, %v1239_v19  ;;  %v3492_v27 = vpop.f32.mrb[38].mxu0  ;;  %v1447_v38 = vadd.f32 %v5215_v28, %v1446_v36 }
 0x417   :  { %v5286_v44 = vpack.c.bf16 %v1234_v14, %v1231_v56  ;;  %v1458_v59 = vadd.f32 %v3492_v27, %v5215_v28  ;;  %v1449_v0 = vpop.f32.mrb[39].mxu0 }
 0x418   :  { %v1450_v17 = vadd.f32 %v5215_v28, %v1449_v0 }
 0x419   :  { %v3455_v2 = vpop.f32.mrb[36].mxu1  ;;  %v5291_v18 = vpack.c.bf16 %v1458_v59, %v1455_v57 }
 0x41a   :  { %v1246_v58 = vpop.f32.mrb[37].mxu1  ;;  %v5294_v3 = vpack.c.bf16 %v1450_v17, %v1447_v38  ;;  %3512 = vmatpush3.bf16.xpose.msra.mxu1 %v1547_v45  ;;  %v1255_v42 = vadd.f32 %v3455_v2, %v5228_v55 }
 0x41b   :  { %v3456_v19 = vpop.f32.mrb[38].mxu1  ;;  %3689 = vmatprep.subr.msk.bf16.mxu1 %vm242_vm1, %v1313_v6  ;;  %v1247_v27 = vadd.f32 %v5228_v55, %v1246_v58  ;;  %v1627_v58 = vsel %vm242_vm1, %v1313_v6, 0 }
 0x41c   :  { %v1258_v56 = vadd.f32 %v3456_v19, %v5228_v55  ;;  %v1249_v14 = vpop.f32.mrb[39].mxu1  ;;  %v3495_v36 = vpop.f32.mrb[40].mxu0 }
 0x41d   :  { %v1250_v57 = vadd.f32 %v5228_v55, %v1249_v14  ;;  %v1471_v59 = vadd.f32 %v3495_v36, %v5215_v28  ;;  %v1462_v51 = vpop.f32.mrb[41].mxu0 }
 0x41e   :  { %v1318_v0 = vpack.c.bf16 %v1258_v56, %v1255_v42  ;;  %v1463_v38 = vadd.f32 %v5215_v28, %v1462_v51  ;;  %v3496_v17 = vpop.f32.mrb[42].mxu0 }
 0x41f   :  { %v1317_v45 = vpack.c.bf16 %v1250_v57, %v1247_v27  ;;  %v1474_v52 = vadd.f32 %v3496_v17, %v5215_v28  ;;  %v1465_v34 = vpop.f32.mrb[43].mxu0 }
 0x420   :  { %v1466_v2 = vadd.f32 %v5215_v28, %v1465_v34 }
 0x421   :  { %v3459_v19 = vpop.f32.mrb[40].mxu1  ;;  %v5305_v54 = vpack.c.bf16 %v1474_v52, %v1471_v59  ;;  %3514 = vmatmul.mubr.msk.bf16.vlgmr.msra.gmra.mrb[52].mxu1 %vm242_vm1, %v1110_v35  ;;  %3693 = vmatprep.subr.msk.bf16.mxu0 %vm242_vm1, %v1317_v45  ;;  %v1716_v42 = vsel %vm242_vm1, %v1317_v45, 0 }
 0x422   :  { %v1262_v56 = vpop.f32.mrb[41].mxu1  ;;  %v5314_v14 = vpack.c.bf16 %v1466_v2, %v1463_v38  ;;  %3517 = vmatprep.mubr.msk.bf16.mxu1 %vm242_vm1, %v1111_v37  ;;  %3522 = vmatpush3.bf16.xpose.msra.mxu1 %v1627_v58  ;;  %v1271_v48 = vadd.f32 %v3459_v19, %v5228_v55  ;;  %v6029_v19 = vpack.c.bf16 %v5132_v15, %v5124_v53  ;;  %v1630_v58 = vsel %vm242_vm1, %v5267_v12, 0 }
 0x423   :  { %3538 = vmatpush3.bf16.xpose.msra.mxu0 %v1716_v42  ;;  %v3460_v52 = vpop.f32.mrb[42].mxu1  ;;  %3690 = vmatprep.subr.msk.bf16.mxu1 %vm242_vm1, %v5267_v12  ;;  %v1263_v6 = vadd.f32 %v5228_v55, %v1262_v56 }
 0x424   :  { %v1274_v7 = vadd.f32 %v3460_v52, %v5228_v55  ;;  %3694 = vmatprep.subr.msk.bf16.mxu0 %vm242_vm1, %v1318_v0  ;;  %v1265_v35 = vpop.f32.mrb[43].mxu1  ;;  %v3499_v34 = vpop.f32.mrb[44].mxu0 }
 0x425   :  { %v1266_v22 = vadd.f32 %v5228_v55, %v1265_v35  ;;  %v1487_v31 = vadd.f32 %v3499_v34, %v5215_v28  ;;  %v1478_v37 = vpop.f32.mrb[45].mxu0 }
 0x426   :  { %v1320_v36 = vpack.c.bf16 %v1274_v7, %v1271_v48  ;;  %v3500_v27 = vpop.f32.mrb[46].mxu0  ;;  %v1479_v38 = vadd.f32 %v5215_v28, %v1478_v37  ;;  %v6030_v48 = vpack.c.bf16 %v5168_v26, %v5160_v30  ;;  %v1719_v7 = vsel %vm242_vm1, %v1318_v0, 0 }
 0x427   :  { %v1319_v57 = vpack.c.bf16 %v1266_v22, %v1263_v6  ;;  %v1490_v59 = vadd.f32 %v3500_v27, %v5215_v28  ;;  %v1481_v51 = vpop.f32.mrb[47].mxu0 }
 0x428   :  { %v1482_v17 = vadd.f32 %v5215_v28, %v1481_v51 }
 0x429   :  { %v3463_v45 = vpop.f32.mrb[44].mxu1  ;;  %v5331_v2 = vpack.c.bf16 %v1490_v59, %v1487_v31  ;;  %3518 = vmatmul.mubr.msk.bf16.gmra.mrb[56].mxu1 %vm242_vm1, %v6029_v19 }
 0x42a   :  { %v1287_v42 = vadd.f32 %v3463_v45, %v5228_v55  ;;  %v1278_v56 = vpop.f32.mrb[45].mxu1  ;;  %v5340_v52 = vpack.c.bf16 %v1482_v17, %v1479_v38  ;;  %3524 = vmatpush3.bf16.xpose.msra.mxu1 %v1630_v58  ;;  %3529 = vmatprep.mubr.msk.bf16.mxu1 %vm242_vm1, %v6030_v48  ;;  %v1633_v45 = vsel %vm242_vm1, %v5286_v44, 0 }
 0x42b   :  { %3540 = vmatpush3.bf16.xpose.msra.mxu0 %v1719_v7  ;;  %v3464_v53 = vpop.f32.mrb[46].mxu1  ;;  %3691 = vmatprep.subr.msk.bf16.mxu1 %vm242_vm1, %v5286_v44  ;;  %v1279_v34 = vadd.f32 %v5228_v55, %v1278_v56 }
 0x42c   :  { %v1290_v15 = vadd.f32 %v3464_v53, %v5228_v55  ;;  %3695 = vmatprep.subr.msk.bf16.mxu0 %vm242_vm1, %v1319_v57  ;;  %v1281_v12 = vpop.f32.mrb[47].mxu1  ;;  %v3503_v35 = vpop.f32.mrb[48].mxu0 }
 0x42d   :  { %v1282_v6 = vadd.f32 %v5228_v55, %v1281_v12  ;;  %v1503_v30 = vadd.f32 %v3503_v35, %v5215_v28  ;;  %v1494_v26 = vpop.f32.mrb[49].mxu0  ;;  %v1636_v35 = vsel %vm242_vm1, %v5284_v49, 0 }
 0x42e   :  { %v1322_v22 = vpack.c.bf16 %v1290_v15, %v1287_v42  ;;  %v1495_v0 = vadd.f32 %v5215_v28, %v1494_v26  ;;  %v3504_v31 = vpop.f32.mrb[50].mxu0  ;;  %v1722_v42 = vsel %vm242_vm1, %v1319_v57, 0  ;;  %v1725_v57 = vsel %vm242_vm1, %v1320_v36, 0 }
 0x42f   :  { %v1321_v37 = vpack.c.bf16 %v1282_v6, %v1279_v34  ;;  %v1506_v27 = vadd.f32 %v3504_v31, %v5215_v28  ;;  %v1497_v59 = vpop.f32.mrb[51].mxu0  ;;  %v6031_v34 = vpack.c.bf16 %v5165_v1, %v5155_v32  ;;  %v6034_v6 = vpack.c.bf16 %v5152_v25, %v5146_v16 }
 0x430   :  { %v1498_v51 = vadd.f32 %v5215_v28, %v1497_v59  ;;  %v1808_v16 = vsel %vm242_vm1, %v1322_v22, 0  ;;  %v6037_v25 = vpack.c.bf16 %v5184_v39, %v5178_v50  ;;  %v6038_v32 = vpack.c.bf16 %v5181_v62, %v5175_v21 }
 0x431   :  { %v3467_v38 = vpop.f32.mrb[48].mxu1  ;;  %v5357_v17 = vpack.c.bf16 %v1506_v27, %v1503_v30  ;;  %v6039_v1 = vpack.c.bf16 %v5218_v10, %v5210_v13  ;;  %v6040_v50 = vpack.c.bf16 %v5213_v20, %v5205_v24 }
 0x432   :  { %v1303_v19 = vadd.f32 %v3467_v38, %v5228_v55  ;;  %v1294_v58 = vpop.f32.mrb[49].mxu1  ;;  %v5362_v56 = vpack.c.bf16 %v1498_v51, %v1495_v0  ;;  %3526 = vmatpush3.bf16.xpose.msra.mxu1 %v1633_v45 }
 0x433   :  { %v1295_v48 = vadd.f32 %v5228_v55, %v1294_v58  ;;  %3542 = vmatpush3.bf16.xpose.msra.mxu0 %v1722_v42  ;;  %v3468_v7 = vpop.f32.mrb[50].mxu1  ;;  %3692 = vmatprep.subr.msk.bf16.mxu1 %vm242_vm1, %v5284_v49  ;;  %v6033_v49 = vpack.c.bf16 %v5200_v63, %v5192_v8 }
 0x434   :  { %v1306_v28 = vadd.f32 %v3468_v7, %v5228_v55  ;;  %3696 = vmatprep.subr.msk.bf16.mxu0 %vm242_vm1, %v1320_v36  ;;  %v1297_v44 = vpop.f32.mrb[51].mxu1  ;;  %v1805_v36 = vsel %vm242_vm1, %v1321_v37, 0 }
 0x435   :  { %v1298_v53 = vadd.f32 %v5228_v55, %v1297_v44  ;;  %v6032_v55 = vpack.c.bf16 %v5119_v43, %v5115_v4  ;;  %v6035_v4 = vpack.c.bf16 %v5197_v47, %v5187_v11  ;;  %v6036_v43 = vpack.c.bf16 %v5149_v29, %v5143_v33 }
 0x436   :  { %v1324_v15 = vpack.c.bf16 %v1306_v28, %v1303_v19 }
 0x437   :  { %v1323_v12 = vpack.c.bf16 %v1298_v53, %v1295_v48 }
 0x438   :  { %v1814_v29 = vsel %vm242_vm1, %v1324_v15, 0 }
 0x439   :  { %v1811_v33 = vsel %vm242_vm1, %v1323_v12, 0 }
 0x43a   :  { %3528 = vmatpush3.bf16.xpose.msra.mxu1 %v1636_v35 }
 0x43b   :  { %3544 = vmatpush3.bf16.xpose.msra.mxu0 %v1725_v57  ;;  %3697 = vmatprep.subr.msk.bf16.mxu1 %vm242_vm1, %v1321_v37 }
 0x43c   :  { %3569 = vmatprep.subr.bf16.mxu0 %v5232_v60 }
 0x441   :  { %3530 = vmatmul.mubr.msk.bf16.vlgmr.msra.gmra.mrb[60].mxu1 %vm242_vm1, %v6031_v34 }
 0x442   :  { %3546 = vmatmul.mubr.msk.bf16.vlgmr.msra.gmra.mrb[52].mxu0 %vm242_vm1, %v6032_v55  ;;  %3533 = vmatprep.mubr.msk.bf16.mxu1 %vm242_vm1, %v6033_v49 }
 0x443   :  { %3549 = vmatprep.mubr.msk.bf16.mxu0 %vm242_vm1, %v6034_v6  ;;  %3554 = vmatpush3.bf16.xpose.msra.mxu1 %v1805_v36 }
 0x444   :  { %3570 = vmatpush3.bf16.msra.mxu0 %v5232_v60  ;;  %3698 = vmatprep.subr.msk.bf16.mxu1 %vm242_vm1, %v1322_v22 }
 0x445   :  { %3571 = vmatprep.subr.bf16.mxu0 %v5230_v46 }
 0x448   :  { %3572 = vmatpush3.bf16.msra.mxu0 %v5230_v46 }
 0x449   :  { %3573 = vmatprep.subr.bf16.mxu0 %v5246_v9  ;;  %3534 = vmatmul.mubr.msk.bf16.gmra.mrb[64].mxu1 %vm242_vm1, %v6035_v4 }
 0x44a   :  { %3550 = vmatmul.mubr.msk.bf16.gmra.mrb[56].mxu0 %vm242_vm1, %v6036_v43  ;;  %3561 = vmatprep.mubr.msk.bf16.mxu1 %vm242_vm1, %v6037_v25 }
 0x44b   :  { %3556 = vmatpush3.bf16.xpose.msra.mxu1 %v1808_v16 }
 0x44c   :  { %3574 = vmatpush3.bf16.msra.mxu0 %v5246_v9  ;;  %3699 = vmatprep.subr.msk.bf16.mxu1 %vm242_vm1, %v1323_v12 }
 0x44d   :  { %3575 = vmatprep.subr.bf16.mxu0 %v5242_v5 }
 0x450   :  { %3576 = vmatpush3.bf16.msra.mxu0 %v5242_v5 }
 0x451   :  { %3601 = vmatprep.subr.bf16.mxu0 %v5294_v3 }
 0x453   :  { %3558 = vmatpush3.bf16.xpose.msra.mxu1 %v1811_v33 }
 0x454   :  { %3700 = vmatprep.subr.msk.bf16.mxu1 %vm242_vm1, %v1324_v15 }
 0x45b   :  { %3560 = vmatpush3.bf16.xpose.msra.mxu1 %v1814_v29 }
 0x45c   :  { %3585 = vmatprep.subr.bf16.mxu1 %v5260_v40 }
 0x462   :  { %3562 = vmatmul.mubr.msk.bf16.vlgmr.msra.gmra.mrb[68].mxu1 %vm242_vm1, %v6038_v32 }
 0x463   :  { %3565 = vmatprep.mubr.msk.bf16.mxu1 %vm242_vm1, %v6039_v1  ;;  %3586 = vmatpush3.bf16.msra.mxu1 %v5260_v40 }
 0x464   :  { %3587 = vmatprep.subr.bf16.mxu1 %v5257_v23 }
 0x467   :  { %3588 = vmatpush3.bf16.msra.mxu1 %v5257_v23 }
 0x468   :  { %3589 = vmatprep.subr.bf16.mxu1 %v5276_v41 }
 0x46a   :  { %3566 = vmatmul.mubr.msk.bf16.gmra.mrb[72].mxu1 %vm242_vm1, %v6040_v50 }
 0x46b   :  { %3590 = vmatpush3.bf16.msra.mxu1 %v5276_v41 }
 0x46c   :  { %3591 = vmatprep.subr.bf16.mxu1 %v5273_v61 }
 0x46f   :  { %3592 = vmatpush3.bf16.msra.mxu1 %v5273_v61 }
 0x470   :  { %3617 = vmatprep.subr.bf16.mxu1 %v5340_v52 }
 0x4f4   :  { %v5440_v21 = vpop.f32.mrb[52].mxu1 }
 0x4f5   :  { %v5442_v62 = vpop.f32.mrb[53].mxu1  ;;  %v1888_v39 = vsel %vm1881_vm9, %v5440_v21, -inf }
 0x4f6   :  { %1889 = vmax.xlane.f32.xlu1 %v1888_v39  ;;  %v5446_v11 = vpop.f32.mrb[54].mxu1  ;;  %v1882_v41 = vsel %vm1881_vm9, %v5442_v62, -inf }
 0x4f7   :  { %1883 = vmax.xlane.f32.xlu0 %v1882_v41  ;;  %v5450_v23 = vpop.f32.mrb[55].mxu1  ;;  %v1891_v8 = vsel %vm1881_vm9, %v5446_v11, -inf }
 0x4f8   :  { %v1885_v47 = vsel %vm1881_vm9, %v5450_v23, -inf }
 0x4fa   :  { %1892 = vmax.xlane.f32.xlu1 %v1891_v8 }
 0x4fb   :  { %1886 = vmax.xlane.f32.xlu0 %v1885_v47 }
 0x4fc   :  { %v5456_v63 = vpop.f32.mrb[56].mxu1 }
 0x4fd   :  { %v5458_v61 = vpop.f32.mrb[57].mxu1  ;;  %v1900_v46 = vsel %vm1881_vm9, %v5456_v63, -inf }
 0x4fe   :  { %v5460_v24 = vpop.f32.mrb[58].mxu1  ;;  %v1894_v13 = vsel %vm1881_vm9, %v5458_v61, -inf }
 0x4ff   :  { %1895 = vmax.xlane.f32.xlu0 %v1894_v13  ;;  %v5464_v20 = vpop.f32.mrb[59].mxu1  ;;  %v1903_v60 = vsel %vm1881_vm9, %v5460_v24, -inf }
 0x500   :  { %v1897_v10 = vsel %vm1881_vm9, %v5464_v20, -inf }
 0x501   :  { %1898 = vmax.xlane.f32.xlu1 %v1897_v10 }
 0x503   :  { %1901 = vmax.xlane.f32.xlu0 %v1900_v46 }
 0x505   :  { %1904 = vmax.xlane.f32.xlu1 %v1903_v60 }
 0x514   :  { %v5472_v5 = vpop.f32.mrb[60].mxu1 }
 0x515   :  { %v5474_v9 = vpop.f32.mrb[52].mxu0  ;;  %v5476_v40 = vpop.f32.mrb[61].mxu1  ;;  %v1912_v59 = vsel %vm1881_vm9, %v5472_v5, -inf }
 0x516   :  { %v5478_v30 = vpop.f32.mrb[53].mxu0  ;;  %v5480_v26 = vpop.f32.mrb[62].mxu1  ;;  %v1906_v22 = vsel %vm1881_vm9, %v5476_v40, -inf  ;;  %v1936_v34 = vsel %vm1881_vm9, %v5474_v9, -inf }
 0x517   :  { %v5484_v0 = vpop.f32.mrb[54].mxu0  ;;  %1907 = vmax.xlane.f32.xlu0 %v1906_v22  ;;  %v5486_v31 = vpop.f32.mrb[63].mxu1  ;;  %v1915_v38 = vsel %vm1881_vm9, %v5480_v26, -inf  ;;  %v1930_v35 = vsel %vm1881_vm9, %v5478_v30, -inf }
 0x518   :  { %v5488_v37 = vpop.f32.mrb[55].mxu0  ;;  %v1909_v27 = vsel %vm1881_vm9, %v5486_v31, -inf  ;;  %v1939_v55 = vsel %vm1881_vm9, %v5484_v0, -inf }
 0x519   :  { %1910 = vmax.xlane.f32.xlu1 %v1909_v27  ;;  %v1933_v57 = vsel %vm1881_vm9, %v5488_v37, -inf }
 0x51b   :  { %1913 = vmax.xlane.f32.xlu0 %v1912_v59 }
 0x51c   :  { %v5494_v51 = vpop.f32.mrb[64].mxu1 }
 0x51d   :  { %v5498_v45 = vpop.f32.mrb[56].mxu0  ;;  %1916 = vmax.xlane.f32.xlu1 %v1915_v38  ;;  %v5500_v19 = vpop.f32.mrb[65].mxu1  ;;  %v1924_v15 = vsel %vm1881_vm9, %v5494_v51, -inf }
 0x51e   :  { %v5502_v58 = vpop.f32.mrb[57].mxu0  ;;  %v5504_v42 = vpop.f32.mrb[66].mxu1  ;;  %v1918_v48 = vsel %vm1881_vm9, %v5500_v19, -inf  ;;  %v1948_v6 = vsel %vm1881_vm9, %v5498_v45, -inf }
 0x51f   :  { %v5508_v7 = vpop.f32.mrb[58].mxu0  ;;  %1919 = vmax.xlane.f32.xlu0 %v1918_v48  ;;  %v5510_v28 = vpop.f32.mrb[67].mxu1  ;;  %v1927_v12 = vsel %vm1881_vm9, %v5504_v42, -inf  ;;  %v1942_v49 = vsel %vm1881_vm9, %v5502_v58, -inf }
 0x520   :  { %v5512_v44 = vpop.f32.mrb[59].mxu0  ;;  %v1921_v53 = vsel %vm1881_vm9, %v5510_v28, -inf  ;;  %v1951_v4 = vsel %vm1881_vm9, %v5508_v7, -inf }
 0x521   :  { %1922 = vmax.xlane.f32.xlu1 %v1921_v53  ;;  %v1945_v36 = vsel %vm1881_vm9, %v5512_v44, -inf }
 0x523   :  { %1925 = vmax.xlane.f32.xlu0 %v1924_v15 }
 0x525   :  { %1928 = vmax.xlane.f32.xlu1 %v1927_v12 }
 0x527   :  { %1931 = vmax.xlane.f32.xlu0 %v1930_v35 }
 0x529   :  { %1934 = vmax.xlane.f32.xlu1 %v1933_v57 }
 0x52b   :  { %1937 = vmax.xlane.f32.xlu0 %v1936_v34 }
 0x52d   :  { %1940 = vmax.xlane.f32.xlu1 %v1939_v55 }
 0x52f   :  { %1943 = vmax.xlane.f32.xlu0 %v1942_v49 }
 0x531   :  { %1946 = vmax.xlane.f32.xlu1 %v1945_v36 }
 0x533   :  { %1949 = vmax.xlane.f32.xlu0 %v1948_v6 }
 0x535   :  { %v5536_v43 = vpop.f32.mrb[68].mxu1  ;;  %1952 = vmax.xlane.f32.xlu1 %v1951_v4 }
 0x536   :  { %v5538_v16 = vpop.f32.mrb[69].mxu1  ;;  %v1960_v1 = vsel %vm1881_vm9, %v5536_v43, -inf }
 0x537   :  { %v5540_v25 = vpop.f32.mrb[70].mxu1  ;;  %v1954_v33 = vsel %vm1881_vm9, %v5538_v16, -inf }
 0x538   :  { %1955 = vmax.xlane.f32.xlu0 %v1954_v33  ;;  %v5544_v29 = vpop.f32.mrb[71].mxu1  ;;  %v1963_v39 = vsel %vm1881_vm9, %v5540_v25, -inf }
 0x539   :  { %v1957_v32 = vsel %vm1881_vm9, %v5544_v29, -inf }
 0x53a   :  { %1958 = vmax.xlane.f32.xlu1 %v1957_v32 }
 0x53c   :  { %1961 = vmax.xlane.f32.xlu0 %v1960_v1 }
 0x53d   :  { %v5550_v50 = vpop.f32.mrb[72].mxu1 }
 0x53e   :  { %1964 = vmax.xlane.f32.xlu1 %v1963_v39  ;;  %v5554_v41 = vpop.f32.mrb[73].mxu1  ;;  %v1972_v46 = vsel %vm1881_vm9, %v5550_v50, -inf }
 0x53f   :  { %v5556_v8 = vpop.f32.mrb[74].mxu1  ;;  %v1966_v47 = vsel %vm1881_vm9, %v5554_v41, -inf }
 0x540   :  { %1967 = vmax.xlane.f32.xlu0 %v1966_v47  ;;  %v5560_v13 = vpop.f32.mrb[75].mxu1  ;;  %v1975_v60 = vsel %vm1881_vm9, %v5556_v8, -inf }
 0x541   :  { %v1969_v10 = vsel %vm1881_vm9, %v5560_v13, -inf }
 0x542   :  { %1970 = vmax.xlane.f32.xlu1 %v1969_v10 }
 0x544   :  { %1973 = vmax.xlane.f32.xlu0 %v1972_v46 }
 0x546   :  { %1976 = vmax.xlane.f32.xlu1 %v1975_v60 }
 0x583   :  { %v5568_v22 = vpop.xlane.xlu1 %1889 }
 0x584   :  { %v2076_v27 = vsub.f32 %v5440_v21, %v5568_v22  ;;  %v5572_v59 = vpop.xlane.xlu0 %1883 }
 0x585   :  { %v2074_v38 = vsub.f32 %v5442_v62, %v5572_v59 }
 0x586   :  { %v2110_v53 = vmul.f32 1.442695, %v2076_v27 }
 0x587   :  { %v5576_v48 = vpop.xlane.xlu1 %1892  ;;  %v2106_v57 = vmul.f32 1.442695, %v2074_v38 }
 0x588   :  { %v2077_v15 = vsub.f32 %v5446_v11, %v5576_v48  ;;  %v5580_v12 = vpop.xlane.xlu0 %1886  ;;  %3736 = vpow2.f32 %v2110_v53 }
 0x589   :  { %v2075_v35 = vsub.f32 %v5450_v23, %v5580_v12 }
 0x58a   :  { %v2112_v34 = vmul.f32 1.442695, %v2077_v15 }
 0x58b   :  { %v2108_v55 = vmul.f32 1.442695, %v2075_v35 }
 0x58c   :  { %v5584_v21 = vpop.xlane.xlu0 %1895  ;;  %3738 = vpow2.f32 %v2112_v34 }
 0x58d   :  { %v2078_v62 = vsub.f32 %v5458_v61, %v5584_v21  ;;  %3740 = vpow2.f32 %v2106_v57 }
 0x58e   :  { %v5588_v49 = vpop.xlane.xlu1 %1898  ;;  %3742 = vpow2.f32 %v2108_v55 }
 0x58f   :  { %v2114_v11 = vmul.f32 1.442695, %v2078_v62  ;;  %v2079_v36 = vsub.f32 %v5464_v20, %v5588_v49 }
 0x590   :  { %v5592_v6 = vpop.xlane.xlu0 %1901 }
 0x591   :  { %v2080_v23 = vsub.f32 %v5456_v63, %v5592_v6  ;;  %v2116_v4 = vmul.f32 1.442695, %v2079_v36  ;;  %3744 = vpow2.f32 %v2114_v11 }
 0x592   :  { %v5596_v33 = vpop.xlane.xlu1 %1904  ;;  %v3737_v1 = vpop.eup %3736 }
 0x593   :  { %v2118_v32 = vmul.f32 1.442695, %v2080_v23  ;;  %3746 = vpow2.f32 %v2116_v4  ;;  %v2081_v61 = vsub.f32 %v5460_v24, %v5596_v33 }
 0x595   :  { %v2120_v39 = vmul.f32 1.442695, %v2081_v61  ;;  %3748 = vpow2.f32 %v2118_v32 }
 0x596   :  { %v3739_v47 = vpop.eup %3738 }
 0x597   :  { %v3741_v10 = vpop.eup %3740  ;;  %v2203_v20 = vpack.c.bf16 %v3739_v47, %v3737_v1  ;;  %3750 = vpow2.f32 %v2120_v39 }
 0x598   :  { %v3743_v46 = vpop.eup %3742 }
 0x599   :  { %v2202_v60 = vpack.c.bf16 %v3743_v46, %v3741_v10 }
 0x59b   :  { %3577 = vmatprep.mubr.msk.bf16.mxu0 %vm1881_vm9, %v2202_v60  ;;  %v3745_v63 = vpop.eup %3744 }
 0x59c   :  { %3578 = vmatmul.mubr.msk.bf16.vlgmr.msra.gmra.mrb[60].mxu0 %vm1881_vm9, %v2203_v20 }
 0x59d   :  { %v3747_v27 = vpop.eup %3746  ;;  %3602 = vmatpush3.bf16.msra.mxu0 %v5294_v3 }
 0x59e   :  { %3603 = vmatprep.subr.bf16.mxu0 %v5291_v18  ;;  %v2204_v24 = vpack.c.bf16 %v3747_v27, %v3745_v63 }
 0x59f   :  { %v3749_v38 = vpop.eup %3748 }
 0x5a0   :  { %3581 = vmatprep.mubr.msk.bf16.mxu0 %vm1881_vm9, %v2204_v24 }
 0x5a1   :  { %v3751_v53 = vpop.eup %3750  ;;  %3604 = vmatpush3.bf16.msra.mxu0 %v5291_v18 }
 0x5a2   :  { %3605 = vmatprep.subr.bf16.mxu0 %v5314_v14  ;;  %v2205_v15 = vpack.c.bf16 %v3751_v53, %v3749_v38 }
 0x5a4   :  { %v5607_v35 = vpop.xlane.xlu0 %1907  ;;  %3582 = vmatmul.mubr.msk.bf16.gmra.mrb[64].mxu0 %vm1881_vm9, %v2205_v15 }
 0x5a5   :  { %v2082_v57 = vsub.f32 %v5476_v40, %v5607_v35  ;;  %3606 = vmatpush3.bf16.msra.mxu0 %v5314_v14 }
 0x5a6   :  { %v5613_v3 = vpop.xlane.xlu1 %1910  ;;  %3607 = vmatprep.subr.bf16.mxu0 %v5305_v54 }
 0x5a7   :  { %v2083_v34 = vsub.f32 %v5486_v31, %v5613_v3  ;;  %v2122_v55 = vmul.f32 1.442695, %v2082_v57 }
 0x5a8   :  { %v5618_v18 = vpop.xlane.xlu0 %1913 }
 0x5a9   :  { %v2124_v62 = vmul.f32 1.442695, %v2083_v34  ;;  %3608 = vmatpush3.bf16.msra.mxu0 %v5305_v54  ;;  %v2084_v11 = vsub.f32 %v5472_v5, %v5618_v18 }
 0x5aa   :  { %v5623_v36 = vpop.xlane.xlu1 %1916 }
 0x5ab   :  { %v2085_v14 = vsub.f32 %v5480_v26, %v5623_v36  ;;  %3752 = vpow2.f32 %v2124_v62  ;;  %v2126_v40 = vmul.f32 1.442695, %v2084_v11 }
 0x5ac   :  { %v5627_v23 = vpop.xlane.xlu0 %1919  ;;  %3754 = vpow2.f32 %v2122_v55 }
 0x5ad   :  { %v2128_v31 = vmul.f32 1.442695, %v2085_v14  ;;  %v2086_v4 = vsub.f32 %v5500_v19, %v5627_v23  ;;  %3756 = vpow2.f32 %v2126_v40 }
 0x5ae   :  { %v5631_v32 = vpop.xlane.xlu1 %1922 }
 0x5af   :  { %v2087_v54 = vsub.f32 %v5510_v28, %v5631_v32  ;;  %3758 = vpow2.f32 %v2128_v31  ;;  %v2130_v61 = vmul.f32 1.442695, %v2086_v4 }
 0x5b0   :  { %v5635_v5 = vpop.xlane.xlu0 %1925 }
 0x5b1   :  { %v2132_v26 = vmul.f32 1.442695, %v2087_v54  ;;  %v2088_v1 = vsub.f32 %v5494_v51, %v5635_v5 }
 0x5b2   :  { %v5639_v39 = vpop.xlane.xlu1 %1928 }
 0x5b3   :  { %v2089_v47 = vsub.f32 %v5504_v42, %v5639_v39  ;;  %3760 = vpow2.f32 %v2132_v26  ;;  %v2134_v10 = vmul.f32 1.442695, %v2088_v1 }
 0x5b4   :  { %v5643_v19 = vpop.xlane.xlu0 %1931  ;;  %3762 = vpow2.f32 %v2130_v61 }
 0x5b5   :  { %v2136_v20 = vmul.f32 1.442695, %v2089_v47  ;;  %v3753_v28 = vpop.eup %3752  ;;  %v2090_v46 = vsub.f32 %v5478_v30, %v5643_v19 }
 0x5b6   :  { %v5647_v60 = vpop.xlane.xlu1 %1934  ;;  %v3755_v63 = vpop.eup %3754 }
 0x5b7   :  { %v2091_v51 = vsub.f32 %v5488_v37, %v5647_v60  ;;  %3764 = vpow2.f32 %v2136_v20  ;;  %v2138_v27 = vmul.f32 1.442695, %v2090_v46  ;;  %v2206_v24 = vpack.c.bf16 %v3753_v28, %v3755_v63  ;;  %v3757_v38 = vpop.eup %3756 }
 0x5b8   :  { %v5651_v42 = vpop.xlane.xlu0 %1937  ;;  %3766 = vpow2.f32 %v2134_v10 }
 0x5b9   :  { %v2140_v53 = vmul.f32 1.442695, %v2091_v51  ;;  %v3759_v15 = vpop.eup %3758  ;;  %3593 = vmatprep.mubr.msk.bf16.mxu1 %vm1881_vm9, %v2206_v24  ;;  %v2092_v30 = vsub.f32 %v5474_v9, %v5651_v42  ;;  %3768 = vpow2.f32 %v2138_v27 }
 0x5ba   :  { %v5656_v57 = vpop.xlane.xlu1 %1940  ;;  %v2207_v34 = vpack.c.bf16 %v3759_v15, %v3757_v38 }
 0x5bb   :  { %3770 = vpow2.f32 %v2140_v53  ;;  %v2142_v37 = vmul.f32 1.442695, %v2092_v30  ;;  %v2093_v55 = vsub.f32 %v5484_v0, %v5656_v57 }
 0x5bc   :  { %v5660_v62 = vpop.xlane.xlu0 %1943  ;;  %3594 = vmatmul.mubr.msk.bf16.vlgmr.msra.gmra.mrb[76].mxu1 %vm1881_vm9, %v2207_v34 }
 0x5bd   :  { %v2094_v11 = vsub.f32 %v5502_v58, %v5660_v62  ;;  %v3761_v14 = vpop.eup %3760  ;;  %v2144_v40 = vmul.f32 1.442695, %v2093_v55  ;;  %3618 = vmatpush3.bf16.msra.mxu1 %v5340_v52  ;;  %3772 = vpow2.f32 %v2142_v37 }
 0x5be   :  { %v5666_v9 = vpop.xlane.xlu1 %1946  ;;  %v3763_v31 = vpop.eup %3762  ;;  %3619 = vmatprep.subr.bf16.mxu1 %v5331_v2 }
 0x5bf   :  { %v2146_v4 = vmul.f32 1.442695, %v2094_v11  ;;  %3774 = vpow2.f32 %v2144_v40  ;;  %v2095_v0 = vsub.f32 %v5512_v44, %v5666_v9  ;;  %v2208_v61 = vpack.c.bf16 %v3761_v14, %v3763_v31 }
 0x5c0   :  { %v5671_v54 = vpop.xlane.xlu0 %1949 }
 0x5c1   :  { %v2096_v58 = vsub.f32 %v5498_v45, %v5671_v54  ;;  %v3765_v26 = vpop.eup %3764  ;;  %v2148_v1 = vmul.f32 1.442695, %v2095_v0  ;;  %3620 = vmatpush3.bf16.msra.mxu1 %v5331_v2  ;;  %3597 = vmatprep.mubr.msk.bf16.mxu1 %vm1881_vm9, %v2208_v61  ;;  %3776 = vpow2.f32 %v2146_v4 }
 0x5c2   :  { %v5677_v52 = vpop.xlane.xlu1 %1952  ;;  %v3767_v47 = vpop.eup %3766  ;;  %3621 = vmatprep.subr.bf16.mxu1 %v5362_v56 }
 0x5c3   :  { %v2150_v10 = vmul.f32 1.442695, %v2096_v58  ;;  %3778 = vpow2.f32 %v2148_v1  ;;  %v2097_v44 = vsub.f32 %v5508_v7, %v5677_v52  ;;  %v2209_v20 = vpack.c.bf16 %v3765_v26, %v3767_v47  ;;  %v3769_v28 = vpop.eup %3768 }
 0x5c5   :  { %v5682_v45 = vpop.xlane.xlu0 %1955  ;;  %v3771_v46 = vpop.eup %3770  ;;  %v2152_v63 = vmul.f32 1.442695, %v2097_v44  ;;  %3598 = vmatmul.mubr.msk.bf16.gmra.mrb[80].mxu1 %vm1881_vm9, %v2209_v20  ;;  %3780 = vpow2.f32 %v2150_v10 }
 0x5c6   :  { %v2098_v2 = vsub.f32 %v5538_v16, %v5682_v45  ;;  %3622 = vmatpush3.bf16.msra.mxu1 %v5362_v56  ;;  %v2210_v27 = vpack.c.bf16 %v3771_v46, %v3769_v28 }
 0x5c7   :  { %v5688_v51 = vpop.xlane.xlu1 %1958  ;;  %3782 = vpow2.f32 %v2152_v63  ;;  %3623 = vmatprep.subr.bf16.mxu1 %v5357_v17  ;;  %v3773_v7 = vpop.eup %3772 }
 0x5c8   :  { %v2154_v24 = vmul.f32 1.442695, %v2098_v2  ;;  %v2099_v38 = vsub.f32 %v5544_v29, %v5688_v51  ;;  %3609 = vmatprep.mubr.msk.bf16.mxu0 %vm1881_vm9, %v2210_v27 }
 0x5c9   :  { %v5694_v53 = vpop.xlane.xlu0 %1961  ;;  %v3775_v15 = vpop.eup %3774 }
 0x5ca   :  { %v2100_v16 = vsub.f32 %v5536_v43, %v5694_v53  ;;  %v2211_v56 = vpack.c.bf16 %v3775_v15, %v3773_v7  ;;  %v2156_v30 = vmul.f32 1.442695, %v2099_v38  ;;  %3624 = vmatpush3.bf16.msra.mxu1 %v5357_v17  ;;  %3784 = vpow2.f32 %v2154_v24 }
 0x5cb   :  { %v5699_v34 = vpop.xlane.xlu1 %1964  ;;  %v3777_v55 = vpop.eup %3776 }
 0x5cc   :  { %v2158_v37 = vmul.f32 1.442695, %v2100_v16  ;;  %3786 = vpow2.f32 %v2156_v30  ;;  %v2101_v29 = vsub.f32 %v5540_v25, %v5699_v34  ;;  %3610 = vmatmul.mubr.msk.bf16.vlgmr.msra.gmra.mrb[68].mxu0 %vm1881_vm9, %v2211_v56  ;;  %v4305_v16 = vmov 32  }
 0x5cd   :  { %v5704_v11 = vpop.xlane.xlu0 %1967  ;;  %v3779_v14 = vpop.eup %3778  ;;  %3725 = vset.pattern.permute.xlu1 %v4305_v16  ;;  %3724 = vset.pattern.permute.xlu0 %v4305_v16  ;;  %v1980_v56 = vsub.f32 -inf, %v5568_v22  ;;  %v1978_v30 = vsub.f32 -inf, %v5572_v59  ;;  %v1983_v22 = vsub.f32 -inf, %v5588_v49  ;;  %v1986_v16 = vsub.f32 -inf, %v5607_v35 }
 0x5ce   :  { %v2102_v43 = vsub.f32 %v5554_v41, %v5704_v11  ;;  %v2160_v40 = vmul.f32 1.442695, %v2101_v29  ;;  %v2212_v17 = vpack.c.bf16 %v3779_v14, %v3777_v55  ;;  %3788 = vpow2.f32 %v2158_v37 }
 0x5cf   :  { %v5708_v31 = vpop.xlane.xlu1 %1970  ;;  %v3781_v0 = vpop.eup %3780  ;;  %v1981_v37 = vsub.f32 -inf, %v5576_v48  ;;  %v1979_v55 = vsub.f32 -inf, %v5580_v12  ;;  %v2014_v29 = vmul.f32 1.442695, %v1980_v56  ;;  %v2010_v14 = vmul.f32 1.442695, %v1978_v30 }
 0x5d0   :  { %v2162_v4 = vmul.f32 1.442695, %v2102_v43  ;;  %3790 = vpow2.f32 %v2160_v40  ;;  %v2103_v61 = vsub.f32 %v5560_v13, %v5708_v31  ;;  %3613 = vmatprep.mubr.msk.bf16.mxu0 %vm1881_vm9, %v2212_v17  ;;  %v1984_v17 = vsub.f32 -inf, %v5592_v6 }
 0x5d1   :  { %v5713_v25 = vpop.xlane.xlu0 %1973  ;;  %v3783_v58 = vpop.eup %3782  ;;  %v2016_v43 = vmul.f32 1.442695, %v1981_v37  ;;  %v2012_v40 = vmul.f32 1.442695, %v1979_v55  ;;  %v2020_v12 = vmul.f32 1.442695, %v1983_v22 }
 0x5d2   :  { %v2104_v26 = vsub.f32 %v5550_v50, %v5713_v25  ;;  %v2164_v41 = vmul.f32 1.442695, %v2103_v61  ;;  %v2213_v47 = vpack.c.bf16 %v3783_v58, %v3781_v0  ;;  %3792 = vpow2.f32 %v2162_v4 }
 0x5d3   :  { %v5717_v1 = vpop.xlane.xlu1 %1976  ;;  %v1982_v4 = vsub.f32 -inf, %v5584_v21  ;;  %v1985_v0 = vsub.f32 -inf, %v5596_v33  ;;  %v2022_v59 = vmul.f32 1.442695, %v1984_v17  ;;  %v1988_v55 = vsub.f32 -inf, %v5618_v18 }
 0x5d4   :  { %v2166_v10 = vmul.f32 1.442695, %v2104_v26  ;;  %3794 = vpow2.f32 %v2164_v41  ;;  %v2105_v44 = vsub.f32 %v5556_v8, %v5717_v1  ;;  %3614 = vmatmul.mubr.msk.bf16.gmra.mrb[72].mxu0 %vm1881_vm9, %v2213_v47  ;;  %v3785_v13 = vpop.eup %3784  ;;  %v2026_v22 = vmul.f32 1.442695, %v1986_v16 }
 0x5d5   :  { %v2018_v48 = vmul.f32 1.442695, %v1982_v4  ;;  %v2024_v61 = vmul.f32 1.442695, %v1985_v0  ;;  %v1989_v4 = vsub.f32 -inf, %v5623_v36  ;;  %v1992_v36 = vsub.f32 -inf, %v5635_v5 }
 0x5d6   :  { %v3787_v20 = vpop.eup %3786  ;;  %v2168_v28 = vmul.f32 1.442695, %v2105_v44  ;;  %3796 = vpow2.f32 %v2166_v10  ;;  %v1994_v5 = vsub.f32 -inf, %v5643_v19  ;;  %v1995_v19 = vsub.f32 -inf, %v5647_v60 }
 0x5d7   :  { %v2214_v46 = vpack.c.bf16 %v3787_v20, %v3785_v13  ;;  %v2032_v18 = vmul.f32 1.442695, %v1989_v4 }
 0x5d8   :  { %3798 = vpow2.f32 %v2168_v28  ;;  %v3789_v63 = vpop.eup %3788 }
 0x5d9   :  { %3625 = vmatprep.mubr.msk.bf16.mxu1 %vm1881_vm9, %v2214_v46  ;;  %3800 = vpow2.f32 %v2014_v29 }
 0x5da   :  { %v3791_v50 = vpop.eup %3790  ;;  %3802 = vpow2.f32 %v2010_v14 }
 0x5db   :  { %v2215_v2 = vpack.c.bf16 %v3791_v50, %v3789_v63  ;;  %3804 = vpow2.f32 %v2016_v43 }
 0x5dc   :  { %v3793_v27 = vpop.eup %3792  ;;  %3806 = vpow2.f32 %v2012_v40 }
 0x5dd   :  { %3626 = vmatmul.mubr.msk.bf16.vlgmr.msra.gmra.mrb[84].mxu1 %vm1881_vm9, %v2215_v2  ;;  %3808 = vpow2.f32 %v2022_v59  ;;  %v1987_v59 = vsub.f32 -inf, %v5613_v3  ;;  %v1993_v3 = vsub.f32 -inf, %v5639_v39  ;;  %v1996_v39 = vsub.f32 -inf, %v5651_v42 }
 0x5de   :  { %v3795_v24 = vpop.eup %3794  ;;  %3810 = vpow2.f32 %v2018_v48 }
 0x5df   :  { %v2216_v7 = vpack.c.bf16 %v3795_v24, %v3793_v27  ;;  %3812 = vpow2.f32 %v2024_v61  ;;  %v2030_v61 = vmul.f32 1.442695, %v1988_v55  ;;  %v2000_v55 = vsub.f32 -inf, %v5671_v54 }
 0x5e0   :  { %v3797_v38 = vpop.eup %3796  ;;  %3814 = vpow2.f32 %v2020_v12  ;;  %v2001_v54 = vsub.f32 -inf, %v5677_v52 }
 0x5e1   :  { %3629 = vmatprep.mubr.msk.bf16.mxu1 %vm1881_vm9, %v2216_v7 }
 0x5e2   :  { %v3799_v8 = vpop.eup %3798 }
 0x5e3   :  { %v2217_v15 = vpack.c.bf16 %v3799_v8, %v3797_v38  ;;  %v3801_v58 = vpop.eup %3800 }
 0x5e4   :  { %v3803_v26 = vpop.eup %3802  ;;  %v2172_v47 = vmul.f32 0.0, %v3801_v58  ;;  %v2028_v58 = vmul.f32 1.442695, %v1987_v59  ;;  %v1999_v59 = vsub.f32 -inf, %v5666_v9 }
 0x5e5   :  { %3630 = vmatmul.mubr.msk.bf16.gmra.mrb[88].mxu1 %vm1881_vm9, %v2217_v15  ;;  %v3805_v6 = vpop.eup %3804  ;;  %v2170_v10 = vmul.f32 0.0, %v3803_v26  ;;  %v1990_v26 = vsub.f32 -inf, %v5627_v23  ;;  %v2040_v23 = vmul.f32 1.442695, %v1993_v3  ;;  %v2002_v3 = vsub.f32 -inf, %v5682_v45 }
 0x5e6   :  { %v3807_v41 = vpop.eup %3806  ;;  %v2173_v13 = vmul.f32 0.0, %v3805_v6  ;;  %v3732_v6 = vld [vmem:[#allocation20] sm:$0xff]   ;;  %v2052_v9 = vmul.f32 1.442695, %v1999_v59  ;;  %v2004_v45 = vsub.f32 -inf, %v5694_v53 }
 0x5e7   :  { %v2171_v28 = vmul.f32 0.0, %v3807_v41  ;;  %v3809_v50 = vpop.eup %3808  ;;  %3633 = vmatprep.subr.bf16.mxu0 %v3732_v6 }
 0x5e8   :  { %v3811_v27 = vpop.eup %3810  ;;  %v2176_v38 = vmul.f32 0.0, %v3809_v50  ;;  %3634 = vmatpush3.bf16.msra.mxu0 %v3732_v6  ;;  %v2042_v50 = vmul.f32 1.442695, %v1994_v5 }
 0x5e9   :  { %v3813_v24 = vpop.eup %3812  ;;  %v2174_v15 = vmul.f32 0.0, %v3811_v27 }
 0x5ea   :  { %v3815_v7 = vpop.eup %3814  ;;  %v2177_v37 = vmul.f32 0.0, %v3813_v24 }
 0x5eb   :  { %v2175_v43 = vmul.f32 0.0, %v3815_v7  ;;  %v2046_v7 = vmul.f32 1.442695, %v1996_v39 }
 0x66f   :  { %v3579_v21 = vpop.f32.mrb[60].mxu0 }
 0x670   :  { %v5734_v44 = vadd.f32 %v3579_v21, %v2172_v47  ;;  %v2264_v33 = vpop.f32.mrb[61].mxu0  ;;  %v2034_v47 = vmul.f32 1.442695, %v1990_v26  ;;  %v1991_v21 = vsub.f32 -inf, %v5631_v32  ;;  %v1997_v32 = vsub.f32 -inf, %v5656_v57 }
 0x671   :  { %v5736_v49 = vadd.f32 %v2264_v33, %v2170_v10  ;;  %v3580_v20 = vpop.f32.mrb[62].mxu0  ;;  %v2038_v10 = vmul.f32 1.442695, %v1992_v36  ;;  %v3733_v33 = vld [vmem:[#allocation20 + $0x8] sm:$0xff]   ;;  %v2054_v26 = vmul.f32 1.442695, %v2000_v55 }
 0x672   :  { %3816 = vrcp.f32 %v5734_v44  ;;  %v5739_v46 = vadd.f32 %v3580_v20, %v2173_v13  ;;  %v2267_v63 = vpop.f32.mrb[63].mxu0  ;;  %v2036_v20 = vmul.f32 1.442695, %v1991_v21  ;;  %3635 = vmatprep.subr.bf16.mxu0 %v3733_v33  ;;  %v2048_v42 = vmul.f32 1.442695, %v1997_v32 }
 0x673   :  { %3818 = vrcp.f32 %v5736_v49  ;;  %v5742_v2 = vadd.f32 %v2267_v63, %v2171_v28  ;;  %3636 = vmatpush3.bf16.msra.mxu0 %v3733_v33  ;;  %v2058_v33 = vmul.f32 1.442695, %v2002_v3 }
 0x674   :  { %3820 = vrcp.f32 %v5739_v46 }
 0x675   :  { %3822 = vrcp.f32 %v5742_v2 }
 0x677   :  { %v3583_v8 = vpop.f32.mrb[64].mxu0 }
 0x678   :  { %v5746_v56 = vadd.f32 %v3583_v8, %v2176_v38  ;;  %v2280_v30 = vpop.f32.mrb[65].mxu0  ;;  %v1998_v8 = vsub.f32 -inf, %v5660_v62 }
 0x679   :  { %v5749_v29 = vadd.f32 %v2280_v30, %v2174_v15  ;;  %v3584_v14 = vpop.f32.mrb[66].mxu0 }
 0x67a   :  { %v5752_v40 = vadd.f32 %v3584_v14, %v2177_v37  ;;  %v2283_v17 = vpop.f32.mrb[67].mxu0  ;;  %3824 = vrcp.f32 %v5746_v56  ;;  %v2044_v37 = vmul.f32 1.442695, %v1995_v19  ;;  %v2050_v62 = vmul.f32 1.442695, %v1998_v8 }
 0x67b   :  { %v5755_v0 = vadd.f32 %v2283_v17, %v2175_v43  ;;  %3826 = vpow2.f32 %v2026_v22 }
 0x67c   :  { %v3817_v35 = vpop.eup %3816  ;;  %3828 = vpow2.f32 %v2030_v61 }
 0x67d   :  { %v3819_v48 = vpop.eup %3818  ;;  %2602 = vperm.xlu1 %3725, %v3817_v35   ;;  %3830 = vrcp.f32 %v5749_v29 }
 0x67e   :  { %2592 = vperm.xlu0 %3724, %v3819_v48   ;;  %v3821_v12 = vpop.eup %3820  ;;  %3832 = vpow2.f32 %v2032_v18 }
 0x67f   :  { %v3823_v41 = vpop.eup %3822  ;;  %3834 = vpow2.f32 %v2028_v58 }
 0x680   :  { %3836 = vrcp.f32 %v5755_v0 }
 0x681   :  { %2607 = vperm.xlu1 %3725, %v3821_v12   ;;  %3838 = vpow2.f32 %v2034_v47  ;;  %v2003_v47 = vsub.f32 -inf, %v5688_v51 }
 0x682   :  { %3840 = vpow2.f32 %v2038_v10 }
 0x683   :  { %3842 = vrcp.f32 %v5752_v40 }
 0x684   :  { %v3825_v13 = vpop.eup %3824  ;;  %3844 = vpow2.f32 %v2040_v23 }
 0x685   :  { %2597 = vperm.xlu1 %3725, %v3823_v41   ;;  %v3827_v28 = vpop.eup %3826  ;;  %3846 = vpow2.f32 %v2036_v20  ;;  %v2056_v41 = vmul.f32 1.442695, %v2001_v54 }
 0x686   :  { %v3829_v63 = vpop.eup %3828  ;;  %3848 = vpow2.f32 %v2042_v50  ;;  %v2178_v16 = vmul.f32 0.0, %v3827_v28 }
 0x687   :  { %v3831_v27 = vpop.eup %3830  ;;  %v2180_v15 = vmul.f32 0.0, %v3829_v63  ;;  %3850 = vpow2.f32 %v2046_v7  ;;  %v2060_v63 = vmul.f32 1.442695, %v2003_v47 }
 0x688   :  { %v3833_v24 = vpop.eup %3832  ;;  %3852 = vpow2.f32 %v2048_v42 }
 0x689   :  { %2622 = vperm.xlu1 %3725, %v3825_v13   ;;  %v3835_v38 = vpop.eup %3834  ;;  %v2181_v60 = vmul.f32 0.0, %v3833_v24  ;;  %v2005_v24 = vsub.f32 -inf, %v5699_v34 }
 0x68a   :  { %v3837_v30 = vpop.eup %3836  ;;  %v2179_v35 = vmul.f32 0.0, %v3835_v38  ;;  %v2062_v38 = vmul.f32 1.442695, %v2004_v45 }
 0x68b   :  { %v3839_v22 = vpop.eup %3838  ;;  %v2064_v34 = vmul.f32 1.442695, %v2005_v24 }
 0x68c   :  { %v3841_v18 = vpop.eup %3840  ;;  %v2182_v10 = vmul.f32 0.0, %v3839_v22 }
 0x68d   :  { %2612 = vperm.xlu1 %3725, %v3831_v27   ;;  %v3843_v58 = vpop.eup %3842  ;;  %v2184_v52 = vmul.f32 0.0, %v3841_v18 }
 0x68e   :  { %v3845_v36 = vpop.eup %3844 }
 0x68f   :  { %v3595_v57 = vpop.f32.mrb[76].mxu1  ;;  %v3847_v6 = vpop.eup %3846  ;;  %v2185_v23 = vmul.f32 0.0, %v3845_v36 }
 0x690   :  { %v5772_v14 = vadd.f32 %v3595_v57, %v2180_v15  ;;  %v2341_v43 = vpop.f32.mrb[77].mxu1  ;;  %v3849_v5 = vpop.eup %3848  ;;  %v2183_v28 = vmul.f32 0.0, %v3847_v6  ;;  %v2006_v57 = vsub.f32 -inf, %v5704_v11 }
 0x691   :  { %v5774_v17 = vadd.f32 %v2341_v43, %v2178_v16  ;;  %2617 = vperm.xlu1 %3725, %v3837_v30   ;;  %v3596_v4 = vpop.f32.mrb[78].mxu1  ;;  %v3851_v32 = vpop.eup %3850  ;;  %v2186_v30 = vmul.f32 0.0, %v3849_v5 }
 0x692   :  { %v5777_v48 = vadd.f32 %v3596_v4, %v2181_v60  ;;  %v2344_v61 = vpop.f32.mrb[79].mxu1  ;;  %v3853_v19 = vpop.eup %3852  ;;  %v2188_v8 = vmul.f32 0.0, %v3851_v32 }
 0x693   :  { %3854 = vrcp.f32 %v5774_v17  ;;  %v5781_v12 = vadd.f32 %v2344_v61, %v2179_v35  ;;  %v2189_v60 = vmul.f32 0.0, %v3853_v19  ;;  %v2007_v35 = vsub.f32 -inf, %v5708_v31 }
 0x694   :  { %3856 = vpow2.f32 %v2044_v37  ;;  %v2008_v31 = vsub.f32 -inf, %v5713_v25 }
 0x695   :  { %3858 = vrcp.f32 %v5781_v12  ;;  %2627 = vperm.xlu1 %3725, %v3843_v58   ;;  %v2066_v58 = vmul.f32 1.442695, %v2006_v57 }
 0x696   :  { %3860 = vpow2.f32 %v2050_v62  ;;  %v2070_v5 = vmul.f32 1.442695, %v2008_v31 }
 0x697   :  { %3862 = vrcp.f32 %v5772_v14 }
 0x698   :  { %3864 = vpow2.f32 %v2054_v26  ;;  %v3599_v21 = vpop.f32.mrb[80].mxu1 }
 0x699   :  { %3866 = vrcp.f32 %v5777_v48  ;;  %v5789_v13 = vadd.f32 %v3599_v21, %v2184_v52  ;;  %v2357_v20 = vpop.f32.mrb[81].mxu1  ;;  %v2009_v52 = vsub.f32 -inf, %v5717_v1 }
 0x69a   :  { %3868 = vpow2.f32 %v2052_v9  ;;  %v5791_v39 = vadd.f32 %v2357_v20, %v2182_v10  ;;  %v3600_v51 = vpop.f32.mrb[82].mxu1  ;;  %v2068_v9 = vmul.f32 1.442695, %v2007_v35 }
 0x69b   :  { %3870 = vpow2.f32 %v2056_v41  ;;  %v5793_v50 = vadd.f32 %v3600_v51, %v2185_v23  ;;  %v2360_v27 = vpop.f32.mrb[83].mxu1  ;;  %v2072_v24 = vmul.f32 1.442695, %v2009_v52 }
 0x69c   :  { %3872 = vrcp.f32 %v5791_v39  ;;  %v5797_v53 = vadd.f32 %v2360_v27, %v2183_v28 }
 0x69d   :  { %v3855_v7 = vpop.eup %3854  ;;  %3874 = vpow2.f32 %v2058_v33 }
 0x69e   :  { %v3857_v42 = vpop.eup %3856  ;;  %3876 = vrcp.f32 %v5797_v53  ;;  %2632 = vperm.xlu1 %3725, %v3855_v7  }
 0x69f   :  { %v3859_v15 = vpop.eup %3858  ;;  %3878 = vpow2.f32 %v2060_v63  ;;  %v3611_v16 = vpop.f32.mrb[68].mxu0  ;;  %v2187_v59 = vmul.f32 0.0, %v3857_v42 }
 0x6a0   :  { %v3861_v37 = vpop.eup %3860  ;;  %3880 = vrcp.f32 %v5789_v13  ;;  %v5802_v55 = vadd.f32 %v3611_v16, %v2188_v8  ;;  %v2418_v43 = vpop.f32.mrb[69].mxu0  ;;  %2637 = vperm.xlu0 %3724, %v3859_v15  }
 0x6a1   :  { %v3863_v4 = vpop.eup %3862  ;;  %3882 = vpow2.f32 %v2062_v38  ;;  %v5805_v22 = vadd.f32 %v2418_v43, %v2186_v30  ;;  %v3612_v62 = vpop.f32.mrb[70].mxu0  ;;  %v2190_v10 = vmul.f32 0.0, %v3861_v37 }
 0x6a2   :  { %v3865_v11 = vpop.eup %3864  ;;  %3884 = vrcp.f32 %v5793_v50  ;;  %v5808_v61 = vadd.f32 %v3612_v62, %v2189_v60  ;;  %v2421_v18 = vpop.f32.mrb[71].mxu0  ;;  %2642 = vperm.xlu1 %3725, %v3863_v4  }
 0x6a3   :  { %v3867_v54 = vpop.eup %3866  ;;  %3886 = vrcp.f32 %v5805_v22  ;;  %v5811_v26 = vadd.f32 %v2421_v18, %v2187_v59  ;;  %v2192_v41 = vmul.f32 0.0, %v3865_v11 }
 0x6a4   :  { %v3869_v36 = vpop.eup %3868  ;;  %3888 = vpow2.f32 %v2064_v34  ;;  %2647 = vperm.xlu0 %3724, %v3867_v54  }
 0x6a5   :  { %v3871_v3 = vpop.eup %3870  ;;  %3890 = vrcp.f32 %v5811_v26  ;;  %v2191_v32 = vmul.f32 0.0, %v3869_v36 }
 0x6a6   :  { %v3873_v6 = vpop.eup %3872  ;;  %3892 = vpow2.f32 %v2066_v58  ;;  %v2193_v45 = vmul.f32 0.0, %v3871_v3 }
 0x6a7   :  { %v3875_v47 = vpop.eup %3874  ;;  %2652 = vperm.xlu1 %3725, %v3873_v6   ;;  %v3615_v21 = vpop.f32.mrb[72].mxu0  ;;  %3894 = vrcp.f32 %v5802_v55 }
 0x6a8   :  { %v3877_v23 = vpop.eup %3876  ;;  %v5817_v33 = vadd.f32 %v3615_v21, %v2192_v41  ;;  %v2434_v25 = vpop.f32.mrb[73].mxu0  ;;  %3896 = vpow2.f32 %v2068_v9  ;;  %v2194_v30 = vmul.f32 0.0, %v3875_v47 }
 0x6a9   :  { %v3879_v20 = vpop.eup %3878  ;;  %v5819_v51 = vadd.f32 %v2434_v25, %v2190_v10  ;;  %2657 = vperm.xlu0 %3724, %v3877_v23   ;;  %v3616_v28 = vpop.f32.mrb[74].mxu0  ;;  %3898 = vrcp.f32 %v5808_v61 }
 0x6aa   :  { %v3881_v63 = vpop.eup %3880  ;;  %v5822_v1 = vadd.f32 %v3616_v28, %v2193_v45  ;;  %v2437_v27 = vpop.f32.mrb[75].mxu0  ;;  %v2195_v59 = vmul.f32 0.0, %v3879_v20 }
 0x6ab   :  { %v3883_v19 = vpop.eup %3882  ;;  %3900 = vrcp.f32 %v5819_v51  ;;  %v5825_v7 = vadd.f32 %v2437_v27, %v2191_v32  ;;  %2662 = vperm.xlu1 %3725, %v3881_v63  }
 0x6ac   :  { %v3885_v38 = vpop.eup %3884  ;;  %3902 = vpow2.f32 %v2070_v5  ;;  %v2196_v57 = vmul.f32 0.0, %v3883_v19 }
 0x6ad   :  { %v3887_v42 = vpop.eup %3886  ;;  %3904 = vrcp.f32 %v5825_v7  ;;  %2667 = vperm.xlu0 %3724, %v3885_v38  }
 0x6ae   :  { %v3889_v8 = vpop.eup %3888  ;;  %3906 = vpow2.f32 %v2072_v24 }
 0x6af   :  { %v3891_v15 = vpop.eup %3890  ;;  %2672 = vperm.xlu1 %3725, %v3887_v42   ;;  %3908 = vrcp.f32 %v5817_v33  ;;  %v2197_v60 = vmul.f32 0.0, %v3889_v8 }
 0x6b0   :  { %v3627_v16 = vpop.f32.mrb[84].mxu1  ;;  %v3893_v37 = vpop.eup %3892  ;;  %3910 = vrcp.f32 %v5822_v1 }
 0x6b1   :  { %v5829_v34 = vadd.f32 %v3627_v16, %v2196_v57  ;;  %2677 = vperm.xlu0 %3724, %v3891_v15   ;;  %v2495_v43 = vpop.f32.mrb[85].mxu1  ;;  %v3895_v4 = vpop.eup %3894  ;;  %v2198_v41 = vmul.f32 0.0, %v3893_v37 }
 0x6b2   :  { %v5832_v35 = vadd.f32 %v2495_v43, %v2194_v30  ;;  %v3628_v62 = vpop.f32.mrb[86].mxu1  ;;  %v3897_v11 = vpop.eup %3896 }
 0x6b3   :  { %v5834_v18 = vadd.f32 %v3628_v62, %v2197_v60  ;;  %v2498_v54 = vpop.f32.mrb[87].mxu1  ;;  %2682 = vperm.xlu1 %3725, %v3895_v4   ;;  %v3899_v58 = vpop.eup %3898  ;;  %v2199_v25 = vmul.f32 0.0, %v3897_v11 }
 0x6b4   :  { %3912 = vrcp.f32 %v5832_v35  ;;  %v5837_v36 = vadd.f32 %v2498_v54, %v2195_v59 }
 0x6b5   :  { %v3901_v31 = vpop.eup %3900  ;;  %2687 = vperm.xlu0 %3724, %v3899_v58  }
 0x6b6   :  { %v3903_v3 = vpop.eup %3902  ;;  %3914 = vrcp.f32 %v5837_v36 }
 0x6b7   :  { %v3905_v9 = vpop.eup %3904  ;;  %2692 = vperm.xlu1 %3725, %v3901_v31   ;;  %3916 = vrcp.f32 %v5829_v34  ;;  %v2200_v10 = vmul.f32 0.0, %v3903_v3 }
 0x6b8   :  { %v3631_v6 = vpop.f32.mrb[88].mxu1  ;;  %v3907_v47 = vpop.eup %3906  ;;  %3918 = vrcp.f32 %v5834_v18 }
 0x6b9   :  { %2697 = vperm.xlu0 %3724, %v3905_v9   ;;  %v2511_v52 = vpop.f32.mrb[89].mxu1  ;;  %v3909_v21 = vpop.eup %3908  ;;  %v5844_v28 = vadd.f32 %v3631_v6, %v2200_v10  ;;  %v2201_v32 = vmul.f32 0.0, %v3907_v47 }
 0x6ba   :  { %v5842_v23 = vadd.f32 %v2511_v52, %v2198_v41  ;;  %v3632_v5 = vpop.f32.mrb[90].mxu1  ;;  %v3911_v20 = vpop.eup %3910 }
 0x6bb   :  { %2702 = vperm.xlu1 %3725, %v3909_v21   ;;  %v2514_v45 = vpop.f32.mrb[91].mxu1  ;;  %v5849_v19 = vadd.f32 %v3632_v5, %v2201_v32 }
 0x6bc   :  { %3920 = vrcp.f32 %v5842_v23  ;;  %v5847_v63 = vadd.f32 %v2514_v45, %v2199_v25 }
 0x6bd   :  { %2707 = vperm.xlu0 %3724, %v3911_v20  }
 0x6be   :  { %v3913_v27 = vpop.eup %3912  ;;  %3922 = vrcp.f32 %v5847_v63 }
 0x6bf   :  { %2712 = vperm.xlu1 %3725, %v3913_v27   ;;  %3924 = vrcp.f32 %v5844_v28 }
 0x6c0   :  { %v3915_v24 = vpop.eup %3914  ;;  %3926 = vrcp.f32 %v5849_v19 }
 0x6c1   :  { %2717 = vperm.xlu0 %3724, %v3915_v24   ;;  %v3917_v38 = vpop.eup %3916 }
 0x6c2   :  { %v3919_v42 = vpop.eup %3918 }
 0x6c3   :  { %2722 = vperm.xlu1 %3725, %v3917_v38  }
 0x6c5   :  { %2727 = vperm.xlu0 %3724, %v3919_v42  }
 0x6c6   :  { %v3921_v8 = vpop.eup %3920 }
 0x6c7   :  { %2732 = vperm.xlu1 %3725, %v3921_v8  }
 0x6c8   :  { %v3923_v15 = vpop.eup %3922 }
 0x6c9   :  { %2737 = vperm.xlu0 %3724, %v3923_v15   ;;  %v3925_v57 = vpop.eup %3924 }
 0x6ca   :  { %v3927_v16 = vpop.eup %3926 }
 0x6cb   :  { %2742 = vperm.xlu1 %3725, %v3925_v57  }
 0x6cd   :  { %2747 = vperm.xlu0 %3724, %v3927_v16  }
 0x6fc   :  { %v2603_v30 = vpop.permute.xlu1 %2602 }
 0x6fd   :  { %v2593_v43 = vpop.permute.xlu0 %2592  ;;  %v2752_v11 = vmul.f32 %v2603_v30, %v5734_v44 }
 0x6fe   :  { %v2750_v62 = vmul.f32 %v2593_v43, %v5736_v49 }
 0x700   :  { %v2608_v37 = vpop.permute.xlu1 %2607 }
 0x701   :  { %v2753_v60 = vmul.f32 %v2608_v37, %v5739_v46 }
 0x703   :  { %v2783_v58 = vpack.c.bf16 %v2753_v60, %v2752_v11 }
 0x704   :  { %v2598_v4 = vpop.permute.xlu1 %2597 }
 0x705   :  { %v2751_v59 = vmul.f32 %v2598_v4, %v5742_v2 }
 0x707   :  { %v2782_v54 = vpack.c.bf16 %v2751_v59, %v2750_v62 }
 0x708   :  { %v2623_v31 = vpop.permute.xlu1 %2622 }
 0x709   :  { %3637 = vmatprep.mubr.msk.bf16.mxu0 %vm242_vm1, %v2782_v54  ;;  %v2756_v49 = vmul.f32 %v2623_v31, %v5746_v56 }
 0x70a   :  { %3638 = vmatmul.mubr.msk.bf16.vlgmr.msra.gmra.mrb[76].mxu0 %vm242_vm1, %v2783_v58 }
 0x70c   :  { %v2613_v3 = vpop.permute.xlu1 %2612 }
 0x70d   :  { %v2754_v6 = vmul.f32 %v2613_v3, %v5749_v29 }
 0x710   :  { %v2618_v9 = vpop.permute.xlu1 %2617 }
 0x711   :  { %v2755_v46 = vmul.f32 %v2618_v9, %v5755_v0 }
 0x713   :  { %v2784_v41 = vpack.c.bf16 %v2755_v46, %v2754_v6 }
 0x714   :  { %v2628_v47 = vpop.permute.xlu1 %2627 }
 0x715   :  { %v2757_v2 = vmul.f32 %v2628_v47, %v5752_v40  ;;  %3641 = vmatprep.mubr.msk.bf16.mxu0 %vm242_vm1, %v2784_v41 }
 0x717   :  { %v2785_v44 = vpack.c.bf16 %v2757_v2, %v2756_v49 }
 0x719   :  { %3642 = vmatmul.mubr.msk.bf16.gmra.mrb[80].mxu0 %vm242_vm1, %v2785_v44 }
 0x71d   :  { %v2633_v52 = vpop.permute.xlu1 %2632 }
 0x71e   :  { %v2758_v10 = vmul.f32 %v2633_v52, %v5774_v17  ;;  %v5902_v52 = vld [vmem:[#allocation22] ss:$0 sm:$0xff] }
 0x71f   :  { %v2638_v21 = vpop.permute.xlu0 %2637 }
 0x720   :  { %v2759_v5 = vmul.f32 %v2638_v21, %v5781_v12 }
 0x721   :  { %v2643_v29 = vpop.permute.xlu1 %2642 }
 0x722   :  { %v2786_v25 = vpack.c.bf16 %v2759_v5, %v2758_v10  ;;  %v2760_v45 = vmul.f32 %v2643_v29, %v5772_v14  ;;  %v3928_v29 = vld [vmem:[#allocation2 + $0x10] sm:$0xff] }
 0x723   :  { %v2648_v0 = vpop.permute.xlu0 %2647 }
 0x724   :  { %v2761_v56 = vmul.f32 %v2648_v0, %v5777_v48  ;;  %3645 = vmatprep.mubr.msk.bf16.mxu0 %vm242_vm1, %v2786_v25 }
 0x726   :  { %v2787_v40 = vpack.c.bf16 %v2761_v56, %v2760_v45  ;;  %v2653_v20 = vpop.permute.xlu1 %2652 }
 0x727   :  { %v2762_v27 = vmul.f32 %v2653_v20, %v5791_v39 }
 0x728   :  { %v2658_v32 = vpop.permute.xlu0 %2657  ;;  %3646 = vmatmul.mubr.msk.bf16.gmra.mrb[84].mxu0 %vm242_vm1, %v2787_v40  ;;  %v3930_v40 = vld [vmem:[#allocation2 + $0x18] sm:$0xff] }
 0x729   :  { %v2763_v17 = vmul.f32 %v2658_v32, %v5797_v53  ;;  %v3931_v32 = vld [vmem:[#allocation2 + $0x8] sm:$0xff] }
 0x72a   :  { %v2663_v24 = vpop.permute.xlu1 %2662 }
 0x72b   :  { %v2788_v12 = vpack.c.bf16 %v2763_v17, %v2762_v27  ;;  %v2764_v42 = vmul.f32 %v2663_v24, %v5789_v13 }
 0x72c   :  { %v2668_v38 = vpop.permute.xlu0 %2667 }
 0x72d   :  { %v2765_v14 = vmul.f32 %v2668_v38, %v5793_v50  ;;  %3649 = vmatprep.mubr.msk.bf16.mxu0 %vm242_vm1, %v2788_v12 }
 0x72e   :  { %v2673_v48 = vpop.permute.xlu1 %2672 }
 0x72f   :  { %v2789_v8 = vpack.c.bf16 %v2765_v14, %v2764_v42  ;;  %v2766_v57 = vmul.f32 %v2673_v48, %v5805_v22  ;;  %v3932_v14 = vld [vmem:[#allocation2 + $0x30] sm:$0xff] }
 0x730   :  { %v2678_v15 = vpop.permute.xlu0 %2677 }
 0x731   :  { %v2767_v16 = vmul.f32 %v2678_v15, %v5811_v26  ;;  %3650 = vmatmul.mubr.msk.bf16.gmra.mrb[88].mxu0 %vm242_vm1, %v2789_v8 }
 0x732   :  { %v2683_v39 = vpop.permute.xlu1 %2682 }
 0x733   :  { %v2790_v53 = vpack.c.bf16 %v2767_v16, %v2766_v57  ;;  %v2768_v37 = vmul.f32 %v2683_v39, %v5802_v55  ;;  %v3933_v57 = vld [vmem:[#allocation2 + $0x20] sm:$0xff] }
 0x734   :  { %v2688_v30 = vpop.permute.xlu0 %2687 }
 0x735   :  { %v2769_v13 = vmul.f32 %v2688_v30, %v5808_v61  ;;  %3653 = vmatprep.mubr.msk.bf16.mxu0 %vm242_vm1, %v2790_v53  ;;  %v3934_v53 = vld [vmem:[#allocation2 + $0x38] sm:$0xff] }
 0x736   :  { %v2693_v50 = vpop.permute.xlu1 %2692 }
 0x737   :  { %v2791_v43 = vpack.c.bf16 %v2769_v13, %v2768_v37  ;;  %v2770_v4 = vmul.f32 %v2693_v50, %v5819_v51  ;;  %v3935_v37 = vld [vmem:[#allocation2 + $0x28] sm:$0xff] }
 0x738   :  { %v2698_v60 = vpop.permute.xlu0 %2697 }
 0x739   :  { %v2771_v22 = vmul.f32 %v2698_v60, %v5825_v7  ;;  %3654 = vmatmul.mubr.msk.bf16.gmra.mrb[92].mxu0 %vm242_vm1, %v2791_v43 }
 0x73a   :  { %v2703_v26 = vpop.permute.xlu1 %2702 }
 0x73b   :  { %v2792_v62 = vpack.c.bf16 %v2771_v22, %v2770_v4  ;;  %v2772_v11 = vmul.f32 %v2703_v26, %v5817_v33  ;;  %v3936_v26 = vld [vmem:[#allocation2 + $0x50] sm:$0xff] }
 0x73c   :  { %v2708_v59 = vpop.permute.xlu0 %2707 }
 0x73d   :  { %v2773_v55 = vmul.f32 %v2708_v59, %v5822_v1  ;;  %3657 = vmatprep.mubr.msk.bf16.mxu0 %vm242_vm1, %v2792_v62 }
 0x73e   :  { %v2713_v61 = vpop.permute.xlu1 %2712 }
 0x73f   :  { %v2793_v54 = vpack.c.bf16 %v2773_v55, %v2772_v11  ;;  %v2774_v31 = vmul.f32 %v2713_v61, %v5832_v35  ;;  %v3937_v55 = vld [vmem:[#allocation2 + $0x40] sm:$0xff] }
 0x740   :  { %v2718_v58 = vpop.permute.xlu0 %2717 }
 0x741   :  { %v2775_v51 = vmul.f32 %v2718_v58, %v5837_v36  ;;  %3658 = vmatmul.mubr.msk.bf16.gmra.mrb[96].mxu0 %vm242_vm1, %v2793_v54  ;;  %v3938_v58 = vld [vmem:[#allocation2 + $0x58] sm:$0xff] }
 0x742   :  { %v2723_v7 = vpop.permute.xlu1 %2722 }
 0x743   :  { %v2794_v3 = vpack.c.bf16 %v2775_v51, %v2774_v31  ;;  %v2776_v6 = vmul.f32 %v2723_v7, %v5829_v34  ;;  %v3939_v51 = vld [vmem:[#allocation2 + $0x48] sm:$0xff] }
 0x744   :  { %v2728_v9 = vpop.permute.xlu0 %2727 }
 0x745   :  { %v2777_v33 = vmul.f32 %v2728_v9, %v5834_v18  ;;  %3661 = vmatprep.mubr.msk.bf16.mxu0 %vm242_vm1, %v2794_v3 }
 0x746   :  { %v2733_v1 = vpop.permute.xlu1 %2732 }
 0x747   :  { %v2795_v46 = vpack.c.bf16 %v2777_v33, %v2776_v6  ;;  %v2778_v47 = vmul.f32 %v2733_v1, %v5842_v23 }
 0x748   :  { %v2738_v41 = vpop.permute.xlu0 %2737 }
 0x749   :  { %v2779_v35 = vmul.f32 %v2738_v41, %v5847_v63  ;;  %3662 = vmatmul.mubr.msk.bf16.gmra.mrb[100].mxu0 %vm242_vm1, %v2795_v46  ;;  %v3940_v46 = vld [vmem:[#allocation2 + $0x70] sm:$0xff] }
 0x74a   :  { %v2743_v36 = vpop.permute.xlu1 %2742 }
 0x74b   :  { %v2796_v49 = vpack.c.bf16 %v2779_v35, %v2778_v47  ;;  %v2780_v44 = vmul.f32 %v2743_v36, %v5844_v28  ;;  %v3941_v36 = vld [vmem:[#allocation2 + $0x60] sm:$0xff] }
 0x74c   :  { %v2748_v2 = vpop.permute.xlu0 %2747 }
 0x74d   :  { %v2781_v34 = vmul.f32 %v2748_v2, %v5849_v19  ;;  %3665 = vmatprep.mubr.msk.bf16.mxu0 %vm242_vm1, %v2796_v49  ;;  %v3929_v19 = vld [vmem:[#allocation2] sm:$0xff] }
 0x74f   :  { %v2797_v18 = vpack.c.bf16 %v2781_v34, %v2780_v44  ;;  %v3942_v44 = vld [vmem:[#allocation2 + $0x78] sm:$0xff] }
 0x751   :  { %3666 = vmatmul.mubr.msk.bf16.gmra.mrb[104].mxu0 %vm242_vm1, %v2797_v18  ;;  %v3943_v18 = vld [vmem:[#allocation2 + $0x68] sm:$0xff] }
 0x7dd   :  { %v3639_v21 = vpop.f32.mrb[76].mxu0 }
 0x7de   :  { %v2912_v23 = vadd.f32 %v3639_v21, %v5902_v52  ;;  %v2903_v63 = vpop.f32.mrb[77].mxu0 }
 0x7df   :  { %v2904_v10 = vadd.f32 %v5902_v52, %v2903_v63  ;;  %v3640_v5 = vpop.f32.mrb[78].mxu0 }
 0x7e0   :  { %v3032_v25 = vadd.f32 %v3928_v29, %v2912_v23  ;;  %v2915_v28 = vadd.f32 %v3640_v5, %v5902_v52  ;;  %v2906_v0 = vpop.f32.mrb[79].mxu0 }
 0x7e1   :  { %v3030_v45 = vadd.f32 %v3929_v19, %v2904_v10  ;;  %v2907_v56 = vadd.f32 %v5902_v52, %v2906_v0 }
 0x7e2   :  { %3064 = vst.msk [vmem:[#allocation23 + $0x10] sm:$0xff] %vm242_vm1, %v3032_v25  ;;  %v3033_v20 = vadd.f32 %v3930_v40, %v2915_v28  ;;  %v3944_v25 = vld [vmem:[#allocation2 + $0x90] sm:$0xff] }
 0x7e3   :  { %3062 = vst.msk [vmem:[#allocation23] sm:$0xff] %vm242_vm1, %v3030_v45  ;;  %v3031_v27 = vadd.f32 %v3931_v32, %v2907_v56  ;;  %v3945_v45 = vld [vmem:[#allocation2 + $0x80] sm:$0xff] }
 0x7e4   :  { %3065 = vst.msk [vmem:[#allocation23 + $0x18] sm:$0xff] %vm242_vm1, %v3033_v20  ;;  %v3946_v20 = vld [vmem:[#allocation2 + $0x98] sm:$0xff] }
 0x7e5   :  { %3063 = vst.msk [vmem:[#allocation23 + $0x8] sm:$0xff] %vm242_vm1, %v3031_v27  ;;  %v3947_v27 = vld [vmem:[#allocation2 + $0x88] sm:$0xff] }
 0x7ec   :  { %v3643_v17 = vpop.f32.mrb[80].mxu0 }
 0x7ed   :  { %v2928_v24 = vadd.f32 %v3643_v17, %v5902_v52  ;;  %v2919_v12 = vpop.f32.mrb[81].mxu0 }
 0x7ee   :  { %v2920_v38 = vadd.f32 %v5902_v52, %v2919_v12  ;;  %v3644_v42 = vpop.f32.mrb[82].mxu0 }
 0x7ef   :  { %v3036_v48 = vadd.f32 %v3932_v14, %v2928_v24  ;;  %v2931_v8 = vadd.f32 %v3644_v42, %v5902_v52  ;;  %v2922_v15 = vpop.f32.mrb[83].mxu0 }
 0x7f0   :  { %v3034_v16 = vadd.f32 %v3933_v57, %v2920_v38  ;;  %v2923_v39 = vadd.f32 %v5902_v52, %v2922_v15 }
 0x7f1   :  { %3068 = vst.msk [vmem:[#allocation23 + $0x30] sm:$0xff] %vm242_vm1, %v3036_v48  ;;  %v3037_v30 = vadd.f32 %v3934_v53, %v2931_v8  ;;  %v3948_v48 = vld [vmem:[#allocation2 + $0xb0] sm:$0xff] }
 0x7f2   :  { %3066 = vst.msk [vmem:[#allocation23 + $0x20] sm:$0xff] %vm242_vm1, %v3034_v16  ;;  %v3035_v13 = vadd.f32 %v3935_v37, %v2923_v39  ;;  %v3949_v16 = vld [vmem:[#allocation2 + $0xa0] sm:$0xff] }
 0x7f3   :  { %3069 = vst.msk [vmem:[#allocation23 + $0x38] sm:$0xff] %vm242_vm1, %v3037_v30  ;;  %v3950_v30 = vld [vmem:[#allocation2 + $0xb8] sm:$0xff] }
 0x7f4   :  { %3067 = vst.msk [vmem:[#allocation23 + $0x28] sm:$0xff] %vm242_vm1, %v3035_v13  ;;  %v3951_v13 = vld [vmem:[#allocation2 + $0xa8] sm:$0xff] }
 0x7fb   :  { %v3647_v50 = vpop.f32.mrb[84].mxu0 }
 0x7fc   :  { %v2944_v43 = vadd.f32 %v3647_v50, %v5902_v52  ;;  %v2935_v60 = vpop.f32.mrb[85].mxu0 }
 0x7fd   :  { %v2936_v4 = vadd.f32 %v5902_v52, %v2935_v60  ;;  %v3648_v22 = vpop.f32.mrb[86].mxu0 }
 0x7fe   :  { %v3040_v62 = vadd.f32 %v3936_v26, %v2944_v43  ;;  %v2947_v59 = vadd.f32 %v3648_v22, %v5902_v52  ;;  %v2938_v11 = vpop.f32.mrb[87].mxu0 }
 0x7ff   :  { %v3038_v61 = vadd.f32 %v3937_v55, %v2936_v4  ;;  %v2939_v54 = vadd.f32 %v5902_v52, %v2938_v11 }
 0x800   :  { %3072 = vst.msk [vmem:[#allocation23 + $0x50] sm:$0xff] %vm242_vm1, %v3040_v62  ;;  %v3041_v31 = vadd.f32 %v3938_v58, %v2947_v59  ;;  %v3952_v62 = vld [vmem:[#allocation2 + $0xd0] sm:$0xff] }
 0x801   :  { %3070 = vst.msk [vmem:[#allocation23 + $0x40] sm:$0xff] %vm242_vm1, %v3038_v61  ;;  %v3039_v7 = vadd.f32 %v3939_v51, %v2939_v54  ;;  %v3953_v61 = vld [vmem:[#allocation2 + $0xc0] sm:$0xff] }
 0x802   :  { %3073 = vst.msk [vmem:[#allocation23 + $0x58] sm:$0xff] %vm242_vm1, %v3041_v31  ;;  %v3954_v31 = vld [vmem:[#allocation2 + $0xd8] sm:$0xff] }
 0x803   :  { %3071 = vst.msk [vmem:[#allocation23 + $0x48] sm:$0xff] %vm242_vm1, %v3039_v7  ;;  %v3955_v7 = vld [vmem:[#allocation2 + $0xc8] sm:$0xff] }
 0x804   :  { %v3651_v3 = vpop.f32.mrb[88].mxu0 }
 0x805   :  { %v2960_v9 = vadd.f32 %v3651_v3, %v5902_v52  ;;  %v2951_v6 = vpop.f32.mrb[89].mxu0 }
 0x806   :  { %v2952_v33 = vadd.f32 %v5902_v52, %v2951_v6  ;;  %v3652_v1 = vpop.f32.mrb[90].mxu0 }
 0x807   :  { %v3044_v41 = vadd.f32 %v3940_v46, %v2960_v9  ;;  %v2963_v47 = vadd.f32 %v3652_v1, %v5902_v52  ;;  %v2954_v35 = vpop.f32.mrb[91].mxu0 }
 0x808   :  { %v3042_v49 = vadd.f32 %v3941_v36, %v2952_v33  ;;  %v2955_v2 = vadd.f32 %v5902_v52, %v2954_v35 }
 0x809   :  { %3076 = vst.msk [vmem:[#allocation23 + $0x70] sm:$0xff] %vm242_vm1, %v3044_v41  ;;  %v3045_v34 = vadd.f32 %v3942_v44, %v2963_v47  ;;  %v3956_v41 = vld [vmem:[#allocation2 + $0xf0] sm:$0xff] }
 0x80a   :  { %3074 = vst.msk [vmem:[#allocation23 + $0x60] sm:$0xff] %vm242_vm1, %v3042_v49  ;;  %v3043_v21 = vadd.f32 %v3943_v18, %v2955_v2  ;;  %v3957_v49 = vld [vmem:[#allocation2 + $0xe0] sm:$0xff] }
 0x80b   :  { %3077 = vst.msk [vmem:[#allocation23 + $0x78] sm:$0xff] %vm242_vm1, %v3045_v34  ;;  %v3958_v34 = vld [vmem:[#allocation2 + $0xf8] sm:$0xff] }
 0x80c   :  { %3075 = vst.msk [vmem:[#allocation23 + $0x68] sm:$0xff] %vm242_vm1, %v3043_v21  ;;  %v3655_v23 = vpop.f32.mrb[92].mxu0  ;;  %v3959_v21 = vld [vmem:[#allocation2 + $0xe8] sm:$0xff] }
 0x80d   :  { %v2976_v63 = vadd.f32 %v3655_v23, %v5902_v52  ;;  %v2967_v10 = vpop.f32.mrb[93].mxu0 }
 0x80e   :  { %v2968_v5 = vadd.f32 %v5902_v52, %v2967_v10  ;;  %v3656_v29 = vpop.f32.mrb[94].mxu0 }
 0x80f   :  { %v3048_v28 = vadd.f32 %v3944_v25, %v2976_v63  ;;  %v2979_v0 = vadd.f32 %v3656_v29, %v5902_v52  ;;  %v2970_v19 = vpop.f32.mrb[95].mxu0 }
 0x810   :  { %v3046_v56 = vadd.f32 %v3945_v45, %v2968_v5  ;;  %v2971_v40 = vadd.f32 %v5902_v52, %v2970_v19 }
 0x811   :  { %3080 = vst.msk [vmem:[#allocation23 + $0x90] sm:$0xff] %vm242_vm1, %v3048_v28  ;;  %v3049_v32 = vadd.f32 %v3946_v20, %v2979_v0 }
 0x812   :  { %3078 = vst.msk [vmem:[#allocation23 + $0x80] sm:$0xff] %vm242_vm1, %v3046_v56  ;;  %v3047_v17 = vadd.f32 %v3947_v27, %v2971_v40 }
 0x813   :  { %3081 = vst.msk [vmem:[#allocation23 + $0x98] sm:$0xff] %vm242_vm1, %v3049_v32 }
 0x814   :  { %3079 = vst.msk [vmem:[#allocation23 + $0x88] sm:$0xff] %vm242_vm1, %v3047_v17  ;;  %v3659_v24 = vpop.f32.mrb[96].mxu0 }
 0x815   :  { %v2992_v12 = vadd.f32 %v3659_v24, %v5902_v52  ;;  %v2983_v38 = vpop.f32.mrb[97].mxu0 }
 0x816   :  { %v2984_v42 = vadd.f32 %v5902_v52, %v2983_v38  ;;  %v3660_v14 = vpop.f32.mrb[98].mxu0 }
 0x817   :  { %v3052_v8 = vadd.f32 %v3948_v48, %v2992_v12  ;;  %v2995_v15 = vadd.f32 %v3660_v14, %v5902_v52  ;;  %v2986_v57 = vpop.f32.mrb[99].mxu0 }
 0x818   :  { %v3050_v39 = vadd.f32 %v3949_v16, %v2984_v42  ;;  %v2987_v53 = vadd.f32 %v5902_v52, %v2986_v57 }
 0x819   :  { %3084 = vst.msk [vmem:[#allocation23 + $0xb0] sm:$0xff] %vm242_vm1, %v3052_v8  ;;  %v3053_v37 = vadd.f32 %v3950_v30, %v2995_v15 }
 0x81a   :  { %3082 = vst.msk [vmem:[#allocation23 + $0xa0] sm:$0xff] %vm242_vm1, %v3050_v39  ;;  %v3051_v50 = vadd.f32 %v3951_v13, %v2987_v53 }
 0x81b   :  { %3085 = vst.msk [vmem:[#allocation23 + $0xb8] sm:$0xff] %vm242_vm1, %v3053_v37 }
 0x81c   :  { %3083 = vst.msk [vmem:[#allocation23 + $0xa8] sm:$0xff] %vm242_vm1, %v3051_v50  ;;  %v3663_v43 = vpop.f32.mrb[100].mxu0 }
 0x81d   :  { %v3008_v60 = vadd.f32 %v3663_v43, %v5902_v52  ;;  %v2999_v4 = vpop.f32.mrb[101].mxu0 }
 0x81e   :  { %v3000_v22 = vadd.f32 %v5902_v52, %v2999_v4  ;;  %v3664_v26 = vpop.f32.mrb[102].mxu0 }
 0x81f   :  { %v3056_v59 = vadd.f32 %v3952_v62, %v3008_v60  ;;  %v3011_v11 = vadd.f32 %v3664_v26, %v5902_v52  ;;  %v3002_v55 = vpop.f32.mrb[103].mxu0 }
 0x820   :  { %v3054_v54 = vadd.f32 %v3953_v61, %v3000_v22  ;;  %v3003_v58 = vadd.f32 %v5902_v52, %v3002_v55 }
 0x821   :  { %3088 = vst.msk [vmem:[#allocation23 + $0xd0] sm:$0xff] %vm242_vm1, %v3056_v59  ;;  %v3057_v51 = vadd.f32 %v3954_v31, %v3011_v11 }
 0x822   :  { %3086 = vst.msk [vmem:[#allocation23 + $0xc0] sm:$0xff] %vm242_vm1, %v3054_v54  ;;  %v3055_v3 = vadd.f32 %v3955_v7, %v3003_v58 }
 0x823   :  { %3089 = vst.msk [vmem:[#allocation23 + $0xd8] sm:$0xff] %vm242_vm1, %v3057_v51 }
 0x824   :  { %3087 = vst.msk [vmem:[#allocation23 + $0xc8] sm:$0xff] %vm242_vm1, %v3055_v3  ;;  %v3667_v9 = vpop.f32.mrb[104].mxu0 }
 0x825   :  { %v3024_v6 = vadd.f32 %v3667_v9, %v5902_v52  ;;  %v3015_v33 = vpop.f32.mrb[105].mxu0 }
 0x826   :  { %v3016_v1 = vadd.f32 %v5902_v52, %v3015_v33  ;;  %v3668_v46 = vpop.f32.mrb[106].mxu0 }
 0x827   :  { %v3060_v47 = vadd.f32 %v3956_v41, %v3024_v6  ;;  %v3027_v35 = vadd.f32 %v3668_v46, %v5902_v52  ;;  %v3018_v36 = vpop.f32.mrb[107].mxu0 }
 0x828   :  { %v3058_v2 = vadd.f32 %v3957_v49, %v3016_v1  ;;  %v3019_v44 = vadd.f32 %v5902_v52, %v3018_v36 }
 0x829   :  { %3092 = vst.msk [vmem:[#allocation23 + $0xf0] sm:$0xff] %vm242_vm1, %v3060_v47  ;;  %v3061_v18 = vadd.f32 %v3958_v34, %v3027_v35 }
 0x82a   :  { %3090 = vst.msk [vmem:[#allocation23 + $0xe0] sm:$0xff] %vm242_vm1, %v3058_v2  ;;  %v3059_v23 = vadd.f32 %v3959_v21, %v3019_v44 }
 0x82b   :  { %3093 = vst.msk [vmem:[#allocation23 + $0xf8] sm:$0xff] %vm242_vm1, %v3061_v18 }
 0x82c   :  { %3091 = vst.msk [vmem:[#allocation23 + $0xe8] sm:$0xff] %vm242_vm1, %v3059_v23 }
 0x82d   :  { %4257 = shalt.err (!%p4254_p10)
}
 0x82e   :  { %s4258_s18 = scalar_lea.hbm %s5996_s13, 4096 }
 0x82f   :  { %p4259_p11 = scmp.ne.s32.totalorder %s5996_s13, %s4258_s18  ;;  %p4262_p12 = scmp.lt.u32.totalorder %s4258_s18, %s5996_s13 }
 0x831   :  { %p4264_p13 = pnand %p4262_p12, %p4259_p11 }
 0x833   :  { %4267 = shalt.err (!%p4264_p13)
}
 0x834   :  { %3105 = dma.vmem_to_hbm [thread:$0]  %s3100_s15, 4096, %s5996_s13, [#allocation4], %s4286_s20, %s4286_s20, %s4287_s21  }
 0x835   :  { %4282 = dma.done.wait [#allocation4], 4096  }
 0x836   :  { %4283 = vsyncadd [#allocation4], 4294963200 }
 0x837   :  { %3109 = vsyncpa [#allocation3], 1 }
 0x838   :  { %3110 = vsyncpa [#allocation6], 1 }
 0x839   :  { %3111 = vsyncpa [#allocation9], 1 }
 0x83a   :  { %3112 = vsyncpa [#allocation12], 1 }
 0x83b   :  { %3113 = vsyncpa [#allocation15], 1 }
 0x83c   :  { %3114 = vsyncpa [#allocation18], 1 }
 0x83d   :  { %3115 = vsyncpa [#allocation21], 1 }
 0x83e   :  { %3116 = vsyncpa [#allocation4], 1 }

</bundles_post_ra>
